<compile_context>
chip_gen: v5e
topology: v5e:2x2
jax: 0.10.0
libtpu: 0.0.40
codegen_flags: <defaults>
</compile_context>

<pallas_src>
import math

import numpy as np
import jax
import jax.numpy as jnp
from jax import lax
from jax.experimental import pallas as pl
from jax.experimental.pallas import tpu as pltpu

ALPHA = 1.6732632423543772
SCALE = 1.0507009873554805


# ----------------------------------------------------------------------------
# host-side helpers
# ----------------------------------------------------------------------------
def _uniform(rng, shape, bound):
    return rng.uniform(-bound, bound, size=shape).astype(np.float32)


def _bf16(a):
    # Round once on the host so kernel slabs and the numpy reference use the
    # exact same effective (bf16-representable) weights / biases.
    return np.asarray(a, np.float32).astype(jnp.bfloat16).astype(np.float32)


class _Slab:
    """Packs 2-D constants into one (rows, width) bf16 slab.  Every piece starts
    at an 8-aligned row, columns start at 0, so the kernel can slice pieces out
    with static offsets.  Collapses ~40 tiny inputs into 3 DMA-friendly arrays."""

    def __init__(self, width):
        self.width = width
        self.row = 0
        self.pieces = []
        self.idx = {}

    def add(self, name, arr):
        arr = np.asarray(arr, np.float32)
        r, c = arr.shape
        assert c <= self.width, (name, arr.shape, self.width)
        self.idx[name] = (self.row, r, c)
        self.pieces.append((self.row, arr))
        self.row += -(-r // 8) * 8

    def build(self):
        rows = max(8, self.row)
        slab = np.zeros((rows, self.width), np.float32)
        for off, a in self.pieces:
            slab[off:off + a.shape[0], :a.shape[1]] = a
        return jnp.asarray(slab, jnp.bfloat16), self.idx


def conv1d_dense(w, bias, l_in, stride, pad):
    """w: (Cout, Cin, K) -> dense (Cin*Lin, Cout*Lout), channel-major flattening."""
    c_out, c_in, k = w.shape
    l_out = (l_in + 2 * pad - k) // stride + 1
    m = np.zeros((c_in * l_in, c_out * l_out), np.float32)
    out_cols = np.arange(c_out) * l_out
    for t in range(l_out):
        for kk in range(k):
            i = t * stride - pad + kk
            if 0 <= i < l_in:
                for ci in range(c_in):
                    m[ci * l_in + i, out_cols + t] += w[:, ci, kk]
    bias_vec = np.repeat(bias, l_out).astype(np.float32)
    return m, bias_vec, l_out


def convtr1d_dense(w, bias, l_in, stride, pad):
    """w: (Cin, Cout, K) (PyTorch ConvTranspose1d layout).  Reference only."""
    c_in, c_out, k = w.shape
    l_out = (l_in - 1) * stride - 2 * pad + k
    m = np.zeros((c_in * l_in, c_out * l_out), np.float32)
    out_cols = np.arange(c_out) * l_out
    for t in range(l_in):
        for kk in range(k):
            j = t * stride - pad + kk
            if 0 <= j < l_out:
                for ci in range(c_in):
                    m[ci * l_in + t, out_cols + j] += w[ci, :, kk]
    bias_vec = np.repeat(bias, l_out).astype(np.float32)
    return m, bias_vec, l_out


def build_decoder_struct(ws, bs, pads, batch, slab):
    """ConvTranspose1d(k=2, s=2) chain: each final output position j depends on
    exactly one position of every intermediate layer, so the decoder is a
    per-position channel MLP with a binary tap per layer.  Layout in kernel:
    rows = (decoder-batch-row, channel), lanes = the 100 output positions.
    Mid layers are stored fused:  Wcat = [W0 | W1]."""
    b2 = 2 * batch
    f32 = np.float32
    nj = 100
    j = np.arange(nj)

    pos = j.copy()
    taps = []
    for p in reversed(pads):                       # layer 5 .. layer 1
        taps.append((pos + p) % 2)
        pos = (pos + p) // 2
    tap5, tap4, tap3, tap2, tap1 = taps
    pos0 = pos                                     # layer-1 input position in [0, 8)
    assert pos0.min() >= 0 and pos0.max() < 8

    gmat = np.zeros((8, nj), f32)                  # gather one yk entry per position
    gmat[pos0, j] = 1.0
    slab.add("gmat", gmat)

    w1, b1 = ws[0], bs[0]                          # (1, 8, 2), (8,)
    slab.add("w1row", np.tile(w1[0][:, tap1], (b2, 1)))                    # (b2*8, 100)
    slab.add("b1mat", np.tile(np.tile(b1, b2)[:, None], (1, nj)))          # (b2*8, 100)

    def add_mid(w, bias, name_w, name_b):          # w: (Cin, Cout, 2)
        eye = np.eye(b2, dtype=f32)
        w0 = np.kron(eye, w[:, :, 0].T)            # (b2*Cout, b2*Cin)
        w1_ = np.kron(eye, w[:, :, 1].T)
        slab.add(name_w, np.concatenate([w0, w1_], axis=1))                # fused Wcat
        slab.add(name_b, np.tile(np.tile(bias, b2)[:, None], (1, nj)))

    add_mid(ws[1], bs[1], "wcat2", "b2mat")
    add_mid(ws[2], bs[2], "wcat3", "b3mat")
    add_mid(ws[3], bs[3], "wcat4", "b4mat")

    w5, b5 = ws[4], bs[4]                          # (64, 1, 2), (1,)
    slab.add("w5row", np.tile(w5[:, 0, :][:, tap5], (b2, 1)))              # (b2*64, 100)
    slab.add("masks", np.stack([tap2, tap3, tap4]).astype(f32))            # (3, 100)
    return float(b5[0])                            # baked as a compile-time scalar


def build_params(batch, seed=0):
    rng = np.random.default_rng(seed)
    ref = {"enc": [], "k": [], "dec": []}

    enc_slab_p = _Slab(704)    # widest encoder matrix is (544, 704)
    k_slab_p = _Slab(384)      # widest K matrix is (128, 384)
    dec_slab_p = _Slab(256)    # widest decoder constant is (256, 256)

    # --- encoder: Conv1d (cin, cout, k, stride, pad) ---
    enc_cfg = [(1, 8, 3, 2, 2), (8, 16, 3, 2, 3), (16, 32, 3, 2, 3),
               (32, 64, 3, 2, 3), (64, 1, 3, 2, 3)]
    l = 104
    for li, (cin, cout, k, s, p) in enumerate(enc_cfg):
        bound = 1.0 / math.sqrt(cin * k)
        w = _bf16(_uniform(rng, (cout, cin, k), bound))
        b = _bf16(_uniform(rng, (cout,), bound))
        m, bias, l = conv1d_dense(w, b, l, s, p)
        ref["enc"].append((m, bias[None, :]))
        if li == 0:                                # split x0-rows / u-rows (no host concat)
            enc_slab_p.add("m1a", m[:100, :])
            enc_slab_p.add("m1b", m[100:, :])
        elif li == 4:                              # (704, 8) stored transposed (lane-dense)
            enc_slab_p.add("m5T", m.T)
        else:
            enc_slab_p.add(f"m{li + 1}", m)
        enc_slab_p.add(f"eb{li + 1}", bias[None, :])
    assert l == 8

    # --- K: Conv1d on u (length 4) ---
    k_cfg = [(1, 8, 3, 1, 1), (8, 16, 3, 1, 1), (16, 32, 3, 1, 1),
             (32, 64, 3, 1, 2), (64, 8, 3, 1, 2)]
    l = 4
    for li, (cin, cout, k, s, p) in enumerate(k_cfg):
        bound = 1.0 / math.sqrt(cin * k)
        w = _bf16(_uniform(rng, (cout, cin, k), bound))
        b = _bf16(_uniform(rng, (cout,), bound))
        m, bias, l = conv1d_dense(w, b, l, s, p)
        ref["k"].append((m, bias[None, :]))
        if li == 4:                                # (384, 64) stored transposed
            k_slab_p.add("km5T", m.T)
        else:
            k_slab_p.add(f"km{li + 1}", m)
        k_slab_p.add(f"kb{li + 1}", bias[None, :])
    assert l == 8
    # constant matrices for the batched (8x8)@(8,) Koopman matvec (0/1, bf16-exact)
    t_mat = np.zeros((8, 64), np.float32)          # replicate yk0 along 8 row-groups
    s_mat = np.zeros((64, 8), np.float32)          # sum each row-group of 8
    for i in range(8):
        for jj in range(8):
            t_mat[jj, i * 8 + jj] = 1.0
            s_mat[i * 8 + jj, i] = 1.0
    k_slab_p.add("tmat", t_mat)
    k_slab_p.add("smatT", s_mat.T)

    # --- decoder: ConvTranspose1d (cin, cout, k, stride, pad) ---
    dec_cfg = [(1, 8, 2, 2, 2), (8, 16, 2, 2, 3), (16, 32, 2, 2, 3),
               (32, 64, 2, 2, 3), (64, 1, 2, 2, 4)]
    dec_w, dec_b, pads = [], [], []
    l = 8
    for cin, cout, k, s, p in dec_cfg:
        bound = 1.0 / math.sqrt(cin * k)
        w = _bf16(_uniform(rng, (cin, cout, k), bound))
        b = _bf16(_uniform(rng, (cout,), bound))
        dec_w.append(w)
        dec_b.append(b)
        pads.append(p)
        m, bias, l = convtr1d_dense(w, b, l, s, p)  # dense form used by the reference only
        ref["dec"].append((m, bias[None, :]))
    assert l == 100
    b5 = build_decoder_struct(dec_w, dec_b, pads, batch, dec_slab_p)

    enc_slab, eidx = enc_slab_p.build()
    k_slab, kidx = k_slab_p.build()
    dec_slab, didx = dec_slab_p.build()
    return (enc_slab, eidx, k_slab, kidx, dec_slab, didx, b5), ref


# ----------------------------------------------------------------------------
# In-kernel math
# ----------------------------------------------------------------------------
def _selu(x):
    return SCALE * jnp.where(x > 0, x, ALPHA * (jnp.exp(jnp.minimum(x, 0.0)) - 1.0))


def make_kernel(eidx, kidx, didx, b5, batch):
    B = batch

    def _w(ref, idx, name):
        off, r, c = idx[name]
        return ref[off:off + r, 0:c]

    def _mm(a, ref, idx, name):
        # activation cast to bf16 (weights already bf16) -> single-pass bf16 MXU,
        # f32 accumulation; no f32 copy of the weight is materialized.
        return jnp.dot(a.astype(jnp.bfloat16), _w(ref, idx, name),
                       preferred_element_type=jnp.float32)

    def _mmt(a, ref, idx, name):
        # "A @ W.T" with W stored transposed (lane-dense storage of narrow matrices).
        return lax.dot_general(a.astype(jnp.bfloat16), _w(ref, idx, name),
                               dimension_numbers=(((1,), (1,)), ((), ())),
                               preferred_element_type=jnp.float32)

    def kernel(x0_ref, u_ref, enc_ref, k_ref, dec_hbm, o_ref, dec_vmem, dec_sem):
        # Kick off the decoder-constant DMA now; it overlaps encoder/K compute.
        dec_cp = pltpu.make_async_copy(dec_hbm, dec_vmem, dec_sem)
        dec_cp.start()

        x0 = x0_ref[...]
        u = u_ref[...]

        # ---------------- encoder (5 Conv1d layers as dense matmuls) ----------
        h = _selu(_mm(x0, enc_ref, eidx, "m1a") + _mm(u, enc_ref, eidx, "m1b")
                  + _w(enc_ref, eidx, "eb1"))
        h = _selu(_mm(h, enc_ref, eidx, "m2") + _w(enc_ref, eidx, "eb2"))
        h = _selu(_mm(h, enc_ref, eidx, "m3") + _w(enc_ref, eidx, "eb3"))
        h = _selu(_mm(h, enc_ref, eidx, "m4") + _w(enc_ref, eidx, "eb4"))
        yk0 = _mmt(h, enc_ref, eidx, "m5T") + _w(enc_ref, eidx, "eb5")      # (B, 8)

        # ---------------- K network + Koopman matvec --------------------------
        g = _selu(_mm(u, k_ref, kidx, "km1") + _w(k_ref, kidx, "kb1"))
        g = _selu(_mm(g, k_ref, kidx, "km2") + _w(k_ref, kidx, "kb2"))
        g = _selu(_mm(g, k_ref, kidx, "km3") + _w(k_ref, kidx, "kb3"))
        g = _selu(_mm(g, k_ref, kidx, "km4") + _w(k_ref, kidx, "kb4"))
        ku = _mmt(g, k_ref, kidx, "km5T") + _w(k_ref, kidx, "kb5")          # (B, 64)
        y0_rep = _mm(yk0, k_ref, kidx, "tmat")                              # (B, 64)
        yk1 = _mmt(ku * y0_rep, k_ref, kidx, "smatT")                       # (B, 8)

        # ---------------- decoder on [yk1; yk0] (2B rows), structured ----------
        dec_cp.wait()                               # decoder constants now in VMEM
        yk_both = jnp.concatenate([yk1, yk0], axis=0)                       # (2B, 8)

        g0 = _mm(yk_both, dec_vmem, didx, "gmat")                           # (2B, 100)
        # layer 1: repeat each batch row over 8 channels (layout op, no matmul)
        h = jnp.broadcast_to(g0[:, None, :], (2 * B, 8, 100)).reshape(2 * B * 8, 100)
        h = _selu(h * _w(dec_vmem, didx, "w1row") + _w(dec_vmem, didx, "b1mat"))

        masks = _w(dec_vmem, didx, "masks")                                 # (3, 100)

        def mid(hh, wname, bname, mi):
            m = masks[mi:mi + 1, :].astype(jnp.float32)                     # (1, 100)
            x = jnp.concatenate([hh * (1.0 - m), hh * m], axis=0).astype(jnp.bfloat16)
            out = jnp.dot(_w(dec_vmem, didx, wname), x,
                          preferred_element_type=jnp.float32)
            return _selu(out + _w(dec_vmem, didx, bname))

        h = mid(h, "wcat2", "b2mat", 0)                                     # (2B*16, 100)
        h = mid(h, "wcat3", "b3mat", 1)                                     # (2B*32, 100)
        h = mid(h, "wcat4", "b4mat", 2)                                     # (2B*64, 100)

        # layer 5: per-row weight, then sum the 64 channel rows of each batch row
        hw = h * _w(dec_vmem, didx, "w5row")                                # (2B*64, 100)
        dec_out = jnp.sum(hw.reshape(2 * B, 64, 100), axis=1) + b5          # (2B, 100)

        # single full-width store: decoder at lanes [0:100], yk at [100:108],
        # zero padding elsewhere (no stale VMEM lanes).
        pad = jnp.zeros((2 * B, 20), jnp.float32)
        o_ref[...] = jnp.concatenate([dec_out, yk_both, pad], axis=1)

    return kernel


# ----------------------------------------------------------------------------
# pallas_call wrapper
# ----------------------------------------------------------------------------
def deep_koopman_forward(x0, u, params):
    enc_slab, eidx, k_slab, kidx, dec_slab, didx, b5 = params
    b = x0.shape[0]
    kernel = make_kernel(eidx, kidx, didx, b5, b)

    def full_spec(a):
        return pl.BlockSpec(a.shape, lambda i: (0,) * a.ndim)

    slab = pl.pallas_call(
        kernel,
        out_shape=jax.ShapeDtypeStruct((2 * b, 128), jnp.float32),
        grid=(1,),
        in_specs=[full_spec(x0), full_spec(u),
                  full_spec(enc_slab), full_spec(k_slab),
                  pl.BlockSpec(memory_space=pl.ANY)],     # decoder slab: manual DMA
        out_specs=pl.BlockSpec((2 * b, 128), lambda i: (0, 0)),
        scratch_shapes=[pltpu.VMEM(dec_slab.shape, jnp.bfloat16),
                        pltpu.SemaphoreType.DMA],
        compiler_params=pltpu.CompilerParams(
            dimension_semantics=("arbitrary",),
            vmem_limit_bytes=32 * 1024 * 1024),
    )(x0, u, enc_slab, k_slab, dec_slab)

    x1 = slab[:b, 0:100]
    x0_hat = slab[b:, 0:100]
    yk1 = slab[:b, 100:108]
    yk0 = slab[b:, 100:108]
    return x1, x0_hat, yk0, yk1


# ----------------------------------------------------------------------------
# Pure-numpy reference (same bf16-rounded effective weights, f32 math)
# ----------------------------------------------------------------------------
def _np_selu(x):
    return SCALE * np.where(x > 0, x, ALPHA * (np.exp(np.minimum(x, 0.0)) - 1.0))


def _np_chain5(x, layers):
    h = x
    for i, (m, b) in enumerate(layers):
        h = h @ m + b
        if i < 4:
            h = _np_selu(h)
    return h


def reference_forward(x0, u, ref):
    x0 = np.asarray(x0, np.float32)
    u = np.asarray(u, np.float32)
    xx = np.concatenate([x0, u], axis=1)
    yk0 = _np_chain5(xx, ref["enc"])
    ku = _np_chain5(u, ref["k"]).reshape(-1, 8, 8)
    yk1 = np.einsum("bij,bj->bi", ku, yk0)
    x1 = _np_chain5(yk1, ref["dec"])
    x0_hat = _np_chain5(yk0, ref["dec"])
    return x1, x0_hat, yk0, yk1


if __name__ == "__main__":
    B = 2
    key = jax.random.PRNGKey(0)
    kx, kk = jax.random.split(key)
    x0 = jax.random.normal(kx, (B, 100), dtype=jnp.float32)
    u = jax.random.normal(kk, (B, 4), dtype=jnp.float32)

    params, ref = build_params(batch=B, seed=0)

    outs = deep_koopman_forward(x0, u, params)
    outs = jax.block_until_ready(outs)
    x1, x0_hat, yk0, yk1 = outs

    assert x1.shape == (B, 100) and x0_hat.shape == (B, 100)
    assert yk0.shape == (B, 8) and yk1.shape == (B, 8)

    # Reference uses the same bf16-rounded weights but f32 activations; the
    # kernel rounds activations to bf16 before every MXU matmul, hence the
    # slightly looser tolerance.
    want = reference_forward(x0, u, ref)
    for got, exp in zip((x1, x0_hat, yk0, yk1), want):
        np.testing.assert_allclose(np.asarray(got), exp, rtol=5e-2, atol=5e-2)

    print("KERNEL_OK")
</pallas_src>

<mosaic_0001>
module attributes {stable_mosaic.version = 11 : i64} {
  func.func @kernel(%arg0: i32, %arg1: memref<2x100xf32, #tpu.memory_space<vmem>>, %arg2: memref<2x4xf32, #tpu.memory_space<vmem>>, %arg3: memref<1592x704xbf16, #tpu.memory_space<vmem>>, %arg4: memref<352x384xbf16, #tpu.memory_space<vmem>>, %arg5: memref<1232x256xbf16, #tpu.memory_space<any>>, %arg6: memref<4x128xf32, #tpu.memory_space<vmem>>, %arg7: memref<1232x256xbf16, #tpu.memory_space<vmem>>, %arg8: memref<!tpu.dma_semaphore, #tpu.memory_space<semaphore_mem>>) attributes {dimension_semantics = [#tpu.dimension_semantics<arbitrary>], iteration_bounds = array<i64: 1>, scalar_prefetch = 0 : i64, scratch_operands = 2 : i64, tpu.core_type = #tpu.core_type<tc>, window_params = [{pipeline_mode = #tpu.pipeline_mode<synchronous>, transform_indices = @transform_0, window_bounds = array<i64: 2, 100>}, {pipeline_mode = #tpu.pipeline_mode<synchronous>, transform_indices = @transform_1, window_bounds = array<i64: 2, 4>}, {pipeline_mode = #tpu.pipeline_mode<synchronous>, transform_indices = @transform_2, window_bounds = array<i64: 1592, 704>}, {pipeline_mode = #tpu.pipeline_mode<synchronous>, transform_indices = @transform_3, window_bounds = array<i64: 352, 384>}, {}, {pipeline_mode = #tpu.pipeline_mode<synchronous>, transform_indices = @transform_5, window_bounds = array<i64: 4, 128>}]} {
    tpu.enqueue_dma source(%arg5 : memref<1232x256xbf16, #tpu.memory_space<any>>) target(%arg7 : memref<1232x256xbf16, #tpu.memory_space<vmem>>) target_semaphore(%arg8 : memref<!tpu.dma_semaphore, #tpu.memory_space<semaphore_mem>>)
    %c0 = arith.constant 0 : index
    %c0_0 = arith.constant 0 : index
    %0 = vector.load %arg1[%c0, %c0_0] : memref<2x100xf32, #tpu.memory_space<vmem>>, vector<2x100xf32>
    %c0_1 = arith.constant 0 : index
    %c0_2 = arith.constant 0 : index
    %1 = vector.load %arg2[%c0_1, %c0_2] : memref<2x4xf32, #tpu.memory_space<vmem>>, vector<2x4xf32>
    %2 = arith.truncf %0 : vector<2x100xf32> to vector<2x100xbf16>
    %c0_3 = arith.constant 0 : index
    %c0_4 = arith.constant 0 : index
    %3 = vector.load %arg3[%c0_3, %c0_4] : memref<1592x704xbf16, #tpu.memory_space<vmem>>, vector<100x424xbf16>
    %cst = arith.constant dense<0.000000e+00> : vector<2x424xf32>
    %4 = tpu.matmul %2, %3, %cst {dimension_numbers = #tpu.dot_dimension_numbers<[1], [0], [0], [1], [0, 0, 1, 1], [], []>} : vector<2x100xbf16>, vector<100x424xbf16>, vector<2x424xf32> -> vector<2x424xf32>
    %5 = arith.truncf %1 : vector<2x4xf32> to vector<2x4xbf16>
    %c104 = arith.constant 104 : index
    %c0_5 = arith.constant 0 : index
    %6 = vector.load %arg3[%c104, %c0_5] : memref<1592x704xbf16, #tpu.memory_space<vmem>>, vector<4x424xbf16>
    %cst_6 = arith.constant dense<0.000000e+00> : vector<2x424xf32>
    %7 = tpu.matmul %5, %6, %cst_6 {dimension_numbers = #tpu.dot_dimension_numbers<[1], [0], [0], [1], [0, 0, 1, 1], [], []>} : vector<2x4xbf16>, vector<4x424xbf16>, vector<2x424xf32> -> vector<2x424xf32>
    %8 = arith.addf %4, %7 : vector<2x424xf32>
    %c112 = arith.constant 112 : index
    %c0_7 = arith.constant 0 : index
    %9 = vector.load %arg3[%c112, %c0_7] : memref<1592x704xbf16, #tpu.memory_space<vmem>>, vector<1x424xbf16>
    %10 = arith.extf %9 : vector<1x424xbf16> to vector<1x424xf32>
    %11 = vector.broadcast %10 : vector<1x424xf32> to vector<2x424xf32>
    %12 = arith.addf %8, %11 : vector<2x424xf32>
    %cst_8 = arith.constant 0.000000e+00 : f32
    %13 = vector.broadcast %cst_8 : f32 to vector<2x424xf32>
    %14 = arith.cmpf ogt, %12, %13 : vector<2x424xf32>
    %cst_9 = arith.constant 0.000000e+00 : f32
    %15 = vector.broadcast %cst_9 : f32 to vector<2x424xf32>
    %16 = arith.minimumf %12, %15 : vector<2x424xf32>
    %17 = math.exp %16 : vector<2x424xf32>
    %cst_10 = arith.constant 1.000000e+00 : f32
    %18 = vector.broadcast %cst_10 : f32 to vector<2x424xf32>
    %19 = arith.subf %17, %18 : vector<2x424xf32>
    %cst_11 = arith.constant 1.67326319 : f32
    %20 = vector.broadcast %cst_11 : f32 to vector<2x424xf32>
    %21 = arith.mulf %20, %19 : vector<2x424xf32>
    %22 = arith.select %14, %12, %21 : vector<2x424xi1>, vector<2x424xf32>
    %cst_12 = arith.constant 1.05070102 : f32
    %23 = vector.broadcast %cst_12 : f32 to vector<2x424xf32>
    %24 = arith.mulf %23, %22 : vector<2x424xf32>
    %25 = arith.truncf %24 : vector<2x424xf32> to vector<2x424xbf16>
    %c120 = arith.constant 120 : index
    %c0_13 = arith.constant 0 : index
    %26 = vector.load %arg3[%c120, %c0_13] : memref<1592x704xbf16, #tpu.memory_space<vmem>>, vector<424x464xbf16>
    %cst_14 = arith.constant dense<0.000000e+00> : vector<2x464xf32>
    %27 = tpu.matmul %25, %26, %cst_14 {dimension_numbers = #tpu.dot_dimension_numbers<[1], [0], [0], [1], [0, 0, 1, 1], [], []>} : vector<2x424xbf16>, vector<424x464xbf16>, vector<2x464xf32> -> vector<2x464xf32>
    %c544 = arith.constant 544 : index
    %c0_15 = arith.constant 0 : index
    %28 = vector.load %arg3[%c544, %c0_15] : memref<1592x704xbf16, #tpu.memory_space<vmem>>, vector<1x464xbf16>
    %29 = arith.extf %28 : vector<1x464xbf16> to vector<1x464xf32>
    %30 = vector.broadcast %29 : vector<1x464xf32> to vector<2x464xf32>
    %31 = arith.addf %27, %30 : vector<2x464xf32>
    %cst_16 = arith.constant 0.000000e+00 : f32
    %32 = vector.broadcast %cst_16 : f32 to vector<2x464xf32>
    %33 = arith.cmpf ogt, %31, %32 : vector<2x464xf32>
    %cst_17 = arith.constant 0.000000e+00 : f32
    %34 = vector.broadcast %cst_17 : f32 to vector<2x464xf32>
    %35 = arith.minimumf %31, %34 : vector<2x464xf32>
    %36 = math.exp %35 : vector<2x464xf32>
    %cst_18 = arith.constant 1.000000e+00 : f32
    %37 = vector.broadcast %cst_18 : f32 to vector<2x464xf32>
    %38 = arith.subf %36, %37 : vector<2x464xf32>
    %cst_19 = arith.constant 1.67326319 : f32
    %39 = vector.broadcast %cst_19 : f32 to vector<2x464xf32>
    %40 = arith.mulf %39, %38 : vector<2x464xf32>
    %41 = arith.select %33, %31, %40 : vector<2x464xi1>, vector<2x464xf32>
    %cst_20 = arith.constant 1.05070102 : f32
    %42 = vector.broadcast %cst_20 : f32 to vector<2x464xf32>
    %43 = arith.mulf %42, %41 : vector<2x464xf32>
    %44 = arith.truncf %43 : vector<2x464xf32> to vector<2x464xbf16>
    %c552 = arith.constant 552 : index
    %c0_21 = arith.constant 0 : index
    %45 = vector.load %arg3[%c552, %c0_21] : memref<1592x704xbf16, #tpu.memory_space<vmem>>, vector<464x544xbf16>
    %cst_22 = arith.constant dense<0.000000e+00> : vector<2x544xf32>
    %46 = tpu.matmul %44, %45, %cst_22 {dimension_numbers = #tpu.dot_dimension_numbers<[1], [0], [0], [1], [0, 0, 1, 1], [], []>} : vector<2x464xbf16>, vector<464x544xbf16>, vector<2x544xf32> -> vector<2x544xf32>
    %c1016 = arith.constant 1016 : index
    %c0_23 = arith.constant 0 : index
    %47 = vector.load %arg3[%c1016, %c0_23] : memref<1592x704xbf16, #tpu.memory_space<vmem>>, vector<1x544xbf16>
    %48 = arith.extf %47 : vector<1x544xbf16> to vector<1x544xf32>
    %49 = vector.broadcast %48 : vector<1x544xf32> to vector<2x544xf32>
    %50 = arith.addf %46, %49 : vector<2x544xf32>
    %cst_24 = arith.constant 0.000000e+00 : f32
    %51 = vector.broadcast %cst_24 : f32 to vector<2x544xf32>
    %52 = arith.cmpf ogt, %50, %51 : vector<2x544xf32>
    %cst_25 = arith.constant 0.000000e+00 : f32
    %53 = vector.broadcast %cst_25 : f32 to vector<2x544xf32>
    %54 = arith.minimumf %50, %53 : vector<2x544xf32>
    %55 = math.exp %54 : vector<2x544xf32>
    %cst_26 = arith.constant 1.000000e+00 : f32
    %56 = vector.broadcast %cst_26 : f32 to vector<2x544xf32>
    %57 = arith.subf %55, %56 : vector<2x544xf32>
    %cst_27 = arith.constant 1.67326319 : f32
    %58 = vector.broadcast %cst_27 : f32 to vector<2x544xf32>
    %59 = arith.mulf %58, %57 : vector<2x544xf32>
    %60 = arith.select %52, %50, %59 : vector<2x544xi1>, vector<2x544xf32>
    %cst_28 = arith.constant 1.05070102 : f32
    %61 = vector.broadcast %cst_28 : f32 to vector<2x544xf32>
    %62 = arith.mulf %61, %60 : vector<2x544xf32>
    %63 = arith.truncf %62 : vector<2x544xf32> to vector<2x544xbf16>
    %c1024 = arith.constant 1024 : index
    %c0_29 = arith.constant 0 : index
    %64 = vector.load %arg3[%c1024, %c0_29] : memref<1592x704xbf16, #tpu.memory_space<vmem>>, vector<544x704xbf16>
    %cst_30 = arith.constant dense<0.000000e+00> : vector<2x704xf32>
    %65 = tpu.matmul %63, %64, %cst_30 {dimension_numbers = #tpu.dot_dimension_numbers<[1], [0], [0], [1], [0, 0, 1, 1], [], []>} : vector<2x544xbf16>, vector<544x704xbf16>, vector<2x704xf32> -> vector<2x704xf32>
    %c1568 = arith.constant 1568 : index
    %c0_31 = arith.constant 0 : index
    %66 = vector.load %arg3[%c1568, %c0_31] : memref<1592x704xbf16, #tpu.memory_space<vmem>>, vector<1x704xbf16>
    %67 = arith.extf %66 : vector<1x704xbf16> to vector<1x704xf32>
    %68 = vector.broadcast %67 : vector<1x704xf32> to vector<2x704xf32>
    %69 = arith.addf %65, %68 : vector<2x704xf32>
    %cst_32 = arith.constant 0.000000e+00 : f32
    %70 = vector.broadcast %cst_32 : f32 to vector<2x704xf32>
    %71 = arith.cmpf ogt, %69, %70 : vector<2x704xf32>
    %cst_33 = arith.constant 0.000000e+00 : f32
    %72 = vector.broadcast %cst_33 : f32 to vector<2x704xf32>
    %73 = arith.minimumf %69, %72 : vector<2x704xf32>
    %74 = math.exp %73 : vector<2x704xf32>
    %cst_34 = arith.constant 1.000000e+00 : f32
    %75 = vector.broadcast %cst_34 : f32 to vector<2x704xf32>
    %76 = arith.subf %74, %75 : vector<2x704xf32>
    %cst_35 = arith.constant 1.67326319 : f32
    %77 = vector.broadcast %cst_35 : f32 to vector<2x704xf32>
    %78 = arith.mulf %77, %76 : vector<2x704xf32>
    %79 = arith.select %71, %69, %78 : vector<2x704xi1>, vector<2x704xf32>
    %cst_36 = arith.constant 1.05070102 : f32
    %80 = vector.broadcast %cst_36 : f32 to vector<2x704xf32>
    %81 = arith.mulf %80, %79 : vector<2x704xf32>
    %82 = arith.truncf %81 : vector<2x704xf32> to vector<2x704xbf16>
    %c1576 = arith.constant 1576 : index
    %c0_37 = arith.constant 0 : index
    %83 = vector.load %arg3[%c1576, %c0_37] : memref<1592x704xbf16, #tpu.memory_space<vmem>>, vector<8x704xbf16>
    %cst_38 = arith.constant dense<0.000000e+00> : vector<2x8xf32>
    %84 = tpu.matmul %82, %83, %cst_38 {dimension_numbers = #tpu.dot_dimension_numbers<[1], [1], [0], [0], [0, 0, 1, 0], [], []>} : vector<2x704xbf16>, vector<8x704xbf16>, vector<2x8xf32> -> vector<2x8xf32>
    %c1584 = arith.constant 1584 : index
    %c0_39 = arith.constant 0 : index
    %85 = vector.load %arg3[%c1584, %c0_39] : memref<1592x704xbf16, #tpu.memory_space<vmem>>, vector<1x8xbf16>
    %86 = arith.extf %85 : vector<1x8xbf16> to vector<1x8xf32>
    %87 = vector.broadcast %86 : vector<1x8xf32> to vector<2x8xf32>
    %88 = arith.addf %84, %87 : vector<2x8xf32>
    %89 = arith.truncf %1 : vector<2x4xf32> to vector<2x4xbf16>
    %c0_40 = arith.constant 0 : index
    %c0_41 = arith.constant 0 : index
    %90 = vector.load %arg4[%c0_40, %c0_41] : memref<352x384xbf16, #tpu.memory_space<vmem>>, vector<4x32xbf16>
    %cst_42 = arith.constant dense<0.000000e+00> : vector<2x32xf32>
    %91 = tpu.matmul %89, %90, %cst_42 {dimension_numbers = #tpu.dot_dimension_numbers<[1], [0], [0], [1], [0, 0, 1, 1], [], []>} : vector<2x4xbf16>, vector<4x32xbf16>, vector<2x32xf32> -> vector<2x32xf32>
    %c8 = arith.constant 8 : index
    %c0_43 = arith.constant 0 : index
    %92 = vector.load %arg4[%c8, %c0_43] : memref<352x384xbf16, #tpu.memory_space<vmem>>, vector<1x32xbf16>
    %93 = arith.extf %92 : vector<1x32xbf16> to vector<1x32xf32>
    %94 = vector.broadcast %93 : vector<1x32xf32> to vector<2x32xf32>
    %95 = arith.addf %91, %94 : vector<2x32xf32>
    %cst_44 = arith.constant 0.000000e+00 : f32
    %96 = vector.broadcast %cst_44 : f32 to vector<2x32xf32>
    %97 = arith.cmpf ogt, %95, %96 : vector<2x32xf32>
    %cst_45 = arith.constant 0.000000e+00 : f32
    %98 = vector.broadcast %cst_45 : f32 to vector<2x32xf32>
    %99 = arith.minimumf %95, %98 : vector<2x32xf32>
    %100 = math.exp %99 : vector<2x32xf32>
    %cst_46 = arith.constant 1.000000e+00 : f32
    %101 = vector.broadcast %cst_46 : f32 to vector<2x32xf32>
    %102 = arith.subf %100, %101 : vector<2x32xf32>
    %cst_47 = arith.constant 1.67326319 : f32
    %103 = vector.broadcast %cst_47 : f32 to vector<2x32xf32>
    %104 = arith.mulf %103, %102 : vector<2x32xf32>
    %105 = arith.select %97, %95, %104 : vector<2x32xi1>, vector<2x32xf32>
    %cst_48 = arith.constant 1.05070102 : f32
    %106 = vector.broadcast %cst_48 : f32 to vector<2x32xf32>
    %107 = arith.mulf %106, %105 : vector<2x32xf32>
    %108 = arith.truncf %107 : vector<2x32xf32> to vector<2x32xbf16>
    %c16 = arith.constant 16 : index
    %c0_49 = arith.constant 0 : index
    %109 = vector.load %arg4[%c16, %c0_49] : memref<352x384xbf16, #tpu.memory_space<vmem>>, vector<32x64xbf16>
    %cst_50 = arith.constant dense<0.000000e+00> : vector<2x64xf32>
    %110 = tpu.matmul %108, %109, %cst_50 {dimension_numbers = #tpu.dot_dimension_numbers<[1], [0], [0], [1], [0, 0, 1, 1], [], []>} : vector<2x32xbf16>, vector<32x64xbf16>, vector<2x64xf32> -> vector<2x64xf32>
    %c48 = arith.constant 48 : index
    %c0_51 = arith.constant 0 : index
    %111 = vector.load %arg4[%c48, %c0_51] : memref<352x384xbf16, #tpu.memory_space<vmem>>, vector<1x64xbf16>
    %112 = arith.extf %111 : vector<1x64xbf16> to vector<1x64xf32>
    %113 = vector.broadcast %112 : vector<1x64xf32> to vector<2x64xf32>
    %114 = arith.addf %110, %113 : vector<2x64xf32>
    %cst_52 = arith.constant 0.000000e+00 : f32
    %115 = vector.broadcast %cst_52 : f32 to vector<2x64xf32>
    %116 = arith.cmpf ogt, %114, %115 : vector<2x64xf32>
    %cst_53 = arith.constant 0.000000e+00 : f32
    %117 = vector.broadcast %cst_53 : f32 to vector<2x64xf32>
    %118 = arith.minimumf %114, %117 : vector<2x64xf32>
    %119 = math.exp %118 : vector<2x64xf32>
    %cst_54 = arith.constant 1.000000e+00 : f32
    %120 = vector.broadcast %cst_54 : f32 to vector<2x64xf32>
    %121 = arith.subf %119, %120 : vector<2x64xf32>
    %cst_55 = arith.constant 1.67326319 : f32
    %122 = vector.broadcast %cst_55 : f32 to vector<2x64xf32>
    %123 = arith.mulf %122, %121 : vector<2x64xf32>
    %124 = arith.select %116, %114, %123 : vector<2x64xi1>, vector<2x64xf32>
    %cst_56 = arith.constant 1.05070102 : f32
    %125 = vector.broadcast %cst_56 : f32 to vector<2x64xf32>
    %126 = arith.mulf %125, %124 : vector<2x64xf32>
    %127 = arith.truncf %126 : vector<2x64xf32> to vector<2x64xbf16>
    %c56 = arith.constant 56 : index
    %c0_57 = arith.constant 0 : index
    %128 = vector.load %arg4[%c56, %c0_57] : memref<352x384xbf16, #tpu.memory_space<vmem>>, vector<64x128xbf16>
    %cst_58 = arith.constant dense<0.000000e+00> : vector<2x128xf32>
    %129 = tpu.matmul %127, %128, %cst_58 {dimension_numbers = #tpu.dot_dimension_numbers<[1], [0], [0], [1], [0, 0, 1, 1], [], []>} : vector<2x64xbf16>, vector<64x128xbf16>, vector<2x128xf32> -> vector<2x128xf32>
    %c120_59 = arith.constant 120 : index
    %c0_60 = arith.constant 0 : index
    %130 = vector.load %arg4[%c120_59, %c0_60] : memref<352x384xbf16, #tpu.memory_space<vmem>>, vector<1x128xbf16>
    %131 = arith.extf %130 : vector<1x128xbf16> to vector<1x128xf32>
    %132 = vector.broadcast %131 : vector<1x128xf32> to vector<2x128xf32>
    %133 = arith.addf %129, %132 : vector<2x128xf32>
    %cst_61 = arith.constant 0.000000e+00 : f32
    %134 = vector.broadcast %cst_61 : f32 to vector<2x128xf32>
    %135 = arith.cmpf ogt, %133, %134 : vector<2x128xf32>
    %cst_62 = arith.constant 0.000000e+00 : f32
    %136 = vector.broadcast %cst_62 : f32 to vector<2x128xf32>
    %137 = arith.minimumf %133, %136 : vector<2x128xf32>
    %138 = math.exp %137 : vector<2x128xf32>
    %cst_63 = arith.constant 1.000000e+00 : f32
    %139 = vector.broadcast %cst_63 : f32 to vector<2x128xf32>
    %140 = arith.subf %138, %139 : vector<2x128xf32>
    %cst_64 = arith.constant 1.67326319 : f32
    %141 = vector.broadcast %cst_64 : f32 to vector<2x128xf32>
    %142 = arith.mulf %141, %140 : vector<2x128xf32>
    %143 = arith.select %135, %133, %142 : vector<2x128xi1>, vector<2x128xf32>
    %cst_65 = arith.constant 1.05070102 : f32
    %144 = vector.broadcast %cst_65 : f32 to vector<2x128xf32>
    %145 = arith.mulf %144, %143 : vector<2x128xf32>
    %146 = arith.truncf %145 : vector<2x128xf32> to vector<2x128xbf16>
    %c128 = arith.constant 128 : index
    %c0_66 = arith.constant 0 : index
    %147 = vector.load %arg4[%c128, %c0_66] : memref<352x384xbf16, #tpu.memory_space<vmem>>, vector<128x384xbf16>
    %cst_67 = arith.constant dense<0.000000e+00> : vector<2x384xf32>
    %148 = tpu.matmul %146, %147, %cst_67 {dimension_numbers = #tpu.dot_dimension_numbers<[1], [0], [0], [1], [0, 0, 1, 1], [], []>} : vector<2x128xbf16>, vector<128x384xbf16>, vector<2x384xf32> -> vector<2x384xf32>
    %c256 = arith.constant 256 : index
    %c0_68 = arith.constant 0 : index
    %149 = vector.load %arg4[%c256, %c0_68] : memref<352x384xbf16, #tpu.memory_space<vmem>>, vector<1x384xbf16>
    %150 = arith.extf %149 : vector<1x384xbf16> to vector<1x384xf32>
    %151 = vector.broadcast %150 : vector<1x384xf32> to vector<2x384xf32>
    %152 = arith.addf %148, %151 : vector<2x384xf32>
    %cst_69 = arith.constant 0.000000e+00 : f32
    %153 = vector.broadcast %cst_69 : f32 to vector<2x384xf32>
    %154 = arith.cmpf ogt, %152, %153 : vector<2x384xf32>
    %cst_70 = arith.constant 0.000000e+00 : f32
    %155 = vector.broadcast %cst_70 : f32 to vector<2x384xf32>
    %156 = arith.minimumf %152, %155 : vector<2x384xf32>
    %157 = math.exp %156 : vector<2x384xf32>
    %cst_71 = arith.constant 1.000000e+00 : f32
    %158 = vector.broadcast %cst_71 : f32 to vector<2x384xf32>
    %159 = arith.subf %157, %158 : vector<2x384xf32>
    %cst_72 = arith.constant 1.67326319 : f32
    %160 = vector.broadcast %cst_72 : f32 to vector<2x384xf32>
    %161 = arith.mulf %160, %159 : vector<2x384xf32>
    %162 = arith.select %154, %152, %161 : vector<2x384xi1>, vector<2x384xf32>
    %cst_73 = arith.constant 1.05070102 : f32
    %163 = vector.broadcast %cst_73 : f32 to vector<2x384xf32>
    %164 = arith.mulf %163, %162 : vector<2x384xf32>
    %165 = arith.truncf %164 : vector<2x384xf32> to vector<2x384xbf16>
    %c264 = arith.constant 264 : index
    %c0_74 = arith.constant 0 : index
    %166 = vector.load %arg4[%c264, %c0_74] : memref<352x384xbf16, #tpu.memory_space<vmem>>, vector<64x384xbf16>
    %cst_75 = arith.constant dense<0.000000e+00> : vector<2x64xf32>
    %167 = tpu.matmul %165, %166, %cst_75 {dimension_numbers = #tpu.dot_dimension_numbers<[1], [1], [0], [0], [0, 0, 1, 0], [], []>} : vector<2x384xbf16>, vector<64x384xbf16>, vector<2x64xf32> -> vector<2x64xf32>
    %c328 = arith.constant 328 : index
    %c0_76 = arith.constant 0 : index
    %168 = vector.load %arg4[%c328, %c0_76] : memref<352x384xbf16, #tpu.memory_space<vmem>>, vector<1x64xbf16>
    %169 = arith.extf %168 : vector<1x64xbf16> to vector<1x64xf32>
    %170 = vector.broadcast %169 : vector<1x64xf32> to vector<2x64xf32>
    %171 = arith.addf %167, %170 : vector<2x64xf32>
    %172 = arith.truncf %88 : vector<2x8xf32> to vector<2x8xbf16>
    %c336 = arith.constant 336 : index
    %c0_77 = arith.constant 0 : index
    %173 = vector.load %arg4[%c336, %c0_77] : memref<352x384xbf16, #tpu.memory_space<vmem>>, vector<8x64xbf16>
    %cst_78 = arith.constant dense<0.000000e+00> : vector<2x64xf32>
    %174 = tpu.matmul %172, %173, %cst_78 {dimension_numbers = #tpu.dot_dimension_numbers<[1], [0], [0], [1], [0, 0, 1, 1], [], []>} : vector<2x8xbf16>, vector<8x64xbf16>, vector<2x64xf32> -> vector<2x64xf32>
    %175 = arith.mulf %171, %174 : vector<2x64xf32>
    %176 = arith.truncf %175 : vector<2x64xf32> to vector<2x64xbf16>
    %c344 = arith.constant 344 : index
    %c0_79 = arith.constant 0 : index
    %177 = vector.load %arg4[%c344, %c0_79] : memref<352x384xbf16, #tpu.memory_space<vmem>>, vector<8x64xbf16>
    %cst_80 = arith.constant dense<0.000000e+00> : vector<2x8xf32>
    %178 = tpu.matmul %176, %177, %cst_80 {dimension_numbers = #tpu.dot_dimension_numbers<[1], [1], [0], [0], [0, 0, 1, 0], [], []>} : vector<2x64xbf16>, vector<8x64xbf16>, vector<2x8xf32> -> vector<2x8xf32>
    tpu.wait_dma2 semaphore(%arg8 : memref<!tpu.dma_semaphore, #tpu.memory_space<semaphore_mem>>) src(%arg5 : memref<1232x256xbf16, #tpu.memory_space<any>>) dst(%arg7 : memref<1232x256xbf16, #tpu.memory_space<vmem>>)
    %179 = tpu.concatenate %178, %88 in 0 : vector<2x8xf32>, vector<2x8xf32> -> vector<4x8xf32>
    %180 = arith.truncf %179 : vector<4x8xf32> to vector<4x8xbf16>
    %c0_81 = arith.constant 0 : index
    %c0_82 = arith.constant 0 : index
    %181 = vector.load %arg7[%c0_81, %c0_82] : memref<1232x256xbf16, #tpu.memory_space<vmem>>, vector<8x100xbf16>
    %cst_83 = arith.constant dense<0.000000e+00> : vector<4x100xf32>
    %182 = tpu.matmul %180, %181, %cst_83 {dimension_numbers = #tpu.dot_dimension_numbers<[1], [0], [0], [1], [0, 0, 1, 1], [], []>} : vector<4x8xbf16>, vector<8x100xbf16>, vector<4x100xf32> -> vector<4x100xf32>
    %183 = vector.shape_cast %182 : vector<4x100xf32> to vector<4x1x100xf32>
    %184 = vector.shape_cast %183 : vector<4x1x100xf32> to vector<4x1x100xf32>
    %185 = vector.broadcast %184 : vector<4x1x100xf32> to vector<4x8x100xf32>
    %186 = vector.shape_cast %185 : vector<4x8x100xf32> to vector<32x100xf32>
    %c8_84 = arith.constant 8 : index
    %c0_85 = arith.constant 0 : index
    %187 = vector.load %arg7[%c8_84, %c0_85] : memref<1232x256xbf16, #tpu.memory_space<vmem>>, vector<32x100xbf16>
    %188 = arith.extf %187 : vector<32x100xbf16> to vector<32x100xf32>
    %189 = arith.mulf %186, %188 : vector<32x100xf32>
    %c40 = arith.constant 40 : index
    %c0_86 = arith.constant 0 : index
    %190 = vector.load %arg7[%c40, %c0_86] : memref<1232x256xbf16, #tpu.memory_space<vmem>>, vector<32x100xbf16>
    %191 = arith.extf %190 : vector<32x100xbf16> to vector<32x100xf32>
    %192 = arith.addf %189, %191 : vector<32x100xf32>
    %cst_87 = arith.constant 0.000000e+00 : f32
    %193 = vector.broadcast %cst_87 : f32 to vector<32x100xf32>
    %194 = arith.cmpf ogt, %192, %193 : vector<32x100xf32>
    %cst_88 = arith.constant 0.000000e+00 : f32
    %195 = vector.broadcast %cst_88 : f32 to vector<32x100xf32>
    %196 = arith.minimumf %192, %195 : vector<32x100xf32>
    %197 = math.exp %196 : vector<32x100xf32>
    %cst_89 = arith.constant 1.000000e+00 : f32
    %198 = vector.broadcast %cst_89 : f32 to vector<32x100xf32>
    %199 = arith.subf %197, %198 : vector<32x100xf32>
    %cst_90 = arith.constant 1.67326319 : f32
    %200 = vector.broadcast %cst_90 : f32 to vector<32x100xf32>
    %201 = arith.mulf %200, %199 : vector<32x100xf32>
    %202 = arith.select %194, %192, %201 : vector<32x100xi1>, vector<32x100xf32>
    %cst_91 = arith.constant 1.05070102 : f32
    %203 = vector.broadcast %cst_91 : f32 to vector<32x100xf32>
    %204 = arith.mulf %203, %202 : vector<32x100xf32>
    %c1224 = arith.constant 1224 : index
    %c0_92 = arith.constant 0 : index
    %205 = vector.load %arg7[%c1224, %c0_92] : memref<1232x256xbf16, #tpu.memory_space<vmem>>, vector<3x100xbf16>
    %206 = vector.extract_strided_slice %205 {offsets = [0, 0], sizes = [1, 100], strides = [1, 1]} : vector<3x100xbf16> to vector<1x100xbf16>
    %207 = arith.extf %206 : vector<1x100xbf16> to vector<1x100xf32>
    %cst_93 = arith.constant 1.000000e+00 : f32
    %208 = vector.broadcast %cst_93 : f32 to vector<1x100xf32>
    %209 = arith.subf %208, %207 : vector<1x100xf32>
    %210 = vector.broadcast %209 : vector<1x100xf32> to vector<32x100xf32>
    %211 = arith.mulf %204, %210 : vector<32x100xf32>
    %212 = vector.broadcast %207 : vector<1x100xf32> to vector<32x100xf32>
    %213 = arith.mulf %204, %212 : vector<32x100xf32>
    %214 = tpu.concatenate %211, %213 in 0 : vector<32x100xf32>, vector<32x100xf32> -> vector<64x100xf32>
    %215 = arith.truncf %214 : vector<64x100xf32> to vector<64x100xbf16>
    %c72 = arith.constant 72 : index
    %c0_94 = arith.constant 0 : index
    %216 = vector.load %arg7[%c72, %c0_94] : memref<1232x256xbf16, #tpu.memory_space<vmem>>, vector<64x64xbf16>
    %cst_95 = arith.constant dense<0.000000e+00> : vector<64x100xf32>
    %217 = tpu.matmul %216, %215, %cst_95 {dimension_numbers = #tpu.dot_dimension_numbers<[1], [0], [0], [1], [0, 0, 1, 1], [], []>} : vector<64x64xbf16>, vector<64x100xbf16>, vector<64x100xf32> -> vector<64x100xf32>
    %c136 = arith.constant 136 : index
    %c0_96 = arith.constant 0 : index
    %218 = vector.load %arg7[%c136, %c0_96] : memref<1232x256xbf16, #tpu.memory_space<vmem>>, vector<64x100xbf16>
    %219 = arith.extf %218 : vector<64x100xbf16> to vector<64x100xf32>
    %220 = arith.addf %217, %219 : vector<64x100xf32>
    %cst_97 = arith.constant 0.000000e+00 : f32
    %221 = vector.broadcast %cst_97 : f32 to vector<64x100xf32>
    %222 = arith.cmpf ogt, %220, %221 : vector<64x100xf32>
    %cst_98 = arith.constant 0.000000e+00 : f32
    %223 = vector.broadcast %cst_98 : f32 to vector<64x100xf32>
    %224 = arith.minimumf %220, %223 : vector<64x100xf32>
    %225 = math.exp %224 : vector<64x100xf32>
    %cst_99 = arith.constant 1.000000e+00 : f32
    %226 = vector.broadcast %cst_99 : f32 to vector<64x100xf32>
    %227 = arith.subf %225, %226 : vector<64x100xf32>
    %cst_100 = arith.constant 1.67326319 : f32
    %228 = vector.broadcast %cst_100 : f32 to vector<64x100xf32>
    %229 = arith.mulf %228, %227 : vector<64x100xf32>
    %230 = arith.select %222, %220, %229 : vector<64x100xi1>, vector<64x100xf32>
    %cst_101 = arith.constant 1.05070102 : f32
    %231 = vector.broadcast %cst_101 : f32 to vector<64x100xf32>
    %232 = arith.mulf %231, %230 : vector<64x100xf32>
    %233 = vector.extract_strided_slice %205 {offsets = [1, 0], sizes = [1, 100], strides = [1, 1]} : vector<3x100xbf16> to vector<1x100xbf16>
    %234 = arith.extf %233 : vector<1x100xbf16> to vector<1x100xf32>
    %cst_102 = arith.constant 1.000000e+00 : f32
    %235 = vector.broadcast %cst_102 : f32 to vector<1x100xf32>
    %236 = arith.subf %235, %234 : vector<1x100xf32>
    %237 = vector.broadcast %236 : vector<1x100xf32> to vector<64x100xf32>
    %238 = arith.mulf %232, %237 : vector<64x100xf32>
    %239 = vector.broadcast %234 : vector<1x100xf32> to vector<64x100xf32>
    %240 = arith.mulf %232, %239 : vector<64x100xf32>
    %241 = tpu.concatenate %238, %240 in 0 : vector<64x100xf32>, vector<64x100xf32> -> vector<128x100xf32>
    %242 = arith.truncf %241 : vector<128x100xf32> to vector<128x100xbf16>
    %c200 = arith.constant 200 : index
    %c0_103 = arith.constant 0 : index
    %243 = vector.load %arg7[%c200, %c0_103] : memref<1232x256xbf16, #tpu.memory_space<vmem>>, vector<128x128xbf16>
    %cst_104 = arith.constant dense<0.000000e+00> : vector<128x100xf32>
    %244 = tpu.matmul %243, %242, %cst_104 {dimension_numbers = #tpu.dot_dimension_numbers<[1], [0], [0], [1], [0, 0, 1, 1], [], []>} : vector<128x128xbf16>, vector<128x100xbf16>, vector<128x100xf32> -> vector<128x100xf32>
    %c328_105 = arith.constant 328 : index
    %c0_106 = arith.constant 0 : index
    %245 = vector.load %arg7[%c328_105, %c0_106] : memref<1232x256xbf16, #tpu.memory_space<vmem>>, vector<128x100xbf16>
    %246 = arith.extf %245 : vector<128x100xbf16> to vector<128x100xf32>
    %247 = arith.addf %244, %246 : vector<128x100xf32>
    %cst_107 = arith.constant 0.000000e+00 : f32
    %248 = vector.broadcast %cst_107 : f32 to vector<128x100xf32>
    %249 = arith.cmpf ogt, %247, %248 : vector<128x100xf32>
    %cst_108 = arith.constant 0.000000e+00 : f32
    %250 = vector.broadcast %cst_108 : f32 to vector<128x100xf32>
    %251 = arith.minimumf %247, %250 : vector<128x100xf32>
    %252 = math.exp %251 : vector<128x100xf32>
    %cst_109 = arith.constant 1.000000e+00 : f32
    %253 = vector.broadcast %cst_109 : f32 to vector<128x100xf32>
    %254 = arith.subf %252, %253 : vector<128x100xf32>
    %cst_110 = arith.constant 1.67326319 : f32
    %255 = vector.broadcast %cst_110 : f32 to vector<128x100xf32>
    %256 = arith.mulf %255, %254 : vector<128x100xf32>
    %257 = arith.select %249, %247, %256 : vector<128x100xi1>, vector<128x100xf32>
    %cst_111 = arith.constant 1.05070102 : f32
    %258 = vector.broadcast %cst_111 : f32 to vector<128x100xf32>
    %259 = arith.mulf %258, %257 : vector<128x100xf32>
    %260 = vector.extract_strided_slice %205 {offsets = [2, 0], sizes = [1, 100], strides = [1, 1]} : vector<3x100xbf16> to vector<1x100xbf16>
    %261 = arith.extf %260 : vector<1x100xbf16> to vector<1x100xf32>
    %cst_112 = arith.constant 1.000000e+00 : f32
    %262 = vector.broadcast %cst_112 : f32 to vector<1x100xf32>
    %263 = arith.subf %262, %261 : vector<1x100xf32>
    %264 = vector.broadcast %263 : vector<1x100xf32> to vector<128x100xf32>
    %265 = arith.mulf %259, %264 : vector<128x100xf32>
    %266 = vector.broadcast %261 : vector<1x100xf32> to vector<128x100xf32>
    %267 = arith.mulf %259, %266 : vector<128x100xf32>
    %268 = tpu.concatenate %265, %267 in 0 : vector<128x100xf32>, vector<128x100xf32> -> vector<256x100xf32>
    %269 = arith.truncf %268 : vector<256x100xf32> to vector<256x100xbf16>
    %c456 = arith.constant 456 : index
    %c0_113 = arith.constant 0 : index
    %270 = vector.load %arg7[%c456, %c0_113] : memref<1232x256xbf16, #tpu.memory_space<vmem>>, vector<256x256xbf16>
    %cst_114 = arith.constant dense<0.000000e+00> : vector<256x100xf32>
    %271 = tpu.matmul %270, %269, %cst_114 {dimension_numbers = #tpu.dot_dimension_numbers<[1], [0], [0], [1], [0, 0, 1, 1], [], []>} : vector<256x256xbf16>, vector<256x100xbf16>, vector<256x100xf32> -> vector<256x100xf32>
    %c712 = arith.constant 712 : index
    %c0_115 = arith.constant 0 : index
    %272 = vector.load %arg7[%c712, %c0_115] : memref<1232x256xbf16, #tpu.memory_space<vmem>>, vector<256x100xbf16>
    %273 = arith.extf %272 : vector<256x100xbf16> to vector<256x100xf32>
    %274 = arith.addf %271, %273 : vector<256x100xf32>
    %cst_116 = arith.constant 0.000000e+00 : f32
    %275 = vector.broadcast %cst_116 : f32 to vector<256x100xf32>
    %276 = arith.cmpf ogt, %274, %275 : vector<256x100xf32>
    %cst_117 = arith.constant 0.000000e+00 : f32
    %277 = vector.broadcast %cst_117 : f32 to vector<256x100xf32>
    %278 = arith.minimumf %274, %277 : vector<256x100xf32>
    %279 = math.exp %278 : vector<256x100xf32>
    %cst_118 = arith.constant 1.000000e+00 : f32
    %280 = vector.broadcast %cst_118 : f32 to vector<256x100xf32>
    %281 = arith.subf %279, %280 : vector<256x100xf32>
    %cst_119 = arith.constant 1.67326319 : f32
    %282 = vector.broadcast %cst_119 : f32 to vector<256x100xf32>
    %283 = arith.mulf %282, %281 : vector<256x100xf32>
    %284 = arith.select %276, %274, %283 : vector<256x100xi1>, vector<256x100xf32>
    %cst_120 = arith.constant 1.05070102 : f32
    %285 = vector.broadcast %cst_120 : f32 to vector<256x100xf32>
    %286 = arith.mulf %285, %284 : vector<256x100xf32>
    %c968 = arith.constant 968 : index
    %c0_121 = arith.constant 0 : index
    %287 = vector.load %arg7[%c968, %c0_121] : memref<1232x256xbf16, #tpu.memory_space<vmem>>, vector<256x100xbf16>
    %288 = arith.extf %287 : vector<256x100xbf16> to vector<256x100xf32>
    %289 = arith.mulf %286, %288 : vector<256x100xf32>
    %290 = vector.shape_cast %289 : vector<256x100xf32> to vector<4x64x100xf32>
    %cst_122 = arith.constant dense<0.000000e+00> : vector<4x100xf32>
    %291 = vector.multi_reduction <add>, %290, %cst_122 [1] : vector<4x64x100xf32> to vector<4x100xf32>
    %cst_123 = arith.constant -0.0668945313 : f32
    %292 = vector.broadcast %cst_123 : f32 to vector<4x100xf32>
    %293 = arith.addf %291, %292 : vector<4x100xf32>
    %cst_124 = arith.constant 0.000000e+00 : f32
    %294 = vector.broadcast %cst_124 : f32 to vector<4x20xf32>
    %295 = tpu.concatenate %293, %179, %294 in 1 : vector<4x100xf32>, vector<4x8xf32>, vector<4x20xf32> -> vector<4x128xf32>
    %c0_125 = arith.constant 0 : index
    %c0_126 = arith.constant 0 : index
    %296 = vector.load %arg6[%c0_125, %c0_126] : memref<4x128xf32, #tpu.memory_space<vmem>>, vector<4x128xf32>
    tpu.vector_store %arg6[%c0_125, %c0_126], %295 {strides = array<i32>} : memref<4x128xf32, #tpu.memory_space<vmem>>, vector<4x128xf32>,
    return
  }
  func.func @transform_0(%arg0: i32) -> (i32, i32) {
    %c0_i32 = arith.constant 0 : i32
    %c0_i32_0 = arith.constant 0 : i32
    %c0_i32_1 = arith.constant 0 : i32
    return %c0_i32, %c0_i32_0 : i32, i32
  }
  func.func @transform_1(%arg0: i32) -> (i32, i32) {
    %c0_i32 = arith.constant 0 : i32
    %c0_i32_0 = arith.constant 0 : i32
    %c0_i32_1 = arith.constant 0 : i32
    return %c0_i32, %c0_i32_0 : i32, i32
  }
  func.func @transform_2(%arg0: i32) -> (i32, i32) {
    %c0_i32 = arith.constant 0 : i32
    %c0_i32_0 = arith.constant 0 : i32
    %c0_i32_1 = arith.constant 0 : i32
    return %c0_i32, %c0_i32_0 : i32, i32
  }
  func.func @transform_3(%arg0: i32) -> (i32, i32) {
    %c0_i32 = arith.constant 0 : i32
    %c0_i32_0 = arith.constant 0 : i32
    %c0_i32_1 = arith.constant 0 : i32
    return %c0_i32, %c0_i32_0 : i32, i32
  }
  func.func @transform_5(%arg0: i32) -> (i32, i32) {
    %c0_i32 = arith.constant 0 : i32
    %c0_i32_0 = arith.constant 0 : i32
    %c0_i32_1 = arith.constant 0 : i32
    return %c0_i32, %c0_i32_0 : i32, i32
  }
}

</mosaic_0001>

<bundles_post_ra>
// kernel: tpu_custom_call.1
= control target key start
LH: loop header
LB: loop body
LE: loop exit
PB: predicated region body
PF: predicated region fallthrough
CT: control target
= control target key end

     0   :  { %10 = vsyncpa [#allocation5], 0  ;;  %s14217_s0 = inlined_call_operand.vmem [shape: f32[2,100], index: 0, kind: input, shape index: {}]   ;;  %s14218_s1 = inlined_call_operand.vmem [shape: f32[2,4], index: 1, kind: input, shape index: {}]   ;;  %s14219_s2 = inlined_call_operand.vmem [shape: bf16[1592,704], index: 2, kind: input, shape index: {}]   ;;  %s14220_s3 = inlined_call_operand.vmem [shape: bf16[352,384], index: 3, kind: input, shape index: {}]   ;;  %s14221_s4 = inlined_call_operand.vmem [shape: bf16[1232,256], index: 4, kind: input, shape index: {}]   ;;  %s14222_s5 = inlined_call_operand.hbm [shape: f32[4,128], index: 5, kind: output, shape index: {}]  }
   0x1   :  { %v30_v0 = vld [vmem:[%s14221_s4] sm:$0xff]  ;;  %v32_v1 = vld [vmem:[%s14221_s4 + $0x8] sm:$0xff]  ;;  %v34_v2 = vld [vmem:[%s14221_s4 + $0x10] sm:$0xff] }
   0x2   :  { %31 = vst [vmem:[#allocation2] sm:$0xff] %v30_v0  ;;  %v36_v3 = vld [vmem:[%s14221_s4 + $0x18] sm:$0xff]  ;;  %v38_v4 = vld [vmem:[%s14221_s4 + $0x20] sm:$0xff]  ;;  %v40_v5 = vld [vmem:[%s14221_s4 + $0x28] sm:$0xff] }
   0x3   :  { %33 = vst [vmem:[#allocation2 + $0x8] sm:$0xff] %v32_v1  ;;  %v42_v6 = vld [vmem:[%s14221_s4 + $0x30] sm:$0xff]  ;;  %v44_v7 = vld [vmem:[%s14221_s4 + $0x38] sm:$0xff]  ;;  %v46_v8 = vld [vmem:[%s14221_s4 + $0x40] sm:$0xff] }
   0x4   :  { %35 = vst [vmem:[#allocation2 + $0x10] sm:$0xff] %v34_v2  ;;  %v48_v9 = vld [vmem:[%s14221_s4 + $0x48] sm:$0xff]  ;;  %v50_v10 = vld [vmem:[%s14221_s4 + $0x50] sm:$0xff]  ;;  %v52_v11 = vld [vmem:[%s14221_s4 + $0x58] sm:$0xff] }
   0x5   :  { %37 = vst [vmem:[#allocation2 + $0x18] sm:$0xff] %v36_v3  ;;  %v54_v12 = vld [vmem:[%s14221_s4 + $0x60] sm:$0xff]  ;;  %v56_v13 = vld [vmem:[%s14221_s4 + $0x68] sm:$0xff]  ;;  %v58_v14 = vld [vmem:[%s14221_s4 + $0x70] sm:$0xff] }
   0x6   :  { %39 = vst [vmem:[#allocation2 + $0x20] sm:$0xff] %v38_v4  ;;  %v60_v15 = vld [vmem:[%s14221_s4 + $0x78] sm:$0xff]  ;;  %v62_v16 = vld [vmem:[%s14221_s4 + $0x80] sm:$0xff]  ;;  %v64_v17 = vld [vmem:[%s14221_s4 + $0x88] sm:$0xff] }
   0x7   :  { %41 = vst [vmem:[#allocation2 + $0x28] sm:$0xff] %v40_v5  ;;  %v66_v18 = vld [vmem:[%s14221_s4 + $0x90] sm:$0xff]  ;;  %v68_v19 = vld [vmem:[%s14221_s4 + $0x98] sm:$0xff]  ;;  %v70_v20 = vld [vmem:[%s14221_s4 + $0xa0] sm:$0xff] }
   0x8   :  { %43 = vst [vmem:[#allocation2 + $0x30] sm:$0xff] %v42_v6  ;;  %v72_v21 = vld [vmem:[%s14221_s4 + $0xa8] sm:$0xff]  ;;  %v74_v22 = vld [vmem:[%s14221_s4 + $0xb0] sm:$0xff]  ;;  %v76_v23 = vld [vmem:[%s14221_s4 + $0xb8] sm:$0xff] }
   0x9   :  { %45 = vst [vmem:[#allocation2 + $0x38] sm:$0xff] %v44_v7  ;;  %v78_v24 = vld [vmem:[%s14221_s4 + $0xc0] sm:$0xff]  ;;  %v80_v25 = vld [vmem:[%s14221_s4 + $0xc8] sm:$0xff]  ;;  %v82_v26 = vld [vmem:[%s14221_s4 + $0xd0] sm:$0xff] }
   0xa   :  { %47 = vst [vmem:[#allocation2 + $0x40] sm:$0xff] %v46_v8  ;;  %v84_v27 = vld [vmem:[%s14221_s4 + $0xd8] sm:$0xff]  ;;  %v86_v28 = vld [vmem:[%s14221_s4 + $0xe0] sm:$0xff]  ;;  %v88_v29 = vld [vmem:[%s14221_s4 + $0xe8] sm:$0xff] }
   0xb   :  { %49 = vst [vmem:[#allocation2 + $0x48] sm:$0xff] %v48_v9  ;;  %v90_v30 = vld [vmem:[%s14221_s4 + $0xf0] sm:$0xff]  ;;  %v92_v31 = vld [vmem:[%s14221_s4 + $0xf8] sm:$0xff]  ;;  %v94_v32 = vld [vmem:[%s14221_s4 + $0x100] sm:$0xff] }
   0xc   :  { %51 = vst [vmem:[#allocation2 + $0x50] sm:$0xff] %v50_v10  ;;  %v96_v33 = vld [vmem:[%s14221_s4 + $0x108] sm:$0xff]  ;;  %v98_v34 = vld [vmem:[%s14221_s4 + $0x110] sm:$0xff]  ;;  %v100_v35 = vld [vmem:[%s14221_s4 + $0x118] sm:$0xff] }
   0xd   :  { %53 = vst [vmem:[#allocation2 + $0x58] sm:$0xff] %v52_v11  ;;  %v102_v36 = vld [vmem:[%s14221_s4 + $0x120] sm:$0xff]  ;;  %v104_v37 = vld [vmem:[%s14221_s4 + $0x128] sm:$0xff]  ;;  %v106_v38 = vld [vmem:[%s14221_s4 + $0x130] sm:$0xff] }
   0xe   :  { %55 = vst [vmem:[#allocation2 + $0x60] sm:$0xff] %v54_v12  ;;  %v108_v39 = vld [vmem:[%s14221_s4 + $0x138] sm:$0xff]  ;;  %v110_v40 = vld [vmem:[%s14221_s4 + $0x140] sm:$0xff]  ;;  %v112_v41 = vld [vmem:[%s14221_s4 + $0x148] sm:$0xff] }
   0xf   :  { %57 = vst [vmem:[#allocation2 + $0x68] sm:$0xff] %v56_v13  ;;  %v114_v42 = vld [vmem:[%s14221_s4 + $0x150] sm:$0xff]  ;;  %v116_v43 = vld [vmem:[%s14221_s4 + $0x158] sm:$0xff]  ;;  %v118_v44 = vld [vmem:[%s14221_s4 + $0x160] sm:$0xff] }
  0x10   :  { %59 = vst [vmem:[#allocation2 + $0x70] sm:$0xff] %v58_v14  ;;  %v120_v45 = vld [vmem:[%s14221_s4 + $0x168] sm:$0xff]  ;;  %v122_v46 = vld [vmem:[%s14221_s4 + $0x170] sm:$0xff]  ;;  %v124_v47 = vld [vmem:[%s14221_s4 + $0x178] sm:$0xff] }
  0x11   :  { %61 = vst [vmem:[#allocation2 + $0x78] sm:$0xff] %v60_v15  ;;  %v126_v48 = vld [vmem:[%s14221_s4 + $0x180] sm:$0xff]  ;;  %v128_v49 = vld [vmem:[%s14221_s4 + $0x188] sm:$0xff]  ;;  %v130_v50 = vld [vmem:[%s14221_s4 + $0x190] sm:$0xff] }
  0x12   :  { %63 = vst [vmem:[#allocation2 + $0x80] sm:$0xff] %v62_v16  ;;  %v132_v51 = vld [vmem:[%s14221_s4 + $0x198] sm:$0xff]  ;;  %v134_v52 = vld [vmem:[%s14221_s4 + $0x1a0] sm:$0xff]  ;;  %v136_v53 = vld [vmem:[%s14221_s4 + $0x1a8] sm:$0xff] }
  0x13   :  { %65 = vst [vmem:[#allocation2 + $0x88] sm:$0xff] %v64_v17  ;;  %v138_v54 = vld [vmem:[%s14221_s4 + $0x1b0] sm:$0xff]  ;;  %v140_v55 = vld [vmem:[%s14221_s4 + $0x1b8] sm:$0xff]  ;;  %v142_v56 = vld [vmem:[%s14221_s4 + $0x1c0] sm:$0xff] }
  0x14   :  { %67 = vst [vmem:[#allocation2 + $0x90] sm:$0xff] %v66_v18  ;;  %v144_v57 = vld [vmem:[%s14221_s4 + $0x1c8] sm:$0xff]  ;;  %v146_v58 = vld [vmem:[%s14221_s4 + $0x1d0] sm:$0xff]  ;;  %v148_v59 = vld [vmem:[%s14221_s4 + $0x1d8] sm:$0xff] }
  0x15   :  { %69 = vst [vmem:[#allocation2 + $0x98] sm:$0xff] %v68_v19  ;;  %v150_v60 = vld [vmem:[%s14221_s4 + $0x1e0] sm:$0xff]  ;;  %v152_v61 = vld [vmem:[%s14221_s4 + $0x1e8] sm:$0xff]  ;;  %v154_v62 = vld [vmem:[%s14221_s4 + $0x1f0] sm:$0xff] }
  0x16   :  { %71 = vst [vmem:[#allocation2 + $0xa0] sm:$0xff] %v70_v20  ;;  %v156_v63 = vld [vmem:[%s14221_s4 + $0x1f8] sm:$0xff]  ;;  %v158_v0 = vld [vmem:[%s14221_s4 + $0x200] sm:$0xff]  ;;  %v160_v1 = vld [vmem:[%s14221_s4 + $0x208] sm:$0xff] }
  0x17   :  { %73 = vst [vmem:[#allocation2 + $0xa8] sm:$0xff] %v72_v21  ;;  %v162_v2 = vld [vmem:[%s14221_s4 + $0x210] sm:$0xff]  ;;  %v164_v3 = vld [vmem:[%s14221_s4 + $0x218] sm:$0xff]  ;;  %v166_v4 = vld [vmem:[%s14221_s4 + $0x220] sm:$0xff] }
  0x18   :  { %75 = vst [vmem:[#allocation2 + $0xb0] sm:$0xff] %v74_v22  ;;  %v168_v5 = vld [vmem:[%s14221_s4 + $0x228] sm:$0xff]  ;;  %v170_v6 = vld [vmem:[%s14221_s4 + $0x230] sm:$0xff]  ;;  %v172_v7 = vld [vmem:[%s14221_s4 + $0x238] sm:$0xff] }
  0x19   :  { %77 = vst [vmem:[#allocation2 + $0xb8] sm:$0xff] %v76_v23  ;;  %v174_v8 = vld [vmem:[%s14221_s4 + $0x240] sm:$0xff]  ;;  %v176_v9 = vld [vmem:[%s14221_s4 + $0x248] sm:$0xff]  ;;  %v178_v10 = vld [vmem:[%s14221_s4 + $0x250] sm:$0xff] }
  0x1a   :  { %79 = vst [vmem:[#allocation2 + $0xc0] sm:$0xff] %v78_v24  ;;  %v180_v11 = vld [vmem:[%s14221_s4 + $0x258] sm:$0xff]  ;;  %v182_v12 = vld [vmem:[%s14221_s4 + $0x260] sm:$0xff]  ;;  %v184_v13 = vld [vmem:[%s14221_s4 + $0x268] sm:$0xff] }
  0x1b   :  { %81 = vst [vmem:[#allocation2 + $0xc8] sm:$0xff] %v80_v25  ;;  %v186_v14 = vld [vmem:[%s14221_s4 + $0x270] sm:$0xff]  ;;  %v188_v15 = vld [vmem:[%s14221_s4 + $0x278] sm:$0xff]  ;;  %v190_v16 = vld [vmem:[%s14221_s4 + $0x280] sm:$0xff] }
  0x1c   :  { %83 = vst [vmem:[#allocation2 + $0xd0] sm:$0xff] %v82_v26  ;;  %v192_v17 = vld [vmem:[%s14221_s4 + $0x288] sm:$0xff]  ;;  %v194_v18 = vld [vmem:[%s14221_s4 + $0x290] sm:$0xff]  ;;  %v196_v19 = vld [vmem:[%s14221_s4 + $0x298] sm:$0xff] }
  0x1d   :  { %85 = vst [vmem:[#allocation2 + $0xd8] sm:$0xff] %v84_v27  ;;  %v198_v20 = vld [vmem:[%s14221_s4 + $0x2a0] sm:$0xff]  ;;  %v200_v21 = vld [vmem:[%s14221_s4 + $0x2a8] sm:$0xff]  ;;  %v202_v22 = vld [vmem:[%s14221_s4 + $0x2b0] sm:$0xff] }
  0x1e   :  { %87 = vst [vmem:[#allocation2 + $0xe0] sm:$0xff] %v86_v28  ;;  %v204_v23 = vld [vmem:[%s14221_s4 + $0x2b8] sm:$0xff]  ;;  %v206_v24 = vld [vmem:[%s14221_s4 + $0x2c0] sm:$0xff]  ;;  %v208_v25 = vld [vmem:[%s14221_s4 + $0x2c8] sm:$0xff] }
  0x1f   :  { %89 = vst [vmem:[#allocation2 + $0xe8] sm:$0xff] %v88_v29  ;;  %v210_v26 = vld [vmem:[%s14221_s4 + $0x2d0] sm:$0xff]  ;;  %v212_v27 = vld [vmem:[%s14221_s4 + $0x2d8] sm:$0xff]  ;;  %v214_v28 = vld [vmem:[%s14221_s4 + $0x2e0] sm:$0xff] }
  0x20   :  { %91 = vst [vmem:[#allocation2 + $0xf0] sm:$0xff] %v90_v30  ;;  %v216_v29 = vld [vmem:[%s14221_s4 + $0x2e8] sm:$0xff]  ;;  %v218_v30 = vld [vmem:[%s14221_s4 + $0x2f0] sm:$0xff] }
  0x21   :  { %93 = vst [vmem:[#allocation2 + $0xf8] sm:$0xff] %v92_v31  ;;  %v220_v31 = vld [vmem:[%s14221_s4 + $0x2f8] sm:$0xff] }
  0x22   :  { %95 = vst [vmem:[#allocation2 + $0x100] sm:$0xff] %v94_v32  ;;  %v222_v32 = vld [vmem:[%s14221_s4 + $0x300] sm:$0xff] }
  0x23   :  { %97 = vst [vmem:[#allocation2 + $0x108] sm:$0xff] %v96_v33  ;;  %v224_v33 = vld [vmem:[%s14221_s4 + $0x308] sm:$0xff] }
  0x24   :  { %99 = vst [vmem:[#allocation2 + $0x110] sm:$0xff] %v98_v34  ;;  %v226_v34 = vld [vmem:[%s14221_s4 + $0x310] sm:$0xff] }
  0x25   :  { %101 = vst [vmem:[#allocation2 + $0x118] sm:$0xff] %v100_v35  ;;  %v228_v35 = vld [vmem:[%s14221_s4 + $0x318] sm:$0xff] }
  0x26   :  { %103 = vst [vmem:[#allocation2 + $0x120] sm:$0xff] %v102_v36  ;;  %v230_v36 = vld [vmem:[%s14221_s4 + $0x320] sm:$0xff] }
  0x27   :  { %105 = vst [vmem:[#allocation2 + $0x128] sm:$0xff] %v104_v37  ;;  %v232_v37 = vld [vmem:[%s14221_s4 + $0x328] sm:$0xff] }
  0x28   :  { %107 = vst [vmem:[#allocation2 + $0x130] sm:$0xff] %v106_v38  ;;  %v234_v38 = vld [vmem:[%s14221_s4 + $0x330] sm:$0xff] }
  0x29   :  { %109 = vst [vmem:[#allocation2 + $0x138] sm:$0xff] %v108_v39  ;;  %v236_v39 = vld [vmem:[%s14221_s4 + $0x338] sm:$0xff] }
  0x2a   :  { %111 = vst [vmem:[#allocation2 + $0x140] sm:$0xff] %v110_v40  ;;  %v238_v40 = vld [vmem:[%s14221_s4 + $0x340] sm:$0xff] }
  0x2b   :  { %113 = vst [vmem:[#allocation2 + $0x148] sm:$0xff] %v112_v41  ;;  %v240_v41 = vld [vmem:[%s14221_s4 + $0x348] sm:$0xff] }
  0x2c   :  { %115 = vst [vmem:[#allocation2 + $0x150] sm:$0xff] %v114_v42  ;;  %v242_v42 = vld [vmem:[%s14221_s4 + $0x350] sm:$0xff] }
  0x2d   :  { %117 = vst [vmem:[#allocation2 + $0x158] sm:$0xff] %v116_v43  ;;  %v244_v43 = vld [vmem:[%s14221_s4 + $0x358] sm:$0xff] }
  0x2e   :  { %119 = vst [vmem:[#allocation2 + $0x160] sm:$0xff] %v118_v44  ;;  %v246_v44 = vld [vmem:[%s14221_s4 + $0x360] sm:$0xff] }
  0x2f   :  { %121 = vst [vmem:[#allocation2 + $0x168] sm:$0xff] %v120_v45  ;;  %v248_v45 = vld [vmem:[%s14221_s4 + $0x368] sm:$0xff] }
  0x30   :  { %123 = vst [vmem:[#allocation2 + $0x170] sm:$0xff] %v122_v46  ;;  %v250_v46 = vld [vmem:[%s14221_s4 + $0x370] sm:$0xff] }
  0x31   :  { %125 = vst [vmem:[#allocation2 + $0x178] sm:$0xff] %v124_v47  ;;  %v252_v47 = vld [vmem:[%s14221_s4 + $0x378] sm:$0xff] }
  0x32   :  { %127 = vst [vmem:[#allocation2 + $0x180] sm:$0xff] %v126_v48  ;;  %v254_v48 = vld [vmem:[%s14221_s4 + $0x380] sm:$0xff] }
  0x33   :  { %129 = vst [vmem:[#allocation2 + $0x188] sm:$0xff] %v128_v49  ;;  %v256_v49 = vld [vmem:[%s14221_s4 + $0x388] sm:$0xff] }
  0x34   :  { %131 = vst [vmem:[#allocation2 + $0x190] sm:$0xff] %v130_v50  ;;  %v258_v50 = vld [vmem:[%s14221_s4 + $0x390] sm:$0xff] }
  0x35   :  { %133 = vst [vmem:[#allocation2 + $0x198] sm:$0xff] %v132_v51  ;;  %v260_v51 = vld [vmem:[%s14221_s4 + $0x398] sm:$0xff] }
  0x36   :  { %135 = vst [vmem:[#allocation2 + $0x1a0] sm:$0xff] %v134_v52  ;;  %v262_v52 = vld [vmem:[%s14221_s4 + $0x3a0] sm:$0xff] }
  0x37   :  { %137 = vst [vmem:[#allocation2 + $0x1a8] sm:$0xff] %v136_v53  ;;  %v264_v53 = vld [vmem:[%s14221_s4 + $0x3a8] sm:$0xff] }
  0x38   :  { %139 = vst [vmem:[#allocation2 + $0x1b0] sm:$0xff] %v138_v54  ;;  %v266_v54 = vld [vmem:[%s14221_s4 + $0x3b0] sm:$0xff] }
  0x39   :  { %141 = vst [vmem:[#allocation2 + $0x1b8] sm:$0xff] %v140_v55  ;;  %v268_v55 = vld [vmem:[%s14221_s4 + $0x3b8] sm:$0xff] }
  0x3a   :  { %143 = vst [vmem:[#allocation2 + $0x1c0] sm:$0xff] %v142_v56  ;;  %v270_v56 = vld [vmem:[%s14221_s4 + $0x3c0] sm:$0xff] }
  0x3b   :  { %145 = vst [vmem:[#allocation2 + $0x1c8] sm:$0xff] %v144_v57  ;;  %v272_v57 = vld [vmem:[%s14221_s4 + $0x3c8] sm:$0xff] }
  0x3c   :  { %147 = vst [vmem:[#allocation2 + $0x1d0] sm:$0xff] %v146_v58  ;;  %v274_v58 = vld [vmem:[%s14221_s4 + $0x3d0] sm:$0xff] }
  0x3d   :  { %149 = vst [vmem:[#allocation2 + $0x1d8] sm:$0xff] %v148_v59  ;;  %v276_v59 = vld [vmem:[%s14221_s4 + $0x3d8] sm:$0xff] }
  0x3e   :  { %151 = vst [vmem:[#allocation2 + $0x1e0] sm:$0xff] %v150_v60  ;;  %v278_v60 = vld [vmem:[%s14221_s4 + $0x3e0] sm:$0xff] }
  0x3f   :  { %153 = vst [vmem:[#allocation2 + $0x1e8] sm:$0xff] %v152_v61  ;;  %v280_v61 = vld [vmem:[%s14221_s4 + $0x3e8] sm:$0xff] }
  0x40   :  { %155 = vst [vmem:[#allocation2 + $0x1f0] sm:$0xff] %v154_v62  ;;  %v282_v62 = vld [vmem:[%s14221_s4 + $0x3f0] sm:$0xff] }
  0x41   :  { %157 = vst [vmem:[#allocation2 + $0x1f8] sm:$0xff] %v156_v63  ;;  %v284_v63 = vld [vmem:[%s14221_s4 + $0x3f8] sm:$0xff] }
  0x42   :  { %159 = vst [vmem:[#allocation2 + $0x200] sm:$0xff] %v158_v0  ;;  %v286_v0 = vld [vmem:[%s14221_s4 + $0x400] sm:$0xff] }
  0x43   :  { %161 = vst [vmem:[#allocation2 + $0x208] sm:$0xff] %v160_v1  ;;  %v288_v1 = vld [vmem:[%s14221_s4 + $0x408] sm:$0xff] }
  0x44   :  { %163 = vst [vmem:[#allocation2 + $0x210] sm:$0xff] %v162_v2  ;;  %v290_v2 = vld [vmem:[%s14221_s4 + $0x410] sm:$0xff] }
  0x45   :  { %165 = vst [vmem:[#allocation2 + $0x218] sm:$0xff] %v164_v3  ;;  %v292_v3 = vld [vmem:[%s14221_s4 + $0x418] sm:$0xff] }
  0x46   :  { %167 = vst [vmem:[#allocation2 + $0x220] sm:$0xff] %v166_v4  ;;  %v294_v4 = vld [vmem:[%s14221_s4 + $0x420] sm:$0xff] }
  0x47   :  { %169 = vst [vmem:[#allocation2 + $0x228] sm:$0xff] %v168_v5  ;;  %v296_v5 = vld [vmem:[%s14221_s4 + $0x428] sm:$0xff] }
  0x48   :  { %171 = vst [vmem:[#allocation2 + $0x230] sm:$0xff] %v170_v6  ;;  %v298_v6 = vld [vmem:[%s14221_s4 + $0x430] sm:$0xff] }
  0x49   :  { %173 = vst [vmem:[#allocation2 + $0x238] sm:$0xff] %v172_v7  ;;  %v300_v7 = vld [vmem:[%s14221_s4 + $0x438] sm:$0xff] }
  0x4a   :  { %175 = vst [vmem:[#allocation2 + $0x240] sm:$0xff] %v174_v8  ;;  %v302_v8 = vld [vmem:[%s14221_s4 + $0x440] sm:$0xff] }
  0x4b   :  { %177 = vst [vmem:[#allocation2 + $0x248] sm:$0xff] %v176_v9  ;;  %v304_v9 = vld [vmem:[%s14221_s4 + $0x448] sm:$0xff] }
  0x4c   :  { %179 = vst [vmem:[#allocation2 + $0x250] sm:$0xff] %v178_v10  ;;  %v306_v10 = vld [vmem:[%s14221_s4 + $0x450] sm:$0xff] }
  0x4d   :  { %181 = vst [vmem:[#allocation2 + $0x258] sm:$0xff] %v180_v11  ;;  %v308_v11 = vld [vmem:[%s14221_s4 + $0x458] sm:$0xff] }
  0x4e   :  { %183 = vst [vmem:[#allocation2 + $0x260] sm:$0xff] %v182_v12  ;;  %v310_v12 = vld [vmem:[%s14221_s4 + $0x460] sm:$0xff] }
  0x4f   :  { %185 = vst [vmem:[#allocation2 + $0x268] sm:$0xff] %v184_v13  ;;  %v312_v13 = vld [vmem:[%s14221_s4 + $0x468] sm:$0xff] }
  0x50   :  { %187 = vst [vmem:[#allocation2 + $0x270] sm:$0xff] %v186_v14  ;;  %v314_v14 = vld [vmem:[%s14221_s4 + $0x470] sm:$0xff] }
  0x51   :  { %189 = vst [vmem:[#allocation2 + $0x278] sm:$0xff] %v188_v15  ;;  %v316_v15 = vld [vmem:[%s14221_s4 + $0x478] sm:$0xff] }
  0x52   :  { %191 = vst [vmem:[#allocation2 + $0x280] sm:$0xff] %v190_v16  ;;  %v318_v16 = vld [vmem:[%s14221_s4 + $0x480] sm:$0xff] }
  0x53   :  { %193 = vst [vmem:[#allocation2 + $0x288] sm:$0xff] %v192_v17  ;;  %v320_v17 = vld [vmem:[%s14221_s4 + $0x488] sm:$0xff] }
  0x54   :  { %195 = vst [vmem:[#allocation2 + $0x290] sm:$0xff] %v194_v18  ;;  %v322_v18 = vld [vmem:[%s14221_s4 + $0x490] sm:$0xff] }
  0x55   :  { %197 = vst [vmem:[#allocation2 + $0x298] sm:$0xff] %v196_v19  ;;  %v324_v19 = vld [vmem:[%s14221_s4 + $0x498] sm:$0xff] }
  0x56   :  { %199 = vst [vmem:[#allocation2 + $0x2a0] sm:$0xff] %v198_v20  ;;  %v326_v20 = vld [vmem:[%s14221_s4 + $0x4a0] sm:$0xff] }
  0x57   :  { %201 = vst [vmem:[#allocation2 + $0x2a8] sm:$0xff] %v200_v21  ;;  %v328_v21 = vld [vmem:[%s14221_s4 + $0x4a8] sm:$0xff] }
  0x58   :  { %203 = vst [vmem:[#allocation2 + $0x2b0] sm:$0xff] %v202_v22  ;;  %v330_v22 = vld [vmem:[%s14221_s4 + $0x4b0] sm:$0xff] }
  0x59   :  { %205 = vst [vmem:[#allocation2 + $0x2b8] sm:$0xff] %v204_v23  ;;  %v332_v23 = vld [vmem:[%s14221_s4 + $0x4b8] sm:$0xff] }
  0x5a   :  { %207 = vst [vmem:[#allocation2 + $0x2c0] sm:$0xff] %v206_v24  ;;  %v334_v24 = vld [vmem:[%s14221_s4 + $0x4c0] sm:$0xff] }
  0x5b   :  { %209 = vst [vmem:[#allocation2 + $0x2c8] sm:$0xff] %v208_v25  ;;  %v336_v25 = vld [vmem:[%s14221_s4 + $0x4c8] sm:$0xff] }
  0x5c   :  { %211 = vst [vmem:[#allocation2 + $0x2d0] sm:$0xff] %v210_v26 }
  0x5d   :  { %213 = vst [vmem:[#allocation2 + $0x2d8] sm:$0xff] %v212_v27 }
  0x5e   :  { %215 = vst [vmem:[#allocation2 + $0x2e0] sm:$0xff] %v214_v28 }
  0x5f   :  { %217 = vst [vmem:[#allocation2 + $0x2e8] sm:$0xff] %v216_v29 }
  0x60   :  { %219 = vst [vmem:[#allocation2 + $0x2f0] sm:$0xff] %v218_v30 }
  0x61   :  { %221 = vst [vmem:[#allocation2 + $0x2f8] sm:$0xff] %v220_v31 }
  0x62   :  { %223 = vst [vmem:[#allocation2 + $0x300] sm:$0xff] %v222_v32 }
  0x63   :  { %225 = vst [vmem:[#allocation2 + $0x308] sm:$0xff] %v224_v33 }
  0x64   :  { %227 = vst [vmem:[#allocation2 + $0x310] sm:$0xff] %v226_v34 }
  0x65   :  { %229 = vst [vmem:[#allocation2 + $0x318] sm:$0xff] %v228_v35 }
  0x66   :  { %231 = vst [vmem:[#allocation2 + $0x320] sm:$0xff] %v230_v36 }
  0x67   :  { %233 = vst [vmem:[#allocation2 + $0x328] sm:$0xff] %v232_v37 }
  0x68   :  { %235 = vst [vmem:[#allocation2 + $0x330] sm:$0xff] %v234_v38 }
  0x69   :  { %237 = vst [vmem:[#allocation2 + $0x338] sm:$0xff] %v236_v39 }
  0x6a   :  { %239 = vst [vmem:[#allocation2 + $0x340] sm:$0xff] %v238_v40 }
  0x6b   :  { %241 = vst [vmem:[#allocation2 + $0x348] sm:$0xff] %v240_v41 }
  0x6c   :  { %243 = vst [vmem:[#allocation2 + $0x350] sm:$0xff] %v242_v42 }
  0x6d   :  { %245 = vst [vmem:[#allocation2 + $0x358] sm:$0xff] %v244_v43 }
  0x6e   :  { %247 = vst [vmem:[#allocation2 + $0x360] sm:$0xff] %v246_v44 }
  0x6f   :  { %249 = vst [vmem:[#allocation2 + $0x368] sm:$0xff] %v248_v45 }
  0x70   :  { %251 = vst [vmem:[#allocation2 + $0x370] sm:$0xff] %v250_v46 }
  0x71   :  { %253 = vst [vmem:[#allocation2 + $0x378] sm:$0xff] %v252_v47 }
  0x72   :  { %255 = vst [vmem:[#allocation2 + $0x380] sm:$0xff] %v254_v48 }
  0x73   :  { %257 = vst [vmem:[#allocation2 + $0x388] sm:$0xff] %v256_v49 }
  0x74   :  { %259 = vst [vmem:[#allocation2 + $0x390] sm:$0xff] %v258_v50 }
  0x75   :  { %261 = vst [vmem:[#allocation2 + $0x398] sm:$0xff] %v260_v51 }
  0x76   :  { %263 = vst [vmem:[#allocation2 + $0x3a0] sm:$0xff] %v262_v52 }
  0x77   :  { %265 = vst [vmem:[#allocation2 + $0x3a8] sm:$0xff] %v264_v53 }
  0x78   :  { %267 = vst [vmem:[#allocation2 + $0x3b0] sm:$0xff] %v266_v54 }
  0x79   :  { %269 = vst [vmem:[#allocation2 + $0x3b8] sm:$0xff] %v268_v55 }
  0x7a   :  { %271 = vst [vmem:[#allocation2 + $0x3c0] sm:$0xff] %v270_v56 }
  0x7b   :  { %273 = vst [vmem:[#allocation2 + $0x3c8] sm:$0xff] %v272_v57 }
  0x7c   :  { %275 = vst [vmem:[#allocation2 + $0x3d0] sm:$0xff] %v274_v58 }
  0x7d   :  { %277 = vst [vmem:[#allocation2 + $0x3d8] sm:$0xff] %v276_v59 }
  0x7e   :  { %279 = vst [vmem:[#allocation2 + $0x3e0] sm:$0xff] %v278_v60 }
  0x7f   :  { %281 = vst [vmem:[#allocation2 + $0x3e8] sm:$0xff] %v280_v61 }
  0x80   :  { %283 = vst [vmem:[#allocation2 + $0x3f0] sm:$0xff] %v282_v62 }
  0x81   :  { %285 = vst [vmem:[#allocation2 + $0x3f8] sm:$0xff] %v284_v63 }
  0x82   :  { %287 = vst [vmem:[#allocation2 + $0x400] sm:$0xff] %v286_v0 }
  0x83   :  { %289 = vst [vmem:[#allocation2 + $0x408] sm:$0xff] %v288_v1 }
  0x84   :  { %291 = vst [vmem:[#allocation2 + $0x410] sm:$0xff] %v290_v2 }
  0x85   :  { %293 = vst [vmem:[#allocation2 + $0x418] sm:$0xff] %v292_v3 }
  0x86   :  { %295 = vst [vmem:[#allocation2 + $0x420] sm:$0xff] %v294_v4 }
  0x87   :  { %297 = vst [vmem:[#allocation2 + $0x428] sm:$0xff] %v296_v5 }
  0x88   :  { %299 = vst [vmem:[#allocation2 + $0x430] sm:$0xff] %v298_v6 }
  0x89   :  { %301 = vst [vmem:[#allocation2 + $0x438] sm:$0xff] %v300_v7 }
  0x8a   :  { %303 = vst [vmem:[#allocation2 + $0x440] sm:$0xff] %v302_v8 }
  0x8b   :  { %305 = vst [vmem:[#allocation2 + $0x448] sm:$0xff] %v304_v9 }
  0x8c   :  { %307 = vst [vmem:[#allocation2 + $0x450] sm:$0xff] %v306_v10 }
  0x8d   :  { %309 = vst [vmem:[#allocation2 + $0x458] sm:$0xff] %v308_v11 }
  0x8e   :  { %311 = vst [vmem:[#allocation2 + $0x460] sm:$0xff] %v310_v12 }
  0x8f   :  { %313 = vst [vmem:[#allocation2 + $0x468] sm:$0xff] %v312_v13 }
  0x90   :  { %315 = vst [vmem:[#allocation2 + $0x470] sm:$0xff] %v314_v14 }
  0x91   :  { %317 = vst [vmem:[#allocation2 + $0x478] sm:$0xff] %v316_v15 }
  0x92   :  { %319 = vst [vmem:[#allocation2 + $0x480] sm:$0xff] %v318_v16 }
  0x93   :  { %321 = vst [vmem:[#allocation2 + $0x488] sm:$0xff] %v320_v17 }
  0x94   :  { %323 = vst [vmem:[#allocation2 + $0x490] sm:$0xff] %v322_v18 }
  0x95   :  { %325 = vst [vmem:[#allocation2 + $0x498] sm:$0xff] %v324_v19 }
  0x96   :  { %327 = vst [vmem:[#allocation2 + $0x4a0] sm:$0xff] %v326_v20 }
  0x97   :  { %329 = vst [vmem:[#allocation2 + $0x4a8] sm:$0xff] %v328_v21 }
  0x98   :  { %331 = vst [vmem:[#allocation2 + $0x4b0] sm:$0xff] %v330_v22 }
  0x99   :  { %333 = vst [vmem:[#allocation2 + $0x4b8] sm:$0xff] %v332_v23 }
  0x9a   :  { %335 = vst [vmem:[#allocation2 + $0x4c0] sm:$0xff] %v334_v24 }
  0x9b   :  { %337 = vst [vmem:[#allocation2 + $0x4c8] sm:$0xff] %v336_v25 }
  0x9c   :  { %343 = vsyncadd [#allocation3], 19712  ;;  %v374_v26 = vld [vmem:[%s14219_s2 + $0x138] sm:$0x33]  ;;  %vm390_vm0 = vcmask 1041408   ;;  %vm386_vm1 = vcmask 31744  }
  0x9d   :  { %v378_v27 = vunpack.c.l.b16 %v374_v26  ;;  %v379_v28 = vunpack.c.h.b16 %v374_v26  ;;  %v375_v29 = vld [vmem:[%s14219_s2 + $0x140] sm:$0x33]  ;;  %v372_v31 = vld [vmem:[%s14219_s2 + $0x128] sm:$0x33]  ;;  %v6808_v41 = vld [vmem:[%s14219_s2 + $0xf0] sm:$0xf] }
  0x9e   :  { %v371_v30 = vld [vmem:[%s14219_s2 + $0x120] sm:$0x33]  ;;  %v380_v32 = vunpack.c.l.b16 %v375_v29  ;;  %v381_v33 = vunpack.c.h.b16 %v375_v29  ;;  %v531_v38 = vunpack.c.l.b16 %v372_v31  ;;  %v532_v39 = vunpack.c.h.b16 %v372_v31  ;;  %v9116_v42 = vld [vmem:[%s14219_s2 + $0x104] sm:$0xf0]  ;;  %v9114_v47 = vld [vmem:[%s14219_s2 + $0xf4] sm:$0xf] }
  0x9f   :  { %v529_v34 = vunpack.c.l.b16 %v371_v30  ;;  %v530_v35 = vunpack.c.h.b16 %v371_v30  ;;  %v382_v36 = vpack.c.b16 %v378_v27, %v378_v27  ;;  %v383_v37 = vpack.c.b16 %v379_v28, %v379_v28  ;;  %v345_v40 = vld [vmem:[%s14218_s1] sm:$0x3]  ;;  %v6810_v48 = vld [vmem:[%s14219_s2 + $0x108] sm:$0xf0]  ;;  %v6816_v49 = vld [vmem:[%s14219_s2 + $0xf8] sm:$0xf] }
  0xa0   :  { %v384_v43 = vpack.c.b16 %v380_v32, %v380_v32  ;;  %v385_v44 = vpack.c.b16 %v381_v33, %v381_v33  ;;  %v559_v52 = vpack.c.b16 %v531_v38, %v531_v38  ;;  %v560_v53 = vpack.c.b16 %v532_v39, %v532_v39  ;;  %v9117_v54 = vld [vmem:[%s14219_s2 + $0x10c] sm:$0xf0]  ;;  %v9115_v55 = vld [vmem:[%s14219_s2 + $0xfc] sm:$0xf]  ;;  %v6818_v60 = vld [vmem:[%s14219_s2 + $0x110] sm:$0xf0] }
  0xa1   :  { %v557_v45 = vpack.c.b16 %v529_v34, %v529_v34  ;;  %v558_v46 = vpack.c.b16 %v530_v35, %v530_v35  ;;  %v392_v50 = vsel %vm390_vm0, %v382_v36, 0  ;;  %v395_v51 = vsel %vm390_vm0, %v383_v37, 0  ;;  %v6792_v2 = vld [vmem:[%s14219_s2 + $0xc0] sm:$0xf]  ;;  %v9112_v3 = vld [vmem:[%s14219_s2 + $0xd4] sm:$0xf0] }
  0xa2   :  { %410 = vmatpush.bf16.msra.mxu0 %v392_v50  ;;  %423 = vmatpush.bf16.msra.mxu1 %v395_v51  ;;  %v398_v56 = vsel %vm390_vm0, %v384_v43, 0  ;;  %v401_v57 = vsel %vm390_vm0, %v385_v44, 0  ;;  %v596_v61 = vsel %vm390_vm0, %v559_v52, 0  ;;  %v599_v62 = vsel %vm390_vm0, %v560_v53, 0  ;;  %v9110_v6 = vld [vmem:[%s14219_s2 + $0xc4] sm:$0xf] }
  0xa3   :  { %v590_v58 = vsel %vm390_vm0, %v557_v45, 0  ;;  %v593_v59 = vsel %vm390_vm0, %v558_v46, 0  ;;  %436 = vmatpush.bf16.msra.mxu2 %v398_v56  ;;  %449 = vmatpush.bf16.msra.mxu3 %v401_v57  ;;  %v10414_v63 = vpack.c.bf16 %v345_v40, %v345_v40  ;;  %v6809_v0 = vor.u32 %v9116_v42, %v6808_v41  ;;  %v6794_v7 = vld [vmem:[%s14219_s2 + $0xd8] sm:$0xf0]  ;;  %v6800_v8 = vld [vmem:[%s14219_s2 + $0xc8] sm:$0xf] }
  0xa4   :  { %v6813_v1 = vor.u32 %v9114_v47, %v6810_v48  ;;  %v6817_v4 = vor.u32 %v9117_v54, %v6816_v49  ;;  %v6821_v5 = vor.u32 %v9115_v55, %v6818_v60  ;;  %v9113_v9 = vld [vmem:[%s14219_s2 + $0xdc] sm:$0xf0]  ;;  %v9111_v10 = vld [vmem:[%s14219_s2 + $0xcc] sm:$0xf]  ;;  %v6802_v11 = vld [vmem:[%s14219_s2 + $0xe0] sm:$0xf0]  ;;  %v6793_v12 = vor.u32 %v9112_v3, %v6792_v2 }
  0xa5   :  { %6723 = vmatmul.msk.bf16.vlgmr.msra.gmra.mxu1 %vm386_vm1, %v10414_v63  ;;  %6722 = vmatmul.msk.bf16.vlgmr.msra.gmra.mxu0 %vm386_vm1, %v10414_v63  ;;  %v6797_v13 = vor.u32 %v9110_v6, %v6794_v7  ;;  %v6776_v14 = vld [vmem:[%s14219_s2 + $0x90] sm:$0xf]  ;;  %v9108_v15 = vld [vmem:[%s14219_s2 + $0xa4] sm:$0xf0]  ;;  %v6801_v16 = vor.u32 %v9113_v9, %v6800_v8  ;;  %v6805_v17 = vor.u32 %v9111_v10, %v6802_v11  ;;  %v9106_v18 = vld [vmem:[%s14219_s2 + $0x94] sm:$0xf] }
  0xa6   :  { %602 = vmatpush.bf16.msrb.mxu0 %v590_v58  ;;  %615 = vmatpush.bf16.msrb.mxu1 %v593_v59  ;;  %v6778_v19 = vld [vmem:[%s14219_s2 + $0xa8] sm:$0xf0]  ;;  %v6784_v20 = vld [vmem:[%s14219_s2 + $0x98] sm:$0xf]  ;;  %v9109_v21 = vld [vmem:[%s14219_s2 + $0xac] sm:$0xf0]  ;;  %v6777_v24 = vor.u32 %v9108_v15, %v6776_v14 }
  0xa7   :  { %628 = vmatpush.bf16.msrb.mxu2 %v596_v61  ;;  %641 = vmatpush.bf16.msrb.mxu3 %v599_v62  ;;  %v9107_v22 = vld [vmem:[%s14219_s2 + $0x9c] sm:$0xf]  ;;  %v6786_v23 = vld [vmem:[%s14219_s2 + $0xb0] sm:$0xf0]  ;;  %v6781_v25 = vor.u32 %v9106_v18, %v6778_v19  ;;  %v6760_v26 = vld [vmem:[%s14219_s2 + $0x60] sm:$0xf]  ;;  %v6785_v28 = vor.u32 %v9109_v21, %v6784_v20 }
  0xa8   :  { %6724 = vmatmul.msk.bf16.vlgmr.msra.gmra.mxu2 %vm386_vm1, %v10414_v63  ;;  %6725 = vmatmul.msk.bf16.vlgmr.msra.gmra.mxu3 %vm386_vm1, %v10414_v63  ;;  %v9104_v27 = vld [vmem:[%s14219_s2 + $0x74] sm:$0xf0]  ;;  %v6789_v29 = vor.u32 %v9107_v22, %v6786_v23  ;;  %v9102_v30 = vld [vmem:[%s14219_s2 + $0x64] sm:$0xf]  ;;  %v6762_v31 = vld [vmem:[%s14219_s2 + $0x78] sm:$0xf0] }
  0xa9   :  { %v6768_v32 = vld [vmem:[%s14219_s2 + $0x68] sm:$0xf]  ;;  %v9105_v33 = vld [vmem:[%s14219_s2 + $0x7c] sm:$0xf0]  ;;  %v9103_v34 = vld [vmem:[%s14219_s2 + $0x6c] sm:$0xf]  ;;  %v6761_v36 = vor.u32 %v9104_v27, %v6760_v26  ;;  %v6765_v37 = vor.u32 %v9102_v30, %v6762_v31 }
  0xaa   :  { %603 = vmatpush.bf16.msrb.mxu0 %v6809_v0  ;;  %616 = vmatpush.bf16.msrb.mxu1 %v6813_v1  ;;  %v6770_v35 = vld [vmem:[%s14219_s2 + $0x80] sm:$0xf0]  ;;  %v6744_v38 = vld [vmem:[%s14219_s2 + $0x30] sm:$0xf]  ;;  %v9100_v39 = vld [vmem:[%s14219_s2 + $0x44] sm:$0xf0]  ;;  %v6769_v40 = vor.u32 %v9105_v33, %v6768_v32 }
  0xab   :  { %629 = vmatpush.bf16.msrb.mxu2 %v6817_v4  ;;  %642 = vmatpush.bf16.msrb.mxu3 %v6821_v5  ;;  %v6773_v41 = vor.u32 %v9103_v34, %v6770_v35  ;;  %v9098_v42 = vld [vmem:[%s14219_s2 + $0x34] sm:$0xf]  ;;  %v6746_v43 = vld [vmem:[%s14219_s2 + $0x48] sm:$0xf0]  ;;  %v6752_v44 = vld [vmem:[%s14219_s2 + $0x38] sm:$0xf]  ;;  %v6745_v48 = vor.u32 %v9100_v39, %v6744_v38 }
  0xac   :  { %v9101_v45 = vld [vmem:[%s14219_s2 + $0x4c] sm:$0xf0]  ;;  %v9099_v46 = vld [vmem:[%s14219_s2 + $0x3c] sm:$0xf]  ;;  %v6754_v47 = vld [vmem:[%s14219_s2 + $0x50] sm:$0xf0]  ;;  %v6749_v49 = vor.u32 %v9098_v42, %v6746_v43 }
  0xad   :  { %v6728_v50 = vld [vmem:[%s14219_s2] sm:$0xf]  ;;  %v9096_v51 = vld [vmem:[%s14219_s2 + $0x14] sm:$0xf0]  ;;  %v9094_v52 = vld [vmem:[%s14219_s2 + $0x4] sm:$0xf]  ;;  %v6753_v53 = vor.u32 %v9101_v45, %v6752_v44  ;;  %v6757_v54 = vor.u32 %v9099_v46, %v6754_v47 }
  0xae   :  { %604 = vmatpush.bf16.msrb.mxu0 %v6793_v12  ;;  %617 = vmatpush.bf16.msrb.mxu1 %v6797_v13  ;;  %v6730_v55 = vld [vmem:[%s14219_s2 + $0x18] sm:$0xf0]  ;;  %v6736_v56 = vld [vmem:[%s14219_s2 + $0x8] sm:$0xf]  ;;  %v9097_v57 = vld [vmem:[%s14219_s2 + $0x1c] sm:$0xf0]  ;;  %v6729_v1 = vor.u32 %v9096_v51, %v6728_v50 }
  0xaf   :  { %630 = vmatpush.bf16.msrb.mxu2 %v6801_v16  ;;  %643 = vmatpush.bf16.msrb.mxu3 %v6805_v17  ;;  %v9095_v58 = vld [vmem:[%s14219_s2 + $0xc] sm:$0xf]  ;;  %v6738_v59 = vld [vmem:[%s14219_s2 + $0x20] sm:$0xf0]  ;;  %v6944_v60 = vld [vmem:[%s14219_s2 + $0x2b8] sm:$0xf]  ;;  %v6733_v2 = vor.u32 %v9094_v52, %v6730_v55  ;;  %v6737_v4 = vor.u32 %v9097_v57, %v6736_v56 }
  0xb0   :  { %v9148_v61 = vld [vmem:[%s14219_s2 + $0x2cc] sm:$0xf0]  ;;  %v7072_v62 = vld [vmem:[%s14219_s2 + $0x438] sm:$0xf]  ;;  %v344_v3 = vld [vmem:[%s14217_s0] sm:$0x3]  ;;  %v6741_v5 = vor.u32 %v9095_v58, %v6738_v59 }
  0xb1   :  { %v9180_v0 = vld [vmem:[%s14219_s2 + $0x44c] sm:$0xf0]  ;;  %v6945_v6 = vor.u32 %v9148_v61, %v6944_v60  ;;  %v346_v8 = vpack.c.bf16 %v344_v3, %v344_v3  ;;  %v6928_v9 = vld [vmem:[%s14219_s2 + $0x288] sm:$0xf]  ;;  %v9144_v10 = vld [vmem:[%s14219_s2 + $0x29c] sm:$0xf0] }
  0xb2   :  { %605 = vmatpush.bf16.msrb.mxu0 %v6777_v24  ;;  %618 = vmatpush.bf16.msrb.mxu1 %v6781_v25  ;;  %v7073_v7 = vor.u32 %v9180_v0, %v7072_v62  ;;  %vm585_vm2 = vcmask 818176   ;;  %v6929_v11 = vor.u32 %v9144_v10, %v6928_v9  ;;  %v6912_v12 = vld [vmem:[%s14219_s2 + $0x258] sm:$0xf]  ;;  %v9140_v13 = vld [vmem:[%s14219_s2 + $0x26c] sm:$0xf0]  ;;  %vm1353_vm3 = vcmask 1043456  }
  0xb3   :  { %631 = vmatpush.bf16.msrb.mxu2 %v6785_v28  ;;  %644 = vmatpush.bf16.msrb.mxu3 %v6789_v29  ;;  %v6913_v14 = vor.u32 %v9140_v13, %v6912_v12  ;;  %v7056_v15 = vld [vmem:[%s14219_s2 + $0x408] sm:$0xf]  ;;  %v9176_v16 = vld [vmem:[%s14219_s2 + $0x41c] sm:$0xf0]  ;;  %v7040_v20 = vld [vmem:[%s14219_s2 + $0x3d8] sm:$0xf] }
  0xb4   :  { %v6896_v17 = vld [vmem:[%s14219_s2 + $0x228] sm:$0xf]  ;;  %v7057_v18 = vor.u32 %v9176_v16, %v7056_v15  ;;  %v9136_v19 = vld [vmem:[%s14219_s2 + $0x23c] sm:$0xf0]  ;;  %v9172_v21 = vld [vmem:[%s14219_s2 + $0x3ec] sm:$0xf0] }
  0xb5   :  { %v6897_v22 = vor.u32 %v9136_v19, %v6896_v17  ;;  %v7041_v23 = vor.u32 %v9172_v21, %v7040_v20  ;;  %v6880_v24 = vld [vmem:[%s14219_s2 + $0x1f8] sm:$0xf]  ;;  %v9132_v25 = vld [vmem:[%s14219_s2 + $0x20c] sm:$0xf0]  ;;  %v7024_v27 = vld [vmem:[%s14219_s2 + $0x3a8] sm:$0xf] }
  0xb6   :  { %606 = vmatpush.bf16.msrb.mxu0 %v6761_v36  ;;  %619 = vmatpush.bf16.msrb.mxu1 %v6765_v37  ;;  %v6881_v26 = vor.u32 %v9132_v25, %v6880_v24  ;;  %v9168_v28 = vld [vmem:[%s14219_s2 + $0x3bc] sm:$0xf0]  ;;  %v6864_v29 = vld [vmem:[%s14219_s2 + $0x1c8] sm:$0xf]  ;;  %v7008_v32 = vld [vmem:[%s14219_s2 + $0x378] sm:$0xf] }
  0xb7   :  { %632 = vmatpush.bf16.msrb.mxu2 %v6769_v40  ;;  %645 = vmatpush.bf16.msrb.mxu3 %v6773_v41  ;;  %v7025_v30 = vor.u32 %v9168_v28, %v7024_v27  ;;  %v9128_v31 = vld [vmem:[%s14219_s2 + $0x1dc] sm:$0xf0]  ;;  %v9164_v33 = vld [vmem:[%s14219_s2 + $0x38c] sm:$0xf0]  ;;  %v6848_v35 = vld [vmem:[%s14219_s2 + $0x198] sm:$0xf] }
  0xb8   :  { %v6865_v34 = vor.u32 %v9128_v31, %v6864_v29  ;;  %v10623_v36 = vld [vmem:[%s14219_s2 + $0x648] sm:$0xff]  ;;  %v7009_v37 = vor.u32 %v9164_v33, %v7008_v32  ;;  %v9124_v38 = vld [vmem:[%s14219_s2 + $0x1ac] sm:$0xf0]  ;;  %v9210_v40 = vld [vmem:[%s14219_s2 + $0x5bc] sm:$0xf]  ;;  %vm1349_vm8 = vcmask 326656  }
  0xb9   :  { %v1133_v39 = vunpack.c.l.b16 %v10623_v36  ;;  %v6992_v41 = vld [vmem:[%s14219_s2 + $0x348] sm:$0xf]  ;;  %v9160_v42 = vld [vmem:[%s14219_s2 + $0x35c] sm:$0xf0]  ;;  %v7202_v43 = vld [vmem:[%s14219_s2 + $0x5d0] sm:$0xf0] }
  0xba   :  { %607 = vmatpush.bf16.msrb.mxu0 %v6745_v48  ;;  %620 = vmatpush.bf16.msrb.mxu1 %v6749_v49  ;;  %v7205_v45 = vor.u32 %v9210_v40, %v7202_v43  ;;  %v7232_v46 = vld [vmem:[%s14219_s2 + $0x618] sm:$0xf]  ;;  %v9220_v47 = vld [vmem:[%s14219_s2 + $0x62c] sm:$0xf0]  ;;  %v6849_v48 = vor.u32 %v9124_v38, %v6848_v35  ;;  %v6832_v49 = vld [vmem:[%s14219_s2 + $0x168] sm:$0xf] }
  0xbb   :  { %633 = vmatpush.bf16.msrb.mxu2 %v6753_v53  ;;  %646 = vmatpush.bf16.msrb.mxu3 %v6757_v54  ;;  %v1241_v44 = vpack.c.b16 %v1133_v39, %v1133_v39  ;;  %v9120_v50 = vld [vmem:[%s14219_s2 + $0x17c] sm:$0xf0]  ;;  %v9178_v51 = vld [vmem:[%s14219_s2 + $0x43c] sm:$0xf]  ;;  %v6993_v53 = vor.u32 %v9160_v42, %v6992_v41  ;;  %v7074_v54 = vld [vmem:[%s14219_s2 + $0x450] sm:$0xf0]  ;;  %v7233_v56 = vor.u32 %v9220_v47, %v7232_v46 }
  0xbc   :  { %v6976_v55 = vld [vmem:[%s14219_s2 + $0x318] sm:$0xf]  ;;  %v9156_v57 = vld [vmem:[%s14219_s2 + $0x32c] sm:$0xf0]  ;;  %v9206_v58 = vld [vmem:[%s14219_s2 + $0x58c] sm:$0xf]  ;;  %v6833_v61 = vor.u32 %v9120_v50, %v6832_v49  ;;  %v7077_v62 = vor.u32 %v9178_v51, %v7074_v54 }
  0xbd   :  { %v1355_v52 = vsel %vm1353_vm3, %v1241_v44, 0  ;;  %v7186_v59 = vld [vmem:[%s14219_s2 + $0x5a0] sm:$0xf0]  ;;  %v6977_v0 = vor.u32 %v9156_v57, %v6976_v55  ;;  %v9146_v9 = vld [vmem:[%s14219_s2 + $0x2bc] sm:$0xf]  ;;  %vm2551_vm13 = vcmask 654336  }
  0xbe   :  { %608 = vmatpush.bf16.msrb.mxu0 %v6729_v1  ;;  %621 = vmatpush.bf16.msrb.mxu1 %v6733_v2  ;;  %v7189_v60 = vor.u32 %v9206_v58, %v7186_v59  ;;  %v7216_v1 = vld [vmem:[%s14219_s2 + $0x5e8] sm:$0xf]  ;;  %v9216_v2 = vld [vmem:[%s14219_s2 + $0x5fc] sm:$0xf0]  ;;  %v6946_v10 = vld [vmem:[%s14219_s2 + $0x2d0] sm:$0xf0] }
  0xbf   :  { %634 = vmatpush.bf16.msrb.mxu2 %v6737_v4  ;;  %647 = vmatpush.bf16.msrb.mxu3 %v6741_v5  ;;  %v7217_v3 = vor.u32 %v9216_v2, %v7216_v1  ;;  %v9174_v4 = vld [vmem:[%s14219_s2 + $0x40c] sm:$0xf]  ;;  %v7058_v5 = vld [vmem:[%s14219_s2 + $0x420] sm:$0xf0]  ;;  %v6949_v12 = vor.u32 %v9146_v9, %v6946_v10  ;;  %v9202_v13 = vld [vmem:[%s14219_s2 + $0x55c] sm:$0xf] }
  0xc0   :  { %v7200_v16 = vld [vmem:[%s14219_s2 + $0x5b8] sm:$0xf]  ;;  %v9212_v17 = vld [vmem:[%s14219_s2 + $0x5cc] sm:$0xf0]  ;;  %v7042_v20 = vld [vmem:[%s14219_s2 + $0x3f0] sm:$0xf0] }
  0xc1   :  { %6822 = vmatmul.msk.bf16.vlgmr.msrb.gmra.mxu0 %vm585_vm2, %v346_v8  ;;  %6823 = vmatmul.msk.bf16.vlgmr.msrb.gmra.mxu1 %vm585_vm2, %v346_v8  ;;  %v7201_v19 = vor.u32 %v9212_v17, %v7200_v16  ;;  %v9198_v25 = vld [vmem:[%s14219_s2 + $0x52c] sm:$0xf]  ;;  %v7184_v27 = vld [vmem:[%s14219_s2 + $0x588] sm:$0xf]  ;;  %v9208_v31 = vld [vmem:[%s14219_s2 + $0x59c] sm:$0xf0] }
  0xc2   :  { %1366 = vmatpush.bf16.msra.mxu0 %v6945_v6  ;;  %6824 = vmatmul.msk.bf16.vlgmr.msrb.gmra.mxu2 %vm585_vm2, %v346_v8  ;;  %v6960_v6 = vld [vmem:[%s14219_s2 + $0x2e8] sm:$0xf]  ;;  %v7185_v32 = vor.u32 %v9208_v31, %v7184_v27  ;;  %v9166_v33 = vld [vmem:[%s14219_s2 + $0x3ac] sm:$0xf]  ;;  %v6914_v38 = vld [vmem:[%s14219_s2 + $0x270] sm:$0xf0] }
  0xc3   :  { %1379 = vmatpush.bf16.msra.mxu2 %v7073_v7  ;;  %6825 = vmatmul.msk.bf16.vlgmr.msrb.gmra.mxu3 %vm585_vm2, %v346_v8  ;;  %v7061_v7 = vor.u32 %v9174_v4, %v7058_v5  ;;  %v9152_v8 = vld [vmem:[%s14219_s2 + $0x2fc] sm:$0xf0]  ;;  %v9194_v39 = vld [vmem:[%s14219_s2 + $0x4fc] sm:$0xf]  ;;  %v7138_v41 = vld [vmem:[%s14219_s2 + $0x510] sm:$0xf0] }
  0xc4   :  { %1444 = vmatpush.bf16.msra.mxu1 %v7205_v45  ;;  %1410 = vmatpush.bf16.msra.mxu3 %v1355_v52  ;;  %v7168_v42 = vld [vmem:[%s14219_s2 + $0x558] sm:$0xf]  ;;  %v9204_v43 = vld [vmem:[%s14219_s2 + $0x56c] sm:$0xf0]  ;;  %v7141_v44 = vor.u32 %v9194_v39, %v7138_v41  ;;  %v9162_v46 = vld [vmem:[%s14219_s2 + $0x37c] sm:$0xf] }
  0xc5   :  { %v7169_v45 = vor.u32 %v9204_v43, %v7168_v42  ;;  %v7010_v47 = vld [vmem:[%s14219_s2 + $0x390] sm:$0xf0]  ;;  %v9134_v49 = vld [vmem:[%s14219_s2 + $0x22c] sm:$0xf]  ;;  %v6898_v50 = vld [vmem:[%s14219_s2 + $0x240] sm:$0xf0] }
  0xc6   :  { %1367 = vmatpush.bf16.msra.mxu0 %v6929_v11  ;;  %v6961_v11 = vor.u32 %v9152_v8, %v6960_v6  ;;  %v9190_v51 = vld [vmem:[%s14219_s2 + $0x4cc] sm:$0xf]  ;;  %v6901_v54 = vor.u32 %v9134_v49, %v6898_v50  ;;  %v7122_v55 = vld [vmem:[%s14219_s2 + $0x4e0] sm:$0xf0]  ;;  %v9200_v57 = vld [vmem:[%s14219_s2 + $0x53c] sm:$0xf0] }
  0xc7   :  { %1380 = vmatpush.bf16.msra.mxu2 %v7057_v18  ;;  %v9170_v18 = vld [vmem:[%s14219_s2 + $0x3dc] sm:$0xf]  ;;  %v7106_v6 = vld [vmem:[%s14219_s2 + $0x4b0] sm:$0xf0]  ;;  %v9196_v8 = vld [vmem:[%s14219_s2 + $0x50c] sm:$0xf0] }
  0xc8   :  { %1445 = vmatpush.bf16.msra.mxu1 %v7189_v60  ;;  %1411 = vmatpush.bf16.msra.mxu3 %v7233_v56  ;;  %v7045_v21 = vor.u32 %v9170_v18, %v7042_v20  ;;  %v7152_v56 = vld [vmem:[%s14219_s2 + $0x528] sm:$0xf]  ;;  %v7125_v60 = vor.u32 %v9190_v51, %v7122_v55  ;;  %v9130_v2 = vld [vmem:[%s14219_s2 + $0x1fc] sm:$0xf]  ;;  %v9126_v16 = vld [vmem:[%s14219_s2 + $0x1cc] sm:$0xf] }
  0xc9   :  { %v9186_v4 = vld [vmem:[%s14219_s2 + $0x49c] sm:$0xf]  ;;  %v6866_v17 = vld [vmem:[%s14219_s2 + $0x1e0] sm:$0xf0]  ;;  %v9182_v18 = vld [vmem:[%s14219_s2 + $0x46c] sm:$0xf] }
  0xca   :  { %1368 = vmatpush.bf16.msra.mxu0 %v6913_v14  ;;  %v7170_v14 = vld [vmem:[%s14219_s2 + $0x570] sm:$0xf0]  ;;  %v7109_v9 = vor.u32 %v9186_v4, %v7106_v6  ;;  %v7104_v39 = vld [vmem:[%s14219_s2 + $0x498] sm:$0xf]  ;;  %v7088_v50 = vld [vmem:[%s14219_s2 + $0x468] sm:$0xf] }
  0xcb   :  { %1381 = vmatpush.bf16.msra.mxu2 %v7041_v23  ;;  %v7173_v15 = vor.u32 %v9202_v13, %v7170_v14  ;;  %v6930_v23 = vld [vmem:[%s14219_s2 + $0x2a0] sm:$0xf0]  ;;  %v6978_v13 = vld [vmem:[%s14219_s2 + $0x330] sm:$0xf0]  ;;  %v9184_v51 = vld [vmem:[%s14219_s2 + $0x47c] sm:$0xf0] }
  0xcc   :  { %1412 = vmatpush.bf16.msra.mxu3 %v7217_v3  ;;  %v6882_v3 = vld [vmem:[%s14219_s2 + $0x210] sm:$0xf0] }
  0xcd   :  { %1446 = vmatpush.bf16.msra.mxu1 %v7173_v15  ;;  %v6885_v5 = vor.u32 %v9130_v2, %v6882_v3 }
  0xce   :  { %1369 = vmatpush.bf16.msra.mxu0 %v6897_v22  ;;  %v9142_v22 = vld [vmem:[%s14219_s2 + $0x28c] sm:$0xf] }
  0xcf   :  { %1382 = vmatpush.bf16.msra.mxu2 %v7025_v30  ;;  %v6933_v24 = vor.u32 %v9142_v22, %v6930_v23  ;;  %v7090_v22 = vld [vmem:[%s14219_s2 + $0x480] sm:$0xf0]  ;;  %v7120_v23 = vld [vmem:[%s14219_s2 + $0x4c8] sm:$0xf] }
  0xd0   :  { %1418 = vmatpush.bf16.msrb.mxu3 %v6949_v12  ;;  %v9154_v12 = vld [vmem:[%s14219_s2 + $0x31c] sm:$0xf]  ;;  %v7093_v27 = vor.u32 %v9182_v18, %v7090_v22 }
  0xd1   :  { %v6981_v15 = vor.u32 %v9154_v12, %v6978_v13 }
  0xd2   :  { %1370 = vmatpush.bf16.msra.mxu0 %v6881_v26  ;;  %v7154_v26 = vld [vmem:[%s14219_s2 + $0x540] sm:$0xf0] }
  0xd3   :  { %1383 = vmatpush.bf16.msra.mxu2 %v7009_v37  ;;  %v7157_v30 = vor.u32 %v9198_v25, %v7154_v26  ;;  %v9138_v37 = vld [vmem:[%s14219_s2 + $0x25c] sm:$0xf]  ;;  %v653_v26 = vld [vmem:[%s14219_s2 + $0x150] sm:$0x11] }
  0xd4   :  { %1419 = vmatpush.bf16.msrb.mxu3 %v6933_v24  ;;  %v6917_v40 = vor.u32 %v9138_v37, %v6914_v38  ;;  %v9192_v24 = vld [vmem:[%s14219_s2 + $0x4dc] sm:$0xf0]  ;;  %v6850_v37 = vld [vmem:[%s14219_s2 + $0x1b0] sm:$0xf0]  ;;  %v655_v41 = vunpack.c.l.bf16 %v653_v26  ;;  %v656_v42 = vunpack.c.h.bf16 %v653_v26 }
  0xd5   :  { %1447 = vmatpush.bf16.msra.mxu1 %v7157_v30  ;;  %v7121_v30 = vor.u32 %v9192_v24, %v7120_v23 }
  0xd6   :  { %1371 = vmatpush.bf16.msra.mxu0 %v6865_v34  ;;  %v7026_v34 = vld [vmem:[%s14219_s2 + $0x3c0] sm:$0xf0]  ;;  %v660_v55 = vperm.slane %v656_v42, 0 }
  0xd7   :  { %1384 = vmatpush.bf16.msra.mxu2 %v6993_v53  ;;  %v7029_v35 = vor.u32 %v9166_v33, %v7026_v34  ;;  %v6962_v33 = vld [vmem:[%s14219_s2 + $0x300] sm:$0xf0] }
  0xd8   :  { %1420 = vmatpush.bf16.msrb.mxu3 %v6917_v40  ;;  %v9188_v40 = vld [vmem:[%s14219_s2 + $0x4ac] sm:$0xf0] }
  0xd9   :  { %1448 = vmatpush.bf16.msra.mxu1 %v7141_v44  ;;  %v7105_v43 = vor.u32 %v9188_v40, %v7104_v39  ;;  %v7240_v44 = vld [vmem:[%s14219_s2 + $0x620] sm:$0xf] }
  0xda   :  { %1372 = vmatpush.bf16.msra.mxu0 %v6849_v48  ;;  %v7013_v48 = vor.u32 %v9162_v46, %v7010_v47  ;;  %v9118_v47 = vld [vmem:[%s14219_s2 + $0x16c] sm:$0xf] }
  0xdb   :  { %1385 = vmatpush.bf16.msra.mxu2 %v6977_v0  ;;  %v6994_v0 = vld [vmem:[%s14219_s2 + $0x360] sm:$0xf0] }
  0xdc   :  { %1421 = vmatpush.bf16.msrb.mxu3 %v6901_v54  ;;  %v659_v54 = vperm.slane %v655_v41, 0 }
  0xdd   :  { %1449 = vmatpush.bf16.msra.mxu1 %v7125_v60  ;;  %v7224_v60 = vld [vmem:[%s14219_s2 + $0x5f0] sm:$0xf] }
  0xde   :  { %1373 = vmatpush.bf16.msra.mxu0 %v6833_v61  ;;  %v7153_v61 = vor.u32 %v9200_v57, %v7152_v56  ;;  %v654_v56 = vld [vmem:[%s14219_s2 + $0x158] sm:$0x11]  ;;  %v7089_v57 = vor.u32 %v9184_v51, %v7088_v50  ;;  %v7234_v50 = vld [vmem:[%s14219_s2 + $0x630] sm:$0xf0] }
  0xdf   :  { %1386 = vmatpush.bf16.msra.mxu2 %v6961_v11  ;;  %v10815_v11 = vld [vmem:[%s14219_s2 + $0x650] sm:$0xff]  ;;  %v657_v2 = vunpack.c.l.bf16 %v654_v56  ;;  %v658_v3 = vunpack.c.h.bf16 %v654_v56  ;;  %v9147_v56 = vld [vmem:[%s14219_s2 + $0x2c4] sm:$0xf] }
  0xe0   :  { %1422 = vmatpush.bf16.msrb.mxu3 %v6885_v5  ;;  %v1135_v14 = vunpack.c.l.b16 %v10815_v11 }
  0xe1   :  { %1450 = vmatpush.bf16.msra.mxu1 %v7109_v9  ;;  %v662_v9 = vperm.slane %v658_v3, 0  ;;  %v9214_v3 = vld [vmem:[%s14219_s2 + $0x5ec] sm:$0xf] }
  0xe2   :  { %1431 = vmatpush.bf16.msrb.mxu0 %v7077_v62  ;;  %v9158_v62 = vld [vmem:[%s14219_s2 + $0x34c] sm:$0xf]  ;;  %v1243_v25 = vpack.c.b16 %v1135_v14, %v1135_v14 }
  0xe3   :  { %1392 = vmatpush.bf16.msrb.mxu2 %v7201_v19  ;;  %v6997_v1 = vor.u32 %v9158_v62, %v6994_v0 }
  0xe4   :  { %v1361_v31 = vsel %vm1353_vm3, %v1243_v25, 0 }
  0xe5   :  { %1451 = vmatpush.bf16.msra.mxu1 %v7093_v27 }
  0xe6   :  { %1432 = vmatpush.bf16.msrb.mxu0 %v7061_v7  ;;  %v7136_v7 = vld [vmem:[%s14219_s2 + $0x4f8] sm:$0xf] }
  0xe7   :  { %1393 = vmatpush.bf16.msrb.mxu2 %v7185_v32  ;;  %v7137_v10 = vor.u32 %v9196_v8, %v7136_v7  ;;  %v9150_v32 = vld [vmem:[%s14219_s2 + $0x2ec] sm:$0xf]  ;;  %v661_v8 = vperm.slane %v657_v2, 0 }
  0xe8   :  { %v6965_v34 = vor.u32 %v9150_v32, %v6962_v33  ;;  %v7208_v32 = vld [vmem:[%s14219_s2 + $0x5c0] sm:$0xf]  ;;  %v9213_v33 = vld [vmem:[%s14219_s2 + $0x5d4] sm:$0xf0] }
  0xe9   :  { %1514 = vmatpush.bf16.msrb.mxu1 %v1361_v31  ;;  %v7209_v40 = vor.u32 %v9213_v33, %v7208_v32 }
  0xea   :  { %1433 = vmatpush.bf16.msrb.mxu0 %v7045_v21  ;;  %v6869_v21 = vor.u32 %v9126_v16, %v6866_v17 }
  0xeb   :  { %1394 = vmatpush.bf16.msrb.mxu2 %v7169_v45  ;;  %v9221_v45 = vld [vmem:[%s14219_s2 + $0x634] sm:$0xf0] }
  0xec   :  { %1423 = vmatpush.bf16.msrb.mxu3 %v6869_v21  ;;  %v7241_v46 = vor.u32 %v9221_v45, %v7240_v44  ;;  %v7192_v44 = vld [vmem:[%s14219_s2 + $0x590] sm:$0xf]  ;;  %v9209_v45 = vld [vmem:[%s14219_s2 + $0x5a4] sm:$0xf0] }
  0xee   :  { %1434 = vmatpush.bf16.msrb.mxu0 %v7029_v35  ;;  %v9122_v35 = vld [vmem:[%s14219_s2 + $0x19c] sm:$0xf]  ;;  %1515 = vmatpush.bf16.msrb.mxu1 %v7241_v46 }
  0xef   :  { %1395 = vmatpush.bf16.msrb.mxu2 %v7153_v61  ;;  %v6853_v38 = vor.u32 %v9122_v35, %v6850_v37  ;;  %v9217_v61 = vld [vmem:[%s14219_s2 + $0x604] sm:$0xf0] }
  0xf1   :  { %1424 = vmatpush.bf16.msrb.mxu3 %v6853_v38 }
  0xf2   :  { %1435 = vmatpush.bf16.msrb.mxu0 %v7013_v48  ;;  %v6834_v48 = vld [vmem:[%s14219_s2 + $0x180] sm:$0xf0] }
  0xf3   :  { %1396 = vmatpush.bf16.msrb.mxu2 %v7137_v10  ;;  %v6837_v49 = vor.u32 %v9118_v47, %v6834_v48 }
  0xf5   :  { %1425 = vmatpush.bf16.msrb.mxu3 %v6837_v49  ;;  %v9218_v49 = vld [vmem:[%s14219_s2 + $0x61c] sm:$0xf] }
  0xf6   :  { %1436 = vmatpush.bf16.msrb.mxu0 %v6997_v1  ;;  %v7225_v1 = vor.u32 %v9217_v61, %v7224_v60  ;;  %v7176_v61 = vld [vmem:[%s14219_s2 + $0x560] sm:$0xf] }
  0xf7   :  { %1397 = vmatpush.bf16.msrb.mxu2 %v7121_v30 }
  0xf8   :  { %1516 = vmatpush.bf16.msrb.mxu1 %v7225_v1 }
  0xfa   :  { %1437 = vmatpush.bf16.msrb.mxu0 %v6981_v15 }
  0xfb   :  { %1398 = vmatpush.bf16.msrb.mxu2 %v7105_v43 }
  0xfe   :  { %1438 = vmatpush.bf16.msrb.mxu0 %v6965_v34 }
  0xff   :  { %1399 = vmatpush.bf16.msrb.mxu2 %v7089_v57 }
 0x122   :  { %v10729_v28 = vpop.f32.mrf.mxu1  ;;  %v10731_v29 = vpop.f32.mrf.mxu0 }
 0x12a   :  { %v427_v58 = vpop.f32.mrf.mxu1  ;;  %v414_v59 = vpop.f32.mrf.mxu0 }
 0x12b   :  { %v10775_v52 = vpop.f32.mrf.mxu2  ;;  %v10777_v53 = vpop.f32.mrf.mxu3 }
 0x133   :  { %v440_v19 = vpop.f32.mrf.mxu2  ;;  %v453_v20 = vpop.f32.mrf.mxu3 }
 0x13e   :  { %v610_v58 = vpop.f32.mrf.mxu0  ;;  %v623_v59 = vpop.f32.mrf.mxu1 }
 0x13f   :  { %v611_v62 = vadd.f32 %v610_v58, %v10731_v29  ;;  %v624_v0 = vadd.f32 %v623_v59, %v10729_v28  ;;  %v7193_v58 = vor.u32 %v9209_v45, %v7192_v44  ;;  %v6954_v59 = vld [vmem:[%s14219_s2 + $0x2d8] sm:$0xf0] }
 0x140   :  { %v6890_v44 = vld [vmem:[%s14219_s2 + $0x218] sm:$0xf0] }
 0x141   :  { %v663_v4 = vadd.f32 %v659_v54, %v611_v62  ;;  %v664_v5 = vadd.f32 %v660_v55, %v624_v0  ;;  %v7080_v54 = vld [vmem:[%s14219_s2 + $0x440] sm:$0xf]  ;;  %v9181_v55 = vld [vmem:[%s14219_s2 + $0x454] sm:$0xf0]  ;;  %v7237_v0 = vor.u32 %v9218_v49, %v7234_v50 }
 0x142   :  { %v9205_v62 = vld [vmem:[%s14219_s2 + $0x574] sm:$0xf0]  ;;  %v6920_v50 = vld [vmem:[%s14219_s2 + $0x260] sm:$0xf] }
 0x143   :  { %v671_v6 = vmin.f32 %v663_v4, 0.0  ;;  %v672_v7 = vmin.f32 %v664_v5, 0.0  ;;  %vm667_vm4 = vcmp.gt.f32.partialorder %v663_v4, 0.0  ;;  %vm668_vm5 = vcmp.gt.f32.partialorder %v664_v5, 0.0  ;;  %v9165_v49 = vld [vmem:[%s14219_s2 + $0x394] sm:$0xf0] }
 0x145   :  { %v675_v10 = vmul.f32 1.442695, %v671_v6  ;;  %v677_v12 = vmul.f32 1.442695, %v672_v7  ;;  %v636_v13 = vpop.f32.mrf.mxu2  ;;  %v6957_v6 = vor.u32 %v9147_v56, %v6954_v59  ;;  %v6874_v59 = vld [vmem:[%s14219_s2 + $0x1e8] sm:$0xf0] }
 0x146   :  { %v649_v14 = vpop.f32.mrf.mxu3  ;;  %v637_v15 = vadd.f32 %v636_v13, %v10775_v52  ;;  %v625_v28 = vpop.f32.mrf.mxu1  ;;  %v1134_v52 = vunpack.c.h.b16 %v10623_v36  ;;  %v6938_v13 = vld [vmem:[%s14219_s2 + $0x2a8] sm:$0xf0] }
 0x147   :  { %v650_v29 = vadd.f32 %v649_v14, %v10777_v53  ;;  %v612_v16 = vpop.f32.mrf.mxu0  ;;  %9675 = vpow2.f32 %v675_v10  ;;  %v7064_v10 = vld [vmem:[%s14219_s2 + $0x410] sm:$0xf]  ;;  %v9201_v28 = vld [vmem:[%s14219_s2 + $0x544] sm:$0xf0] }
 0x148   :  { %9677 = vpow2.f32 %v677_v12  ;;  %v665_v17 = vadd.f32 %v661_v8, %v637_v15  ;;  %v1242_v35 = vpack.c.b16 %v1134_v52, %v1134_v52  ;;  %v7081_v8 = vor.u32 %v9181_v55, %v7080_v54  ;;  %v9143_v12 = vld [vmem:[%s14219_s2 + $0x294] sm:$0xf]  ;;  %v9177_v15 = vld [vmem:[%s14219_s2 + $0x424] sm:$0xf0]  ;;  %v7112_v54 = vld [vmem:[%s14219_s2 + $0x4a0] sm:$0xf] }
 0x149   :  { %v666_v18 = vadd.f32 %v662_v9, %v650_v29  ;;  %v7177_v9 = vor.u32 %v9205_v62, %v7176_v61  ;;  %v7160_v29 = vld [vmem:[%s14219_s2 + $0x530] sm:$0xf]  ;;  %v9189_v55 = vld [vmem:[%s14219_s2 + $0x4b4] sm:$0xf0] }
 0x14a   :  { %v673_v19 = vmin.f32 %v665_v17, 0.0  ;;  %v1358_v48 = vsel %vm1353_vm3, %v1242_v35, 0  ;;  %vm669_vm6 = vcmp.gt.f32.partialorder %v665_v17, 0.0  ;;  %v9169_v35 = vld [vmem:[%s14219_s2 + $0x3c4] sm:$0xf0]  ;;  %v7113_v61 = vor.u32 %v9189_v55, %v7112_v54 }
 0x14b   :  { %v674_v20 = vmin.f32 %v666_v18, 0.0  ;;  %vm670_vm7 = vcmp.gt.f32.partialorder %v666_v18, 0.0  ;;  %v7000_v62 = vld [vmem:[%s14219_s2 + $0x350] sm:$0xf] }
 0x14c   :  { %v679_v21 = vmul.f32 1.442695, %v673_v19  ;;  %v7161_v19 = vor.u32 %v9201_v28, %v7160_v29  ;;  %v6888_v29 = vld [vmem:[%s14219_s2 + $0x200] sm:$0xf]  ;;  %v9133_v28 = vld [vmem:[%s14219_s2 + $0x214] sm:$0xf0] }
 0x14d   :  { %v681_v22 = vmul.f32 1.442695, %v674_v20  ;;  %v9676_v23 = vpop.eup %9675  ;;  %v638_v24 = vpop.f32.mrf.mxu2  ;;  %v9139_v20 = vld [vmem:[%s14219_s2 + $0x264] sm:$0xf] }
 0x14e   :  { %v651_v25 = vpop.f32.mrf.mxu3  ;;  %v9678_v26 = vpop.eup %9677  ;;  %v6826_v27 = vadd.f32 -1.0, %v9676_v23  ;;  %9679 = vpow2.f32 %v679_v21  ;;  %v6922_v21 = vld [vmem:[%s14219_s2 + $0x278] sm:$0xf0]  ;;  %v9173_v23 = vld [vmem:[%s14219_s2 + $0x3f4] sm:$0xf0] }
 0x14f   :  { %v6827_v53 = vadd.f32 -1.0, %v9678_v26  ;;  %9681 = vpow2.f32 %v681_v22  ;;  %v7048_v22 = vld [vmem:[%s14219_s2 + $0x3e0] sm:$0xf]  ;;  %v9149_v25 = vld [vmem:[%s14219_s2 + $0x2d4] sm:$0xf0]  ;;  %v6925_v52 = vor.u32 %v9139_v20, %v6922_v21  ;;  %v6889_v20 = vor.u32 %v9133_v28, %v6888_v29 }
 0x150   :  { %v687_v30 = vmul.f32 1.6732632, %v6826_v27  ;;  %v6952_v24 = vld [vmem:[%s14219_s2 + $0x2c0] sm:$0xf]  ;;  %v9197_v27 = vld [vmem:[%s14219_s2 + $0x514] sm:$0xf0] }
 0x151   :  { %v688_v31 = vmul.f32 1.6732632, %v6827_v53  ;;  %v7144_v26 = vld [vmem:[%s14219_s2 + $0x500] sm:$0xf]  ;;  %v7049_v53 = vor.u32 %v9173_v23, %v7048_v22  ;;  %v6953_v32 = vor.u32 %v9149_v25, %v6952_v24  ;;  %v6968_v21 = vld [vmem:[%s14219_s2 + $0x2f0] sm:$0xf] }
 0x152   :  { %v691_v34 = vsel %vm667_vm4, %v663_v4, %v687_v30  ;;  %v7218_v4 = vld [vmem:[%s14219_s2 + $0x600] sm:$0xf0]  ;;  %v9135_v30 = vld [vmem:[%s14219_s2 + $0x234] sm:$0xf]  ;;  %v7145_v33 = vor.u32 %v9197_v27, %v7144_v26  ;;  %v9153_v22 = vld [vmem:[%s14219_s2 + $0x304] sm:$0xf0] }
 0x153   :  { %v695_v37 = vmul.f32 1.050701, %v691_v34  ;;  %v692_v38 = vsel %vm668_vm5, %v664_v5, %v688_v31  ;;  %v7221_v16 = vor.u32 %v9214_v3, %v7218_v4  ;;  %v6906_v31 = vld [vmem:[%s14219_s2 + $0x248] sm:$0xf0]  ;;  %v7032_v34 = vld [vmem:[%s14219_s2 + $0x3b0] sm:$0xf] }
 0x154   :  { %v9680_v39 = vpop.eup %9679  ;;  %v696_v36 = vmul.f32 1.050701, %v692_v38  ;;  %v9145_v38 = vld [vmem:[%s14219_s2 + $0x2a4] sm:$0xf0]  ;;  %v7096_v3 = vld [vmem:[%s14219_s2 + $0x470] sm:$0xf] }
 0x155   :  { %v9682_v41 = vpop.eup %9681  ;;  %v6828_v42 = vadd.f32 -1.0, %v9680_v39  ;;  %v10902_v43 = vpack.c.bf16 %v695_v37, %v695_v37  ;;  %v6936_v37 = vld [vmem:[%s14219_s2 + $0x290] sm:$0xf]  ;;  %v9185_v4 = vld [vmem:[%s14219_s2 + $0x484] sm:$0xf0] }
 0x156   :  { %v6829_v46 = vadd.f32 -1.0, %v9682_v41  ;;  %v10910_v47 = vpack.c.bf16 %v696_v36, %v696_v36  ;;  %v7128_v39 = vld [vmem:[%s14219_s2 + $0x4d0] sm:$0xf]  ;;  %v9193_v36 = vld [vmem:[%s14219_s2 + $0x4e4] sm:$0xf0]  ;;  %v7033_v41 = vor.u32 %v9169_v35, %v7032_v34  ;;  %v6937_v45 = vor.u32 %v9145_v38, %v6936_v37 }
 0x157   :  { %v689_v51 = vmul.f32 1.6732632, %v6828_v42  ;;  %1374 = vmatmul.bf16.vlgmr.msra.gmra.mxu0 %v10902_v43  ;;  %v9131_v42 = vld [vmem:[%s14219_s2 + $0x204] sm:$0xf]  ;;  %v7210_v24 = vld [vmem:[%s14219_s2 + $0x5d8] sm:$0xf0] }
 0x158   :  { %v690_v57 = vmul.f32 1.6732632, %v6829_v46  ;;  %1387 = vmatmul.bf16.vlgmr.msra.gmra.mxu2 %v10910_v47  ;;  %1496 = vmatpush.bf16.msra.mxu0 %v7209_v40  ;;  %v6909_v40 = vor.u32 %v9135_v30, %v6906_v31  ;;  %v7129_v46 = vor.u32 %v9193_v36, %v7128_v39  ;;  %v6893_v56 = vor.u32 %v9131_v42, %v6890_v44  ;;  %v9211_v23 = vld [vmem:[%s14219_s2 + $0x5c4] sm:$0xf]  ;;  %v6872_v25 = vld [vmem:[%s14219_s2 + $0x1d0] sm:$0xf] }
 0x159   :  { %v693_v60 = vsel %vm669_vm6, %v665_v17, %v689_v51  ;;  %1462 = vmatpush.bf16.msra.mxu2 %v1358_v48  ;;  %v6941_v17 = vor.u32 %v9143_v12, %v6938_v13  ;;  %v7016_v48 = vld [vmem:[%s14219_s2 + $0x380] sm:$0xf]  ;;  %v9141_v51 = vld [vmem:[%s14219_s2 + $0x274] sm:$0xf0]  ;;  %v7097_v12 = vor.u32 %v9185_v4, %v7096_v3  ;;  %v9129_v26 = vld [vmem:[%s14219_s2 + $0x1e4] sm:$0xf0] }
 0x15a   :  { %v697_v1 = vmul.f32 1.050701, %v693_v60  ;;  %v694_v2 = vsel %vm670_vm7, %v666_v18, %v690_v57  ;;  %v7065_v18 = vor.u32 %v9177_v15, %v7064_v10  ;;  %v7017_v57 = vor.u32 %v9165_v49, %v7016_v48  ;;  %v6984_v13 = vld [vmem:[%s14219_s2 + $0x320] sm:$0xf]  ;;  %v9157_v15 = vld [vmem:[%s14219_s2 + $0x334] sm:$0xf0] }
 0x15b   :  { %v698_v5 = vmul.f32 1.050701, %v694_v2  ;;  %v6921_v60 = vor.u32 %v9141_v51, %v6920_v50  ;;  %v9137_v2 = vld [vmem:[%s14219_s2 + $0x244] sm:$0xf0]  ;;  %v6873_v30 = vor.u32 %v9129_v26, %v6872_v25  ;;  %v9207_v31 = vld [vmem:[%s14219_s2 + $0x594] sm:$0xf] }
 0x15c   :  { %1497 = vmatpush.bf16.msra.mxu0 %v7193_v58  ;;  %v10945_v7 = vpack.c.bf16 %v697_v1, %v697_v1  ;;  %v9127_v58 = vld [vmem:[%s14219_s2 + $0x1d4] sm:$0xf]  ;;  %v6904_v1 = vld [vmem:[%s14219_s2 + $0x230] sm:$0xf]  ;;  %v9125_v34 = vld [vmem:[%s14219_s2 + $0x1b4] sm:$0xf0] }
 0x15d   :  { %v10956_v14 = vpack.c.bf16 %v698_v5, %v698_v5  ;;  %1463 = vmatpush.bf16.msra.mxu2 %v7237_v0  ;;  %v9161_v0 = vld [vmem:[%s14219_s2 + $0x364] sm:$0xf0]  ;;  %v6877_v5 = vor.u32 %v9127_v58, %v6874_v59  ;;  %v6905_v10 = vor.u32 %v9137_v2, %v6904_v1  ;;  %v9203_v38 = vld [vmem:[%s14219_s2 + $0x564] sm:$0xf]  ;;  %v7178_v39 = vld [vmem:[%s14219_s2 + $0x578] sm:$0xf0] }
 0x15e   :  { %1452 = vmatmul.bf16.vlgmr.msra.gmra.mxu1 %v10945_v7  ;;  %v6840_v36 = vld [vmem:[%s14219_s2 + $0x170] sm:$0xf]  ;;  %v7082_v42 = vld [vmem:[%s14219_s2 + $0x458] sm:$0xf0]  ;;  %v7181_v44 = vor.u32 %v9203_v38, %v7178_v39  ;;  %v9199_v48 = vld [vmem:[%s14219_s2 + $0x534] sm:$0xf] }
 0x15f   :  { %7246 = vmatmul.msk.bf16.vlgmr.msra.gmra.mxu3 %vm1349_vm8, %v10956_v14  ;;  %1522 = vmatpush.bf16.msra.mxu1 %v6957_v6  ;;  %v7001_v6 = vor.u32 %v9161_v0, %v7000_v62  ;;  %v7162_v49 = vld [vmem:[%s14219_s2 + $0x548] sm:$0xf0]  ;;  %v9175_v50 = vld [vmem:[%s14219_s2 + $0x414] sm:$0xf]  ;;  %v9171_v58 = vld [vmem:[%s14219_s2 + $0x3e4] sm:$0xf] }
 0x160   :  { %1483 = vmatpush.bf16.msra.mxu3 %v7081_v8  ;;  %1498 = vmatpush.bf16.msra.mxu0 %v7177_v9  ;;  %v9123_v8 = vld [vmem:[%s14219_s2 + $0x1a4] sm:$0xf]  ;;  %v6858_v9 = vld [vmem:[%s14219_s2 + $0x1b8] sm:$0xf0]  ;;  %v7066_v51 = vld [vmem:[%s14219_s2 + $0x428] sm:$0xf0]  ;;  %v7165_v54 = vor.u32 %v9199_v48, %v7162_v49 }
 0x161   :  { %1464 = vmatpush.bf16.msra.mxu2 %v7221_v16  ;;  %v6861_v16 = vor.u32 %v9123_v8, %v6858_v9  ;;  %v7069_v55 = vor.u32 %v9175_v50, %v7066_v51  ;;  %v7050_v59 = vld [vmem:[%s14219_s2 + $0x3f8] sm:$0xf0]  ;;  %v9191_v62 = vld [vmem:[%s14219_s2 + $0x4d4] sm:$0xf]  ;;  %v7130_v0 = vld [vmem:[%s14219_s2 + $0x4e8] sm:$0xf0] }
 0x162   :  { %v9167_v1 = vld [vmem:[%s14219_s2 + $0x3b4] sm:$0xf]  ;;  %v7133_v2 = vor.u32 %v9191_v62, %v7130_v0  ;;  %v9187_v4 = vld [vmem:[%s14219_s2 + $0x4a4] sm:$0xf]  ;;  %v7018_v8 = vld [vmem:[%s14219_s2 + $0x398] sm:$0xf0] }
 0x163   :  { %1523 = vmatpush.bf16.msra.mxu1 %v6941_v17  ;;  %v6985_v17 = vor.u32 %v9157_v15, %v6984_v13  ;;  %v7098_v13 = vld [vmem:[%s14219_s2 + $0x488] sm:$0xf0]  ;;  %v9159_v15 = vld [vmem:[%s14219_s2 + $0x354] sm:$0xf]  ;;  %v9249_v38 = vld [vmem:[%s14219_s2 + $0x77c] sm:$0xf0] }
 0x164   :  { %1484 = vmatpush.bf16.msra.mxu3 %v7065_v18  ;;  %1499 = vmatpush.bf16.msra.mxu0 %v7161_v19  ;;  %v9119_v18 = vld [vmem:[%s14219_s2 + $0x174] sm:$0xf]  ;;  %v6842_v19 = vld [vmem:[%s14219_s2 + $0x188] sm:$0xf0]  ;;  %v7276_v48 = vld [vmem:[%s14219_s2 + $0x6a8] sm:$0xf] }
 0x165   :  { %v6845_v27 = vor.u32 %v9119_v18, %v6842_v19  ;;  %v7002_v29 = vld [vmem:[%s14219_s2 + $0x368] sm:$0xf0]  ;;  %v7376_v18 = vld [vmem:[%s14219_s2 + $0x798] sm:$0xf]  ;;  %v9229_v49 = vld [vmem:[%s14219_s2 + $0x6bc] sm:$0xf0] }
 0x166   :  { %v7005_v19 = vor.u32 %v9159_v15, %v7002_v29  ;;  %v7556_v50 = vld [vmem:[%s14219_s2 + $0x948] sm:$0xf]  ;;  %v7277_v51 = vor.u32 %v9229_v49, %v7276_v48  ;;  %v7558_v62 = vld [vmem:[%s14219_s2 + $0x960] sm:$0xf0]  ;;  %vm4099_vm7 = vcmask 261120  }
 0x167   :  { %1524 = vmatpush.bf16.msra.mxu1 %v6925_v52  ;;  %1439 = vmatmul.bf16.vlgmr.msrb.gmra.mxu0 %v10910_v47  ;;  %v6969_v52 = vor.u32 %v9153_v22, %v6968_v21  ;;  %v9254_v21 = vld [vmem:[%s14219_s2 + $0x7ac] sm:$0xf0]  ;;  %v9155_v22 = vld [vmem:[%s14219_s2 + $0x324] sm:$0xf] }
 0x168   :  { %1485 = vmatpush.bf16.msra.mxu3 %v7049_v53  ;;  %1400 = vmatmul.bf16.vlgmr.msrb.gmra.mxu2 %v10945_v7  ;;  %v7213_v53 = vor.u32 %v9211_v23, %v7210_v24  ;;  %v6986_v23 = vld [vmem:[%s14219_s2 + $0x338] sm:$0xf0]  ;;  %v1136_v24 = vunpack.c.h.b16 %v10815_v11  ;;  %v7377_v25 = vor.u32 %v9254_v21, %v7376_v18  ;;  %v11344_v21 = vld [vmem:[%s14219_s2 + $0x660] sm:$0x11] }
 0x169   :  { %1470 = vmatpush.bf16.msrb.mxu2 %v6953_v32  ;;  %1500 = vmatpush.bf16.msra.mxu0 %v7145_v33  ;;  %v7194_v32 = vld [vmem:[%s14219_s2 + $0x5a8] sm:$0xf0]  ;;  %v6856_v33 = vld [vmem:[%s14219_s2 + $0x1a0] sm:$0xf]  ;;  %v6989_v26 = vor.u32 %v9155_v22, %v6986_v23  ;;  %v9282_v18 = vld [vmem:[%s14219_s2 + $0x8bc] sm:$0xf] }
 0x16a   :  { %v7197_v35 = vor.u32 %v9207_v31, %v7194_v32  ;;  %v6857_v37 = vor.u32 %v9125_v34, %v6856_v33  ;;  %v9219_v31 = vld [vmem:[%s14219_s2 + $0x624] sm:$0xf]  ;;  %v7242_v32 = vld [vmem:[%s14219_s2 + $0x638] sm:$0xf0]  ;;  %v7226_v34 = vld [vmem:[%s14219_s2 + $0x608] sm:$0xf0] }
 0x16b   :  { %1525 = vmatpush.bf16.msra.mxu1 %v6909_v40  ;;  %v9121_v40 = vld [vmem:[%s14219_s2 + $0x184] sm:$0xf0]  ;;  %v7245_v33 = vor.u32 %v9219_v31, %v7242_v32  ;;  %v7456_v22 = vld [vmem:[%s14219_s2 + $0x858] sm:$0xf]  ;;  %v9274_v23 = vld [vmem:[%s14219_s2 + $0x86c] sm:$0xf0] }
 0x16c   :  { %1486 = vmatpush.bf16.msra.mxu3 %v7033_v41  ;;  %v9179_v41 = vld [vmem:[%s14219_s2 + $0x444] sm:$0xf]  ;;  %v7436_v31 = vld [vmem:[%s14219_s2 + $0x828] sm:$0xf]  ;;  %v9269_v32 = vld [vmem:[%s14219_s2 + $0x83c] sm:$0xf0] }
 0x16d   :  { %1471 = vmatpush.bf16.msrb.mxu2 %v6937_v45  ;;  %1501 = vmatpush.bf16.msra.mxu0 %v7129_v46  ;;  %v6841_v45 = vor.u32 %v9121_v40, %v6840_v36  ;;  %v7085_v46 = vor.u32 %v9179_v41, %v7082_v42  ;;  %v9244_v36 = vld [vmem:[%s14219_s2 + $0x74c] sm:$0xf0]  ;;  %v9239_v41 = vld [vmem:[%s14219_s2 + $0x71c] sm:$0xf0] }
 0x16e   :  { %7248 = vmatmul.msk.bf16.vlgmr.msrb.gmra.mxu1 %vm1349_vm8, %v10956_v14 }
 0x16f   :  { %1426 = vmatmul.bf16.vlgmr.msrb.gmra.mxu3 %v10902_v43  ;;  %1526 = vmatpush.bf16.msra.mxu1 %v6893_v56  ;;  %v9195_v56 = vld [vmem:[%s14219_s2 + $0x504] sm:$0xf] }
 0x170   :  { %1487 = vmatpush.bf16.msra.mxu3 %v7017_v57  ;;  %v7146_v57 = vld [vmem:[%s14219_s2 + $0x518] sm:$0xf0] }
 0x171   :  { %1472 = vmatpush.bf16.msrb.mxu2 %v6921_v60  ;;  %1502 = vmatpush.bf16.msra.mxu0 %v7113_v61  ;;  %v7149_v60 = vor.u32 %v9195_v56, %v7146_v57  ;;  %v7053_v61 = vor.u32 %v9171_v58, %v7050_v59  ;;  %v7256_v56 = vld [vmem:[%s14219_s2 + $0x678] sm:$0xf]  ;;  %v9224_v57 = vld [vmem:[%s14219_s2 + $0x68c] sm:$0xf0] }
 0x172   :  { %v7536_v58 = vld [vmem:[%s14219_s2 + $0x918] sm:$0xf]  ;;  %v7257_v59 = vor.u32 %v9224_v57, %v7256_v56  ;;  %v9334_v57 = vld [vmem:[%s14219_s2 + $0xaac] sm:$0xf0] }
 0x173   :  { %1527 = vmatpush.bf16.msra.mxu1 %v6877_v5  ;;  %v7114_v5 = vld [vmem:[%s14219_s2 + $0x4b8] sm:$0xf0]  ;;  %v7696_v56 = vld [vmem:[%s14219_s2 + $0xa98] sm:$0xf] }
 0x174   :  { %1488 = vmatpush.bf16.msra.mxu3 %v7001_v6  ;;  %v9163_v6 = vld [vmem:[%s14219_s2 + $0x384] sm:$0xf]  ;;  %v7117_v9 = vor.u32 %v9187_v4, %v7114_v5  ;;  %v9292_v4 = vld [vmem:[%s14219_s2 + $0x91c] sm:$0xf]  ;;  %v7538_v5 = vld [vmem:[%s14219_s2 + $0x930] sm:$0xf0] }
 0x175   :  { %1473 = vmatpush.bf16.msrb.mxu2 %v6905_v10  ;;  %1503 = vmatpush.bf16.msra.mxu0 %v7097_v12  ;;  %v7021_v10 = vor.u32 %v9163_v6, %v7018_v8  ;;  %v9183_v12 = vld [vmem:[%s14219_s2 + $0x474] sm:$0xf]  ;;  %v7541_v6 = vor.u32 %v9292_v4, %v7538_v5  ;;  %v7496_v8 = vld [vmem:[%s14219_s2 + $0x8b8] sm:$0xf]  ;;  %v9329_v4 = vld [vmem:[%s14219_s2 + $0xa7c] sm:$0xf0] }
 0x176   :  { %v7101_v28 = vor.u32 %v9183_v12, %v7098_v13  ;;  %v9287_v12 = vld [vmem:[%s14219_s2 + $0x8ec] sm:$0xf]  ;;  %v7518_v13 = vld [vmem:[%s14219_s2 + $0x900] sm:$0xf0] }
 0x177   :  { %1528 = vmatpush.bf16.msra.mxu1 %v6861_v16  ;;  %v7396_v16 = vld [vmem:[%s14219_s2 + $0x7c8] sm:$0xf]  ;;  %v7521_v29 = vor.u32 %v9287_v12, %v7518_v13  ;;  %v7678_v12 = vld [vmem:[%s14219_s2 + $0xa80] sm:$0xf0] }
 0x178   :  { %1489 = vmatpush.bf16.msra.mxu3 %v6985_v17  ;;  %7247 = vmatmul.msk.bf16.vlgmr.msra.gmra.mxu2 %vm1349_vm8, %v10956_v14  ;;  %v9259_v17 = vld [vmem:[%s14219_s2 + $0x7dc] sm:$0xf0] }
 0x179   :  { %1474 = vmatpush.bf16.msrb.mxu2 %v6889_v20  ;;  %1504 = vmatmul.bf16.vlgmr.msra.gmra.mxu0 %v10945_v7  ;;  %v7397_v20 = vor.u32 %v9259_v17, %v7396_v16  ;;  %v9279_v16 = vld [vmem:[%s14219_s2 + $0x89c] sm:$0xf0] }
 0x17b   :  { %1529 = vmatpush.bf16.msra.mxu1 %v6845_v27  ;;  %2555 = vmatpush.bf16.msrb.mxu0 %v7397_v20  ;;  %v9151_v27 = vld [vmem:[%s14219_s2 + $0x2f4] sm:$0xf] }
 0x17c   :  { %1490 = vmatpush.bf16.msra.mxu3 %v6969_v52  ;;  %v6970_v52 = vld [vmem:[%s14219_s2 + $0x308] sm:$0xf0] }
 0x17d   :  { %1475 = vmatpush.bf16.msrb.mxu2 %v6873_v30  ;;  %v6973_v30 = vor.u32 %v9151_v27, %v6970_v52  ;;  %v9277_v27 = vld [vmem:[%s14219_s2 + $0x88c] sm:$0xf]  ;;  %v7478_v52 = vld [vmem:[%s14219_s2 + $0x8a0] sm:$0xf0] }
 0x17e   :  { %1530 = vmatmul.bf16.vlgmr.msra.gmra.mxu1 %v10902_v43 }
 0x17f   :  { %1491 = vmatmul.bf16.vlgmr.msra.gmra.mxu3 %v10910_v47  ;;  %2556 = vmatpush.bf16.msrb.mxu0 %v7377_v25 }
 0x180   :  { %1548 = vmatpush.bf16.msrb.mxu3 %v7213_v53  ;;  %v1244_v53 = vpack.c.b16 %v1136_v24, %v1136_v24 }
 0x181   :  { %1476 = vmatpush.bf16.msrb.mxu2 %v6857_v37  ;;  %v7356_v37 = vld [vmem:[%s14219_s2 + $0x768] sm:$0xf] }
 0x182   :  { %v1364_v11 = vsel %vm1353_vm3, %v1244_v53, 0  ;;  %v7357_v39 = vor.u32 %v9249_v38, %v7356_v37 }
 0x184   :  { %1549 = vmatpush.bf16.msrb.mxu3 %v7197_v35  ;;  %2557 = vmatpush.bf16.msrb.mxu0 %v7357_v39  ;;  %v7416_v39 = vld [vmem:[%s14219_s2 + $0x7f8] sm:$0xf] }
 0x185   :  { %1477 = vmatpush.bf16.msrb.mxu2 %v6841_v45  ;;  %v9234_v45 = vld [vmem:[%s14219_s2 + $0x6ec] sm:$0xf0] }
 0x188   :  { %1550 = vmatpush.bf16.msrb.mxu3 %v7181_v44  ;;  %1478 = vmatmul.bf16.vlgmr.msrb.gmra.mxu2 %v10902_v43  ;;  %v7034_v43 = vld [vmem:[%s14219_s2 + $0x3c8] sm:$0xf0]  ;;  %v7296_v44 = vld [vmem:[%s14219_s2 + $0x6d8] sm:$0xf] }
 0x189   :  { %1535 = vmatpush.bf16.msra.mxu2 %v7085_v46  ;;  %v7037_v3 = vor.u32 %v9167_v1, %v7034_v43  ;;  %v7297_v46 = vor.u32 %v9234_v45, %v7296_v44  ;;  %v7516_v43 = vld [vmem:[%s14219_s2 + $0x8e8] sm:$0xf]  ;;  %v9267_v44 = vld [vmem:[%s14219_s2 + $0x82c] sm:$0xf]  ;;  %v7438_v45 = vld [vmem:[%s14219_s2 + $0x840] sm:$0xf0] }
 0x18a   :  { %v7441_v49 = vor.u32 %v9267_v44, %v7438_v45  ;;  %v7596_v44 = vld [vmem:[%s14219_s2 + $0x9a8] sm:$0xf]  ;;  %v9309_v45 = vld [vmem:[%s14219_s2 + $0x9bc] sm:$0xf0] }
 0x18c   :  { %1551 = vmatpush.bf16.msrb.mxu3 %v7165_v54  ;;  %v9299_v54 = vld [vmem:[%s14219_s2 + $0x95c] sm:$0xf0] }
 0x18d   :  { %1536 = vmatpush.bf16.msra.mxu2 %v7069_v55  ;;  %v7557_v55 = vor.u32 %v9299_v54, %v7556_v50  ;;  %v9337_v50 = vld [vmem:[%s14219_s2 + $0xacc] sm:$0xf] }
 0x18f   :  { %2568 = vmatpush.bf16.msrb.mxu1 %v7557_v55 }
 0x190   :  { %1552 = vmatpush.bf16.msrb.mxu3 %v7149_v60  ;;  %v9294_v60 = vld [vmem:[%s14219_s2 + $0x92c] sm:$0xf0] }
 0x191   :  { %1537 = vmatpush.bf16.msra.mxu2 %v7053_v61  ;;  %v9297_v61 = vld [vmem:[%s14219_s2 + $0x94c] sm:$0xf]  ;;  %v7537_v0 = vor.u32 %v9294_v60, %v7536_v58  ;;  %v7697_v58 = vor.u32 %v9334_v57, %v7696_v56  ;;  %v7418_v60 = vld [vmem:[%s14219_s2 + $0x810] sm:$0xf0]  ;;  %v7724_v57 = vld [vmem:[%s14219_s2 + $0xad0] sm:$0xf] }
 0x192   :  { %v7561_v1 = vor.u32 %v9297_v61, %v7558_v62  ;;  %v9332_v61 = vld [vmem:[%s14219_s2 + $0xa9c] sm:$0xf] }
 0x193   :  { %2569 = vmatpush.bf16.msrb.mxu1 %v7537_v0  ;;  %v7698_v0 = vld [vmem:[%s14219_s2 + $0xab0] sm:$0xf0] }
 0x194   :  { %1553 = vmatpush.bf16.msrb.mxu3 %v7133_v2  ;;  %v9289_v2 = vld [vmem:[%s14219_s2 + $0x8fc] sm:$0xf0] }
 0x195   :  { %1538 = vmatpush.bf16.msra.mxu2 %v7037_v3  ;;  %v7517_v3 = vor.u32 %v9289_v2, %v7516_v43 }
 0x197   :  { %2570 = vmatpush.bf16.msrb.mxu1 %v7517_v3  ;;  %v7676_v3 = vld [vmem:[%s14219_s2 + $0xa68] sm:$0xf] }
 0x198   :  { %1554 = vmatpush.bf16.msrb.mxu3 %v7117_v9  ;;  %v9284_v9 = vld [vmem:[%s14219_s2 + $0x8cc] sm:$0xf0] }
 0x199   :  { %1539 = vmatpush.bf16.msra.mxu2 %v7021_v10  ;;  %v7497_v10 = vor.u32 %v9284_v9, %v7496_v8  ;;  %v812_v8 = vunpack.c.h.bf16 %v11344_v21  ;;  %v7677_v9 = vor.u32 %v9329_v4, %v7676_v3  ;;  %v9302_v3 = vld [vmem:[%s14219_s2 + $0x97c] sm:$0xf] }
 0x19b   :  { %2571 = vmatpush.bf16.msrb.mxu1 %v7497_v10  ;;  %v9327_v10 = vld [vmem:[%s14219_s2 + $0xa6c] sm:$0xf] }
 0x19c   :  { %1555 = vmatpush.bf16.msrb.mxu3 %v7101_v28  ;;  %v7476_v28 = vld [vmem:[%s14219_s2 + $0x888] sm:$0xf] }
 0x19d   :  { %1540 = vmatpush.bf16.msra.mxu2 %v7005_v19  ;;  %v7477_v17 = vor.u32 %v9279_v16, %v7476_v28  ;;  %v7498_v19 = vld [vmem:[%s14219_s2 + $0x8d0] sm:$0xf0]  ;;  %v7656_v16 = vld [vmem:[%s14219_s2 + $0xa38] sm:$0xf] }
 0x19e   :  { %v7501_v20 = vor.u32 %v9282_v18, %v7498_v19  ;;  %v816_v18 = vperm.slane %v812_v8, 0 }
 0x19f   :  { %1556 = vmatmul.bf16.vlgmr.msrb.gmra.mxu3 %v10945_v7  ;;  %v9215_v7 = vld [vmem:[%s14219_s2 + $0x5f4] sm:$0xf]  ;;  %2572 = vmatpush.bf16.msrb.mxu1 %v7477_v17  ;;  %v9324_v17 = vld [vmem:[%s14219_s2 + $0xa4c] sm:$0xf0] }
 0x1a0   :  { %v7229_v35 = vor.u32 %v9215_v7, %v7226_v34  ;;  %v9272_v7 = vld [vmem:[%s14219_s2 + $0x85c] sm:$0xf]  ;;  %v7458_v34 = vld [vmem:[%s14219_s2 + $0x870] sm:$0xf0]  ;;  %v7657_v19 = vor.u32 %v9324_v17, %v7656_v16  ;;  %v7704_v17 = vld [vmem:[%s14219_s2 + $0xaa0] sm:$0xf] }
 0x1a1   :  { %1541 = vmatpush.bf16.msra.mxu2 %v6989_v26  ;;  %v7457_v26 = vor.u32 %v9274_v23, %v7456_v22 }
 0x1a3   :  { %2573 = vmatpush.bf16.msrb.mxu1 %v7457_v26 }
 0x1a5   :  { %1542 = vmatpush.bf16.msra.mxu2 %v6973_v30  ;;  %v7481_v30 = vor.u32 %v9277_v27, %v7478_v52  ;;  %v7636_v27 = vld [vmem:[%s14219_s2 + $0xa08] sm:$0xf]  ;;  %v9319_v52 = vld [vmem:[%s14219_s2 + $0xa1c] sm:$0xf0] }
 0x1a8   :  { %1543 = vmatmul.bf16.vlgmr.msra.gmra.mxu2 %v10910_v47  ;;  %v7336_v47 = vld [vmem:[%s14219_s2 + $0x738] sm:$0xf] }
 0x1a9   :  { %1566 = vmatpush.bf16.msrb.mxu2 %v1364_v11  ;;  %v7337_v40 = vor.u32 %v9244_v36, %v7336_v47  ;;  %v811_v11 = vunpack.c.l.bf16 %v11344_v21  ;;  %v9264_v47 = vld [vmem:[%s14219_s2 + $0x80c] sm:$0xf0]  ;;  %v7716_v36 = vld [vmem:[%s14219_s2 + $0xac8] sm:$0xf]  ;;  %v7658_v21 = vld [vmem:[%s14219_s2 + $0xa50] sm:$0xf0] }
 0x1ab   :  { %2558 = vmatpush.bf16.msrb.mxu0 %v7337_v40  ;;  %v815_v37 = vperm.slane %v811_v11, 0 }
 0x1ad   :  { %1567 = vmatpush.bf16.msrb.mxu2 %v7245_v33  ;;  %v7437_v33 = vor.u32 %v9269_v32, %v7436_v31  ;;  %v7637_v31 = vor.u32 %v9319_v52, %v7636_v27  ;;  %v9317_v32 = vld [vmem:[%s14219_s2 + $0xa0c] sm:$0xf]  ;;  %v7798_v52 = vld [vmem:[%s14219_s2 + $0xba0] sm:$0xf0] }
 0x1af   :  { %2574 = vmatpush.bf16.msrb.mxu1 %v7437_v33  ;;  %v7638_v33 = vld [vmem:[%s14219_s2 + $0xa20] sm:$0xf0] }
 0x1b1   :  { %1568 = vmatpush.bf16.msrb.mxu2 %v7229_v35  ;;  %v7461_v35 = vor.u32 %v9272_v7, %v7458_v34  ;;  %v7641_v7 = vor.u32 %v9317_v32, %v7638_v33  ;;  %v7776_v32 = vld [vmem:[%s14219_s2 + $0xb58] sm:$0xf]  ;;  %v9354_v33 = vld [vmem:[%s14219_s2 + $0xb6c] sm:$0xf0] }
 0x1b8   :  { %7249 = vmatmul.msk.bf16.vlgmr.msrb.gmra.mxu2 %vm1349_vm8, %v10956_v14  ;;  %v7316_v14 = vld [vmem:[%s14219_s2 + $0x708] sm:$0xf] }
 0x1b9   :  { %v7317_v42 = vor.u32 %v9239_v41, %v7316_v14  ;;  %v7417_v41 = vor.u32 %v9264_v47, %v7416_v39  ;;  %v9312_v47 = vld [vmem:[%s14219_s2 + $0x9dc] sm:$0xf] }
 0x1bb   :  { %2559 = vmatpush.bf16.msrb.mxu0 %v7317_v42  ;;  %v9339_v42 = vld [vmem:[%s14219_s2 + $0xadc] sm:$0xf0]  ;;  %2575 = vmatpush.bf16.msrb.mxu1 %v7417_v41 }
 0x1bc   :  { %v7717_v48 = vor.u32 %v9339_v42, %v7716_v36  ;;  %v7618_v36 = vld [vmem:[%s14219_s2 + $0x9f0] sm:$0xf0] }
 0x1be   :  { %2581 = vmatpush.bf16.msra.mxu2 %v7717_v48 }
 0x1bf   :  { %2560 = vmatpush.bf16.msrb.mxu0 %v7297_v46 }
 0x1c2   :  { %2582 = vmatpush.bf16.msra.mxu2 %v7697_v58  ;;  %v9340_v58 = vld [vmem:[%s14219_s2 + $0xae4] sm:$0xf0] }
 0x1c3   :  { %2561 = vmatpush.bf16.msrb.mxu0 %v7277_v51  ;;  %v7718_v51 = vld [vmem:[%s14219_s2 + $0xae0] sm:$0xf0] }
 0x1c4   :  { %v7721_v54 = vor.u32 %v9337_v50, %v7718_v51  ;;  %v7597_v50 = vor.u32 %v9309_v45, %v7596_v44  ;;  %v9307_v51 = vld [vmem:[%s14219_s2 + $0x9ac] sm:$0xf]  ;;  %v9325_v45 = vld [vmem:[%s14219_s2 + $0xa54] sm:$0xf0] }
 0x1c6   :  { %2633 = vmatpush.bf16.msra.mxu1 %v7721_v54  ;;  %2583 = vmatpush.bf16.msra.mxu2 %v7677_v9  ;;  %v7578_v9 = vld [vmem:[%s14219_s2 + $0x990] sm:$0xf0] }
 0x1c7   :  { %2562 = vmatpush.bf16.msrb.mxu0 %v7257_v59  ;;  %v9262_v59 = vld [vmem:[%s14219_s2 + $0x7fc] sm:$0xf] }
 0x1c8   :  { %v7421_v62 = vor.u32 %v9262_v59, %v7418_v60 }
 0x1ca   :  { %2584 = vmatpush.bf16.msra.mxu2 %v7657_v19 }
 0x1cb   :  { %2620 = vmatpush.bf16.msra.mxu0 %v7561_v1  ;;  %v7701_v1 = vor.u32 %v9332_v61, %v7698_v0  ;;  %v7576_v61 = vld [vmem:[%s14219_s2 + $0x978] sm:$0xf] }
 0x1cd   :  { %2634 = vmatpush.bf16.msra.mxu1 %v7701_v1 }
 0x1ce   :  { %2585 = vmatpush.bf16.msra.mxu2 %v7637_v31  ;;  %v9330_v31 = vld [vmem:[%s14219_s2 + $0xa84] sm:$0xf0] }
 0x1cf   :  { %2621 = vmatpush.bf16.msra.mxu0 %v7541_v6 }
 0x1d3   :  { %2622 = vmatpush.bf16.msra.mxu0 %v7521_v29  ;;  %v7681_v29 = vor.u32 %v9327_v10, %v7678_v12  ;;  %v7725_v10 = vor.u32 %v9340_v58, %v7724_v57  ;;  %v7581_v12 = vor.u32 %v9302_v3, %v7578_v9  ;;  %v9365_v57 = vld [vmem:[%s14219_s2 + $0xbd4] sm:$0xf0] }
 0x1d4   :  { %v1375_v15 = vpop.f32.mrf.mxu0  ;;  %v7736_v3 = vld [vmem:[%s14219_s2 + $0xaf8] sm:$0xf] }
 0x1d5   :  { %v1376_v55 = vadd.f32 %v1375_v15, %v815_v37  ;;  %2635 = vmatpush.bf16.msra.mxu1 %v7681_v29  ;;  %v7616_v37 = vld [vmem:[%s14219_s2 + $0x9d8] sm:$0xf] }
 0x1d7   :  { %2623 = vmatpush.bf16.msra.mxu0 %v7501_v20  ;;  %v9322_v20 = vld [vmem:[%s14219_s2 + $0xa3c] sm:$0xf] }
 0x1d8   :  { %v7661_v23 = vor.u32 %v9322_v20, %v7658_v21 }
 0x1da   :  { %2636 = vmatpush.bf16.msra.mxu1 %v7661_v23  ;;  %v9359_v23 = vld [vmem:[%s14219_s2 + $0xb9c] sm:$0xf0] }
 0x1db   :  { %v1388_v24 = vpop.f32.mrf.mxu2  ;;  %v11352_v25 = vpop.f32.mrf.mxu1  ;;  %2624 = vmatpush.bf16.msra.mxu0 %v7481_v30 }
 0x1dc   :  { %v1377_v53 = vpop.f32.mrf.mxu0  ;;  %v1389_v43 = vadd.f32 %v1388_v24, %v1376_v55 }
 0x1de   :  { %2637 = vmatpush.bf16.msra.mxu1 %v7641_v7  ;;  %v9352_v7 = vld [vmem:[%s14219_s2 + $0xb5c] sm:$0xf] }
 0x1df   :  { %2625 = vmatpush.bf16.msra.mxu0 %v7461_v35 }
 0x1e2   :  { %v1414_v38 = vpop.f32.mrf.mxu3 }
 0x1e3   :  { %v1390_v40 = vpop.f32.mrf.mxu2  ;;  %v1455_v14 = vpop.f32.mrf.mxu1  ;;  %2626 = vmatpush.bf16.msra.mxu0 %v7441_v49 }
 0x1e4   :  { %v1440_v46 = vpop.f32.mrf.mxu0  ;;  %v7621_v40 = vor.u32 %v9312_v47, %v7618_v36  ;;  %v7778_v47 = vld [vmem:[%s14219_s2 + $0xb70] sm:$0xf0] }
 0x1e6   :  { %2638 = vmatpush.bf16.msra.mxu1 %v7621_v40 }
 0x1e7   :  { %2627 = vmatpush.bf16.msra.mxu0 %v7421_v62  ;;  %v9304_v62 = vld [vmem:[%s14219_s2 + $0x98c] sm:$0xf0] }
 0x1e8   :  { %v7577_v1 = vor.u32 %v9304_v62, %v7576_v61  ;;  %v7644_v61 = vld [vmem:[%s14219_s2 + $0xa10] sm:$0xf]  ;;  %v9320_v62 = vld [vmem:[%s14219_s2 + $0xa24] sm:$0xf0] }
 0x1ea   :  { %v1416_v2 = vpop.f32.mrf.mxu3 }
 0x1eb   :  { %v1401_v5 = vpop.f32.mrf.mxu2  ;;  %v11421_v6 = vpop.f32.mrf.mxu1  ;;  %v9364_v2 = vld [vmem:[%s14219_s2 + $0xbcc] sm:$0xf0] }
 0x1ec   :  { %v1402_v13 = vadd.f32 %v1401_v5, %v1389_v43  ;;  %v1442_v15 = vpop.f32.mrf.mxu0  ;;  %v7816_v43 = vld [vmem:[%s14219_s2 + $0xbb8] sm:$0xf] }
 0x1ed   :  { %v7817_v8 = vor.u32 %v9364_v2, %v7816_v43  ;;  %v7818_v15 = vld [vmem:[%s14219_s2 + $0xbd0] sm:$0xf0]  ;;  %v7804_v43 = vld [vmem:[%s14219_s2 + $0xb90] sm:$0xf] }
 0x1ee   :  { %v1415_v28 = vadd.f32 %v1414_v38, %v1402_v13  ;;  %v9314_v38 = vld [vmem:[%s14219_s2 + $0x9ec] sm:$0xf0]  ;;  %v9362_v13 = vld [vmem:[%s14219_s2 + $0xbbc] sm:$0xf] }
 0x1ef   :  { %v7617_v39 = vor.u32 %v9314_v38, %v7616_v37  ;;  %2597 = vmatpush.bf16.msra.mxu3 %v7817_v8  ;;  %v7821_v19 = vor.u32 %v9362_v13, %v7818_v15  ;;  %v7664_v38 = vld [vmem:[%s14219_s2 + $0xa40] sm:$0xf]  ;;  %v9257_v13 = vld [vmem:[%s14219_s2 + $0x7cc] sm:$0xf]  ;;  %v7398_v15 = vld [vmem:[%s14219_s2 + $0x7e0] sm:$0xf0] }
 0x1f0   :  { %v1578_v22 = vmin.f32 %v1415_v28, 0.0  ;;  %vm1574_vm9 = vcmp.gt.f32.partialorder %v1415_v28, 0.0 }
 0x1f1   :  { %2586 = vmatpush.bf16.msra.mxu2 %v7617_v39  ;;  %v7777_v39 = vor.u32 %v9354_v33, %v7776_v32  ;;  %v7764_v33 = vld [vmem:[%s14219_s2 + $0xb30] sm:$0xf] }
 0x1f2   :  { %v1582_v24 = vmul.f32 1.442695, %v1578_v22  ;;  %v1427_v26 = vpop.f32.mrf.mxu3  ;;  %v7796_v22 = vld [vmem:[%s14219_s2 + $0xb88] sm:$0xf] }
 0x1f3   :  { %v1428_v53 = vadd.f32 %v1427_v26, %v816_v18  ;;  %v1403_v30 = vpop.f32.mrf.mxu2  ;;  %v1520_v11 = vpop.f32.mrf.mxu1  ;;  %v9335_v18 = vld [vmem:[%s14219_s2 + $0xab4] sm:$0xf0]  ;;  %v7797_v27 = vor.u32 %v9359_v23, %v7796_v22  ;;  %v7784_v23 = vld [vmem:[%s14219_s2 + $0xb60] sm:$0xf] }
 0x1f4   :  { %9683 = vpow2.f32 %v1582_v24  ;;  %v9357_v24 = vld [vmem:[%s14219_s2 + $0xb8c] sm:$0xf]  ;;  %v7684_v11 = vld [vmem:[%s14219_s2 + $0xa70] sm:$0xf] }
 0x1f5   :  { %v1441_v34 = vadd.f32 %v1440_v46, %v1428_v53  ;;  %2587 = vmatpush.bf16.msra.mxu2 %v7597_v50  ;;  %v7705_v53 = vor.u32 %v9335_v18, %v7704_v17  ;;  %v7801_v30 = vor.u32 %v9357_v24, %v7798_v52  ;;  %2598 = vmatpush.bf16.msra.mxu3 %v7797_v27  ;;  %v7758_v50 = vld [vmem:[%s14219_s2 + $0xb40] sm:$0xf0]  ;;  %v7378_v27 = vld [vmem:[%s14219_s2 + $0x7b0] sm:$0xf0] }
 0x1f6   :  { %v11454_v35 = vpop.f32.mrf.mxu0  ;;  %v7685_v40 = vor.u32 %v9330_v31, %v7684_v11  ;;  %v7401_v18 = vor.u32 %v9257_v13, %v7398_v15  ;;  %v7604_v11 = vld [vmem:[%s14219_s2 + $0x9b0] sm:$0xf]  ;;  %v9310_v31 = vld [vmem:[%s14219_s2 + $0x9c4] sm:$0xf0]  ;;  %v7298_v13 = vld [vmem:[%s14219_s2 + $0x6f0] sm:$0xf0] }
 0x1f7   :  { %v1454_v42 = vadd.f32 %v11352_v25, %v1441_v34  ;;  %v7598_v25 = vld [vmem:[%s14219_s2 + $0x9c0] sm:$0xf0] }
 0x1f8   :  { %v7601_v55 = vor.u32 %v9307_v51, %v7598_v25 }
 0x1f9   :  { %2588 = vmatpush.bf16.msra.mxu2 %v7577_v1  ;;  %2599 = vmatpush.bf16.msra.mxu3 %v7777_v39 }
 0x1fa   :  { %v9684_v14 = vpop.eup %9683  ;;  %v1429_v41 = vpop.f32.mrf.mxu3  ;;  %2639 = vmatpush.bf16.msra.mxu1 %v7601_v55 }
 0x1fb   :  { %v7250_v46 = vadd.f32 -1.0, %v9684_v14  ;;  %v1466_v48 = vpop.f32.mrf.mxu2  ;;  %v11475_v49 = vpop.f32.mrf.mxu1  ;;  %v7781_v14 = vor.u32 %v9352_v7, %v7778_v47  ;;  %v7756_v41 = vld [vmem:[%s14219_s2 + $0xb28] sm:$0xf]  ;;  %v7584_v47 = vld [vmem:[%s14219_s2 + $0x980] sm:$0xf] }
 0x1fc   :  { %v11483_v54 = vadd.f32 %v1466_v48, %v1454_v42  ;;  %v9349_v42 = vld [vmem:[%s14219_s2 + $0xb3c] sm:$0xf0]  ;;  %v9347_v48 = vld [vmem:[%s14219_s2 + $0xb2c] sm:$0xf]  ;;  %v9350_v7 = vld [vmem:[%s14219_s2 + $0xb44] sm:$0xf0] }
 0x1fd   :  { %v1594_v56 = vmul.f32 1.6732632, %v7250_v46  ;;  %2649 = vmatpush.bf16.msrb.mxu2 %v7821_v19  ;;  %v7757_v46 = vor.u32 %v9349_v42, %v7756_v41  ;;  %v7761_v58 = vor.u32 %v9347_v48, %v7758_v50  ;;  %v7624_v19 = vld [vmem:[%s14219_s2 + $0x9e0] sm:$0xf]  ;;  %v7826_v41 = vld [vmem:[%s14219_s2 + $0xbd8] sm:$0xf0] }
 0x1fe   :  { %v1579_v59 = vmin.f32 %v11483_v54, 0.0  ;;  %v1507_v60 = vpop.f32.mrf.mxu0  ;;  %2640 = vmatpush.bf16.msra.mxu1 %v7581_v12  ;;  %vm1575_vm10 = vcmp.gt.f32.partialorder %v11483_v54, 0.0  ;;  %v7738_v12 = vld [vmem:[%s14219_s2 + $0xb10] sm:$0xf0]  ;;  %v7744_v42 = vld [vmem:[%s14219_s2 + $0xb00] sm:$0xf] }
 0x1ff   :  { %v1598_v0 = vsel %vm1574_vm9, %v1415_v28, %v1594_v56  ;;  %v11521_v28 = vld [vmem:[%s14219_s2 + $0x668] sm:$0x11]  ;;  %v7824_v56 = vld [vmem:[%s14219_s2 + $0xbc0] sm:$0xf]  ;;  %v7665_v60 = vor.u32 %v9325_v45, %v7664_v38  ;;  %2600 = vmatpush.bf16.msra.mxu3 %v7757_v46  ;;  %v7605_v38 = vor.u32 %v9310_v31, %v7604_v11  ;;  %v9242_v45 = vld [vmem:[%s14219_s2 + $0x73c] sm:$0xf] }
 0x200   :  { %v1602_v4 = vmul.f32 1.050701, %v1598_v0  ;;  %v1584_v5 = vmul.f32 1.442695, %v1579_v59  ;;  %v813_v26 = vunpack.c.l.bf16 %v11521_v28  ;;  %v7825_v2 = vor.u32 %v9365_v57, %v7824_v56  ;;  %v7338_v46 = vld [vmem:[%s14219_s2 + $0x750] sm:$0xf0] }
 0x201   :  { %2650 = vmatpush.bf16.msrb.mxu2 %v7801_v30  ;;  %v7341_v50 = vor.u32 %v9242_v45, %v7338_v46  ;;  %v7364_v11 = vld [vmem:[%s14219_s2 + $0x770] sm:$0xf]  ;;  %v7344_v45 = vld [vmem:[%s14219_s2 + $0x740] sm:$0xf]  ;;  %v9245_v46 = vld [vmem:[%s14219_s2 + $0x754] sm:$0xf0] }
 0x202   :  { %v11516_v29 = vpack.c.bf16 %v1602_v4, %v1602_v4  ;;  %9685 = vpow2.f32 %v1584_v5  ;;  %v1492_v16 = vpop.f32.mrf.mxu3  ;;  %v817_v37 = vperm.slane %v813_v26, 0  ;;  %v9344_v4 = vld [vmem:[%s14219_s2 + $0xb0c] sm:$0xf0]  ;;  %v9342_v5 = vld [vmem:[%s14219_s2 + $0xafc] sm:$0xf] }
 0x203   :  { %v1468_v20 = vpop.f32.mrf.mxu2  ;;  %v1533_v21 = vpop.f32.mrf.mxu1  ;;  %v7741_v17 = vor.u32 %v9342_v5, %v7738_v12  ;;  %v9355_v26 = vld [vmem:[%s14219_s2 + $0xb74] sm:$0xf0]  ;;  %v9353_v5 = vld [vmem:[%s14219_s2 + $0xb64] sm:$0xf]  ;;  %v9232_v12 = vld [vmem:[%s14219_s2 + $0x6dc] sm:$0xf] }
 0x204   :  { %2563 = vmatmul.bf16.vlgmr.msrb.gmra.mxu0 %v11516_v29  ;;  %v9315_v20 = vld [vmem:[%s14219_s2 + $0x9f4] sm:$0xf0]  ;;  %v7785_v32 = vor.u32 %v9355_v26, %v7784_v23  ;;  %v7386_v23 = vld [vmem:[%s14219_s2 + $0x7b8] sm:$0xf0] }
 0x205   :  { %2685 = vmatpush.bf16.msrb.mxu0 %v7725_v10  ;;  %2651 = vmatpush.bf16.msrb.mxu2 %v7781_v14  ;;  %v7737_v10 = vor.u32 %v9344_v4, %v7736_v3  ;;  %v7625_v52 = vor.u32 %v9315_v20, %v7624_v19  ;;  %v9363_v14 = vld [vmem:[%s14219_s2 + $0xbc4] sm:$0xf]  ;;  %v7406_v4 = vld [vmem:[%s14219_s2 + $0x7e8] sm:$0xf0]  ;;  %v9255_v19 = vld [vmem:[%s14219_s2 + $0x7b4] sm:$0xf0] }
 0x206   :  { %v9253_v20 = vld [vmem:[%s14219_s2 + $0x7a4] sm:$0xf] }
 0x207   :  { %2601 = vmatpush.bf16.msra.mxu3 %v7737_v10 }
 0x208   :  { %v9686_v34 = vpop.eup %9685 }
 0x209   :  { %v7251_v36 = vadd.f32 -1.0, %v9686_v34  ;;  %2686 = vmatpush.bf16.msrb.mxu0 %v7705_v53  ;;  %2652 = vmatpush.bf16.msrb.mxu2 %v7761_v58  ;;  %v9247_v34 = vld [vmem:[%s14219_s2 + $0x76c] sm:$0xf]  ;;  %v9358_v58 = vld [vmem:[%s14219_s2 + $0xb94] sm:$0xf] }
 0x20a   :  { %v1494_v44 = vpop.f32.mrf.mxu3 }
 0x20b   :  { %v1595_v51 = vmul.f32 1.6732632, %v7251_v36  ;;  %v1479_v25 = vpop.f32.mrf.mxu2  ;;  %2607 = vmatpush.bf16.msrb.mxu3 %v7401_v18  ;;  %v9305_v36 = vld [vmem:[%s14219_s2 + $0x994] sm:$0xf0] }
 0x20c   :  { %v1480_v55 = vadd.f32 %v1479_v25, %v817_v37  ;;  %v7358_v37 = vld [vmem:[%s14219_s2 + $0x780] sm:$0xf0]  ;;  %v9345_v44 = vld [vmem:[%s14219_s2 + $0xb14] sm:$0xf0]  ;;  %v7585_v48 = vor.u32 %v9305_v36, %v7584_v47  ;;  %v7829_v25 = vor.u32 %v9363_v14, %v7826_v41  ;;  %v9261_v47 = vld [vmem:[%s14219_s2 + $0x7ec] sm:$0xf0] }
 0x20d   :  { %v1599_v59 = vsel %vm1575_vm10, %v11483_v54, %v1595_v51  ;;  %2687 = vmatpush.bf16.msrb.mxu0 %v7685_v40  ;;  %v9360_v54 = vld [vmem:[%s14219_s2 + $0xba4] sm:$0xf0]  ;;  %2653 = vmatpush.bf16.msrb.mxu2 %v7741_v17  ;;  %v7361_v39 = vor.u32 %v9247_v34, %v7358_v37  ;;  %v7765_v40 = vor.u32 %v9350_v7, %v7764_v33  ;;  %v7366_v7 = vld [vmem:[%s14219_s2 + $0x788] sm:$0xf0]  ;;  %v9343_v37 = vld [vmem:[%s14219_s2 + $0xb04] sm:$0xf] }
 0x20e   :  { %v1603_v0 = vmul.f32 1.050701, %v1599_v59  ;;  %v1493_v1 = vadd.f32 %v1492_v16, %v1480_v55  ;;  %v7645_v16 = vor.u32 %v9320_v62, %v7644_v61  ;;  %v7805_v22 = vor.u32 %v9360_v54, %v7804_v43  ;;  %v7806_v59 = vld [vmem:[%s14219_s2 + $0xba8] sm:$0xf0]  ;;  %v7318_v61 = vld [vmem:[%s14219_s2 + $0x720] sm:$0xf0] }
 0x20f   :  { %v7745_v57 = vor.u32 %v9345_v44, %v7744_v42  ;;  %v9260_v43 = vld [vmem:[%s14219_s2 + $0x7e4] sm:$0xf0]  ;;  %v9258_v54 = vld [vmem:[%s14219_s2 + $0x7d4] sm:$0xf]  ;;  %v9222_v36 = vld [vmem:[%s14219_s2 + $0x67c] sm:$0xf] }
 0x210   :  { %v11608_v8 = vpack.c.bf16 %v1603_v0, %v1603_v0  ;;  %v1506_v9 = vadd.f32 %v11454_v35, %v1493_v1  ;;  %v7404_v0 = vld [vmem:[%s14219_s2 + $0x7d0] sm:$0xf]  ;;  %v7409_v18 = vor.u32 %v9258_v54, %v7406_v4  ;;  %v9250_v33 = vld [vmem:[%s14219_s2 + $0x784] sm:$0xf0] }
 0x211   :  { %2688 = vmatpush.bf16.msrb.mxu0 %v7665_v60  ;;  %v9237_v60 = vld [vmem:[%s14219_s2 + $0x70c] sm:$0xf]  ;;  %v7405_v15 = vor.u32 %v9260_v43, %v7404_v0  ;;  %v7365_v41 = vor.u32 %v9250_v33, %v7364_v11  ;;  %v9240_v0 = vld [vmem:[%s14219_s2 + $0x724] sm:$0xf0]  ;;  %v9238_v43 = vld [vmem:[%s14219_s2 + $0x714] sm:$0xf] }
 0x212   :  { %v11621_v35 = vadd.f32 %v11421_v6, %v1506_v9  ;;  %2576 = vmatmul.bf16.vlgmr.msrb.gmra.mxu1 %v11608_v8  ;;  %v9252_v6 = vld [vmem:[%s14219_s2 + $0x79c] sm:$0xf]  ;;  %v7321_v1 = vor.u32 %v9237_v60, %v7318_v61  ;;  %v7345_v60 = vor.u32 %v9245_v46, %v7344_v45  ;;  %v9225_v33 = vld [vmem:[%s14219_s2 + $0x694] sm:$0xf0] }
 0x213   :  { %v1481_v21 = vpop.f32.mrf.mxu2  ;;  %2701 = vmatpush.bf16.msrb.mxu1 %v7825_v2  ;;  %v7381_v53 = vor.u32 %v9252_v6, %v7378_v27  ;;  %v7809_v2 = vor.u32 %v9358_v58, %v7806_v59  ;;  %v7786_v9 = vld [vmem:[%s14219_s2 + $0xb78] sm:$0xf0]  ;;  %v9348_v6 = vld [vmem:[%s14219_s2 + $0xb34] sm:$0xf]  ;;  %v9227_v27 = vld [vmem:[%s14219_s2 + $0x6ac] sm:$0xf] }
 0x214   :  { %v1580_v24 = vmin.f32 %v11621_v35, 0.0  ;;  %2628 = vmatmul.bf16.vlgmr.msra.gmra.mxu0 %v11608_v8  ;;  %vm1576_vm11 = vcmp.gt.f32.partialorder %v11621_v35, 0.0  ;;  %v7789_v21 = vor.u32 %v9353_v5, %v7786_v9  ;;  %v9256_v58 = vld [vmem:[%s14219_s2 + $0x7bc] sm:$0xf0] }
 0x215   :  { %2689 = vmatpush.bf16.msrb.mxu0 %v7645_v16  ;;  %2608 = vmatpush.bf16.msrb.mxu3 %v7381_v53  ;;  %v7301_v16 = vor.u32 %v9232_v12, %v7298_v13  ;;  %v814_v53 = vunpack.c.h.bf16 %v11521_v28  ;;  %v9248_v28 = vld [vmem:[%s14219_s2 + $0x774] sm:$0xf]  ;;  %v7304_v9 = vld [vmem:[%s14219_s2 + $0x6e0] sm:$0xf]  ;;  %v9233_v13 = vld [vmem:[%s14219_s2 + $0x6e4] sm:$0xf] }
 0x216   :  { %v1586_v30 = vmul.f32 1.442695, %v1580_v24  ;;  %v7766_v24 = vld [vmem:[%s14219_s2 + $0xb48] sm:$0xf0]  ;;  %v7369_v44 = vor.u32 %v9248_v28, %v7366_v7  ;;  %v9223_v28 = vld [vmem:[%s14219_s2 + $0x684] sm:$0xf] }
 0x217   :  { %2702 = vmatpush.bf16.msrb.mxu1 %v7805_v22  ;;  %v7769_v34 = vor.u32 %v9348_v6, %v7766_v24  ;;  %v818_v14 = vperm.slane %v814_v53, 0  ;;  %v9228_v24 = vld [vmem:[%s14219_s2 + $0x6b4] sm:$0xf]  ;;  %v9241_v53 = vld [vmem:[%s14219_s2 + $0x72c] sm:$0xf0] }
 0x218   :  { %9687 = vpow2.f32 %v1586_v30  ;;  %v7266_v7 = vld [vmem:[%s14219_s2 + $0x698] sm:$0xf0] }
 0x219   :  { %2690 = vmatpush.bf16.msrb.mxu0 %v7625_v52  ;;  %2609 = vmatpush.bf16.msrb.mxu3 %v7361_v39  ;;  %v7278_v52 = vld [vmem:[%s14219_s2 + $0x6c0] sm:$0xf0]  ;;  %v7412_v39 = vld [vmem:[%s14219_s2 + $0x7d8] sm:$0xf]  ;;  %v1532_v59 = vadd.f32 %v11475_v49, %v818_v14  ;;  %v7326_v49 = vld [vmem:[%s14219_s2 + $0x728] sm:$0xf0] }
 0x21a   :  { %v7281_v31 = vor.u32 %v9227_v27, %v7278_v52  ;;  %v7329_v5 = vor.u32 %v9238_v43, %v7326_v49  ;;  %v7332_v52 = vld [vmem:[%s14219_s2 + $0x718] sm:$0xf]  ;;  %v7544_v43 = vld [vmem:[%s14219_s2 + $0x920] sm:$0xf] }
 0x21b   :  { %2703 = vmatpush.bf16.msrb.mxu1 %v7785_v32  ;;  %v7389_v32 = vor.u32 %v9253_v20, %v7386_v23  ;;  %v9230_v23 = vld [vmem:[%s14219_s2 + $0x6c4] sm:$0xf0]  ;;  %v7292_v14 = vld [vmem:[%s14219_s2 + $0x6b8] sm:$0xf] }
 0x21c   :  { %v9295_v49 = vld [vmem:[%s14219_s2 + $0x934] sm:$0xf0] }
 0x21d   :  { %2691 = vmatpush.bf16.msrb.mxu0 %v7605_v38  ;;  %2610 = vmatpush.bf16.msrb.mxu3 %v7341_v50  ;;  %v7746_v38 = vld [vmem:[%s14219_s2 + $0xb18] sm:$0xf0]  ;;  %v9243_v50 = vld [vmem:[%s14219_s2 + $0x744] sm:$0xf] }
 0x21e   :  { %v9688_v51 = vpop.eup %9687 }
 0x21f   :  { %v7252_v55 = vadd.f32 -1.0, %v9688_v51  ;;  %2704 = vmatpush.bf16.msrb.mxu1 %v7765_v40  ;;  %v7258_v40 = vld [vmem:[%s14219_s2 + $0x690] sm:$0xf0]  ;;  %v7346_v51 = vld [vmem:[%s14219_s2 + $0x758] sm:$0xf0] }
 0x220   :  { %v7261_v42 = vor.u32 %v9222_v36, %v7258_v40  ;;  %v7349_v61 = vor.u32 %v9243_v50, %v7346_v51  ;;  %v7269_v36 = vor.u32 %v9223_v28, %v7266_v7  ;;  %v9300_v50 = vld [vmem:[%s14219_s2 + $0x964] sm:$0xf0]  ;;  %v9298_v51 = vld [vmem:[%s14219_s2 + $0x954] sm:$0xf]  ;;  %v7486_v28 = vld [vmem:[%s14219_s2 + $0x8a8] sm:$0xf0] }
 0x221   :  { %v1596_v62 = vmul.f32 1.6732632, %v7252_v55  ;;  %2692 = vmatpush.bf16.msrb.mxu0 %v7585_v48  ;;  %2611 = vmatpush.bf16.msrb.mxu3 %v7321_v1  ;;  %v7749_v48 = vor.u32 %v9343_v37, %v7746_v38  ;;  %v7312_v38 = vld [vmem:[%s14219_s2 + $0x6e8] sm:$0xf]  ;;  %v7492_v7 = vld [vmem:[%s14219_s2 + $0x898] sm:$0xf] }
 0x222   :  { %v11686_v56 = vpop.f32.mrf.mxu3 }
 0x223   :  { %v1600_v3 = vsel %vm1576_vm11, %v11621_v35, %v1596_v62  ;;  %2705 = vmatpush.bf16.msrb.mxu1 %v7745_v57  ;;  %v7384_v35 = vld [vmem:[%s14219_s2 + $0x7a0] sm:$0xf]  ;;  %v7392_v57 = vld [vmem:[%s14219_s2 + $0x7a8] sm:$0xf]  ;;  %v7324_v62 = vld [vmem:[%s14219_s2 + $0x710] sm:$0xf] }
 0x224   :  { %v1604_v10 = vmul.f32 1.050701, %v1600_v3  ;;  %v7385_v30 = vor.u32 %v9255_v19, %v7384_v35  ;;  %v7393_v54 = vor.u32 %v9256_v58, %v7392_v57  ;;  %v9251_v3 = vld [vmem:[%s14219_s2 + $0x78c] sm:$0xf0]  ;;  %v7325_v4 = vor.u32 %v9240_v0, %v7324_v62  ;;  %v7352_v35 = vld [vmem:[%s14219_s2 + $0x748] sm:$0xf] }
 0x225   :  { %2753 = vmatpush.bf16.msra.mxu0 %v7829_v25  ;;  %2612 = vmatpush.bf16.msrb.mxu3 %v7301_v16  ;;  %v7413_v25 = vor.u32 %v9261_v47, %v7412_v39  ;;  %v9246_v19 = vld [vmem:[%s14219_s2 + $0x75c] sm:$0xf0]  ;;  %v7572_v57 = vld [vmem:[%s14219_s2 + $0x958] sm:$0xf]  ;;  %v9301_v58 = vld [vmem:[%s14219_s2 + $0x96c] sm:$0xf0] }
 0x226   :  { %v11726_v17 = vpack.c.bf16 %v1604_v10, %v1604_v10  ;;  %v9235_v10 = vld [vmem:[%s14219_s2 + $0x6f4] sm:$0xf0]  ;;  %v7353_v27 = vor.u32 %v9246_v19, %v7352_v35  ;;  %v9236_v39 = vld [vmem:[%s14219_s2 + $0x6fc] sm:$0xf0]  ;;  %v7526_v35 = vld [vmem:[%s14219_s2 + $0x908] sm:$0xf0] }
 0x227   :  { %v7305_v20 = vor.u32 %v9235_v10, %v7304_v9  ;;  %v7313_v40 = vor.u32 %v9236_v39, %v7312_v38  ;;  %v9296_v9 = vld [vmem:[%s14219_s2 + $0x93c] sm:$0xf0]  ;;  %v7545_v10 = vor.u32 %v9295_v49, %v7544_v43  ;;  %v7532_v19 = vld [vmem:[%s14219_s2 + $0x8f8] sm:$0xf]  ;;  %v9338_v43 = vld [vmem:[%s14219_s2 + $0xad4] sm:$0xf] }
 0x228   :  { %2589 = vmatmul.bf16.vlgmr.msra.gmra.mxu2 %v11726_v17  ;;  %2641 = vmatmul.bf16.vlgmr.msra.gmra.mxu1 %v11726_v17  ;;  %v7464_v39 = vld [vmem:[%s14219_s2 + $0x860] sm:$0xf]  ;;  %v7726_v49 = vld [vmem:[%s14219_s2 + $0xae8] sm:$0xf0] }
 0x229   :  { %2754 = vmatpush.bf16.msra.mxu0 %v7809_v2  ;;  %2659 = vmatpush.bf16.msra.mxu2 %v7405_v15  ;;  %v7372_v2 = vld [vmem:[%s14219_s2 + $0x778] sm:$0xf]  ;;  %v7306_v15 = vld [vmem:[%s14219_s2 + $0x6f8] sm:$0xf0] }
 0x22a   :  { %v1559_v22 = vpop.f32.mrf.mxu3  ;;  %2693 = vmatmul.bf16.vlgmr.msrb.gmra.mxu0 %v11726_v17  ;;  %2711 = vmatpush.bf16.msra.mxu1 %v7409_v18  ;;  %v7373_v16 = vor.u32 %v9251_v3, %v7372_v2  ;;  %v9293_v2 = vld [vmem:[%s14219_s2 + $0x924] sm:$0xf]  ;;  %v7546_v3 = vld [vmem:[%s14219_s2 + $0x938] sm:$0xf0] }
 0x22b   :  { %v1544_v26 = vpop.f32.mrf.mxu2  ;;  %2613 = vmatpush.bf16.msrb.mxu3 %v7281_v31  ;;  %v7284_v22 = vld [vmem:[%s14219_s2 + $0x6b0] sm:$0xf] }
 0x22c   :  { %v1545_v1 = vadd.f32 %v1544_v26, %v1532_v59  ;;  %v7286_v26 = vld [vmem:[%s14219_s2 + $0x6c8] sm:$0xf0]  ;;  %v7285_v11 = vor.u32 %v9230_v23, %v7284_v22  ;;  %v7504_v22 = vld [vmem:[%s14219_s2 + $0x8c0] sm:$0xf]  ;;  %v9285_v23 = vld [vmem:[%s14219_s2 + $0x8d4] sm:$0xf0] }
 0x22d   :  { %2755 = vmatpush.bf16.msra.mxu0 %v7789_v21  ;;  %2660 = vmatpush.bf16.msra.mxu2 %v7385_v30  ;;  %v7309_v21 = vor.u32 %v9233_v13, %v7306_v15  ;;  %v7289_v31 = vor.u32 %v9228_v24, %v7286_v26  ;;  %v7524_v13 = vld [vmem:[%s14219_s2 + $0x8f0] sm:$0xf]  ;;  %v9290_v15 = vld [vmem:[%s14219_s2 + $0x904] sm:$0xf0]  ;;  %v9283_v24 = vld [vmem:[%s14219_s2 + $0x8c4] sm:$0xf] }
 0x22e   :  { %2712 = vmatpush.bf16.msra.mxu1 %v7389_v32  ;;  %v1558_v12 = vadd.f32 %v11686_v56, %v1545_v1  ;;  %v7264_v32 = vld [vmem:[%s14219_s2 + $0x680] sm:$0xf]  ;;  %v7506_v26 = vld [vmem:[%s14219_s2 + $0x8d8] sm:$0xf0] }
 0x22f   :  { %2614 = vmatpush.bf16.msrb.mxu3 %v7261_v42  ;;  %v7265_v47 = vor.u32 %v9225_v33, %v7264_v32  ;;  %v9278_v33 = vld [vmem:[%s14219_s2 + $0x894] sm:$0xf] }
 0x230   :  { %v7489_v38 = vor.u32 %v9278_v33, %v7486_v28  ;;  %v9321_v33 = vld [vmem:[%s14219_s2 + $0xa2c] sm:$0xf0] }
 0x231   :  { %2756 = vmatpush.bf16.msra.mxu0 %v7769_v34  ;;  %2661 = vmatpush.bf16.msra.mxu2 %v7365_v41  ;;  %v7333_v34 = vor.u32 %v9241_v53, %v7332_v52  ;;  %v9231_v41 = vld [vmem:[%s14219_s2 + $0x6cc] sm:$0xf0]  ;;  %v9286_v52 = vld [vmem:[%s14219_s2 + $0x8dc] sm:$0xf0]  ;;  %v7505_v53 = vor.u32 %v9285_v23, %v7504_v22  ;;  %v7692_v22 = vld [vmem:[%s14219_s2 + $0xa78] sm:$0xf] }
 0x232   :  { %2713 = vmatpush.bf16.msra.mxu1 %v7369_v44  ;;  %v7293_v45 = vor.u32 %v9231_v41, %v7292_v14  ;;  %v7466_v14 = vld [vmem:[%s14219_s2 + $0x878] sm:$0xf0]  ;;  %v7472_v41 = vld [vmem:[%s14219_s2 + $0x868] sm:$0xf]  ;;  %v9331_v23 = vld [vmem:[%s14219_s2 + $0xa8c] sm:$0xf0] }
 0x233   :  { %v1546_v55 = vpop.f32.mrf.mxu2 }
 0x234   :  { %v7566_v55 = vld [vmem:[%s14219_s2 + $0x968] sm:$0xf0] }
 0x235   :  { %2757 = vmatpush.bf16.msra.mxu0 %v7749_v48  ;;  %2662 = vmatpush.bf16.msra.mxu2 %v7345_v60  ;;  %v7564_v48 = vld [vmem:[%s14219_s2 + $0x950] sm:$0xf]  ;;  %v7272_v60 = vld [vmem:[%s14219_s2 + $0x688] sm:$0xf]  ;;  %v7569_v1 = vor.u32 %v9298_v51, %v7566_v55  ;;  %v9268_v51 = vld [vmem:[%s14219_s2 + $0x834] sm:$0xf] }
 0x236   :  { %2714 = vmatpush.bf16.msra.mxu1 %v7349_v61  ;;  %v9226_v61 = vld [vmem:[%s14219_s2 + $0x69c] sm:$0xf0]  ;;  %v7565_v62 = vor.u32 %v9300_v50, %v7564_v48  ;;  %v9270_v48 = vld [vmem:[%s14219_s2 + $0x844] sm:$0xf0]  ;;  %v9271_v55 = vld [vmem:[%s14219_s2 + $0x84c] sm:$0xf0] }
 0x239   :  { %2763 = vmatpush.bf16.msrb.mxu0 %v7413_v25  ;;  %2663 = vmatpush.bf16.msra.mxu2 %v7325_v4  ;;  %v7273_v4 = vor.u32 %v9226_v61, %v7272_v60  ;;  %v9265_v60 = vld [vmem:[%s14219_s2 + $0x814] sm:$0xf0]  ;;  %v9263_v61 = vld [vmem:[%s14219_s2 + $0x804] sm:$0xf] }
 0x23a   :  { %2715 = vmatpush.bf16.msra.mxu1 %v7329_v5  ;;  %v7552_v5 = vld [vmem:[%s14219_s2 + $0x928] sm:$0xf] }
 0x23b   :  { %v1570_v18 = vpop.f32.mrf.mxu2 }
 0x23c   :  { %v1571_v56 = vadd.f32 %v1570_v18, %v1558_v12  ;;  %v7549_v12 = vor.u32 %v9293_v2, %v7546_v3  ;;  %v9288_v18 = vld [vmem:[%s14219_s2 + $0x8f4] sm:$0xf]  ;;  %v9266_v2 = vld [vmem:[%s14219_s2 + $0x81c] sm:$0xf0]  ;;  %v7732_v3 = vld [vmem:[%s14219_s2 + $0xad8] sm:$0xf] }
 0x23d   :  { %2764 = vmatpush.bf16.msrb.mxu0 %v7393_v54  ;;  %2664 = vmatpush.bf16.msra.mxu2 %v7305_v20  ;;  %v7573_v54 = vor.u32 %v9301_v58, %v7572_v57  ;;  %v7525_v20 = vor.u32 %v9290_v15, %v7524_v13  ;;  %v7424_v58 = vld [vmem:[%s14219_s2 + $0x800] sm:$0xf]  ;;  %v9333_v15 = vld [vmem:[%s14219_s2 + $0xaa4] sm:$0xf] }
 0x23e   :  { %v1581_v6 = vmin.f32 %v1571_v56, 0.0  ;;  %2716 = vmatpush.bf16.msra.mxu1 %v7309_v21  ;;  %vm1577_vm12 = vcmp.gt.f32.partialorder %v1571_v56, 0.0  ;;  %v7529_v21 = vor.u32 %v9288_v18, %v7526_v35  ;;  %v7712_v18 = vld [vmem:[%s14219_s2 + $0xaa8] sm:$0xf]  ;;  %v9336_v35 = vld [vmem:[%s14219_s2 + $0xabc] sm:$0xf0] }
 0x240   :  { %v1588_v30 = vmul.f32 1.442695, %v1581_v6 }
 0x241   :  { %2765 = vmatpush.bf16.msrb.mxu0 %v7373_v16  ;;  %2665 = vmatpush.bf16.msra.mxu2 %v7285_v11  ;;  %v7553_v16 = vor.u32 %v9296_v9, %v7552_v5  ;;  %v7484_v11 = vld [vmem:[%s14219_s2 + $0x890] sm:$0xf]  ;;  %v7425_v5 = vor.u32 %v9265_v60, %v7424_v58  ;;  %v7812_v60 = vld [vmem:[%s14219_s2 + $0xb98] sm:$0xf] }
 0x242   :  { %9689 = vpow2.f32 %v1588_v30  ;;  %2717 = vmatpush.bf16.msra.mxu1 %v7289_v31  ;;  %v7509_v30 = vor.u32 %v9283_v24, %v7506_v26  ;;  %v9280_v31 = vld [vmem:[%s14219_s2 + $0x8a4] sm:$0xf0]  ;;  %v7693_v24 = vor.u32 %v9331_v23, %v7692_v22  ;;  %v9323_v26 = vld [vmem:[%s14219_s2 + $0xa44] sm:$0xf]  ;;  %v7990_v22 = vld [vmem:[%s14219_s2 + $0xd20] sm:$0xf] }
 0x243   :  { %v1572_v37 = vpop.f32.mrf.mxu2  ;;  %v9406_v23 = vld [vmem:[%s14219_s2 + $0xd34] sm:$0xf0] }
 0x244   :  { %v7485_v37 = vor.u32 %v9280_v31, %v7484_v11  ;;  %v9318_v11 = vld [vmem:[%s14219_s2 + $0xa14] sm:$0xf]  ;;  %v7646_v31 = vld [vmem:[%s14219_s2 + $0xa28] sm:$0xf0] }
 0x245   :  { %2766 = vmatpush.bf16.msrb.mxu0 %v7353_v27  ;;  %2666 = vmatpush.bf16.msra.mxu2 %v7265_v47  ;;  %v7512_v27 = vld [vmem:[%s14219_s2 + $0x8c8] sm:$0xf]  ;;  %v9275_v47 = vld [vmem:[%s14219_s2 + $0x874] sm:$0xf0]  ;;  %v7649_v28 = vor.u32 %v9318_v11, %v7646_v31 }
 0x246   :  { %2718 = vmatpush.bf16.msra.mxu1 %v7269_v36  ;;  %v7513_v32 = vor.u32 %v9286_v52, %v7512_v27  ;;  %v7666_v27 = vld [vmem:[%s14219_s2 + $0xa58] sm:$0xf0]  ;;  %v7672_v52 = vld [vmem:[%s14219_s2 + $0xa48] sm:$0xf] }
 0x247   :  { %v9508_v31 = vld [vmem:[%s14219_s2 + $0x1064] sm:$0xf0] }
 0x248   :  { %v9690_v42 = vpop.eup %9689 }
 0x249   :  { %2767 = vmatpush.bf16.msrb.mxu0 %v7333_v34  ;;  %v7253_v44 = vadd.f32 -1.0, %v9690_v42  ;;  %v9281_v34 = vld [vmem:[%s14219_s2 + $0x8ac] sm:$0xf0]  ;;  %v9276_v42 = vld [vmem:[%s14219_s2 + $0x87c] sm:$0xf0] }
 0x24a   :  { %v7493_v36 = vor.u32 %v9281_v34, %v7492_v7  ;;  %v7473_v50 = vor.u32 %v9276_v42, %v7472_v41  ;;  %v9313_v34 = vld [vmem:[%s14219_s2 + $0x9e4] sm:$0xf]  ;;  %v7612_v41 = vld [vmem:[%s14219_s2 + $0x9b8] sm:$0xf]  ;;  %v9311_v42 = vld [vmem:[%s14219_s2 + $0x9cc] sm:$0xf0] }
 0x24b   :  { %v1597_v46 = vmul.f32 1.6732632, %v7253_v44  ;;  %v7465_v44 = vor.u32 %v9275_v47, %v7464_v39  ;;  %v9316_v39 = vld [vmem:[%s14219_s2 + $0x9fc] sm:$0xf0] }
 0x24d   :  { %2768 = vmatpush.bf16.msrb.mxu0 %v7313_v40  ;;  %v1601_v25 = vsel %vm1577_vm12, %v1571_v56, %v1597_v46  ;;  %v9291_v56 = vld [vmem:[%s14219_s2 + $0x90c] sm:$0xf0]  ;;  %v9273_v40 = vld [vmem:[%s14219_s2 + $0x864] sm:$0xf] }
 0x24e   :  { %v1605_v59 = vmul.f32 1.050701, %v1601_v25  ;;  %v7533_v6 = vor.u32 %v9291_v56, %v7532_v19  ;;  %v7444_v46 = vld [vmem:[%s14219_s2 + $0x830] sm:$0xf]  ;;  %v7446_v25 = vld [vmem:[%s14219_s2 + $0x848] sm:$0xf0]  ;;  %v7713_v56 = vor.u32 %v9336_v35, %v7712_v18 }
 0x24f   :  { %v7445_v57 = vor.u32 %v9270_v48, %v7444_v46  ;;  %v7613_v46 = vor.u32 %v9311_v42, %v7612_v41  ;;  %v9303_v48 = vld [vmem:[%s14219_s2 + $0x984] sm:$0xf]  ;;  %v8158_v42 = vld [vmem:[%s14219_s2 + $0xe70] sm:$0xf] }
 0x250   :  { %v11908_v0 = vpack.c.bf16 %v1605_v59, %v1605_v59  ;;  %v7449_v59 = vor.u32 %v9268_v51, %v7446_v25  ;;  %v7592_v51 = vld [vmem:[%s14219_s2 + $0x988] sm:$0xf]  ;;  %v9306_v25 = vld [vmem:[%s14219_s2 + $0x99c] sm:$0xf0] }
 0x251   :  { %2769 = vmatpush.bf16.msrb.mxu0 %v7293_v45  ;;  %v7469_v45 = vor.u32 %v9273_v40, %v7466_v14  ;;  %v9308_v40 = vld [vmem:[%s14219_s2 + $0x9b4] sm:$0xf]  ;;  %v7606_v14 = vld [vmem:[%s14219_s2 + $0x9c8] sm:$0xf0]  ;;  %v7593_v58 = vor.u32 %v9306_v25, %v7592_v51  ;;  %v7894_v25 = vld [vmem:[%s14219_s2 + $0xc60] sm:$0xf] }
 0x252   :  { %7834 = vmatmul.msk.bf16.vlgmr.msra.gmra.mxu3 %vm2551_vm13, %v11908_v0  ;;  %7835 = vmatmul.msk.bf16.vlgmr.msrb.gmra.mxu2 %vm2551_vm13, %v11908_v0 }
 0x253   :  { %2672 = vmatpush.bf16.msra.mxu3 %v7565_v62  ;;  %7836 = vmatmul.msk.bf16.vlgmr.msrb.gmra.mxu1 %vm2551_vm13, %v11908_v0  ;;  %v7426_v62 = vld [vmem:[%s14219_s2 + $0x818] sm:$0xf0] }
 0x254   :  { %2724 = vmatpush.bf16.msrb.mxu2 %v7569_v1  ;;  %7837 = vmatmul.msk.bf16.vlgmr.msra.gmra.mxu0 %vm2551_vm13, %v11908_v0  ;;  %v7429_v9 = vor.u32 %v9263_v61, %v7426_v62  ;;  %v9361_v61 = vld [vmem:[%s14219_s2 + $0xbac] sm:$0xf0] }
 0x255   :  { %2776 = vmatpush.bf16.msrb.mxu1 %v7573_v54  ;;  %2770 = vmatpush.bf16.msrb.mxu0 %v7273_v4  ;;  %v7432_v54 = vld [vmem:[%s14219_s2 + $0x808] sm:$0xf]  ;;  %v9341_v4 = vld [vmem:[%s14219_s2 + $0xaec] sm:$0xf0] }
 0x256   :  { %v7733_v13 = vor.u32 %v9341_v4, %v7732_v3  ;;  %v7772_v3 = vld [vmem:[%s14219_s2 + $0xb38] sm:$0xf]  ;;  %v9351_v4 = vld [vmem:[%s14219_s2 + $0xb4c] sm:$0xf0] }
 0x257   :  { %2673 = vmatpush.bf16.msra.mxu3 %v7545_v10  ;;  %v7729_v10 = vor.u32 %v9338_v43, %v7726_v49  ;;  %v7792_v43 = vld [vmem:[%s14219_s2 + $0xb68] sm:$0xf]  ;;  %v9356_v49 = vld [vmem:[%s14219_s2 + $0xb7c] sm:$0xf0] }
 0x258   :  { %2725 = vmatpush.bf16.msrb.mxu2 %v7549_v12  ;;  %v7433_v12 = vor.u32 %v9266_v2, %v7432_v54  ;;  %v7793_v54 = vor.u32 %v9356_v49, %v7792_v43  ;;  %v7870_v43 = vld [vmem:[%s14219_s2 + $0xc30] sm:$0xf]  ;;  %v9376_v49 = vld [vmem:[%s14219_s2 + $0xc44] sm:$0xf0] }
 0x259   :  { %2777 = vmatpush.bf16.msrb.mxu1 %v7553_v16  ;;  %v7706_v16 = vld [vmem:[%s14219_s2 + $0xab8] sm:$0xf0] }
 0x25a   :  { %v7709_v19 = vor.u32 %v9333_v15, %v7706_v16 }
 0x25b   :  { %2674 = vmatpush.bf16.msra.mxu3 %v7525_v20  ;;  %v9328_v20 = vld [vmem:[%s14219_s2 + $0xa74] sm:$0xf] }
 0x25c   :  { %2726 = vmatpush.bf16.msrb.mxu2 %v7529_v21  ;;  %v7686_v21 = vld [vmem:[%s14219_s2 + $0xa88] sm:$0xf0] }
 0x25d   :  { %2778 = vmatpush.bf16.msrb.mxu1 %v7533_v6  ;;  %v7689_v6 = vor.u32 %v9328_v20, %v7686_v21 }
 0x25f   :  { %2675 = vmatpush.bf16.msra.mxu3 %v7505_v53  ;;  %v7669_v53 = vor.u32 %v9323_v26, %v7666_v27  ;;  %v9400_v26 = vld [vmem:[%s14219_s2 + $0xd04] sm:$0xf0] }
 0x260   :  { %2727 = vmatpush.bf16.msrb.mxu2 %v7509_v30 }
 0x261   :  { %2779 = vmatpush.bf16.msrb.mxu1 %v7513_v32  ;;  %v7652_v32 = vld [vmem:[%s14219_s2 + $0xa18] sm:$0xf] }
 0x262   :  { %2615 = vmatmul.bf16.vlgmr.msrb.gmra.mxu3 %v11516_v29  ;;  %2667 = vmatmul.bf16.vlgmr.msra.gmra.mxu2 %v11516_v29  ;;  %v7653_v7 = vor.u32 %v9321_v33, %v7652_v32  ;;  %v7942_v33 = vld [vmem:[%s14219_s2 + $0xcc0] sm:$0xf] }
 0x263   :  { %2676 = vmatpush.bf16.msra.mxu3 %v7485_v37  ;;  %2719 = vmatmul.bf16.vlgmr.msra.gmra.mxu1 %v11516_v29  ;;  %v7626_v37 = vld [vmem:[%s14219_s2 + $0x9f8] sm:$0xf0] }
 0x264   :  { %2728 = vmatpush.bf16.msrb.mxu2 %v7489_v38  ;;  %2771 = vmatmul.bf16.vlgmr.msrb.gmra.mxu0 %v11516_v29  ;;  %v7452_v29 = vld [vmem:[%s14219_s2 + $0x838] sm:$0xf]  ;;  %v7632_v38 = vld [vmem:[%s14219_s2 + $0x9e8] sm:$0xf]  ;;  %v7629_v47 = vor.u32 %v9313_v34, %v7626_v37  ;;  %v8182_v34 = vld [vmem:[%s14219_s2 + $0xea0] sm:$0xf] }
 0x265   :  { %2780 = vmatpush.bf16.msrb.mxu1 %v7493_v36  ;;  %v7453_v1 = vor.u32 %v9271_v55, %v7452_v29  ;;  %v7633_v36 = vor.u32 %v9316_v39, %v7632_v38  ;;  %v7832_v29 = vld [vmem:[%s14219_s2 + $0xbc8] sm:$0xf]  ;;  %v9366_v55 = vld [vmem:[%s14219_s2 + $0xbdc] sm:$0xf0]  ;;  %v9454_v37 = vld [vmem:[%s14219_s2 + $0xeb4] sm:$0xf0] }
 0x266   :  { %v8374_v38 = vld [vmem:[%s14219_s2 + $0x1020] sm:$0xf]  ;;  %v8183_v39 = vor.u32 %v9454_v37, %v8182_v34  ;;  %v9418_v37 = vld [vmem:[%s14219_s2 + $0xd94] sm:$0xf0] }
 0x267   :  { %2677 = vmatpush.bf16.msra.mxu3 %v7465_v44  ;;  %v8038_v34 = vld [vmem:[%s14219_s2 + $0xd80] sm:$0xf] }
 0x268   :  { %2729 = vmatpush.bf16.msrb.mxu2 %v7469_v45  ;;  %v7609_v45 = vor.u32 %v9308_v40, %v7606_v14  ;;  %v7918_v40 = vld [vmem:[%s14219_s2 + $0xc90] sm:$0xf]  ;;  %v9388_v14 = vld [vmem:[%s14219_s2 + $0xca4] sm:$0xf0] }
 0x269   :  { %2781 = vmatpush.bf16.msrb.mxu1 %v7473_v50  ;;  %v7586_v50 = vld [vmem:[%s14219_s2 + $0x998] sm:$0xf0]  ;;  %v7919_v41 = vor.u32 %v9388_v14, %v7918_v40  ;;  %v8016_v40 = vld [vmem:[%s14219_s2 + $0xd68] sm:$0xf0] }
 0x26b   :  { %2678 = vmatpush.bf16.msra.mxu3 %v7445_v57  ;;  %v7589_v57 = vor.u32 %v9303_v48, %v7586_v50  ;;  %v9496_v50 = vld [vmem:[%s14219_s2 + $0x1004] sm:$0xf0] }
 0x26c   :  { %2730 = vmatpush.bf16.msrb.mxu2 %v7449_v59  ;;  %v7833_v59 = vor.u32 %v9366_v55, %v7832_v29  ;;  %v9382_v29 = vld [vmem:[%s14219_s2 + $0xc74] sm:$0xf0] }
 0x26d   :  { %2782 = vmatpush.bf16.msrb.mxu1 %v7453_v1  ;;  %v7813_v1 = vor.u32 %v9361_v61, %v7812_v60  ;;  %v7895_v55 = vor.u32 %v9382_v29, %v7894_v25  ;;  %v8326_v60 = vld [vmem:[%s14219_s2 + $0xfc0] sm:$0xf]  ;;  %v9490_v61 = vld [vmem:[%s14219_s2 + $0xfd4] sm:$0xf0] }
 0x26f   :  { %2679 = vmatpush.bf16.msra.mxu3 %v7425_v5 }
 0x270   :  { %2731 = vmatpush.bf16.msrb.mxu2 %v7429_v9  ;;  %v7773_v9 = vor.u32 %v9351_v4, %v7772_v3  ;;  %v8110_v3 = vld [vmem:[%s14219_s2 + $0xe10] sm:$0xf]  ;;  %v9436_v4 = vld [vmem:[%s14219_s2 + $0xe24] sm:$0xf0] }
 0x271   :  { %2783 = vmatpush.bf16.msrb.mxu1 %v7433_v12  ;;  %v8014_v12 = vld [vmem:[%s14219_s2 + $0xd50] sm:$0xf] }
 0x272   :  { %2680 = vmatmul.bf16.vlgmr.msra.gmra.mxu3 %v11608_v8 }
 0x273   :  { %2737 = vmatpush.bf16.msrb.mxu3 %v7729_v10  ;;  %2732 = vmatmul.bf16.vlgmr.msrb.gmra.mxu2 %v11608_v8  ;;  %v9346_v10 = vld [vmem:[%s14219_s2 + $0xb1c] sm:$0xf0] }
 0x274   :  { %2789 = vmatpush.bf16.msra.mxu2 %v7733_v13  ;;  %2784 = vmatmul.bf16.vlgmr.msrb.gmra.mxu1 %v11608_v8  ;;  %v9326_v8 = vld [vmem:[%s14219_s2 + $0xa5c] sm:$0xf0]  ;;  %v9412_v13 = vld [vmem:[%s14219_s2 + $0xd64] sm:$0xf0] }
 0x275   :  { %v7673_v30 = vor.u32 %v9326_v8, %v7672_v52  ;;  %v8015_v18 = vor.u32 %v9412_v13, %v8014_v12  ;;  %v8206_v52 = vld [vmem:[%s14219_s2 + $0xed0] sm:$0xf]  ;;  %v9460_v8 = vld [vmem:[%s14219_s2 + $0xee4] sm:$0xf0] }
 0x276   :  { %v8207_v11 = vor.u32 %v9460_v8, %v8206_v52  ;;  %v8254_v52 = vld [vmem:[%s14219_s2 + $0xf30] sm:$0xf] }
 0x277   :  { %2738 = vmatpush.bf16.msrb.mxu3 %v7709_v19 }
 0x278   :  { %2790 = vmatpush.bf16.msra.mxu2 %v7713_v56  ;;  %4116 = vmatpush.bf16.msra.mxu0 %v8207_v11  ;;  %v8590_v11 = vld [vmem:[%s14219_s2 + $0x11d0] sm:$0xf] }
 0x27b   :  { %2739 = vmatpush.bf16.msrb.mxu3 %v7689_v6 }
 0x27c   :  { %2791 = vmatpush.bf16.msra.mxu2 %v7693_v24  ;;  %v7991_v24 = vor.u32 %v9406_v23, %v7990_v22  ;;  %4117 = vmatpush.bf16.msra.mxu0 %v8183_v39  ;;  %v8278_v22 = vld [vmem:[%s14219_s2 + $0xf60] sm:$0xf]  ;;  %v8039_v39 = vor.u32 %v9418_v37, %v8038_v34  ;;  %v9385_v34 = vld [vmem:[%s14219_s2 + $0xc94] sm:$0xf]  ;;  %v7920_v37 = vld [vmem:[%s14219_s2 + $0xca8] sm:$0xf0] }
 0x27f   :  { %2740 = vmatpush.bf16.msrb.mxu3 %v7669_v53  ;;  %v8398_v53 = vld [vmem:[%s14219_s2 + $0x1050] sm:$0xf] }
 0x280   :  { %2792 = vmatpush.bf16.msra.mxu2 %v7673_v30  ;;  %v8399_v32 = vor.u32 %v9508_v31, %v8398_v53  ;;  %v9472_v53 = vld [vmem:[%s14219_s2 + $0xf44] sm:$0xf0] }
 0x281   :  { %v12135_v44 = vpop.f32.mrf.mxu0  ;;  %v9556_v31 = vld [vmem:[%s14219_s2 + $0x11e4] sm:$0xf0] }
 0x282   :  { %4129 = vmatpush.bf16.msra.mxu1 %v8399_v32 }
 0x283   :  { %2741 = vmatpush.bf16.msrb.mxu3 %v7649_v28  ;;  %v9394_v28 = vld [vmem:[%s14219_s2 + $0xcd4] sm:$0xf0] }
 0x284   :  { %2793 = vmatpush.bf16.msra.mxu2 %v7653_v7  ;;  %v7943_v7 = vor.u32 %v9394_v28, %v7942_v33  ;;  %v8591_v28 = vor.u32 %v9556_v31, %v8590_v11 }
 0x287   :  { %2742 = vmatpush.bf16.msrb.mxu3 %v7629_v47  ;;  %v9502_v47 = vld [vmem:[%s14219_s2 + $0x1034] sm:$0xf0] }
 0x288   :  { %2794 = vmatpush.bf16.msra.mxu2 %v7633_v36  ;;  %v8375_v36 = vor.u32 %v9502_v47, %v8374_v38  ;;  %v8230_v38 = vld [vmem:[%s14219_s2 + $0xf00] sm:$0xf]  ;;  %v9466_v47 = vld [vmem:[%s14219_s2 + $0xf14] sm:$0xf0] }
 0x289   :  { %v2566_v62 = vpop.f32.mrf.mxu0  ;;  %v8231_v14 = vor.u32 %v9466_v47, %v8230_v38  ;;  %v9433_v38 = vld [vmem:[%s14219_s2 + $0xe14] sm:$0xf]  ;;  %v8112_v47 = vld [vmem:[%s14219_s2 + $0xe28] sm:$0xf0] }
 0x28a   :  { %4130 = vmatpush.bf16.msra.mxu1 %v8375_v36  ;;  %v8327_v62 = vor.u32 %v9490_v61, %v8326_v60  ;;  %v9409_v36 = vld [vmem:[%s14219_s2 + $0xd54] sm:$0xf]  ;;  %v8184_v60 = vld [vmem:[%s14219_s2 + $0xeb8] sm:$0xf0]  ;;  %v8542_v61 = vld [vmem:[%s14219_s2 + $0x1170] sm:$0xf] }
 0x28b   :  { %2743 = vmatpush.bf16.msrb.mxu3 %v7609_v45  ;;  %v9448_v45 = vld [vmem:[%s14219_s2 + $0xe84] sm:$0xf0] }
 0x28c   :  { %2795 = vmatpush.bf16.msra.mxu2 %v7613_v46  ;;  %v8350_v46 = vld [vmem:[%s14219_s2 + $0xff0] sm:$0xf]  ;;  %v8159_v48 = vor.u32 %v9448_v45, %v8158_v42  ;;  %v8208_v42 = vld [vmem:[%s14219_s2 + $0xee8] sm:$0xf0]  ;;  %v8566_v45 = vld [vmem:[%s14219_s2 + $0x11a0] sm:$0xf] }
 0x28d   :  { %v8351_v51 = vor.u32 %v9496_v50, %v8350_v46  ;;  %v9550_v50 = vld [vmem:[%s14219_s2 + $0x11b4] sm:$0xf0] }
 0x28e   :  { %4118 = vmatpush.bf16.msra.mxu0 %v8159_v48  ;;  %v8567_v29 = vor.u32 %v9550_v50, %v8566_v45  ;;  %v7896_v50 = vld [vmem:[%s14219_s2 + $0xc78] sm:$0xf0] }
 0x28f   :  { %2744 = vmatpush.bf16.msrb.mxu3 %v7589_v57  ;;  %v12169_v2 = vpop.f32.mrf.mxu1  ;;  %4131 = vmatpush.bf16.msra.mxu1 %v8351_v51  ;;  %v8134_v57 = vld [vmem:[%s14219_s2 + $0xe40] sm:$0xf] }
 0x290   :  { %2796 = vmatpush.bf16.msra.mxu2 %v7593_v58  ;;  %v9442_v58 = vld [vmem:[%s14219_s2 + $0xe54] sm:$0xf0] }
 0x291   :  { %v12177_v5 = vpop.f32.mrf.mxu0 }
 0x292   :  { %2745 = vmatmul.bf16.vlgmr.msrb.gmra.mxu3 %v11726_v17 }
 0x293   :  { %2805 = vmatpush.bf16.msra.mxu3 %v7833_v59  ;;  %2797 = vmatmul.bf16.vlgmr.msra.gmra.mxu2 %v11726_v17  ;;  %v7752_v17 = vld [vmem:[%s14219_s2 + $0xb08] sm:$0xf]  ;;  %v8135_v59 = vor.u32 %v9442_v58, %v8134_v57  ;;  %v9403_v57 = vld [vmem:[%s14219_s2 + $0xd24] sm:$0xf] }
 0x294   :  { %v7753_v15 = vor.u32 %v9346_v10, %v7752_v17  ;;  %4132 = vmatpush.bf16.msra.mxu1 %v8327_v62  ;;  %v8111_v17 = vor.u32 %v9436_v4, %v8110_v3  ;;  %v9484_v10 = vld [vmem:[%s14219_s2 + $0xfa4] sm:$0xf0]  ;;  %4142 = vmatpush.bf16.msrb.mxu2 %v8591_v28  ;;  %v9451_v58 = vld [vmem:[%s14219_s2 + $0xea4] sm:$0xf] }
 0x295   :  { %4119 = vmatpush.bf16.msra.mxu0 %v8135_v59  ;;  %v9544_v62 = vld [vmem:[%s14219_s2 + $0x1184] sm:$0xf0] }
 0x296   :  { %v8543_v3 = vor.u32 %v9544_v62, %v8542_v61 }
 0x297   :  { %2806 = vmatpush.bf16.msra.mxu3 %v7813_v1  ;;  %v2579_v16 = vpop.f32.mrf.mxu1  ;;  %v12280_v1 = vld [vmem:[%s14219_s2 + $0xbe8] sm:$0x11] }
 0x298   :  { %v1787_v13 = vunpack.c.l.bf16 %v12280_v1  ;;  %v9370_v16 = vld [vmem:[%s14219_s2 + $0xc14] sm:$0xf0]  ;;  %4143 = vmatpush.bf16.msrb.mxu2 %v8567_v29 }
 0x299   :  { %v2631_v35 = vpop.f32.mrf.mxu0  ;;  %4120 = vmatpush.bf16.msra.mxu0 %v8111_v17  ;;  %v9397_v17 = vld [vmem:[%s14219_s2 + $0xcf4] sm:$0xf] }
 0x29a   :  { %v8086_v35 = vld [vmem:[%s14219_s2 + $0xde0] sm:$0xf] }
 0x29b   :  { %2807 = vmatpush.bf16.msra.mxu3 %v7793_v54  ;;  %v7871_v54 = vor.u32 %v9376_v49, %v7870_v43 }
 0x29c   :  { %4144 = vmatpush.bf16.msrb.mxu2 %v8543_v3 }
 0x29f   :  { %2808 = vmatpush.bf16.msra.mxu3 %v7773_v9  ;;  %v8302_v9 = vld [vmem:[%s14219_s2 + $0xf90] sm:$0xf] }
 0x2a0   :  { %v8303_v12 = vor.u32 %v9484_v10, %v8302_v9  ;;  %v7968_v10 = vld [vmem:[%s14219_s2 + $0xd08] sm:$0xf0] }
 0x2a2   :  { %4133 = vmatpush.bf16.msra.mxu1 %v8303_v12  ;;  %v7971_v12 = vor.u32 %v9397_v17, %v7968_v10  ;;  %v9421_v17 = vld [vmem:[%s14219_s2 + $0xdb4] sm:$0xf] }
 0x2a3   :  { %2809 = vmatpush.bf16.msra.mxu3 %v7753_v15  ;;  %v7846_v15 = vld [vmem:[%s14219_s2 + $0xc00] sm:$0xf] }
 0x2a5   :  { %v12193_v19 = vpop.f32.mrf.mxu1 }
 0x2a6   :  { %7838 = vmatmul.msk.bf16.vlgmr.msra.gmra.mxu3 %vm2551_vm13, %v11908_v0  ;;  %v7966_v0 = vld [vmem:[%s14219_s2 + $0xcf0] sm:$0xf] }
 0x2a7   :  { %4103 = vmatpush.bf16.msrb.mxu3 %v8015_v18  ;;  %v12195_v56 = vpop.f32.mrf.mxu0  ;;  %v7967_v27 = vor.u32 %v9400_v26, %v7966_v0  ;;  %v7847_v18 = vor.u32 %v9370_v16, %v7846_v15  ;;  %v1792_v0 = vperm.slane %v1787_v13, 0  ;;  %v8062_v26 = vld [vmem:[%s14219_s2 + $0xdb0] sm:$0xf]  ;;  %v9445_v13 = vld [vmem:[%s14219_s2 + $0xe74] sm:$0xf] }
 0x2a8   :  { %v8160_v15 = vld [vmem:[%s14219_s2 + $0xe88] sm:$0xf0]  ;;  %v8518_v16 = vld [vmem:[%s14219_s2 + $0x1140] sm:$0xf] }
 0x2a9   :  { %v2565_v32 = vadd.f32 %v12135_v44, %v1792_v0  ;;  %v7944_v0 = vld [vmem:[%s14219_s2 + $0xcd8] sm:$0xf0] }
 0x2ab   :  { %v12197_v20 = vpop.f32.mrf.mxu2  ;;  %4104 = vmatpush.bf16.msrb.mxu3 %v7991_v24  ;;  %v2578_v44 = vadd.f32 %v12169_v2, %v2565_v32  ;;  %v9457_v2 = vld [vmem:[%s14219_s2 + $0xed4] sm:$0xf] }
 0x2ac   :  { %v8211_v48 = vor.u32 %v9457_v2, %v8208_v42 }
 0x2ad   :  { %v2644_v21 = vpop.f32.mrf.mxu1  ;;  %v2591_v46 = vadd.f32 %v12197_v20, %v2578_v44  ;;  %v7992_v20 = vld [vmem:[%s14219_s2 + $0xd38] sm:$0xf0] }
 0x2ae   :  { %v9430_v21 = vld [vmem:[%s14219_s2 + $0xdf4] sm:$0xf0]  ;;  %v7995_v59 = vor.u32 %v9403_v57, %v7992_v20  ;;  %v8088_v20 = vld [vmem:[%s14219_s2 + $0xdf8] sm:$0xf0] }
 0x2af   :  { %v2696_v6 = vpop.f32.mrf.mxu0  ;;  %4105 = vmatpush.bf16.msrb.mxu3 %v7967_v27  ;;  %v8087_v23 = vor.u32 %v9430_v21, %v8086_v35  ;;  %v9424_v27 = vld [vmem:[%s14219_s2 + $0xdc4] sm:$0xf0]  ;;  %v9538_v35 = vld [vmem:[%s14219_s2 + $0x1154] sm:$0xf0] }
 0x2b0   :  { %v9478_v6 = vld [vmem:[%s14219_s2 + $0xf74] sm:$0xf0]  ;;  %v8063_v8 = vor.u32 %v9424_v27, %v8062_v26  ;;  %v9439_v26 = vld [vmem:[%s14219_s2 + $0xe44] sm:$0xf] }
 0x2b1   :  { %v8279_v24 = vor.u32 %v9478_v6, %v8278_v22  ;;  %4121 = vmatpush.bf16.msra.mxu0 %v8087_v23  ;;  %v1788_v23 = vunpack.c.h.bf16 %v12280_v1  ;;  %v8519_v6 = vor.u32 %v9538_v35, %v8518_v16  ;;  %v8136_v1 = vld [vmem:[%s14219_s2 + $0xe58] sm:$0xf0] }
 0x2b3   :  { %v2592_v30 = vpop.f32.mrf.mxu2  ;;  %4106 = vmatpush.bf16.msrb.mxu3 %v7943_v7  ;;  %4134 = vmatpush.bf16.msra.mxu1 %v8279_v24  ;;  %v9391_v24 = vld [vmem:[%s14219_s2 + $0xcc4] sm:$0xf]  ;;  %v1793_v32 = vperm.slane %v1788_v23, 0 }
 0x2b4   :  { %v8255_v30 = vor.u32 %v9472_v53, %v8254_v52  ;;  %4145 = vmatpush.bf16.msrb.mxu2 %v8519_v6  ;;  %v7947_v27 = vor.u32 %v9391_v24, %v7944_v0  ;;  %v8494_v52 = vld [vmem:[%s14219_s2 + $0x1110] sm:$0xf]  ;;  %v9367_v0 = vld [vmem:[%s14219_s2 + $0xc04] sm:$0xf] }
 0x2b5   :  { %4122 = vmatpush.bf16.msra.mxu0 %v8063_v8  ;;  %v9532_v8 = vld [vmem:[%s14219_s2 + $0x1124] sm:$0xf0] }
 0x2b6   :  { %v8495_v11 = vor.u32 %v9532_v8, %v8494_v52  ;;  %v8040_v52 = vld [vmem:[%s14219_s2 + $0xd98] sm:$0xf0] }
 0x2b7   :  { %4107 = vmatpush.bf16.msrb.mxu3 %v7919_v41  ;;  %4135 = vmatpush.bf16.msra.mxu1 %v8255_v30  ;;  %v8019_v41 = vor.u32 %v9409_v36, %v8016_v40  ;;  %v8139_v30 = vor.u32 %v9439_v26, %v8136_v1  ;;  %v8470_v36 = vld [vmem:[%s14219_s2 + $0x10e0] sm:$0xf]  ;;  %v8115_v40 = vor.u32 %v9433_v38, %v8112_v47  ;;  %v7848_v26 = vld [vmem:[%s14219_s2 + $0xc18] sm:$0xf0]  ;;  %v9415_v1 = vld [vmem:[%s14219_s2 + $0xd84] sm:$0xf] }
 0x2b8   :  { %4146 = vmatpush.bf16.msrb.mxu2 %v8495_v11  ;;  %v8043_v11 = vor.u32 %v9415_v1, %v8040_v52  ;;  %v9469_v52 = vld [vmem:[%s14219_s2 + $0xf34] sm:$0xf] }
 0x2b9   :  { %4123 = vmatpush.bf16.msra.mxu0 %v8039_v39  ;;  %v7923_v39 = vor.u32 %v9385_v34, %v7920_v37  ;;  %v8376_v34 = vld [vmem:[%s14219_s2 + $0x1038] sm:$0xf0] }
 0x2bb   :  { %4108 = vmatpush.bf16.msrb.mxu3 %v7895_v55  ;;  %4136 = vmatpush.bf16.msra.mxu1 %v8231_v14  ;;  %v9526_v14 = vld [vmem:[%s14219_s2 + $0x10f4] sm:$0xf0] }
 0x2bc   :  { %v8471_v45 = vor.u32 %v9526_v14, %v8470_v36 }
 0x2bd   :  { %4168 = vmatpush.bf16.msrb.mxu0 %v8019_v41 }
 0x2be   :  { %4147 = vmatpush.bf16.msrb.mxu2 %v8471_v45 }
 0x2bf   :  { %4109 = vmatpush.bf16.msrb.mxu3 %v7871_v54  ;;  %4181 = vmatpush.bf16.msrb.mxu1 %v8211_v48  ;;  %v8187_v54 = vor.u32 %v9451_v58, %v8184_v60  ;;  %v9379_v48 = vld [vmem:[%s14219_s2 + $0xc64] sm:$0xf]  ;;  %v8446_v58 = vld [vmem:[%s14219_s2 + $0x10b0] sm:$0xf] }
 0x2c0   :  { %v7899_v57 = vor.u32 %v9379_v48, %v7896_v50  ;;  %v9487_v48 = vld [vmem:[%s14219_s2 + $0xfc4] sm:$0xf]  ;;  %v8328_v50 = vld [vmem:[%s14219_s2 + $0xfd8] sm:$0xf0] }
 0x2c1   :  { %4169 = vmatpush.bf16.msrb.mxu0 %v7995_v59  ;;  %v9520_v59 = vld [vmem:[%s14219_s2 + $0x10c4] sm:$0xf0] }
 0x2c3   :  { %4110 = vmatpush.bf16.msrb.mxu3 %v7847_v18  ;;  %4182 = vmatpush.bf16.msrb.mxu1 %v8187_v54  ;;  %v8163_v18 = vor.u32 %v9445_v13, %v8160_v15  ;;  %v9514_v13 = vld [vmem:[%s14219_s2 + $0x1094] sm:$0xf0] }
 0x2c5   :  { %4170 = vmatpush.bf16.msrb.mxu0 %v7971_v12  ;;  %v8064_v12 = vld [vmem:[%s14219_s2 + $0xdc8] sm:$0xf0] }
 0x2c7   :  { %4183 = vmatpush.bf16.msrb.mxu1 %v8163_v18  ;;  %v8067_v18 = vor.u32 %v9421_v17, %v8064_v12  ;;  %v9481_v12 = vld [vmem:[%s14219_s2 + $0xf94] sm:$0xf] }
 0x2c9   :  { %4171 = vmatpush.bf16.msrb.mxu0 %v7947_v27  ;;  %v7851_v27 = vor.u32 %v9367_v0, %v7848_v26  ;;  %v9541_v26 = vld [vmem:[%s14219_s2 + $0x1174] sm:$0xf] }
 0x2cb   :  { %4184 = vmatpush.bf16.msrb.mxu1 %v8139_v30 }
 0x2cd   :  { %4172 = vmatpush.bf16.msrb.mxu0 %v7923_v39  ;;  %v8352_v39 = vld [vmem:[%s14219_s2 + $0x1008] sm:$0xf0] }
 0x2cf   :  { %4185 = vmatpush.bf16.msrb.mxu1 %v8115_v40 }
 0x2d0   :  { %v12338_v33 = vpop.f32.mrf.mxu1 }
 0x2d1   :  { %v12340_v7 = vpop.f32.mrf.mxu0  ;;  %4173 = vmatpush.bf16.msrb.mxu0 %v7899_v57  ;;  %v8331_v57 = vor.u32 %v9487_v48, %v8328_v50  ;;  %v8598_v50 = vld [vmem:[%s14219_s2 + $0x11d8] sm:$0xf] }
 0x2d5   :  { %v2603_v51 = vpop.f32.mrf.mxu3  ;;  %v12374_v25 = vpop.f32.mrf.mxu2 }
 0x2d6   :  { %v12376_v55 = vadd.f32 %v2603_v51, %v2591_v46  ;;  %v9427_v51 = vld [vmem:[%s14219_s2 + $0xde4] sm:$0xf] }
 0x2d8   :  { %v2820_v43 = vmin.f32 %v12376_v55, 0.0  ;;  %v2709_v49 = vpop.f32.mrf.mxu1  ;;  %vm2815_vm14 = vcmp.gt.f32.partialorder %v12376_v55, 0.0 }
 0x2d9   :  { %v2761_v4 = vpop.f32.mrf.mxu0  ;;  %v12482_v49 = vld [vmem:[%s14219_s2 + $0xbf0] sm:$0x11] }
 0x2da   :  { %v2825_v9 = vmul.f32 1.442695, %v2820_v43  ;;  %v8091_v43 = vor.u32 %v9427_v51, %v8088_v20  ;;  %v1789_v16 = vunpack.c.l.bf16 %v12482_v49 }
 0x2dc   :  { %9691 = vpow2.f32 %v2825_v9  ;;  %4186 = vmatpush.bf16.msrb.mxu1 %v8091_v43  ;;  %v9373_v9 = vld [vmem:[%s14219_s2 + $0xc34] sm:$0xf]  ;;  %v1794_v30 = vperm.slane %v1789_v16, 0  ;;  %v8640_v43 = vld [vmem:[%s14219_s2 + $0x1248] sm:$0xf0] }
 0x2dd   :  { %v2605_v21 = vpop.f32.mrf.mxu3  ;;  %v2657_v22 = vpop.f32.mrf.mxu2  ;;  %v8568_v16 = vld [vmem:[%s14219_s2 + $0x11b8] sm:$0xf0] }
 0x2de   :  { %v9505_v21 = vld [vmem:[%s14219_s2 + $0x1054] sm:$0xf]  ;;  %v8400_v22 = vld [vmem:[%s14219_s2 + $0x1068] sm:$0xf0] }
 0x2df   :  { %v8403_v24 = vor.u32 %v9505_v21, %v8400_v22  ;;  %v8616_v21 = vld [vmem:[%s14219_s2 + $0x1218] sm:$0xf0] }
 0x2e0   :  { %v12434_v53 = vpop.f32.mrf.mxu1  ;;  %4187 = vmatpush.bf16.msrb.mxu1 %v8067_v18 }
 0x2e1   :  { %v12436_v31 = vpop.f32.mrf.mxu0 }
 0x2e2   :  { %v9692_v28 = vpop.eup %9691 }
 0x2e3   :  { %v7839_v44 = vadd.f32 -1.0, %v9692_v28 }
 0x2e4   :  { %4188 = vmatpush.bf16.msrb.mxu1 %v8043_v11 }
 0x2e5   :  { %v2840_v41 = vmul.f32 1.6732632, %v7839_v44  ;;  %v2616_v2 = vpop.f32.mrf.mxu3  ;;  %v12457_v42 = vpop.f32.mrf.mxu2  ;;  %v9493_v44 = vld [vmem:[%s14219_s2 + $0xff4] sm:$0xf] }
 0x2e6   :  { %v2617_v46 = vadd.f32 %v2616_v2, %v1793_v32  ;;  %v9499_v32 = vld [vmem:[%s14219_s2 + $0x1024] sm:$0xf]  ;;  %v2669_v38 = vadd.f32 %v12457_v42, %v1794_v30  ;;  %v8355_v36 = vor.u32 %v9493_v44, %v8352_v39  ;;  %v9568_v2 = vld [vmem:[%s14219_s2 + $0x1244] sm:$0xf0] }
 0x2e7   :  { %v2845_v29 = vsel %vm2815_vm14, %v12376_v55, %v2840_v41  ;;  %v8447_v55 = vor.u32 %v9520_v59, %v8446_v58  ;;  %v8379_v37 = vor.u32 %v9499_v32, %v8376_v34  ;;  %v8638_v41 = vld [vmem:[%s14219_s2 + $0x1230] sm:$0xf]  ;;  %v9562_v58 = vld [vmem:[%s14219_s2 + $0x1214] sm:$0xf0]  ;;  %v1790_v32 = vunpack.c.h.bf16 %v12482_v49  ;;  %v9463_v49 = vld [vmem:[%s14219_s2 + $0xf04] sm:$0xf] }
 0x2e8   :  { %v2850_v60 = vmul.f32 1.050701, %v2845_v29  ;;  %v2630_v61 = vadd.f32 %v12177_v5, %v2617_v46  ;;  %v2722_v62 = vpop.f32.mrf.mxu1  ;;  %v7872_v5 = vld [vmem:[%s14219_s2 + $0xc48] sm:$0xf0]  ;;  %v8639_v42 = vor.u32 %v9568_v2, %v8638_v41 }
 0x2e9   :  { %v2774_v54 = vpop.f32.mrf.mxu0  ;;  %4148 = vmatpush.bf16.msrb.mxu2 %v8447_v55  ;;  %v7875_v10 = vor.u32 %v9373_v9, %v7872_v5  ;;  %v9553_v62 = vld [vmem:[%s14219_s2 + $0x11d4] sm:$0xf]  ;;  %v8592_v55 = vld [vmem:[%s14219_s2 + $0x11e8] sm:$0xf0]  ;;  %v1795_v41 = vperm.slane %v1790_v32, 0 }
 0x2ea   :  { %v12484_v3 = vpack.c.bf16 %v2850_v60, %v2850_v60  ;;  %v2643_v4 = vadd.f32 %v12193_v19, %v2630_v61  ;;  %v8422_v19 = vld [vmem:[%s14219_s2 + $0x1080] sm:$0xf]  ;;  %4161 = vmatpush.bf16.msra.mxu3 %v8639_v42  ;;  %v9565_v60 = vld [vmem:[%s14219_s2 + $0x1234] sm:$0xf]  ;;  %v8595_v9 = vor.u32 %v9553_v62, %v8592_v55  ;;  %v8472_v62 = vld [vmem:[%s14219_s2 + $0x10f8] sm:$0xf0] }
 0x2eb   :  { %v8423_v35 = vor.u32 %v9514_v13, %v8422_v19  ;;  %4174 = vmatpush.bf16.msrb.mxu0 %v7875_v10  ;;  %v8643_v19 = vor.u32 %v9565_v60, %v8640_v43  ;;  %v8304_v13 = vld [vmem:[%s14219_s2 + $0xfa8] sm:$0xf0] }
 0x2ec   :  { %v12506_v15 = vadd.f32 %v12374_v25, %v2643_v4  ;;  %4111 = vmatmul.bf16.vlgmr.msrb.gmra.mxu3 %v12484_v3  ;;  %v8307_v22 = vor.u32 %v9481_v12, %v8304_v13  ;;  %v8448_v13 = vld [vmem:[%s14219_s2 + $0x10c8] sm:$0xf0] }
 0x2ed   :  { %v2618_v23 = vpop.f32.mrf.mxu3  ;;  %v2670_v6 = vpop.f32.mrf.mxu2  ;;  %4149 = vmatpush.bf16.msrb.mxu2 %v8423_v35  ;;  %v9559_v35 = vld [vmem:[%s14219_s2 + $0x1204] sm:$0xf] }
 0x2ee   :  { %v2821_v25 = vmin.f32 %v12506_v15, 0.0  ;;  %vm2816_vm15 = vcmp.gt.f32.partialorder %v12506_v15, 0.0  ;;  %v9475_v6 = vld [vmem:[%s14219_s2 + $0xf64] sm:$0xf]  ;;  %v8619_v0 = vor.u32 %v9559_v35, %v8616_v21 }
 0x2ef   :  { %4175 = vmatpush.bf16.msrb.mxu0 %v7851_v27  ;;  %v8544_v27 = vld [vmem:[%s14219_s2 + $0x1188] sm:$0xf0] }
 0x2f0   :  { %v2827_v8 = vmul.f32 1.442695, %v2821_v25  ;;  %v8547_v1 = vor.u32 %v9541_v26, %v8544_v27  ;;  %v9511_v26 = vld [vmem:[%s14219_s2 + $0x1084] sm:$0xf]  ;;  %v8526_v27 = vld [vmem:[%s14219_s2 + $0x1148] sm:$0xf] }
 0x2f1   :  { %4194 = vmatpush.bf16.msra.mxu2 %v8403_v24  ;;  %v12532_v28 = vpop.f32.mrf.mxu1  ;;  %v8280_v24 = vld [vmem:[%s14219_s2 + $0xf78] sm:$0xf0] }
 0x2f2   :  { %9693 = vpow2.f32 %v2827_v8  ;;  %v8283_v25 = vor.u32 %v9475_v6, %v8280_v24  ;;  %v8256_v8 = vld [vmem:[%s14219_s2 + $0xf48] sm:$0xf0]  ;;  %v7950_v6 = vld [vmem:[%s14219_s2 + $0xcc8] sm:$0xf]  ;;  %v9395_v24 = vld [vmem:[%s14219_s2 + $0xcdc] sm:$0xf0] }
 0x2f3   :  { %v8259_v11 = vor.u32 %v9469_v52, %v8256_v8 }
 0x2f5   :  { %4195 = vmatpush.bf16.msra.mxu2 %v8379_v37  ;;  %v2681_v47 = vpop.f32.mrf.mxu3  ;;  %v9535_v37 = vld [vmem:[%s14219_s2 + $0x1144] sm:$0xf] }
 0x2f6   :  { %v2682_v40 = vadd.f32 %v2681_v47, %v2669_v38  ;;  %v12544_v14 = vpop.f32.mrf.mxu2  ;;  %v8520_v38 = vld [vmem:[%s14219_s2 + $0x1158] sm:$0xf0]  ;;  %v8022_v47 = vld [vmem:[%s14219_s2 + $0xd58] sm:$0xf] }
 0x2f7   :  { %v8523_v44 = vor.u32 %v9535_v37, %v8520_v38  ;;  %v9389_v37 = vld [vmem:[%s14219_s2 + $0xcac] sm:$0xf0] }
 0x2f8   :  { %v9694_v45 = vpop.eup %9693  ;;  %v2695_v46 = vadd.f32 %v12195_v56, %v2682_v40  ;;  %v8614_v56 = vld [vmem:[%s14219_s2 + $0x1200] sm:$0xf]  ;;  %v8232_v40 = vld [vmem:[%s14219_s2 + $0xf18] sm:$0xf0] }
 0x2f9   :  { %4196 = vmatpush.bf16.msra.mxu2 %v8355_v36  ;;  %v7840_v51 = vadd.f32 -1.0, %v9694_v45  ;;  %v2787_v29 = vpop.f32.mrf.mxu1  ;;  %v8615_v61 = vor.u32 %v9562_v58, %v8614_v56  ;;  %v9413_v36 = vld [vmem:[%s14219_s2 + $0xd6c] sm:$0xf0]  ;;  %v8235_v42 = vor.u32 %v9463_v49, %v8232_v40  ;;  %v9529_v45 = vld [vmem:[%s14219_s2 + $0x1114] sm:$0xf] }
 0x2fa   :  { %v12560_v20 = vadd.f32 %v12338_v33, %v2695_v46  ;;  %v8496_v46 = vld [vmem:[%s14219_s2 + $0x1128] sm:$0xf0]  ;;  %v7998_v56 = vld [vmem:[%s14219_s2 + $0xd28] sm:$0xf]  ;;  %v9407_v58 = vld [vmem:[%s14219_s2 + $0xd3c] sm:$0xf0] }
 0x2fb   :  { %v2841_v59 = vmul.f32 1.6732632, %v7840_v51  ;;  %4162 = vmatpush.bf16.msra.mxu3 %v8615_v61  ;;  %v9557_v51 = vld [vmem:[%s14219_s2 + $0x11ec] sm:$0xf0]  ;;  %v8499_v29 = vor.u32 %v9529_v45, %v8496_v46  ;;  %v9523_v61 = vld [vmem:[%s14219_s2 + $0x10e4] sm:$0xf] }
 0x2fc   :  { %v2822_v33 = vmin.f32 %v12560_v20, 0.0  ;;  %vm2817_vm4 = vcmp.gt.f32.partialorder %v12560_v20, 0.0  ;;  %v8599_v60 = vor.u32 %v9557_v51, %v8598_v50  ;;  %v8475_v43 = vor.u32 %v9523_v61, %v8472_v62  ;;  %v7902_v40 = vld [vmem:[%s14219_s2 + $0xc68] sm:$0xf]  ;;  %v9521_v61 = vld [vmem:[%s14219_s2 + $0x10cc] sm:$0xf0] }
 0x2fd   :  { %4197 = vmatpush.bf16.msra.mxu2 %v8331_v57  ;;  %v2846_v54 = vsel %vm2816_vm15, %v12506_v15, %v2841_v59  ;;  %v2683_v4 = vpop.f32.mrf.mxu3  ;;  %v9547_v15 = vld [vmem:[%s14219_s2 + $0x11a4] sm:$0xf]  ;;  %v8023_v57 = vor.u32 %v9413_v36, %v8022_v47  ;;  %v2721_v59 = vadd.f32 %v12434_v53, %v1795_v41  ;;  %v9551_v53 = vld [vmem:[%s14219_s2 + $0x11bc] sm:$0xf0]  ;;  %v9533_v47 = vld [vmem:[%s14219_s2 + $0x112c] sm:$0xf0] }
 0x2fe   :  { %v2851_v5 = vmul.f32 1.050701, %v2846_v54  ;;  %v2829_v17 = vmul.f32 1.442695, %v2822_v33  ;;  %v2735_v10 = vpop.f32.mrf.mxu2  ;;  %v8571_v23 = vor.u32 %v9547_v15, %v8568_v16  ;;  %v8574_v33 = vld [vmem:[%s14219_s2 + $0x11a8] sm:$0xf]  ;;  %v7999_v54 = vor.u32 %v9407_v58, %v7998_v56 }
 0x2ff   :  { %4207 = vmatpush.bf16.msrb.mxu3 %v8595_v9  ;;  %v2734_v55 = vadd.f32 %v12544_v14, %v2721_v59  ;;  %v7974_v9 = vld [vmem:[%s14219_s2 + $0xcf8] sm:$0xf]  ;;  %v8575_v14 = vor.u32 %v9551_v53, %v8574_v33  ;;  %v9545_v16 = vld [vmem:[%s14219_s2 + $0x118c] sm:$0xf0]  ;;  %v9383_v41 = vld [vmem:[%s14219_s2 + $0xc7c] sm:$0xf0] }
 0x300   :  { %v12595_v18 = vpack.c.bf16 %v2851_v5, %v2851_v5  ;;  %9695 = vpow2.f32 %v2829_v17  ;;  %v9401_v5 = vld [vmem:[%s14219_s2 + $0xd0c] sm:$0xf0]  ;;  %v1786_v17 = vld [vmem:[%s14219_s2 + $0xbf8] sm:$0x1]  ;;  %v8478_v45 = vld [vmem:[%s14219_s2 + $0x10e8] sm:$0xf] }
 0x301   :  { %4198 = vmatpush.bf16.msra.mxu2 %v8307_v22  ;;  %v8550_v15 = vld [vmem:[%s14219_s2 + $0x1178] sm:$0xf]  ;;  %v7975_v22 = vor.u32 %v9401_v5, %v7974_v9  ;;  %v9461_v53 = vld [vmem:[%s14219_s2 + $0xeec] sm:$0xf0] }
 0x302   :  { %4124 = vmatmul.bf16.vlgmr.msra.gmra.mxu0 %v12595_v18  ;;  %v8214_v33 = vld [vmem:[%s14219_s2 + $0xed8] sm:$0xf] }
 0x303   :  { %4226 = vmatpush.bf16.msra.mxu0 %v8643_v19  ;;  %4208 = vmatpush.bf16.msrb.mxu3 %v8571_v23  ;;  %v9517_v19 = vld [vmem:[%s14219_s2 + $0x10b4] sm:$0xf]  ;;  %v1791_v23 = vunpack.c.l.bf16 %v1786_v17  ;;  %v8646_v5 = vld [vmem:[%s14219_s2 + $0x1238] sm:$0xf]  ;;  %v9569_v17 = vld [vmem:[%s14219_s2 + $0x124c] sm:$0xf0] }
 0x304   :  { %v8451_v35 = vor.u32 %v9517_v19, %v8448_v13  ;;  %v8430_v19 = vld [vmem:[%s14219_s2 + $0x1088] sm:$0xf]  ;;  %v9515_v13 = vld [vmem:[%s14219_s2 + $0x109c] sm:$0xf0] }
 0x305   :  { %4199 = vmatpush.bf16.msra.mxu2 %v8283_v25 }
 0x306   :  { %v9696_v30 = vpop.eup %9695 }
 0x307   :  { %v7841_v34 = vadd.f32 -1.0, %v9696_v30  ;;  %4227 = vmatpush.bf16.msra.mxu0 %v8619_v0  ;;  %4209 = vmatpush.bf16.msrb.mxu3 %v8547_v1  ;;  %v8551_v0 = vor.u32 %v9545_v16, %v8550_v15  ;;  %v9539_v1 = vld [vmem:[%s14219_s2 + $0x115c] sm:$0xf0]  ;;  %v7951_v30 = vor.u32 %v9395_v24, %v7950_v6  ;;  %v8622_v6 = vld [vmem:[%s14219_s2 + $0x1208] sm:$0xf] }
 0x308   :  { %v9563_v24 = vld [vmem:[%s14219_s2 + $0x121c] sm:$0xf0] }
 0x309   :  { %v2842_v39 = vmul.f32 1.6732632, %v7841_v34  ;;  %4200 = vmatpush.bf16.msra.mxu2 %v8259_v11  ;;  %v1796_v11 = vperm.slane %v1791_v23, 0  ;;  %v7926_v34 = vld [vmem:[%s14219_s2 + $0xc98] sm:$0xf] }
 0x30a   :  { %v7927_v49 = vor.u32 %v9389_v37, %v7926_v34  ;;  %v8576_v34 = vld [vmem:[%s14219_s2 + $0x11c0] sm:$0xf0] }
 0x30b   :  { %v2847_v2 = vsel %vm2817_vm4, %v12560_v20, %v2842_v39  ;;  %4210 = vmatpush.bf16.msrb.mxu3 %v8523_v44  ;;  %v8527_v44 = vor.u32 %v9539_v1, %v8526_v27  ;;  %v8502_v39 = vld [vmem:[%s14219_s2 + $0x1118] sm:$0xf]  ;;  %v2773_v36 = vadd.f32 %v12436_v31, %v1796_v11  ;;  %v9527_v31 = vld [vmem:[%s14219_s2 + $0x10fc] sm:$0xf0]  ;;  %v9449_v1 = vld [vmem:[%s14219_s2 + $0xe8c] sm:$0xf0] }
 0x30c   :  { %v2852_v48 = vmul.f32 1.050701, %v2847_v2  ;;  %v8503_v2 = vor.u32 %v9533_v47, %v8502_v39  ;;  %v8479_v56 = vor.u32 %v9527_v31, %v8478_v45  ;;  %v8166_v27 = vld [vmem:[%s14219_s2 + $0xe78] sm:$0xf]  ;;  %v9542_v45 = vld [vmem:[%s14219_s2 + $0x117c] sm:$0xf] }
 0x30d   :  { %4201 = vmatpush.bf16.msra.mxu2 %v8235_v42  ;;  %v2786_v42 = vadd.f32 %v12532_v28, %v2773_v36  ;;  %v9377_v28 = vld [vmem:[%s14219_s2 + $0xc4c] sm:$0xf0]  ;;  %v8167_v11 = vor.u32 %v9449_v1, %v8166_v27  ;;  %v8552_v31 = vld [vmem:[%s14219_s2 + $0x1190] sm:$0xf0]  ;;  %v8046_v27 = vld [vmem:[%s14219_s2 + $0xd88] sm:$0xf] }
 0x30e   :  { %v12655_v20 = vpack.c.bf16 %v2852_v48, %v2852_v48  ;;  %v7903_v48 = vor.u32 %v9383_v41, %v7902_v40  ;;  %v9509_v36 = vld [vmem:[%s14219_s2 + $0x106c] sm:$0xf0]  ;;  %v9506_v41 = vld [vmem:[%s14219_s2 + $0x105c] sm:$0xf]  ;;  %v9419_v1 = vld [vmem:[%s14219_s2 + $0xd9c] sm:$0xf0] }
 0x30f   :  { %4211 = vmatpush.bf16.msrb.mxu3 %v8499_v29  ;;  %v7878_v29 = vld [vmem:[%s14219_s2 + $0xc38] sm:$0xf] }
 0x310   :  { %4137 = vmatmul.bf16.vlgmr.msra.gmra.mxu1 %v12655_v20  ;;  %v7879_v62 = vor.u32 %v9377_v28, %v7878_v29  ;;  %v8382_v28 = vld [vmem:[%s14219_s2 + $0x1028] sm:$0xf] }
 0x311   :  { %4233 = vmatpush.bf16.msra.mxu1 %v8023_v57 }
 0x312   :  { %4176 = vmatmul.bf16.vlgmr.msrb.gmra.mxu0 %v12484_v3 }
 0x313   :  { %4272 = vmatpush.bf16.msrb.mxu0 %v8599_v60  ;;  %4212 = vmatpush.bf16.msrb.mxu3 %v8475_v43  ;;  %v8454_v60 = vld [vmem:[%s14219_s2 + $0x10b8] sm:$0xf] }
 0x315   :  { %v2746_v4 = vpop.f32.mrf.mxu3  ;;  %4234 = vmatpush.bf16.msra.mxu1 %v7999_v54  ;;  %v7854_v54 = vld [vmem:[%s14219_s2 + $0xc08] sm:$0xf] }
 0x316   :  { %v2747_v10 = vadd.f32 %v2746_v4, %v2734_v55  ;;  %v2798_v12 = vpop.f32.mrf.mxu2  ;;  %v9371_v4 = vld [vmem:[%s14219_s2 + $0xc1c] sm:$0xf0] }
 0x317   :  { %4273 = vmatpush.bf16.msrb.mxu0 %v8575_v14  ;;  %4213 = vmatpush.bf16.msrb.mxu3 %v8451_v35  ;;  %v2799_v51 = vadd.f32 %v2798_v12, %v2786_v42  ;;  %v8215_v14 = vor.u32 %v9461_v53, %v8214_v33  ;;  %v7855_v16 = vor.u32 %v9371_v4, %v7854_v54  ;;  %v8190_v35 = vld [vmem:[%s14219_s2 + $0xea8] sm:$0xf]  ;;  %v8528_v33 = vld [vmem:[%s14219_s2 + $0x1160] sm:$0xf0]  ;;  %v8358_v4 = vld [vmem:[%s14219_s2 + $0xff8] sm:$0xf] }
 0x318   :  { %v2760_v21 = vadd.f32 %v12340_v7, %v2747_v10  ;;  %v8424_v7 = vld [vmem:[%s14219_s2 + $0x1098] sm:$0xf0]  ;;  %v8455_v10 = vor.u32 %v9521_v61, %v8454_v60  ;;  %v8384_v60 = vld [vmem:[%s14219_s2 + $0x1040] sm:$0xf0]  ;;  %v8094_v53 = vld [vmem:[%s14219_s2 + $0xde8] sm:$0xf] }
 0x319   :  { %v8427_v52 = vor.u32 %v9511_v26, %v8424_v7  ;;  %4235 = vmatpush.bf16.msra.mxu1 %v7975_v22  ;;  %v8647_v22 = vor.u32 %v9569_v17, %v8646_v5  ;;  %v9554_v26 = vld [vmem:[%s14219_s2 + $0x11dc] sm:$0xf]  ;;  %v8600_v7 = vld [vmem:[%s14219_s2 + $0x11f0] sm:$0xf0]  ;;  %v9497_v5 = vld [vmem:[%s14219_s2 + $0x100c] sm:$0xf0] }
 0x31a   :  { %v2823_v25 = vmin.f32 %v2760_v21, 0.0  ;;  %vm2818_vm5 = vcmp.gt.f32.partialorder %v2760_v21, 0.0  ;;  %v9494_v17 = vld [vmem:[%s14219_s2 + $0xffc] sm:$0xf] }
 0x31b   :  { %4274 = vmatpush.bf16.msrb.mxu0 %v8551_v0  ;;  %4214 = vmatpush.bf16.msrb.mxu3 %v8427_v52  ;;  %v8623_v52 = vor.u32 %v9563_v24, %v8622_v6  ;;  %v9491_v6 = vld [vmem:[%s14219_s2 + $0xfdc] sm:$0xf0]  ;;  %v9488_v24 = vld [vmem:[%s14219_s2 + $0xfcc] sm:$0xf] }
 0x31c   :  { %v2831_v8 = vmul.f32 1.442695, %v2823_v25  ;;  %v8431_v25 = vor.u32 %v9515_v13, %v8430_v19  ;;  %v8504_v19 = vld [vmem:[%s14219_s2 + $0x1130] sm:$0xf0]  ;;  %v8070_v13 = vld [vmem:[%s14219_s2 + $0xdb8] sm:$0xf] }
 0x31d   :  { %v2748_v32 = vpop.f32.mrf.mxu3  ;;  %4236 = vmatpush.bf16.msra.mxu1 %v7951_v30 }
 0x31e   :  { %9697 = vpow2.f32 %v2831_v8  ;;  %v2800_v38 = vpop.f32.mrf.mxu2  ;;  %v8603_v8 = vor.u32 %v9554_v26, %v8600_v7  ;;  %v9548_v32 = vld [vmem:[%s14219_s2 + $0x11ac] sm:$0xf]  ;;  %v8480_v7 = vld [vmem:[%s14219_s2 + $0x1100] sm:$0xf0] }
 0x31f   :  { %4275 = vmatpush.bf16.msrb.mxu0 %v8527_v44  ;;  %v8142_v38 = vld [vmem:[%s14219_s2 + $0xe48] sm:$0xf]  ;;  %v9443_v44 = vld [vmem:[%s14219_s2 + $0xe5c] sm:$0xf0]  ;;  %v8579_v47 = vor.u32 %v9548_v32, %v8576_v34  ;;  %v9524_v26 = vld [vmem:[%s14219_s2 + $0x10ec] sm:$0xf] }
 0x320   :  { %4189 = vmatmul.bf16.vlgmr.msrb.gmra.mxu1 %v12595_v18  ;;  %v8143_v40 = vor.u32 %v9443_v44, %v8142_v38  ;;  %v8483_v32 = vor.u32 %v9524_v26, %v8480_v7  ;;  %v8310_v34 = vld [vmem:[%s14219_s2 + $0xf98] sm:$0xf]  ;;  %v8047_v38 = vor.u32 %v9419_v1, %v8046_v27  ;;  %v9482_v44 = vld [vmem:[%s14219_s2 + $0xf9c] sm:$0xf]  ;;  %v7928_v27 = vld [vmem:[%s14219_s2 + $0xcb0] sm:$0xf0] }
 0x321   :  { %4237 = vmatpush.bf16.msra.mxu1 %v7927_v49  ;;  %v8406_v49 = vld [vmem:[%s14219_s2 + $0x1058] sm:$0xf]  ;;  %v9386_v26 = vld [vmem:[%s14219_s2 + $0xc9c] sm:$0xf]  ;;  %v8366_v1 = vld [vmem:[%s14219_s2 + $0x1000] sm:$0xf] }
 0x323   :  { %4276 = vmatpush.bf16.msrb.mxu0 %v8503_v2  ;;  %v8408_v2 = vld [vmem:[%s14219_s2 + $0x1070] sm:$0xf0] }
 0x324   :  { %v9698_v46 = vpop.eup %9697  ;;  %v8411_v29 = vor.u32 %v9506_v41, %v8408_v2  ;;  %v9404_v41 = vld [vmem:[%s14219_s2 + $0xd2c] sm:$0xf]  ;;  %v8000_v2 = vld [vmem:[%s14219_s2 + $0xd40] sm:$0xf0] }
 0x325   :  { %v7842_v50 = vadd.f32 -1.0, %v9698_v46  ;;  %4238 = vmatpush.bf16.msra.mxu1 %v7903_v48  ;;  %v8118_v48 = vld [vmem:[%s14219_s2 + $0xe18] sm:$0xf] }
 0x327   :  { %v2843_v58 = vmul.f32 1.6732632, %v7842_v50  ;;  %4277 = vmatpush.bf16.msrb.mxu0 %v8479_v56  ;;  %v9437_v50 = vld [vmem:[%s14219_s2 + $0xe2c] sm:$0xf0]  ;;  %v8555_v56 = vor.u32 %v9542_v45, %v8552_v31  ;;  %v8286_v45 = vld [vmem:[%s14219_s2 + $0xf68] sm:$0xf] }
 0x328   :  { %v8119_v61 = vor.u32 %v9437_v50, %v8118_v48  ;;  %v9479_v31 = vld [vmem:[%s14219_s2 + $0xf7c] sm:$0xf0]  ;;  %v9476_v48 = vld [vmem:[%s14219_s2 + $0xf6c] sm:$0xf]  ;;  %v8288_v50 = vld [vmem:[%s14219_s2 + $0xf80] sm:$0xf0] }
 0x329   :  { %v2811_v57 = vpop.f32.mrf.mxu3  ;;  %v2848_v43 = vsel %vm2818_vm5, %v2760_v21, %v2843_v58  ;;  %4239 = vmatpush.bf16.msra.mxu1 %v7879_v62  ;;  %v9455_v21 = vld [vmem:[%s14219_s2 + $0xebc] sm:$0xf0]  ;;  %v9536_v62 = vld [vmem:[%s14219_s2 + $0x114c] sm:$0xf]  ;;  %vm5149_vm5 = vcmask 64512  }
 0x32a   :  { %v12752_v59 = vadd.f32 %v2811_v57, %v2799_v51  ;;  %v2853_v9 = vmul.f32 1.050701, %v2848_v43  ;;  %v8191_v0 = vor.u32 %v9455_v21, %v8190_v35  ;;  %v8407_v51 = vor.u32 %v9509_v36, %v8406_v49  ;;  %v9503_v58 = vld [vmem:[%s14219_s2 + $0x103c] sm:$0xf0]  ;;  %v9518_v49 = vld [vmem:[%s14219_s2 + $0x10bc] sm:$0xf] }
 0x32b   :  { %4278 = vmatpush.bf16.msrb.mxu0 %v8455_v10  ;;  %v9431_v43 = vld [vmem:[%s14219_s2 + $0xdfc] sm:$0xf0]  ;;  %v8360_v10 = vld [vmem:[%s14219_s2 + $0x1010] sm:$0xf0]  ;;  %v8359_v35 = vor.u32 %v9497_v5, %v8358_v4  ;;  %v9392_v5 = vld [vmem:[%s14219_s2 + $0xccc] sm:$0xf] }
 0x32c   :  { %v2824_v55 = vmin.f32 %v12752_v59, 0.0  ;;  %v12785_v15 = vpack.c.bf16 %v2853_v9, %v2853_v9  ;;  %vm2819_vm6 = vcmp.gt.f32.partialorder %v12752_v59, 0.0  ;;  %v8531_v9 = vor.u32 %v9536_v62, %v8528_v33  ;;  %v8456_v36 = vld [vmem:[%s14219_s2 + $0x10d0] sm:$0xf0]  ;;  %v8262_v33 = vld [vmem:[%s14219_s2 + $0xf38] sm:$0xf] }
 0x32d   :  { %4240 = vmatpush.bf16.msra.mxu1 %v7855_v16  ;;  %v9425_v16 = vld [vmem:[%s14219_s2 + $0xdcc] sm:$0xf0]  ;;  %v8363_v21 = vor.u32 %v9494_v17, %v8360_v10  ;;  %v8291_v62 = vor.u32 %v9476_v48, %v8288_v50  ;;  %v7952_v10 = vld [vmem:[%s14219_s2 + $0xce0] sm:$0xf0]  ;;  %v8174_v48 = vld [vmem:[%s14219_s2 + $0xe80] sm:$0xf] }
 0x32e   :  { %v2833_v12 = vmul.f32 1.442695, %v2824_v55  ;;  %4150 = vmatmul.bf16.vlgmr.msrb.gmra.mxu2 %v12785_v15  ;;  %v8383_v55 = vor.u32 %v9503_v58, %v8382_v28  ;;  %v8432_v28 = vld [vmem:[%s14219_s2 + $0x10a0] sm:$0xf0]  ;;  %v8287_v58 = vor.u32 %v9479_v31, %v8286_v45  ;;  %v8168_v45 = vld [vmem:[%s14219_s2 + $0xe90] sm:$0xf0] }
 0x32f   :  { %4246 = vmatpush.bf16.msrb.mxu2 %v8215_v14  ;;  %4279 = vmatpush.bf16.msrb.mxu0 %v8431_v25  ;;  %v9530_v14 = vld [vmem:[%s14219_s2 + $0x111c] sm:$0xf]  ;;  %v8336_v25 = vld [vmem:[%s14219_s2 + $0xfe0] sm:$0xf0]  ;;  %v9450_v50 = vld [vmem:[%s14219_s2 + $0xe94] sm:$0xf0] }
 0x330   :  { %9699 = vpow2.f32 %v2833_v12  ;;  %4241 = vmatmul.bf16.vlgmr.msra.gmra.mxu1 %v12484_v3  ;;  %v8095_v12 = vor.u32 %v9431_v43, %v8094_v53  ;;  %v9473_v53 = vld [vmem:[%s14219_s2 + $0xf4c] sm:$0xf0] }
 0x331   :  { %v2813_v23 = vpop.f32.mrf.mxu3  ;;  %4291 = vmatpush.bf16.msrb.mxu1 %v8647_v22  ;;  %v8334_v22 = vld [vmem:[%s14219_s2 + $0xfc8] sm:$0xf]  ;;  %v8263_v17 = vor.u32 %v9473_v53, %v8262_v33  ;;  %v8150_v53 = vld [vmem:[%s14219_s2 + $0xe50] sm:$0xf] }
 0x332   :  { %v8507_v23 = vor.u32 %v9530_v14, %v8504_v19  ;;  %v9504_v14 = vld [vmem:[%s14219_s2 + $0x1044] sm:$0xf0] }
 0x333   :  { %4247 = vmatpush.bf16.msrb.mxu2 %v8191_v0  ;;  %v8071_v0 = vor.u32 %v9425_v16, %v8070_v13  ;;  %v8238_v13 = vld [vmem:[%s14219_s2 + $0xf08] sm:$0xf]  ;;  %v9467_v16 = vld [vmem:[%s14219_s2 + $0xf1c] sm:$0xf0] }
 0x334   :  { %v8239_v7 = vor.u32 %v9467_v16, %v8238_v13 }
 0x335   :  { %4292 = vmatpush.bf16.msrb.mxu1 %v8623_v52  ;;  %v8335_v52 = vor.u32 %v9491_v6, %v8334_v22  ;;  %v9458_v22 = vld [vmem:[%s14219_s2 + $0xedc] sm:$0xf]  ;;  %v7955_v6 = vor.u32 %v9392_v5, %v7952_v10  ;;  %v8648_v10 = vld [vmem:[%s14219_s2 + $0x1250] sm:$0xf0] }
 0x336   :  { %v9700_v30 = vpop.eup %9699 }
 0x337   :  { %v7843_v37 = vadd.f32 -1.0, %v9700_v30  ;;  %4248 = vmatpush.bf16.msrb.mxu2 %v8167_v11  ;;  %v9410_v30 = vld [vmem:[%s14219_s2 + $0xd5c] sm:$0xf]  ;;  %v8024_v11 = vld [vmem:[%s14219_s2 + $0xd70] sm:$0xf0] }
 0x339   :  { %v2844_v39 = vmul.f32 1.6732632, %v7843_v37  ;;  %4337 = vmatpush.bf16.msra.mxu1 %v8603_v8  ;;  %v8339_v8 = vor.u32 %v9488_v24, %v8336_v25  ;;  %v9485_v37 = vld [vmem:[%s14219_s2 + $0xfac] sm:$0xf0]  ;;  %v8222_v25 = vld [vmem:[%s14219_s2 + $0xee0] sm:$0xf] }
 0x33b   :  { %v2849_v42 = vsel %vm2819_vm6, %v12752_v59, %v2844_v39  ;;  %4249 = vmatpush.bf16.msrb.mxu2 %v8143_v40  ;;  %v9500_v59 = vld [vmem:[%s14219_s2 + $0x102c] sm:$0xf]  ;;  %v8312_v39 = vld [vmem:[%s14219_s2 + $0xfb0] sm:$0xf0]  ;;  %v8311_v40 = vor.u32 %v9485_v37, %v8310_v34  ;;  %v8192_v34 = vld [vmem:[%s14219_s2 + $0xec0] sm:$0xf0]  ;;  %v7931_v37 = vor.u32 %v9386_v26, %v7928_v27 }
 0x33c   :  { %v2854_v46 = vmul.f32 1.050701, %v2849_v42  ;;  %v8387_v54 = vor.u32 %v9500_v59, %v8384_v60  ;;  %v8315_v42 = vor.u32 %v9482_v44, %v8312_v39  ;;  %v7976_v59 = vld [vmem:[%s14219_s2 + $0xd10] sm:$0xf0]  ;;  %v8414_v60 = vld [vmem:[%s14219_s2 + $0x1060] sm:$0xf] }
 0x33d   :  { %4338 = vmatpush.bf16.msra.mxu1 %v8579_v47  ;;  %v8027_v47 = vor.u32 %v9410_v30, %v8024_v11  ;;  %v8198_v44 = vld [vmem:[%s14219_s2 + $0xeb0] sm:$0xf]  ;;  %v9456_v39 = vld [vmem:[%s14219_s2 + $0xec4] sm:$0xf0]  ;;  %v8606_v26 = vld [vmem:[%s14219_s2 + $0x11e0] sm:$0xf] }
 0x33e   :  { %v12854_v57 = vpack.c.bf16 %v2854_v46, %v2854_v46  ;;  %4202 = vmatmul.bf16.vlgmr.msra.gmra.mxu2 %v12655_v20  ;;  %v8459_v46 = vor.u32 %v9518_v49, %v8456_v36  ;;  %v7904_v49 = vld [vmem:[%s14219_s2 + $0xc80] sm:$0xf0]  ;;  %v8342_v36 = vld [vmem:[%s14219_s2 + $0xfd0] sm:$0xf]  ;;  %v9558_v27 = vld [vmem:[%s14219_s2 + $0x11f4] sm:$0xf0] }
 0x33f   :  { %4250 = vmatpush.bf16.msrb.mxu2 %v8119_v61  ;;  %v9510_v61 = vld [vmem:[%s14219_s2 + $0x1074] sm:$0xf0] }
 0x340   :  { %8660 = vmatmul.msk.bf16.vlgmr.msra.gmra.mxu3 %vm4099_vm7, %v12854_v57  ;;  %8661 = vmatmul.msk.bf16.vlgmr.msra.gmra.mxu0 %vm4099_vm7, %v12854_v57 }
 0x341   :  { %4259 = vmatpush.bf16.msra.mxu3 %v8407_v51  ;;  %4324 = vmatpush.bf16.msra.mxu0 %v8411_v29  ;;  %v8003_v51 = vor.u32 %v9404_v41, %v8000_v2  ;;  %v9512_v29 = vld [vmem:[%s14219_s2 + $0x108c] sm:$0xf]  ;;  %v8199_v2 = vor.u32 %v9456_v39, %v8198_v44  ;;  %v9459_v39 = vld [vmem:[%s14219_s2 + $0xee4] sm:$0xf] }
 0x342   :  { %4339 = vmatpush.bf16.msra.mxu1 %v8555_v56  ;;  %v9398_v56 = vld [vmem:[%s14219_s2 + $0xcfc] sm:$0xf]  ;;  %v8435_v43 = vor.u32 %v9512_v29, %v8432_v28  ;;  %v7880_v29 = vld [vmem:[%s14219_s2 + $0xc50] sm:$0xf0]  ;;  %v8318_v28 = vld [vmem:[%s14219_s2 + $0xfa0] sm:$0xf] }
 0x343   :  { %4251 = vmatpush.bf16.msrb.mxu2 %v8095_v12  ;;  %8662 = vmatmul.msk.bf16.vlgmr.msrb.gmra.mxu1 %vm4099_vm7, %v12854_v57  ;;  %v7979_v4 = vor.u32 %v9398_v56, %v7976_v59  ;;  %v8390_v12 = vld [vmem:[%s14219_s2 + $0x1030] sm:$0xf]  ;;  %v9486_v56 = vld [vmem:[%s14219_s2 + $0xfb4] sm:$0xf0]  ;;  %v8175_v59 = vor.u32 %v9450_v50, %v8174_v48  ;;  %v9453_v48 = vld [vmem:[%s14219_s2 + $0xeb4] sm:$0xf] }
 0x344   :  { %v8391_v24 = vor.u32 %v9504_v14, %v8390_v12  ;;  %v8319_v33 = vor.u32 %v9486_v56, %v8318_v28  ;;  %v9434_v14 = vld [vmem:[%s14219_s2 + $0xe1c] sm:$0xf]  ;;  %v8558_v28 = vld [vmem:[%s14219_s2 + $0x1180] sm:$0xf]  ;;  %v9546_v56 = vld [vmem:[%s14219_s2 + $0x1194] sm:$0xf0] }
 0x345   :  { %4260 = vmatpush.bf16.msra.mxu3 %v8383_v55  ;;  %4325 = vmatpush.bf16.msra.mxu0 %v8387_v54  ;;  %v9470_v55 = vld [vmem:[%s14219_s2 + $0xf3c] sm:$0xf]  ;;  %v8264_v54 = vld [vmem:[%s14219_s2 + $0xf50] sm:$0xf0] }
 0x346   :  { %4340 = vmatpush.bf16.msra.mxu1 %v8531_v9  ;;  %v8415_v9 = vor.u32 %v9510_v61, %v8414_v60  ;;  %v8267_v19 = vor.u32 %v9470_v55, %v8264_v54  ;;  %v9440_v60 = vld [vmem:[%s14219_s2 + $0xe4c] sm:$0xf]  ;;  %v8144_v61 = vld [vmem:[%s14219_s2 + $0xe60] sm:$0xf0] }
 0x347   :  { %4252 = vmatpush.bf16.msrb.mxu2 %v8071_v0  ;;  %v9462_v0 = vld [vmem:[%s14219_s2 + $0xef4] sm:$0xf0]  ;;  %v9368_v55 = vld [vmem:[%s14219_s2 + $0xc0c] sm:$0xf]  ;;  %v7856_v54 = vld [vmem:[%s14219_s2 + $0xc20] sm:$0xf0]  ;;  %v8147_v5 = vor.u32 %v9440_v60, %v8144_v61 }
 0x348   :  { %v8223_v11 = vor.u32 %v9462_v0, %v8222_v25  ;;  %v7859_v13 = vor.u32 %v9368_v55, %v7856_v54  ;;  %v9560_v25 = vld [vmem:[%s14219_s2 + $0x120c] sm:$0xf]  ;;  %v8624_v0 = vld [vmem:[%s14219_s2 + $0x1220] sm:$0xf0]  ;;  %v8054_v61 = vld [vmem:[%s14219_s2 + $0xd90] sm:$0xf] }
 0x349   :  { %4261 = vmatpush.bf16.msra.mxu3 %v8359_v35  ;;  %4326 = vmatpush.bf16.msra.mxu0 %v8363_v21  ;;  %v9464_v35 = vld [vmem:[%s14219_s2 + $0xf0c] sm:$0xf]  ;;  %v8240_v21 = vld [vmem:[%s14219_s2 + $0xf20] sm:$0xf0] }
 0x34a   :  { %4341 = vmatpush.bf16.msra.mxu1 %v8507_v23  ;;  %v8216_v23 = vld [vmem:[%s14219_s2 + $0xef0] sm:$0xf0]  ;;  %v8048_v60 = vld [vmem:[%s14219_s2 + $0xda0] sm:$0xf0] }
 0x34b   :  { %4253 = vmatpush.bf16.msrb.mxu2 %v8047_v38  ;;  %v8219_v30 = vor.u32 %v9458_v22, %v8216_v23  ;;  %v8270_v23 = vld [vmem:[%s14219_s2 + $0xf40] sm:$0xf]  ;;  %v9411_v54 = vld [vmem:[%s14219_s2 + $0xd64] sm:$0xf] }
 0x34d   :  { %4262 = vmatpush.bf16.msra.mxu3 %v8335_v52  ;;  %4327 = vmatpush.bf16.msra.mxu0 %v8339_v8  ;;  %v9498_v52 = vld [vmem:[%s14219_s2 + $0x1014] sm:$0xf0]  ;;  %v8243_v8 = vor.u32 %v9464_v35, %v8240_v21  ;;  %v8126_v35 = vld [vmem:[%s14219_s2 + $0xe20] sm:$0xf] }
 0x34e   :  { %4342 = vmatpush.bf16.msra.mxu1 %v8483_v32  ;;  %4254 = vmatmul.bf16.vlgmr.msrb.gmra.mxu2 %v12595_v18  ;;  %v9452_v32 = vld [vmem:[%s14219_s2 + $0xeac] sm:$0xf]  ;;  %v8367_v38 = vor.u32 %v9498_v52, %v8366_v1  ;;  %v9438_v21 = vld [vmem:[%s14219_s2 + $0xe34] sm:$0xf0]  ;;  %v8096_v52 = vld [vmem:[%s14219_s2 + $0xe00] sm:$0xf0] }
 0x34f   :  { %4298 = vmatpush.bf16.msra.mxu2 %v8027_v47  ;;  %v9380_v47 = vld [vmem:[%s14219_s2 + $0xc6c] sm:$0xf]  ;;  %v8195_v41 = vor.u32 %v9452_v32, %v8192_v34  ;;  %v8627_v32 = vor.u32 %v9560_v25, %v8624_v0  ;;  %v8246_v34 = vld [vmem:[%s14219_s2 + $0xf10] sm:$0xf]  ;;  %v9441_v25 = vld [vmem:[%s14219_s2 + $0xe54] sm:$0xf] }
 0x350   :  { %4215 = vmatmul.bf16.vlgmr.msrb.gmra.mxu3 %v12785_v15  ;;  %4280 = vmatmul.bf16.vlgmr.msrb.gmra.mxu0 %v12785_v15  ;;  %v7907_v31 = vor.u32 %v9380_v47, %v7904_v49  ;;  %v9428_v1 = vld [vmem:[%s14219_s2 + $0xdec] sm:$0xf]  ;;  %v8224_v47 = vld [vmem:[%s14219_s2 + $0xef8] sm:$0xf0]  ;;  %v8582_v49 = vld [vmem:[%s14219_s2 + $0x11b0] sm:$0xf] }
 0x351   :  { %4263 = vmatpush.bf16.msra.mxu3 %v8311_v40  ;;  %4328 = vmatpush.bf16.msra.mxu0 %v8315_v42  ;;  %v9492_v40 = vld [vmem:[%s14219_s2 + $0xfe4] sm:$0xf0]  ;;  %v9446_v42 = vld [vmem:[%s14219_s2 + $0xe7c] sm:$0xf]  ;;  %v8099_v44 = vor.u32 %v9428_v1, %v8096_v52  ;;  %v8152_v0 = vld [vmem:[%s14219_s2 + $0xe68] sm:$0xf0] }
 0x352   :  { %4343 = vmatpush.bf16.msra.mxu1 %v8459_v46  ;;  %v8343_v46 = vor.u32 %v9492_v40, %v8342_v36  ;;  %v9552_v40 = vld [vmem:[%s14219_s2 + $0x11c4] sm:$0xf0]  ;;  %v7982_v52 = vld [vmem:[%s14219_s2 + $0xd00] sm:$0xf] }
 0x353   :  { %4299 = vmatpush.bf16.msra.mxu2 %v8003_v51  ;;  %v9374_v51 = vld [vmem:[%s14219_s2 + $0xc3c] sm:$0xf]  ;;  %v8583_v50 = vor.u32 %v9552_v40, %v8582_v49  ;;  %v9528_v49 = vld [vmem:[%s14219_s2 + $0x1104] sm:$0xf0]  ;;  %v7958_v40 = vld [vmem:[%s14219_s2 + $0xcd0] sm:$0xf] }
 0x355   :  { %4264 = vmatpush.bf16.msra.mxu3 %v8287_v58  ;;  %4329 = vmatpush.bf16.msra.mxu0 %v8291_v62  ;;  %v8171_v58 = vor.u32 %v9446_v42, %v8168_v45  ;;  %v7883_v62 = vor.u32 %v9374_v51, %v7880_v29  ;;  %v8078_v45 = vld [vmem:[%s14219_s2 + $0xdc0] sm:$0xf]  ;;  %v8200_v29 = vld [vmem:[%s14219_s2 + $0xec8] sm:$0xf0] }
 0x356   :  { %4344 = vmatpush.bf16.msra.mxu1 %v8435_v43  ;;  %v9444_v43 = vld [vmem:[%s14219_s2 + $0xe64] sm:$0xf0]  ;;  %v8203_v55 = vor.u32 %v9453_v48, %v8200_v29  ;;  %v8104_v48 = vld [vmem:[%s14219_s2 + $0xe08] sm:$0xf0]  ;;  %v9522_v29 = vld [vmem:[%s14219_s2 + $0x10d4] sm:$0xf0] }
 0x357   :  { %4300 = vmatpush.bf16.msra.mxu2 %v7979_v4  ;;  %v8294_v4 = vld [vmem:[%s14219_s2 + $0xf70] sm:$0xf]  ;;  %v8151_v12 = vor.u32 %v9444_v43, %v8150_v53  ;;  %v9414_v53 = vld [vmem:[%s14219_s2 + $0xd74] sm:$0xf0] }
 0x359   :  { %4265 = vmatpush.bf16.msra.mxu3 %v8263_v17  ;;  %4330 = vmatpush.bf16.msra.mxu0 %v8267_v19  ;;  %v9566_v17 = vld [vmem:[%s14219_s2 + $0x123c] sm:$0xf]  ;;  %v8120_v19 = vld [vmem:[%s14219_s2 + $0xe30] sm:$0xf0] }
 0x35a   :  { %4389 = vmatpush.bf16.msrb.mxu1 %v8415_v9  ;;  %v9480_v9 = vld [vmem:[%s14219_s2 + $0xf84] sm:$0xf0]  ;;  %v8651_v22 = vor.u32 %v9566_v17, %v8648_v10  ;;  %v9447_v17 = vld [vmem:[%s14219_s2 + $0xe84] sm:$0xf]  ;;  %v8176_v10 = vld [vmem:[%s14219_s2 + $0xe98] sm:$0xf0] }
 0x35b   :  { %4345 = vmatmul.bf16.vlgmr.msra.gmra.mxu1 %v12785_v15  ;;  %4301 = vmatpush.bf16.msra.mxu2 %v7955_v6  ;;  %v8295_v16 = vor.u32 %v9480_v9, %v8294_v4  ;;  %v9474_v6 = vld [vmem:[%s14219_s2 + $0xf54] sm:$0xf0]  ;;  %v8032_v4 = vld [vmem:[%s14219_s2 + $0xd78] sm:$0xf0]  ;;  %v8559_v9 = vor.u32 %v9546_v56, %v8558_v28  ;;  %v7934_v56 = vld [vmem:[%s14219_s2 + $0xca0] sm:$0xf] }
 0x35d   :  { %4266 = vmatpush.bf16.msra.mxu3 %v8239_v7  ;;  %4331 = vmatpush.bf16.msra.mxu0 %v8243_v8  ;;  %v8127_v7 = vor.u32 %v9438_v21, %v8126_v35  ;;  %v8271_v8 = vor.u32 %v9474_v6, %v8270_v23  ;;  %v8006_v35 = vld [vmem:[%s14219_s2 + $0xd30] sm:$0xf]  ;;  %v9408_v21 = vld [vmem:[%s14219_s2 + $0xd44] sm:$0xf0]  ;;  %v9405_v23 = vld [vmem:[%s14219_s2 + $0xd34] sm:$0xf] }
 0x35e   :  { %4390 = vmatpush.bf16.msrb.mxu1 %v8391_v24  ;;  %v8123_v24 = vor.u32 %v9434_v14, %v8120_v19  ;;  %v8534_v19 = vld [vmem:[%s14219_s2 + $0x1150] sm:$0xf]  ;;  %v8008_v6 = vld [vmem:[%s14219_s2 + $0xd48] sm:$0xf0] }
 0x35f   :  { %4302 = vmatpush.bf16.msra.mxu2 %v7931_v37  ;;  %v9468_v37 = vld [vmem:[%s14219_s2 + $0xf24] sm:$0xf0]  ;;  %v8011_v1 = vor.u32 %v9405_v23, %v8008_v6 }
 0x360   :  { %4267 = vmatmul.bf16.vlgmr.msra.gmra.mxu3 %v12655_v20  ;;  %4332 = vmatmul.bf16.vlgmr.msra.gmra.mxu0 %v12655_v20  ;;  %v8247_v42 = vor.u32 %v9468_v37, %v8246_v34  ;;  %v7984_v34 = vld [vmem:[%s14219_s2 + $0xd18] sm:$0xf0] }
 0x361   :  { %4311 = vmatpush.bf16.msrb.mxu3 %v8219_v30  ;;  %4376 = vmatpush.bf16.msrb.mxu0 %v8223_v11  ;;  %v8102_v30 = vld [vmem:[%s14219_s2 + $0xdf0] sm:$0xf]  ;;  %v9432_v11 = vld [vmem:[%s14219_s2 + $0xe04] sm:$0xf0] }
 0x362   :  { %4391 = vmatpush.bf16.msrb.mxu1 %v8367_v38  ;;  %v8607_v38 = vor.u32 %v9558_v27, %v8606_v26  ;;  %v8103_v36 = vor.u32 %v9432_v11, %v8102_v30  ;;  %v8007_v26 = vor.u32 %v9408_v21, %v8006_v35  ;;  %v9534_v27 = vld [vmem:[%s14219_s2 + $0x1134] sm:$0xf0]  ;;  %v8155_v11 = vor.u32 %v9441_v25, %v8152_v0  ;;  %v9417_v21 = vld [vmem:[%s14219_s2 + $0xd94] sm:$0xf]  ;;  %v8392_v0 = vld [vmem:[%s14219_s2 + $0x1048] sm:$0xf0] }
 0x363   :  { %4303 = vmatpush.bf16.msra.mxu2 %v7907_v31  ;;  %v9426_v31 = vld [vmem:[%s14219_s2 + $0xdd4] sm:$0xf0] }
 0x365   :  { %4312 = vmatpush.bf16.msrb.mxu3 %v8195_v41  ;;  %4377 = vmatpush.bf16.msrb.mxu0 %v8199_v2  ;;  %v9422_v41 = vld [vmem:[%s14219_s2 + $0xdbc] sm:$0xf]  ;;  %v8072_v2 = vld [vmem:[%s14219_s2 + $0xdd0] sm:$0xf0] }
 0x366   :  { %4392 = vmatpush.bf16.msrb.mxu1 %v8343_v46  ;;  %v8227_v46 = vor.u32 %v9459_v39, %v8224_v47  ;;  %v8075_v51 = vor.u32 %v9422_v41, %v8072_v2  ;;  %v8486_v47 = vld [vmem:[%s14219_s2 + $0x10f0] sm:$0xf]  ;;  %v9396_v41 = vld [vmem:[%s14219_s2 + $0xce4] sm:$0xf0] }
 0x367   :  { %4304 = vmatpush.bf16.msra.mxu2 %v7883_v62  ;;  %v9420_v62 = vld [vmem:[%s14219_s2 + $0xda4] sm:$0xf0] }
 0x369   :  { %4313 = vmatpush.bf16.msrb.mxu3 %v8171_v58  ;;  %4378 = vmatpush.bf16.msrb.mxu0 %v8175_v59  ;;  %v8079_v58 = vor.u32 %v9426_v31, %v8078_v45  ;;  %v9416_v59 = vld [vmem:[%s14219_s2 + $0xd8c] sm:$0xf]  ;;  %v8487_v31 = vor.u32 %v9528_v49, %v8486_v47  ;;  %v8654_v49 = vld [vmem:[%s14219_s2 + $0x1240] sm:$0xf] }
 0x36a   :  { %4393 = vmatpush.bf16.msrb.mxu1 %v8319_v33  ;;  %v8030_v33 = vld [vmem:[%s14219_s2 + $0xd60] sm:$0xf]  ;;  %v7960_v45 = vld [vmem:[%s14219_s2 + $0xce8] sm:$0xf0] }
 0x36b   :  { %4305 = vmatpush.bf16.msra.mxu2 %v7859_v13  ;;  %v8031_v14 = vor.u32 %v9414_v53, %v8030_v33  ;;  %v9540_v13 = vld [vmem:[%s14219_s2 + $0x1164] sm:$0xf0]  ;;  %v9423_v53 = vld [vmem:[%s14219_s2 + $0xdc4] sm:$0xf]  ;;  %v7864_v47 = vld [vmem:[%s14219_s2 + $0xc28] sm:$0xf0] }
 0x36d   :  { %4314 = vmatpush.bf16.msrb.mxu3 %v8147_v5  ;;  %4379 = vmatpush.bf16.msrb.mxu0 %v8151_v12  ;;  %v8051_v5 = vor.u32 %v9416_v59, %v8048_v60  ;;  %v8055_v12 = vor.u32 %v9420_v62, %v8054_v61  ;;  %v9387_v61 = vld [vmem:[%s14219_s2 + $0xca4] sm:$0xf]  ;;  %v7936_v62 = vld [vmem:[%s14219_s2 + $0xcb8] sm:$0xf0] }
 0x36e   :  { %4394 = vmatpush.bf16.msrb.mxu1 %v8295_v16  ;;  %4306 = vmatmul.bf16.vlgmr.msra.gmra.mxu2 %v12484_v3  ;;  %v8035_v16 = vor.u32 %v9411_v54, %v8032_v4  ;;  %v8438_v4 = vld [vmem:[%s14219_s2 + $0x1090] sm:$0xf] }
 0x36f   :  { %4356 = vmatpush.bf16.msrb.mxu2 %v8651_v22  ;;  %v13239_v43 = vpop.f32.mrf.mxu3  ;;  %v8179_v22 = vor.u32 %v9447_v17, %v8176_v10  ;;  %v7939_v17 = vor.u32 %v9387_v61, %v7936_v62  ;;  %v8416_v10 = vld [vmem:[%s14219_s2 + $0x1078] sm:$0xf0]  ;;  %v8632_v61 = vld [vmem:[%s14219_s2 + $0x1228] sm:$0xf0] }
 0x371   :  { %4315 = vmatpush.bf16.msrb.mxu3 %v8123_v24  ;;  %4380 = vmatpush.bf16.msrb.mxu0 %v8127_v7  ;;  %v8535_v24 = vor.u32 %v9540_v13, %v8534_v19  ;;  %v8510_v7 = vld [vmem:[%s14219_s2 + $0x1120] sm:$0xf]  ;;  %v9381_v13 = vld [vmem:[%s14219_s2 + $0xc74] sm:$0xf] }
 0x372   :  { %4395 = vmatpush.bf16.msrb.mxu1 %v8271_v8  ;;  %v9402_v8 = vld [vmem:[%s14219_s2 + $0xd14] sm:$0xf0]  ;;  %v8511_v37 = vor.u32 %v9534_v27, %v8510_v7 }
 0x373   :  { %4357 = vmatpush.bf16.msrb.mxu2 %v8627_v32  ;;  %v9399_v32 = vld [vmem:[%s14219_s2 + $0xd04] sm:$0xf]  ;;  %v7983_v39 = vor.u32 %v9402_v8, %v7982_v52  ;;  %v9378_v7 = vld [vmem:[%s14219_s2 + $0xc54] sm:$0xf0]  ;;  %v7888_v8 = vld [vmem:[%s14219_s2 + $0xc58] sm:$0xf0] }
 0x374   :  { %v9375_v52 = vld [vmem:[%s14219_s2 + $0xc44] sm:$0xf] }
 0x375   :  { %4316 = vmatpush.bf16.msrb.mxu3 %v8099_v44  ;;  %4381 = vmatpush.bf16.msrb.mxu0 %v8103_v36  ;;  %v8128_v44 = vld [vmem:[%s14219_s2 + $0xe38] sm:$0xf0]  ;;  %v7987_v36 = vor.u32 %v9399_v32, %v7984_v34  ;;  %v9495_v32 = vld [vmem:[%s14219_s2 + $0x1004] sm:$0xf] }
 0x376   :  { %4396 = vmatpush.bf16.msrb.mxu1 %v8247_v42  ;;  %v9393_v42 = vld [vmem:[%s14219_s2 + $0xcd4] sm:$0xf]  ;;  %v8368_v34 = vld [vmem:[%s14219_s2 + $0x1018] sm:$0xf0] }
 0x377   :  { %4402 = vmatpush.bf16.msra.mxu2 %v8607_v38  ;;  %v4114_v30 = vpop.f32.mrf.mxu3  ;;  %v9435_v38 = vld [vmem:[%s14219_s2 + $0xe24] sm:$0xf]  ;;  %v7963_v28 = vor.u32 %v9393_v42, %v7960_v45  ;;  %v8371_v42 = vor.u32 %v9495_v32, %v8368_v34  ;;  %v8488_v32 = vld [vmem:[%s14219_s2 + $0x1108] sm:$0xf0] }
 0x378   :  { %v8131_v2 = vor.u32 %v9435_v38, %v8128_v44  ;;  %v7862_v38 = vld [vmem:[%s14219_s2 + $0xc10] sm:$0xf]  ;;  %v9372_v44 = vld [vmem:[%s14219_s2 + $0xc24] sm:$0xf0] }
 0x379   :  { %4317 = vmatpush.bf16.msrb.mxu3 %v8075_v51  ;;  %4382 = vmatpush.bf16.msrb.mxu0 %v8079_v58  ;;  %v8462_v51 = vld [vmem:[%s14219_s2 + $0x10c0] sm:$0xf]  ;;  %v9390_v58 = vld [vmem:[%s14219_s2 + $0xcb4] sm:$0xf0]  ;;  %v7863_v45 = vor.u32 %v9372_v44, %v7862_v38  ;;  %v9519_v38 = vld [vmem:[%s14219_s2 + $0x10c4] sm:$0xf] }
 0x37a   :  { %4441 = vmatpush.bf16.msra.mxu1 %v8227_v46  ;;  %v9429_v46 = vld [vmem:[%s14219_s2 + $0xdf4] sm:$0xf]  ;;  %v8463_v33 = vor.u32 %v9522_v29, %v8462_v51  ;;  %v7935_v54 = vor.u32 %v9390_v58, %v7934_v56  ;;  %v8630_v29 = vld [vmem:[%s14219_s2 + $0x1210] sm:$0xf]  ;;  %v8608_v58 = vld [vmem:[%s14219_s2 + $0x11f8] sm:$0xf0] }
 0x37b   :  { %4403 = vmatpush.bf16.msra.mxu2 %v8583_v50  ;;  %4397 = vmatmul.bf16.vlgmr.msrb.gmra.mxu1 %v12655_v20  ;;  %v7959_v50 = vor.u32 %v9396_v41, %v7958_v40  ;;  %v8107_v60 = vor.u32 %v9429_v46, %v8104_v48  ;;  %v9567_v40 = vld [vmem:[%s14219_s2 + $0x1244] sm:$0xf]  ;;  %v8656_v41 = vld [vmem:[%s14219_s2 + $0x1258] sm:$0xf0]  ;;  %v9489_v48 = vld [vmem:[%s14219_s2 + $0xfd4] sm:$0xf] }
 0x37c   :  { %v8659_v56 = vor.u32 %v9567_v40, %v8656_v41  ;;  %v8464_v44 = vld [vmem:[%s14219_s2 + $0x10d8] sm:$0xf0] }
 0x37d   :  { %4318 = vmatpush.bf16.msrb.mxu3 %v8051_v5  ;;  %4383 = vmatpush.bf16.msrb.mxu0 %v8055_v12  ;;  %v9507_v5 = vld [vmem:[%s14219_s2 + $0x1064] sm:$0xf]  ;;  %v7910_v12 = vld [vmem:[%s14219_s2 + $0xc70] sm:$0xf] }
 0x37e   :  { %4442 = vmatpush.bf16.msra.mxu1 %v8203_v55  ;;  %8663 = vmatmul.msk.bf16.vlgmr.msrb.gmra.mxu2 %vm4099_vm7, %v12854_v57  ;;  %v8080_v55 = vld [vmem:[%s14219_s2 + $0xdd8] sm:$0xf0]  ;;  %v8419_v23 = vor.u32 %v9507_v5, %v8416_v10  ;;  %v8584_v5 = vld [vmem:[%s14219_s2 + $0x11c8] sm:$0xf0] }
 0x37f   :  { %4404 = vmatpush.bf16.msra.mxu2 %v8559_v9  ;;  %v13342_v59 = vpop.f32.mrf.mxu0  ;;  %v9516_v9 = vld [vmem:[%s14219_s2 + $0x10a4] sm:$0xf0]  ;;  %v8083_v19 = vor.u32 %v9423_v53, %v8080_v55  ;;  %v9483_v53 = vld [vmem:[%s14219_s2 + $0xfa4] sm:$0xf]  ;;  %v8320_v55 = vld [vmem:[%s14219_s2 + $0xfb8] sm:$0xf0] }
 0x380   :  { %4319 = vmatmul.bf16.vlgmr.msrb.gmra.mxu3 %v12595_v18  ;;  %4384 = vmatmul.bf16.vlgmr.msrb.gmra.mxu0 %v12595_v18  ;;  %v8439_v35 = vor.u32 %v9516_v9, %v8438_v4  ;;  %v9549_v9 = vld [vmem:[%s14219_s2 + $0x11b4] sm:$0xf]  ;;  %v8323_v10 = vor.u32 %v9483_v53, %v8320_v55 }
 0x381   :  { %4363 = vmatpush.bf16.msra.mxu3 %v8031_v14  ;;  %4428 = vmatpush.bf16.msra.mxu0 %v8035_v16  ;;  %v9384_v14 = vld [vmem:[%s14219_s2 + $0xc84] sm:$0xf0]  ;;  %v7912_v16 = vld [vmem:[%s14219_s2 + $0xc88] sm:$0xf0] }
 0x382   :  { %4443 = vmatpush.bf16.msra.mxu1 %v8179_v22  ;;  %v8056_v22 = vld [vmem:[%s14219_s2 + $0xda8] sm:$0xf0]  ;;  %v7911_v6 = vor.u32 %v9384_v14, %v7910_v12  ;;  %v7915_v25 = vor.u32 %v9381_v13, %v7912_v16  ;;  %v9477_v12 = vld [vmem:[%s14219_s2 + $0xf74] sm:$0xf]  ;;  %v8587_v13 = vor.u32 %v9549_v9, %v8584_v5  ;;  %v8560_v16 = vld [vmem:[%s14219_s2 + $0x1198] sm:$0xf0] }
 0x383   :  { %4405 = vmatpush.bf16.msra.mxu2 %v8535_v24  ;;  %v9501_v24 = vld [vmem:[%s14219_s2 + $0x1034] sm:$0xf]  ;;  %v8296_v14 = vld [vmem:[%s14219_s2 + $0xf88] sm:$0xf0] }
 0x384   :  { %v8395_v30 = vor.u32 %v9501_v24, %v8392_v0  ;;  %v8536_v24 = vld [vmem:[%s14219_s2 + $0x1168] sm:$0xf0] }
 0x385   :  { %4364 = vmatpush.bf16.msra.mxu3 %v8007_v26  ;;  %4429 = vmatpush.bf16.msra.mxu0 %v8011_v1  ;;  %v7886_v26 = vld [vmem:[%s14219_s2 + $0xc40] sm:$0xf]  ;;  %v8059_v1 = vor.u32 %v9417_v21, %v8056_v22  ;;  %v9471_v21 = vld [vmem:[%s14219_s2 + $0xf44] sm:$0xf]  ;;  %v8272_v22 = vld [vmem:[%s14219_s2 + $0xf58] sm:$0xf0] }
 0x386   :  { %4444 = vmatpush.bf16.msra.mxu1 %v8155_v11  ;;  %v7887_v11 = vor.u32 %v9378_v7, %v7886_v26  ;;  %v8275_v0 = vor.u32 %v9471_v21, %v8272_v22  ;;  %v9465_v26 = vld [vmem:[%s14219_s2 + $0xf14] sm:$0xf]  ;;  %v8248_v7 = vld [vmem:[%s14219_s2 + $0xf28] sm:$0xf0]  ;;  %v4548_v21 = vld [vmem:[%s14219_s2 + $0x1280] sm:$0xff] }
 0x387   :  { %4406 = vmatpush.bf16.msra.mxu2 %v8511_v37  ;;  %v4127_v27 = vpop.f32.mrf.mxu0  ;;  %v7891_v37 = vor.u32 %v9375_v52, %v7888_v8  ;;  %v8512_v52 = vld [vmem:[%s14219_s2 + $0x1138] sm:$0xf0]  ;;  %v8251_v8 = vor.u32 %v9465_v26, %v8248_v7 }
 0x389   :  { %4365 = vmatpush.bf16.msra.mxu3 %v7983_v39  ;;  %4430 = vmatpush.bf16.msra.mxu0 %v7987_v36  ;;  %v9369_v39 = vld [vmem:[%s14219_s2 + $0xc14] sm:$0xf]  ;;  %v9570_v36 = vld [vmem:[%s14219_s2 + $0x1254] sm:$0xf0] }
 0x38a   :  { %4445 = vmatpush.bf16.msra.mxu1 %v8131_v2  ;;  %v8655_v46 = vor.u32 %v9570_v36, %v8654_v49  ;;  %v8440_v36 = vld [vmem:[%s14219_s2 + $0x10a8] sm:$0xf0] }
 0x38b   :  { %4407 = vmatpush.bf16.msra.mxu2 %v8487_v31  ;;  %v7867_v31 = vor.u32 %v9369_v39, %v7864_v47  ;;  %v4547_v39 = vld [vmem:[%s14219_s2 + $0x1278] sm:$0xff]  ;;  %v8467_v47 = vor.u32 %v9519_v38, %v8464_v44  ;;  %v4658_v38 = vld [vmem:[%s14220_s3] sm:$0x3] }
 0x38c   :  { %v4556_v49 = vunpack.c.l.b16 %v4547_v39  ;;  %v4663_v44 = vsel %vm390_vm0, %v4658_v38, 0 }
 0x38d   :  { %4366 = vmatpush.bf16.msra.mxu3 %v7959_v50  ;;  %4431 = vmatpush.bf16.msra.mxu0 %v7963_v28  ;;  %v13435_v2 = vpop.f32.mrf.mxu1  ;;  %v8344_v50 = vld [vmem:[%s14219_s2 + $0xfe8] sm:$0xf0]  ;;  %v9555_v28 = vld [vmem:[%s14219_s2 + $0x11e4] sm:$0xf] }
 0x38e   :  { %4446 = vmatpush.bf16.msra.mxu1 %v8107_v60  ;;  %v9561_v60 = vld [vmem:[%s14219_s2 + $0x1214] sm:$0xf]  ;;  %v8347_v62 = vor.u32 %v9489_v48, %v8344_v50  ;;  %v4562_v41 = vpack.c.b16 %v4556_v49, %v4556_v49 }
 0x38f   :  { %4408 = vmatpush.bf16.msra.mxu2 %v8463_v33  ;;  %v13444_v51 = vpop.f32.mrf.mxu0  ;;  %v8635_v4 = vor.u32 %v9561_v60, %v8632_v61  ;;  %v4557_v61 = vunpack.c.h.b16 %v4547_v39 }
 0x391   :  { %4367 = vmatpush.bf16.msra.mxu3 %v7935_v54  ;;  %4432 = vmatpush.bf16.msra.mxu0 %v7939_v17  ;;  %v8611_v54 = vor.u32 %v9555_v28, %v8608_v58 }
 0x392   :  { %4447 = vmatpush.bf16.msra.mxu1 %v8083_v19 }
 0x393   :  { %4409 = vmatpush.bf16.msra.mxu2 %v8439_v35  ;;  %v8299_v35 = vor.u32 %v9477_v12, %v8296_v14 }
 0x395   :  { %4368 = vmatpush.bf16.msra.mxu3 %v7911_v6  ;;  %4433 = vmatpush.bf16.msra.mxu0 %v7915_v25  ;;  %v4140_v17 = vpop.f32.mrf.mxu1  ;;  %v9537_v6 = vld [vmem:[%s14219_s2 + $0x1154] sm:$0xf] }
 0x396   :  { %4410 = vmatmul.bf16.vlgmr.msra.gmra.mxu2 %v12785_v15  ;;  %4448 = vmatpush.bf16.msra.mxu1 %v8059_v1  ;;  %v8539_v27 = vor.u32 %v9537_v6, %v8536_v24  ;;  %v9531_v1 = vld [vmem:[%s14219_s2 + $0x1124] sm:$0xf]  ;;  %v4558_v6 = vunpack.c.l.b16 %v4548_v21 }
 0x397   :  { %4454 = vmatpush.bf16.msrb.mxu2 %v8419_v23  ;;  %v4179_v19 = vpop.f32.mrf.mxu0 }
 0x398   :  { %v4564_v7 = vpack.c.b16 %v4558_v6, %v4558_v6 }
 0x399   :  { %4369 = vmatpush.bf16.msra.mxu3 %v7887_v11  ;;  %4434 = vmatpush.bf16.msra.mxu0 %v7891_v37  ;;  %v9525_v11 = vld [vmem:[%s14219_s2 + $0x10f4] sm:$0xf] }
 0x39a   :  { %4449 = vmatmul.bf16.vlgmr.msra.gmra.mxu1 %v12595_v18  ;;  %v9564_v18 = vld [vmem:[%s14219_s2 + $0x1224] sm:$0xf0]  ;;  %v8491_v37 = vor.u32 %v9525_v11, %v8488_v32 }
 0x39b   :  { %4455 = vmatpush.bf16.msrb.mxu2 %v8395_v30  ;;  %v8631_v33 = vor.u32 %v9564_v18, %v8630_v29  ;;  %v8515_v30 = vor.u32 %v9531_v1, %v8512_v52  ;;  %4587 = vmatpush.bf16.xpose.msrb.mxu1 %v4562_v41 }
 0x39d   :  { %4370 = vmatpush.bf16.msra.mxu3 %v7863_v45  ;;  %4435 = vmatpush.bf16.msra.mxu0 %v7867_v31  ;;  %v13502_v25 = vpop.f32.mrf.mxu1 }
 0x39f   :  { %4456 = vmatpush.bf16.msrb.mxu2 %v8371_v42 }
 0x3a0   :  { %4371 = vmatmul.bf16.vlgmr.msra.gmra.mxu3 %v12484_v3  ;;  %4436 = vmatmul.bf16.vlgmr.msra.gmra.mxu0 %v12484_v3  ;;  %v9543_v3 = vld [vmem:[%s14219_s2 + $0x1184] sm:$0xf] }
 0x3a1   :  { %4421 = vmatpush.bf16.msrb.mxu3 %v8655_v46  ;;  %4486 = vmatpush.bf16.msrb.mxu0 %v8659_v56  ;;  %v8563_v23 = vor.u32 %v9543_v3, %v8560_v16 }
 0x3a3   :  { %4457 = vmatpush.bf16.msrb.mxu2 %v8347_v62 }
 0x3a5   :  { %4422 = vmatpush.bf16.msrb.mxu3 %v8631_v33  ;;  %4487 = vmatpush.bf16.msrb.mxu0 %v8635_v4  ;;  %v4192_v34 = vpop.f32.mrf.mxu1 }
 0x3a7   :  { %4458 = vmatpush.bf16.msrb.mxu2 %v8323_v10 }
 0x3a9   :  { %4467 = vmatpush.bf16.msra.mxu3 %v8611_v54  ;;  %v4563_v54 = vpack.c.b16 %v4557_v61, %v4557_v61 }
 0x3ab   :  { %4459 = vmatpush.bf16.msrb.mxu2 %v8299_v35 }
 0x3ad   :  { %4468 = vmatpush.bf16.msra.mxu3 %v8587_v13  ;;  %v13545_v40 = vpop.f32.mrf.mxu1 }
 0x3af   :  { %4460 = vmatpush.bf16.msrb.mxu2 %v8275_v0 }
 0x3b0   :  { %8664 = vmatmul.msk.bf16.vlgmr.msrb.gmra.mxu3 %vm4099_vm7, %v12854_v57  ;;  %8665 = vmatmul.msk.bf16.vlgmr.msrb.gmra.mxu0 %vm4099_vm7, %v12854_v57  ;;  %v3064_v57 = vld [vmem:[%s14219_s2 + $0x1260] sm:$0x11] }
 0x3b1   :  { %4469 = vmatpush.bf16.msra.mxu3 %v8563_v23  ;;  %v3067_v42 = vunpack.c.l.bf16 %v3064_v57  ;;  %v4151_v45 = vpop.f32.mrf.mxu2  ;;  %v3068_v4 = vunpack.c.h.bf16 %v3064_v57 }
 0x3b3   :  { %4461 = vmatpush.bf16.msrb.mxu2 %v8251_v8  ;;  %v3073_v46 = vperm.slane %v3067_v42, 0  ;;  %v3074_v5 = vperm.slane %v3068_v4, 0 }
 0x3b5   :  { %4470 = vmatpush.bf16.msra.mxu3 %v8539_v27  ;;  %v4244_v48 = vpop.f32.mrf.mxu1  ;;  %v4113_v50 = vadd.f32 %v13239_v43, %v3073_v46 }
 0x3b6   :  { %4462 = vmatmul.bf16.vlgmr.msrb.gmra.mxu2 %v12655_v20  ;;  %v9513_v20 = vld [vmem:[%s14219_s2 + $0x1094] sm:$0xf] }
 0x3b7   :  { %v8443_v31 = vor.u32 %v9513_v20, %v8440_v36  ;;  %v4126_v28 = vadd.f32 %v13342_v59, %v4113_v50  ;;  %4600 = vmatpush.bf16.xpose.msra.mxu2 %v4563_v54  ;;  %v4178_v59 = vadd.f32 %v13444_v51, %v3074_v5  ;;  %v3065_v51 = vld [vmem:[%s14219_s2 + $0x1268] sm:$0x11] }
 0x3b8   :  { %v3069_v52 = vunpack.c.l.bf16 %v3065_v51 }
 0x3b9   :  { %4471 = vmatpush.bf16.msra.mxu3 %v8515_v30  ;;  %v4153_v29 = vpop.f32.mrf.mxu2  ;;  %v4139_v56 = vadd.f32 %v13435_v2, %v4126_v28  ;;  %v4191_v14 = vadd.f32 %v13502_v25, %v4178_v59 }
 0x3ba   :  { %v3075_v11 = vperm.slane %v3069_v52, 0  ;;  %v4549_v52 = vld [vmem:[%s14219_s2 + $0x1288] sm:$0xff] }
 0x3bb   :  { %v4152_v58 = vadd.f32 %v4151_v45, %v4139_v56  ;;  %v4559_v56 = vunpack.c.h.b16 %v4548_v21 }
 0x3bc   :  { %v4243_v39 = vadd.f32 %v13545_v40, %v3075_v11 }
 0x3bd   :  { %4472 = vmatpush.bf16.msra.mxu3 %v8491_v37  ;;  %v4229_v18 = vpop.f32.mrf.mxu0  ;;  %v4565_v61 = vpack.c.b16 %v4559_v56, %v4559_v56 }
 0x3bf   :  { %4626 = vmatpush.bf16.xpose.msra.mxu0 %v4565_v61 }
 0x3c0   :  { %v4294_v33 = vpop.f32.mrf.mxu1 }
 0x3c1   :  { %4473 = vmatpush.bf16.msra.mxu3 %v8467_v47  ;;  %v4203_v53 = vpop.f32.mrf.mxu2 }
 0x3c2   :  { %v4204_v13 = vadd.f32 %v4203_v53, %v4191_v14  ;;  %v3070_v53 = vunpack.c.h.bf16 %v3065_v51 }
 0x3c3   :  { %v4164_v60 = vpop.f32.mrf.mxu3 }
 0x3c4   :  { %v4165_v62 = vadd.f32 %v4164_v60, %v4152_v58 }
 0x3c5   :  { %4474 = vmatpush.bf16.msra.mxu3 %v8443_v31  ;;  %v4231_v55 = vpop.f32.mrf.mxu0 }
 0x3c6   :  { %v4499_v9 = vmin.f32 %v4165_v62, 0.0  ;;  %vm4493_vm8 = vcmp.gt.f32.partialorder %v4165_v62, 0.0 }
 0x3c8   :  { %4475 = vmatmul.bf16.vlgmr.msra.gmra.mxu3 %v12785_v15  ;;  %v4505_v43 = vmul.f32 1.442695, %v4499_v9  ;;  %v4296_v17 = vpop.f32.mrf.mxu1 }
 0x3c9   :  { %v4205_v10 = vpop.f32.mrf.mxu2  ;;  %4613 = vmatpush.bf16.xpose.msrb.mxu3 %v4564_v7 }
 0x3ca   :  { %9701 = vpow2.f32 %v4505_v43 }
 0x3cb   :  { %v4166_v15 = vpop.f32.mrf.mxu3 }
 0x3cd   :  { %v4281_v2 = vpop.f32.mrf.mxu0 }
 0x3d0   :  { %v9702_v12 = vpop.eup %9701 }
 0x3d1   :  { %v8666_v19 = vadd.f32 -1.0, %v9702_v12  ;;  %v4255_v23 = vpop.f32.mrf.mxu2  ;;  %4672 = vmatpush.bf16.msra.mxu3 %v4663_v44 }
 0x3d2   :  { %v4256_v49 = vadd.f32 %v4255_v23, %v4243_v39 }
 0x3d3   :  { %v4523_v3 = vmul.f32 1.6732632, %v8666_v19  ;;  %v4216_v16 = vpop.f32.mrf.mxu3 }
 0x3d4   :  { %v4217_v35 = vadd.f32 %v4216_v16, %v4204_v13 }
 0x3d5   :  { %v4529_v22 = vsel %vm4493_vm8, %v4165_v62, %v4523_v3  ;;  %v4283_v25 = vpop.f32.mrf.mxu0 }
 0x3d6   :  { %v4535_v24 = vmul.f32 1.050701, %v4529_v22  ;;  %v4230_v0 = vadd.f32 %v4229_v18, %v4217_v35 }
 0x3d8   :  { %v4346_v26 = vpop.f32.mrf.mxu1  ;;  %v4541_v27 = vpack.c.bf16 %v4535_v24, %v4535_v24  ;;  %v4500_v1 = vmin.f32 %v4230_v0, 0.0  ;;  %vm4494_vm9 = vcmp.gt.f32.partialorder %v4230_v0, 0.0 }
 0x3d9   :  { %v4257_v32 = vpop.f32.mrf.mxu2 }
 0x3da   :  { %v4507_v8 = vmul.f32 1.442695, %v4500_v1  ;;  %4588 = vmatmul.bf16.vlgmr.msrb.gmra.mxu1 %v4541_v27 }
 0x3db   :  { %v4218_v30 = vpop.f32.mrf.mxu3 }
 0x3dc   :  { %9703 = vpow2.f32 %v4507_v8 }
 0x3dd   :  { %v4333_v34 = vpop.f32.mrf.mxu0 }
 0x3e0   :  { %v4348_v37 = vpop.f32.mrf.mxu1 }
 0x3e2   :  { %v9704_v57 = vpop.eup %9703 }
 0x3e3   :  { %v8667_v47 = vadd.f32 -1.0, %v9704_v57  ;;  %v4268_v20 = vpop.f32.mrf.mxu3 }
 0x3e4   :  { %v4269_v41 = vadd.f32 %v4268_v20, %v4256_v49 }
 0x3e5   :  { %v4524_v36 = vmul.f32 1.6732632, %v8667_v47  ;;  %v4335_v42 = vpop.f32.mrf.mxu0 }
 0x3e6   :  { %v4282_v31 = vadd.f32 %v4281_v2, %v4269_v41 }
 0x3e7   :  { %v4530_v45 = vsel %vm4494_vm9, %v4230_v0, %v4524_v36  ;;  %v3066_v0 = vld [vmem:[%s14219_s2 + $0x1270] sm:$0x11]  ;;  %v4561_v36 = vunpack.c.h.b16 %v4549_v52 }
 0x3e8   :  { %v4536_v46 = vmul.f32 1.050701, %v4530_v45  ;;  %v4295_v48 = vadd.f32 %v4294_v33, %v4282_v31  ;;  %v3076_v33 = vperm.slane %v3070_v53, 0  ;;  %v3071_v7 = vunpack.c.l.bf16 %v3066_v0 }
 0x3e9   :  { %v4567_v42 = vpack.c.b16 %v4561_v36, %v4561_v36  ;;  %v3072_v45 = vunpack.c.h.bf16 %v3066_v0  ;;  %v9572_v0 = vld [vmem:[%s14220_s3 + $0x38] sm:$0xf0] }
 0x3ea   :  { %v4542_v50 = vpack.c.bf16 %v4536_v46, %v4536_v46  ;;  %v4501_v29 = vmin.f32 %v4295_v48, 0.0  ;;  %vm4495_vm10 = vcmp.gt.f32.partialorder %v4295_v48, 0.0  ;;  %v3077_v11 = vperm.slane %v3071_v7, 0 }
 0x3eb   :  { %v4270_v18 = vpop.f32.mrf.mxu3 }
 0x3ec   :  { %4601 = vmatmul.bf16.vlgmr.msra.gmra.mxu2 %v4542_v50  ;;  %v4509_v28 = vmul.f32 1.442695, %v4501_v29  ;;  %v3078_v18 = vperm.slane %v3072_v45, 0 }
 0x3ee   :  { %9705 = vpow2.f32 %v4509_v28 }
 0x3f1   :  { %v4307_v40 = vpop.f32.mrf.mxu2 }
 0x3f2   :  { %v4308_v17 = vadd.f32 %v4307_v40, %v3076_v33 }
 0x3f4   :  { %v9706_v60 = vpop.eup %9705 }
 0x3f5   :  { %v8668_v62 = vadd.f32 -1.0, %v9706_v60 }
 0x3f7   :  { %v4525_v55 = vmul.f32 1.6732632, %v8668_v62 }
 0x3f8   :  { %v4398_v58 = vpop.f32.mrf.mxu1 }
 0x3f9   :  { %v4531_v54 = vsel %vm4495_vm10, %v4295_v48, %v4525_v55  ;;  %v4309_v4 = vpop.f32.mrf.mxu2 }
 0x3fa   :  { %v4537_v9 = vmul.f32 1.050701, %v4531_v54 }
 0x3fc   :  { %v4543_v15 = vpack.c.bf16 %v4537_v9, %v4537_v9 }
 0x3fd   :  { %v4385_v43 = vpop.f32.mrf.mxu0 }
 0x3fe   :  { %4614 = vmatmul.bf16.vlgmr.msrb.gmra.mxu3 %v4543_v15 }
 0x400   :  { %v4400_v5 = vpop.f32.mrf.mxu1 }
 0x401   :  { %v4359_v2 = vpop.f32.mrf.mxu2 }
 0x403   :  { %v4320_v10 = vpop.f32.mrf.mxu3 }
 0x404   :  { %v4321_v59 = vadd.f32 %v4320_v10, %v4308_v17 }
 0x405   :  { %v4387_v14 = vpop.f32.mrf.mxu0 }
 0x406   :  { %v4334_v12 = vadd.f32 %v4333_v34, %v4321_v59 }
 0x408   :  { %v4347_v19 = vadd.f32 %v4346_v26, %v4334_v12 }
 0x409   :  { %v4361_v35 = vpop.f32.mrf.mxu2 }
 0x40a   :  { %v4360_v13 = vadd.f32 %v4359_v2, %v4347_v19 }
 0x40b   :  { %v4322_v3 = vpop.f32.mrf.mxu3 }
 0x40c   :  { %v4502_v16 = vmin.f32 %v4360_v13, 0.0  ;;  %vm4496_vm11 = vcmp.gt.f32.partialorder %v4360_v13, 0.0 }
 0x40e   :  { %v4511_v21 = vmul.f32 1.442695, %v4502_v16  ;;  %8673 = vmatmul.msk.bf16.vlgmr.msra.gmra.mxu3 %vm386_vm1, %v10414_v63  ;;  %v4560_v63 = vunpack.c.l.b16 %v4549_v52  ;;  %vm4573_vm1 = vcmask 523264   ;;  %v4550_v16 = vld [vmem:[%s14219_s2 + $0x1290] sm:$0x1] }
 0x40f   :  { %v4578_v50 = vsel %vm4573_vm1, %v4567_v42, 0  ;;  %v4551_v35 = vunpack.c.l.bf16 %v4550_v16  ;;  %v9595_v16 = vld [vmem:[%s14220_s3 + $0x154] sm:$0xf] }
 0x410   :  { %9707 = vpow2.f32 %v4511_v21  ;;  %v4566_v32 = vpack.c.b16 %v4560_v63, %v4560_v63  ;;  %4652 = vmatpush.bf16.xpose.msrb.mxu2 %v4578_v50  ;;  %v4659_v63 = vld [vmem:[%s14220_s3 + $0xc] sm:$0x1] }
 0x411   :  { %v4552_v21 = vperm.slane %v4551_v35, 0 }
 0x412   :  { %4639 = vmatpush.bf16.xpose.msra.mxu1 %v4566_v32 }
 0x416   :  { %v9708_v23 = vpop.eup %9707 }
 0x417   :  { %v4450_v22 = vpop.f32.mrf.mxu1  ;;  %v8669_v6 = vadd.f32 -1.0, %v9708_v23 }
 0x419   :  { %v4411_v51 = vpop.f32.mrf.mxu2  ;;  %v4526_v24 = vmul.f32 1.6732632, %v8669_v6 }
 0x41b   :  { %v4532_v25 = vsel %vm4496_vm11, %v4360_v13, %v4526_v24  ;;  %v8681_v24 = vld [vmem:[%s14220_s3 + $0x30] sm:$0xf] }
 0x41c   :  { %v4538_v27 = vmul.f32 1.050701, %v4532_v25  ;;  %v8682_v25 = vor.u32 %v9572_v0, %v8681_v24 }
 0x41d   :  { %v4437_v26 = vpop.f32.mrf.mxu0 }
 0x41e   :  { %v4544_v8 = vpack.c.bf16 %v4538_v27, %v4538_v27  ;;  %v4438_v40 = vadd.f32 %v4437_v26, %v3078_v18  ;;  %4715 = vmatpush.bf16.msrb.mxu0 %v8682_v25  ;;  %v8677_v27 = vld [vmem:[%s14220_s3 + $0x18] sm:$0xf] }
 0x41f   :  { %v4452_v1 = vpop.f32.mrf.mxu1 }
 0x420   :  { %4627 = vmatmul.bf16.vlgmr.msra.gmra.mxu0 %v4544_v8  ;;  %v4451_v61 = vadd.f32 %v4450_v22, %v4438_v40  ;;  %v9571_v1 = vld [vmem:[%s14220_s3 + $0x20] sm:$0xf0]  ;;  %v9576_v40 = vld [vmem:[%s14220_s3 + $0xa4] sm:$0xf0] }
 0x421   :  { %v4413_v30 = vpop.f32.mrf.mxu2  ;;  %v8678_v52 = vor.u32 %v9571_v1, %v8677_v27 }
 0x422   :  { %v4660_v30 = vunpack.c.l.bf16 %v4659_v63 }
 0x423   :  { %v4372_v34 = vpop.f32.mrf.mxu3  ;;  %4716 = vmatpush.bf16.msrb.mxu0 %v8678_v52 }
 0x424   :  { %v4373_v37 = vadd.f32 %v4372_v34, %v3077_v11  ;;  %v4661_v11 = vperm.slane %v4660_v30, 0 }
 0x425   :  { %v4439_v38 = vpop.f32.mrf.mxu0 }
 0x426   :  { %v4386_v44 = vadd.f32 %v4385_v43, %v4373_v37 }
 0x428   :  { %v4399_v47 = vadd.f32 %v4398_v58, %v4386_v44 }
 0x42a   :  { %v4412_v49 = vadd.f32 %v4411_v51, %v4399_v47 }
 0x42b   :  { %v4374_v39 = vpop.f32.mrf.mxu3 }
 0x42d   :  { %v4489_v57 = vpop.f32.mrf.mxu0 }
 0x433   :  { %v4424_v20 = vpop.f32.mrf.mxu3 }
 0x434   :  { %v4425_v41 = vadd.f32 %v4424_v20, %v4412_v49 }
 0x435   :  { %v4491_v46 = vpop.f32.mrf.mxu0 }
 0x436   :  { %v4503_v31 = vmin.f32 %v4425_v41, 0.0  ;;  %vm4497_vm12 = vcmp.gt.f32.partialorder %v4425_v41, 0.0 }
 0x438   :  { %v4513_v29 = vmul.f32 1.442695, %v4503_v31 }
 0x439   :  { %v4463_v48 = vpop.f32.mrf.mxu2 }
 0x43a   :  { %9709 = vpow2.f32 %v4513_v29  ;;  %v4464_v53 = vadd.f32 %v4463_v48, %v4451_v61 }
 0x43b   :  { %v4426_v28 = vpop.f32.mrf.mxu3 }
 0x43c   :  { %v8699_v28 = vld [vmem:[%s14220_s3 + $0x9c] sm:$0xf] }
 0x440   :  { %v9710_v58 = vpop.eup %9709 }
 0x441   :  { %v4465_v56 = vpop.f32.mrf.mxu2  ;;  %v8670_v60 = vadd.f32 -1.0, %v9710_v58  ;;  %v8695_v58 = vld [vmem:[%s14220_s3 + $0x84] sm:$0xf] }
 0x442   :  { %v8700_v56 = vor.u32 %v9576_v40, %v8699_v28  ;;  %v9587_v28 = vld [vmem:[%s14220_s3 + $0x110] sm:$0xf0]  ;;  %v9586_v40 = vld [vmem:[%s14220_s3 + $0x10c] sm:$0xf] }
 0x443   :  { %v4527_v62 = vmul.f32 1.6732632, %v8670_v60  ;;  %v9575_v60 = vld [vmem:[%s14220_s3 + $0x8c] sm:$0xf0] }
 0x444   :  { %4773 = vmatpush.bf16.msrb.mxu1 %v8700_v56  ;;  %v8696_v61 = vor.u32 %v9575_v60, %v8695_v58  ;;  %v8743_v58 = vld [vmem:[%s14220_s3 + $0x114] sm:$0xf0]  ;;  %v8749_v60 = vld [vmem:[%s14220_s3 + $0x110] sm:$0xf] }
 0x445   :  { %v4533_v55 = vsel %vm4497_vm12, %v4425_v41, %v4527_v62  ;;  %v8691_v62 = vld [vmem:[%s14220_s3 + $0x6c] sm:$0xf] }
 0x446   :  { %v4539_v4 = vmul.f32 1.050701, %v4533_v55 }
 0x448   :  { %v4545_v33 = vpack.c.bf16 %v4539_v4, %v4539_v4  ;;  %4774 = vmatpush.bf16.msrb.mxu1 %v8696_v61  ;;  %v9573_v4 = vld [vmem:[%s14220_s3 + $0x5c] sm:$0xf0]  ;;  %v9588_v61 = vld [vmem:[%s14220_s3 + $0x118] sm:$0xf0] }
 0x44a   :  { %4640 = vmatmul.bf16.vlgmr.msra.gmra.mxu1 %v4545_v33  ;;  %v4691_v33 = vld [vmem:[%s14220_s3 + $0x48] sm:$0x1] }
 0x44b   :  { %v4476_v54 = vpop.f32.mrf.mxu3 }
 0x44c   :  { %v4477_v9 = vadd.f32 %v4476_v54, %v4464_v53  ;;  %v9574_v53 = vld [vmem:[%s14220_s3 + $0x74] sm:$0xf0]  ;;  %v8687_v54 = vld [vmem:[%s14220_s3 + $0x54] sm:$0xf] }
 0x44d   :  { %v8692_v55 = vor.u32 %v9574_v53, %v8691_v62  ;;  %v8746_v62 = vor.u32 %v9586_v40, %v8743_v58  ;;  %v8750_v53 = vor.u32 %v9588_v61, %v8749_v60  ;;  %v8828_v40 = vld [vmem:[%s14220_s3 + $0x1bc] sm:$0xf]  ;;  %v9607_v58 = vld [vmem:[%s14220_s3 + $0x1c0] sm:$0xf]  ;;  %v8830_v61 = vld [vmem:[%s14220_s3 + $0x1c8] sm:$0xf0] }
 0x44e   :  { %v4490_v43 = vadd.f32 %v4489_v57, %v4477_v9  ;;  %v8688_v9 = vor.u32 %v9573_v4, %v8687_v54  ;;  %v9584_v54 = vld [vmem:[%s14220_s3 + $0xf8] sm:$0xf0]  ;;  %v9583_v4 = vld [vmem:[%s14220_s3 + $0xf4] sm:$0xf] }
 0x44f   :  { %4775 = vmatpush.bf16.msrb.mxu1 %v8692_v55  ;;  %v8729_v55 = vld [vmem:[%s14220_s3 + $0xf0] sm:$0xf] }
 0x450   :  { %v4504_v5 = vmin.f32 %v4490_v43, 0.0  ;;  %vm4498_vm13 = vcmp.gt.f32.partialorder %v4490_v43, 0.0 }
 0x452   :  { %v4515_v15 = vmul.f32 1.442695, %v4504_v5  ;;  %v9599_v5 = vld [vmem:[%s14220_s3 + $0x170] sm:$0xf0] }
 0x453   :  { %v4478_v17 = vpop.f32.mrf.mxu3  ;;  %4776 = vmatpush.bf16.msrb.mxu1 %v8688_v9  ;;  %v8730_v9 = vor.u32 %v9584_v54, %v8729_v55  ;;  %v9606_v55 = vld [vmem:[%s14220_s3 + $0x1b4] sm:$0xf0] }
 0x454   :  { %9711 = vpow2.f32 %v4515_v15  ;;  %v9598_v15 = vld [vmem:[%s14220_s3 + $0x16c] sm:$0xf] }
 0x457   :  { %v4589_v13 = vpop.f32.mrf.mxu1 }
 0x458   :  { %v4590_v22 = vadd.f32 %v4589_v13, %v4552_v21  ;;  %v8777_v13 = vld [vmem:[%s14220_s3 + $0x150] sm:$0xf]  ;;  %v8779_v21 = vld [vmem:[%s14220_s3 + $0x15c] sm:$0xf0] }
 0x45a   :  { %v9712_v10 = vpop.eup %9711 }
 0x45b   :  { %v8671_v59 = vadd.f32 -1.0, %v9712_v10  ;;  %v8791_v10 = vld [vmem:[%s14220_s3 + $0x174] sm:$0xf0] }
 0x45d   :  { %v4528_v2 = vmul.f32 1.6732632, %v8671_v59  ;;  %v8797_v59 = vld [vmem:[%s14220_s3 + $0x170] sm:$0xf] }
 0x45f   :  { %v4534_v12 = vsel %vm4498_vm13, %v4490_v43, %v4528_v2  ;;  %v4591_v3 = vpop.f32.mrf.mxu1  ;;  %v8789_v43 = vld [vmem:[%s14220_s3 + $0x168] sm:$0xf]  ;;  %v9600_v2 = vld [vmem:[%s14220_s3 + $0x178] sm:$0xf0] }
 0x460   :  { %v4540_v14 = vmul.f32 1.050701, %v4534_v12  ;;  %v8790_v17 = vor.u32 %v9599_v5, %v8789_v43  ;;  %v4692_v12 = vunpack.c.l.bf16 %v4691_v33  ;;  %v9596_v3 = vld [vmem:[%s14220_s3 + $0x158] sm:$0xf0]  ;;  %v8731_v33 = vld [vmem:[%s14220_s3 + $0xfc] sm:$0xf0] }
 0x461   :  { %v8778_v35 = vor.u32 %v9596_v3, %v8777_v13  ;;  %v8737_v43 = vld [vmem:[%s14220_s3 + $0xf8] sm:$0xf]  ;;  %v9585_v5 = vld [vmem:[%s14220_s3 + $0x100] sm:$0xf0]  ;;  %v9582_v13 = vld [vmem:[%s14220_s3 + $0xe8] sm:$0xf0] }
 0x462   :  { %v4546_v19 = vpack.c.bf16 %v4540_v14, %v4540_v14  ;;  %v8794_v14 = vor.u32 %v9598_v15, %v8791_v10  ;;  %4959 = vmatpush.bf16.msra.mxu2 %v8790_v17  ;;  %v4693_v24 = vperm.slane %v4692_v12, 0  ;;  %v8734_v15 = vor.u32 %v9583_v4, %v8731_v33  ;;  %v8717_v10 = vld [vmem:[%s14220_s3 + $0xd8] sm:$0xf]  ;;  %v8816_v4 = vld [vmem:[%s14220_s3 + $0x1a4] sm:$0xf] }
 0x463   :  { %v8738_v17 = vor.u32 %v9585_v5, %v8737_v43  ;;  %v9604_v33 = vld [vmem:[%s14220_s3 + $0x1a8] sm:$0xf]  ;;  %v8818_v5 = vld [vmem:[%s14220_s3 + $0x1b0] sm:$0xf0] }
 0x464   :  { %8672 = vmatmul.msk.bf16.vlgmr.msrb.gmra.mxu2 %vm4573_vm1, %v4546_v19  ;;  %v8798_v19 = vor.u32 %v9600_v2, %v8797_v59  ;;  %4972 = vmatpush.bf16.msrb.mxu3 %v8794_v14  ;;  %v9581_v59 = vld [vmem:[%s14220_s3 + $0xe0] sm:$0xf0]  ;;  %v9580_v2 = vld [vmem:[%s14220_s3 + $0xdc] sm:$0xf]  ;;  %v8719_v14 = vld [vmem:[%s14220_s3 + $0xe4] sm:$0xf0] }
 0x465   :  { %v8718_v12 = vor.u32 %v9581_v59, %v8717_v10  ;;  %v8722_v3 = vor.u32 %v9580_v2, %v8719_v14  ;;  %v9603_v10 = vld [vmem:[%s14220_s3 + $0x19c] sm:$0xf0]  ;;  %v8804_v2 = vld [vmem:[%s14220_s3 + $0x18c] sm:$0xf]  ;;  %v9601_v14 = vld [vmem:[%s14220_s3 + $0x190] sm:$0xf] }
 0x466   :  { %4985 = vmatpush.bf16.msra.mxu0 %v8798_v19  ;;  %4960 = vmatpush.bf16.msra.mxu2 %v8778_v35  ;;  %v8725_v19 = vld [vmem:[%s14220_s3 + $0xe0] sm:$0xf] }
 0x467   :  { %v8705_v35 = vld [vmem:[%s14220_s3 + $0xc0] sm:$0xf] }
 0x46f   :  { %v4602_v23 = vpop.f32.mrf.mxu2 }
 0x470   :  { %v4603_v6 = vadd.f32 %v4602_v23, %v4590_v22  ;;  %v8785_v22 = vld [vmem:[%s14220_s3 + $0x158] sm:$0xf]  ;;  %v9597_v23 = vld [vmem:[%s14220_s3 + $0x160] sm:$0xf0] }
 0x477   :  { %v4604_v51 = vpop.f32.mrf.mxu2 }
 0x478   :  { %v8786_v51 = vor.u32 %v9597_v23, %v8785_v22  ;;  %v9577_v22 = vld [vmem:[%s14220_s3 + $0xc4] sm:$0xf] }
 0x47a   :  { %4986 = vmatpush.bf16.msra.mxu0 %v8786_v51  ;;  %v8713_v51 = vld [vmem:[%s14220_s3 + $0xc8] sm:$0xf] }
 0x481   :  { %v4615_v26 = vpop.f32.mrf.mxu3 }
 0x482   :  { %v4616_v7 = vadd.f32 %v4615_v26, %v4603_v6  ;;  %v8782_v6 = vor.u32 %v9595_v16, %v8779_v21  ;;  %v8726_v16 = vor.u32 %v9582_v13, %v8725_v19  ;;  %v9578_v21 = vld [vmem:[%s14220_s3 + $0xc8] sm:$0xf0]  ;;  %v8806_v13 = vld [vmem:[%s14220_s3 + $0x198] sm:$0xf0] }
 0x483   :  { %v8706_v23 = vor.u32 %v9578_v21, %v8705_v35  ;;  %v4823_v21 = vld [vmem:[%s14220_s3 + $0x180] sm:$0x11] }
 0x484   :  { %4973 = vmatpush.bf16.msrb.mxu3 %v8782_v6  ;;  %v8707_v6 = vld [vmem:[%s14220_s3 + $0xcc] sm:$0xf0] }
 0x489   :  { %v4617_v8 = vpop.f32.mrf.mxu3 }
 0x491   :  { %v4674_v32 = vpop.f32.mrf.mxu3 }
 0x492   :  { %v4675_v34 = vadd.f32 %v4674_v32, %v4661_v11  ;;  %v8765_v32 = vld [vmem:[%s14220_s3 + $0x138] sm:$0xf] }
 0x494   :  { %v4679_v37 = vmin.f32 %v4675_v34, 0.0  ;;  %vm4678_vm14 = vcmp.gt.f32.partialorder %v4675_v34, 0.0 }
 0x496   :  { %v4680_v38 = vmul.f32 1.442695, %v4679_v37  ;;  %v9592_v37 = vld [vmem:[%s14220_s3 + $0x13c] sm:$0xf] }
 0x498   :  { %9713 = vpow2.f32 %v4680_v38 }
 0x499   :  { %v4676_v39 = vpop.f32.mrf.mxu3 }
 0x49a   :  { %v8773_v39 = vld [vmem:[%s14220_s3 + $0x140] sm:$0xf] }
 0x49d   :  { %v4628_v44 = vpop.f32.mrf.mxu0 }
 0x49e   :  { %v4629_v57 = vadd.f32 %v4628_v44, %v4616_v7  ;;  %v9714_v47 = vpop.eup %9713  ;;  %v8767_v44 = vld [vmem:[%s14220_s3 + $0x144] sm:$0xf0] }
 0x49f   :  { %v8674_v49 = vadd.f32 -1.0, %v9714_v47  ;;  %v8770_v47 = vor.u32 %v9592_v37, %v8767_v44  ;;  %v9612_v37 = vld [vmem:[%s14220_s3 + $0x1e4] sm:$0xf0] }
 0x4a1   :  { %v4683_v20 = vmul.f32 1.6732632, %v8674_v49  ;;  %4974 = vmatpush.bf16.msrb.mxu3 %v8770_v47  ;;  %v8842_v47 = vld [vmem:[%s14220_s3 + $0x1e0] sm:$0xf0] }
 0x4a3   :  { %v4684_v41 = vsel %vm4678_vm14, %v4675_v34, %v4683_v20  ;;  %v9593_v34 = vld [vmem:[%s14220_s3 + $0x140] sm:$0xf0]  ;;  %v8753_v20 = vld [vmem:[%s14220_s3 + $0x120] sm:$0xf] }
 0x4a4   :  { %v4685_v42 = vmul.f32 1.050701, %v4684_v41  ;;  %v8766_v38 = vor.u32 %v9593_v34, %v8765_v32  ;;  %v9589_v41 = vld [vmem:[%s14220_s3 + $0x124] sm:$0xf]  ;;  %v8848_v34 = vld [vmem:[%s14220_s3 + $0x1dc] sm:$0xf] }
 0x4a5   :  { %v4630_v36 = vpop.f32.mrf.mxu0  ;;  %v8849_v44 = vor.u32 %v9612_v37, %v8848_v34 }
 0x4a6   :  { %v4686_v45 = vpack.c.bf16 %v4685_v42, %v4685_v42  ;;  %4961 = vmatpush.bf16.msra.mxu2 %v8766_v38  ;;  %v9590_v36 = vld [vmem:[%s14220_s3 + $0x128] sm:$0xf0]  ;;  %v8840_v38 = vld [vmem:[%s14220_s3 + $0x1d4] sm:$0xf] }
 0x4a7   :  { %v8754_v42 = vor.u32 %v9590_v36, %v8753_v20 }
 0x4a8   :  { %8683 = vmatmul.msk.bf16.vlgmr.msrb.gmra.mxu0 %vm4099_vm7, %v4686_v45  ;;  %v8755_v45 = vld [vmem:[%s14220_s3 + $0x12c] sm:$0xf0] }
 0x4aa   :  { %4962 = vmatpush.bf16.msra.mxu2 %v8754_v42 }
 0x4c7   :  { %v4641_v31 = vpop.f32.mrf.mxu1 }
 0x4c8   :  { %v4642_v46 = vadd.f32 %v4641_v31, %v4629_v57  ;;  %v9594_v57 = vld [vmem:[%s14220_s3 + $0x148] sm:$0xf0]  ;;  %v8761_v31 = vld [vmem:[%s14220_s3 + $0x128] sm:$0xf] }
 0x4c9   :  { %v8774_v49 = vor.u32 %v9594_v57, %v8773_v39  ;;  %v9611_v39 = vld [vmem:[%s14220_s3 + $0x1dc] sm:$0xf0]  ;;  %v9610_v57 = vld [vmem:[%s14220_s3 + $0x1d8] sm:$0xf] }
 0x4ca   :  { %v8845_v20 = vor.u32 %v9610_v57, %v8842_v47 }
 0x4cb   :  { %4987 = vmatpush.bf16.msra.mxu0 %v8774_v49  ;;  %v8841_v49 = vor.u32 %v9611_v39, %v8840_v38 }
 0x4cd   :  { %5112 = vmatpush.bf16.xpose.msra.mxu1 %v8841_v49 }
 0x4cf   :  { %v4643_v48 = vpop.f32.mrf.mxu1 }
 0x4d0   :  { %v8758_v48 = vor.u32 %v9589_v41, %v8755_v45 }
 0x4d2   :  { %4975 = vmatpush.bf16.msrb.mxu3 %v8758_v48 }
 0x4d6   :  { %4976 = vmatpush.bf16.msrb.mxu3 %v8746_v62  ;;  %v8833_v62 = vor.u32 %v9607_v58, %v8830_v61 }
 0x4da   :  { %4977 = vmatpush.bf16.msrb.mxu3 %v8734_v15  ;;  %v8821_v15 = vor.u32 %v9604_v33, %v8818_v5 }
 0x4de   :  { %4978 = vmatpush.bf16.msrb.mxu3 %v8722_v3  ;;  %v8809_v3 = vor.u32 %v9601_v14, %v8806_v13 }
 0x4e7   :  { %v4654_v50 = vpop.f32.mrf.mxu2 }
 0x4e8   :  { %v13593_v29 = vadd.f32 %v4654_v50, %v4642_v46  ;;  %v9591_v46 = vld [vmem:[%s14220_s3 + $0x130] sm:$0xf0] }
 0x4e9   :  { %v8762_v50 = vor.u32 %v9591_v46, %v8761_v31 }
 0x4ea   :  { %v5147_v48 = vpack.c.bf16 %v13593_v29, %v13593_v29 }
 0x4eb   :  { %4988 = vmatpush.bf16.msra.mxu0 %v8762_v50  ;;  %v8836_v50 = vld [vmem:[%s14220_s3 + $0x1c4] sm:$0xf] }
 0x4ef   :  { %v4656_v18 = vpop.f32.mrf.mxu2  ;;  %4989 = vmatpush.bf16.msra.mxu0 %v8750_v53  ;;  %v8824_v53 = vld [vmem:[%s14220_s3 + $0x1ac] sm:$0xf] }
 0x4f0   :  { %v8741_v18 = vld [vmem:[%s14220_s3 + $0x108] sm:$0xf]  ;;  %v8825_v54 = vor.u32 %v9606_v55, %v8824_v53  ;;  %v5041_v53 = vld [vmem:[%s14220_s3 + $0x1ec] sm:$0x1] }
 0x4f1   :  { %v8742_v56 = vor.u32 %v9587_v28, %v8741_v18  ;;  %v9609_v18 = vld [vmem:[%s14220_s3 + $0x1cc] sm:$0xf0]  ;;  %v5042_v55 = vunpack.c.l.bf16 %v5041_v53 }
 0x4f2   :  { %v8837_v28 = vor.u32 %v9609_v18, %v8836_v50 }
 0x4f3   :  { %4963 = vmatpush.bf16.msra.mxu2 %v8742_v56  ;;  %4990 = vmatpush.bf16.msra.mxu0 %v8738_v17  ;;  %v9608_v56 = vld [vmem:[%s14220_s3 + $0x1c4] sm:$0xf0]  ;;  %v8812_v17 = vld [vmem:[%s14220_s3 + $0x194] sm:$0xf] }
 0x4f4   :  { %v8829_v60 = vor.u32 %v9608_v56, %v8828_v40  ;;  %v8813_v59 = vor.u32 %v9603_v10, %v8812_v17 }
 0x4f6   :  { %5113 = vmatpush.bf16.xpose.msra.mxu1 %v8829_v60 }
 0x4f7   :  { %4964 = vmatpush.bf16.msra.mxu2 %v8730_v9  ;;  %4991 = vmatpush.bf16.msra.mxu0 %v8726_v16  ;;  %v9605_v9 = vld [vmem:[%s14220_s3 + $0x1ac] sm:$0xf0]  ;;  %v4824_v16 = vld [vmem:[%s14220_s3 + $0x188] sm:$0x1] }
 0x4f8   :  { %v8817_v43 = vor.u32 %v9605_v9, %v8816_v4  ;;  %v4827_v35 = vunpack.c.l.bf16 %v4824_v16  ;;  %v5043_v9 = vperm.slane %v5042_v55, 0 }
 0x4fb   :  { %4965 = vmatpush.bf16.msra.mxu2 %v8718_v12  ;;  %v9602_v12 = vld [vmem:[%s14220_s3 + $0x194] sm:$0xf0] }
 0x4fc   :  { %v8805_v19 = vor.u32 %v9602_v12, %v8804_v2 }
 0x4fe   :  { %5114 = vmatpush.bf16.xpose.msra.mxu1 %v8817_v43 }
 0x4ff   :  { %4966 = vmatpush.bf16.msra.mxu2 %v8706_v23  ;;  %v5171_v23 = vld [vmem:[%s14220_s3 + $0x204] sm:$0xf] }
 0x503   :  { %5125 = vmatpush.bf16.xpose.msrb.mxu2 %v8845_v20 }
 0x506   :  { %5115 = vmatpush.bf16.xpose.msra.mxu1 %v8805_v19 }
 0x50b   :  { %5126 = vmatpush.bf16.xpose.msrb.mxu2 %v8833_v62 }
 0x513   :  { %5127 = vmatpush.bf16.xpose.msrb.mxu2 %v8821_v15 }
 0x51b   :  { %5128 = vmatpush.bf16.xpose.msrb.mxu2 %v8809_v3 }
 0x525   :  { %v4718_v0 = vpop.f32.mrf.mxu0 }
 0x526   :  { %v4719_v25 = vadd.f32 %v4718_v0, %v4693_v24  ;;  %v9579_v24 = vld [vmem:[%s14220_s3 + $0xd0] sm:$0xf0]  ;;  %v8710_v0 = vor.u32 %v9577_v22, %v8707_v6  ;;  %v4830_v22 = vperm.slane %v4827_v35, 0  ;;  %v4825_v6 = vunpack.c.l.bf16 %v4823_v21 }
 0x528   :  { %v4723_v26 = vmin.f32 %v4719_v25, 0.0  ;;  %vm4722_vm15 = vcmp.gt.f32.partialorder %v4719_v25, 0.0  ;;  %4979 = vmatpush.bf16.msrb.mxu3 %v8710_v0 }
 0x52a   :  { %v4724_v7 = vmul.f32 1.442695, %v4723_v26  ;;  %v4739_v26 = vld [vmem:[%s14220_s3 + $0xb4] sm:$0x1] }
 0x52c   :  { %9715 = vpow2.f32 %v4724_v7  ;;  %v5148_v7 = vld [vmem:[%s14220_s3 + $0x1f8] sm:$0xf]  ;;  %5138 = vmatpush.bf16.xpose.msra.mxu3 %v8849_v44 }
 0x52d   :  { %v4720_v27 = vpop.f32.mrf.mxu0 }
 0x52e   :  { %v4740_v27 = vunpack.c.l.bf16 %v4739_v26  ;;  %v4828_v26 = vperm.slane %v4825_v6, 0 }
 0x532   :  { %v9716_v1 = vpop.eup %9715 }
 0x533   :  { %v8684_v52 = vadd.f32 -1.0, %v9716_v1  ;;  %v5154_v1 = vsel %vm1353_vm3, %v5148_v7, 0 }
 0x534   :  { %5139 = vmatpush.bf16.xpose.msra.mxu3 %v8837_v28 }
 0x535   :  { %v4727_v63 = vmul.f32 1.6732632, %v8684_v52  ;;  %v4741_v52 = vperm.slane %v4740_v27, 0 }
 0x537   :  { %v4728_v8 = vsel %vm4722_vm15, %v4719_v25, %v4727_v63  ;;  %v8714_v25 = vor.u32 %v9579_v24, %v8713_v51  ;;  %v4826_v51 = vunpack.c.h.bf16 %v4823_v21  ;;  %v5176_v24 = vsel %vm4573_vm1, %v5171_v23, 0 }
 0x538   :  { %v4729_v30 = vmul.f32 1.050701, %v4728_v8 }
 0x539   :  { %4992 = vmatpush.bf16.msra.mxu0 %v8714_v25  ;;  %v4829_v7 = vperm.slane %v4826_v51, 0 }
 0x53a   :  { %v4730_v11 = vpack.c.bf16 %v4729_v30, %v4729_v30 }
 0x53c   :  { %8701 = vmatmul.msk.bf16.vlgmr.msrb.gmra.mxu1 %vm4573_vm1, %v4730_v11  ;;  %5140 = vmatpush.bf16.xpose.msra.mxu3 %v8825_v54 }
 0x53d   :  { %5163 = vmatpush.bf16.msrb.mxu0 %v5154_v1  ;;  %5185 = vmatpush.bf16.xpose.msrb.mxu1 %v5176_v24 }
 0x544   :  { %5141 = vmatpush.bf16.xpose.msra.mxu3 %v8813_v59 }
 0x5b9   :  { %v4778_v63 = vpop.f32.mrf.mxu1 }
 0x5ba   :  { %v4779_v8 = vadd.f32 %v4778_v63, %v4741_v52 }
 0x5bc   :  { %v4783_v30 = vmin.f32 %v4779_v8, 0.0  ;;  %vm4782_vm4 = vcmp.gt.f32.partialorder %v4779_v8, 0.0 }
 0x5be   :  { %v4784_v11 = vmul.f32 1.442695, %v4783_v30 }
 0x5c0   :  { %9717 = vpow2.f32 %v4784_v11 }
 0x5c1   :  { %v4780_v32 = vpop.f32.mrf.mxu1 }
 0x5c6   :  { %v9718_v36 = vpop.eup %9717 }
 0x5c7   :  { %v8702_v41 = vadd.f32 -1.0, %v9718_v36 }
 0x5c9   :  { %v4787_v42 = vmul.f32 1.6732632, %v8702_v41 }
 0x5cb   :  { %v4788_v45 = vsel %vm4782_vm4, %v4779_v8, %v4787_v42 }
 0x5cc   :  { %v4789_v31 = vmul.f32 1.050701, %v4788_v45 }
 0x5ce   :  { %v4790_v46 = vpack.c.bf16 %v4789_v31, %v4789_v31 }
 0x5d0   :  { %4967 = vmatmul.bf16.vlgmr.msra.gmra.mxu2 %v4790_v46  ;;  %4980 = vmatmul.bf16.vlgmr.msrb.gmra.mxu3 %v4790_v46 }
 0x5d1   :  { %4993 = vmatmul.bf16.vlgmr.msra.gmra.mxu0 %v4790_v46 }
 0x5e1   :  { %8850 = vmatmul.msk.bf16.vlgmr.msrb.gmra.mxu0 %vm5149_vm5, %v5147_v48 }
 0x64e   :  { %v4994_v0 = vpop.f32.mrf.mxu0 }
 0x64f   :  { %v4995_v25 = vadd.f32 %v4994_v0, %v4830_v22 }
 0x651   :  { %v5003_v27 = vmin.f32 %v4995_v25, 0.0  ;;  %vm5000_vm6 = vcmp.gt.f32.partialorder %v4995_v25, 0.0 }
 0x653   :  { %v5008_v1 = vmul.f32 1.442695, %v5003_v27  ;;  %v4968_v52 = vpop.f32.mrf.mxu2  ;;  %v4981_v63 = vpop.f32.mrf.mxu3 }
 0x654   :  { %v4969_v8 = vadd.f32 %v4968_v52, %v4828_v26  ;;  %v4982_v30 = vadd.f32 %v4981_v63, %v4829_v7 }
 0x655   :  { %9719 = vpow2.f32 %v5008_v1 }
 0x656   :  { %v5001_v11 = vmin.f32 %v4969_v8, 0.0  ;;  %v5002_v32 = vmin.f32 %v4982_v30, 0.0  ;;  %v4996_v34 = vpop.f32.mrf.mxu0  ;;  %vm4998_vm7 = vcmp.gt.f32.partialorder %v4969_v8, 0.0  ;;  %vm4999_vm8 = vcmp.gt.f32.partialorder %v4982_v30, 0.0 }
 0x658   :  { %v5004_v37 = vmul.f32 1.442695, %v5001_v11  ;;  %v5006_v38 = vmul.f32 1.442695, %v5002_v32 }
 0x65a   :  { %9721 = vpow2.f32 %v5004_v37 }
 0x65b   :  { %v9720_v44 = vpop.eup %9719  ;;  %9723 = vpow2.f32 %v5006_v38  ;;  %v4970_v39 = vpop.f32.mrf.mxu2 }
 0x65c   :  { %v4983_v57 = vpop.f32.mrf.mxu3  ;;  %v8801_v47 = vadd.f32 -1.0, %v9720_v44 }
 0x65e   :  { %v5015_v49 = vmul.f32 1.6732632, %v8801_v47  ;;  %v5165_v20 = vpop.f32.mrf.mxu0 }
 0x660   :  { %v9722_v36 = vpop.eup %9721  ;;  %v5018_v41 = vsel %vm5000_vm6, %v4995_v25, %v5015_v49 }
 0x661   :  { %v9724_v42 = vpop.eup %9723  ;;  %v5021_v45 = vmul.f32 1.050701, %v5018_v41  ;;  %v8799_v31 = vadd.f32 -1.0, %v9722_v36 }
 0x662   :  { %v8800_v46 = vadd.f32 -1.0, %v9724_v42 }
 0x663   :  { %v5024_v48 = vpack.c.bf16 %v5021_v45, %v5021_v45  ;;  %v5013_v50 = vmul.f32 1.6732632, %v8799_v31 }
 0x664   :  { %v5014_v18 = vmul.f32 1.6732632, %v8800_v46 }
 0x665   :  { %v5016_v28 = vsel %vm4998_vm7, %v4969_v8, %v5013_v50  ;;  %5142 = vmatmul.bf16.vlgmr.msra.gmra.mxu3 %v5024_v48 }
 0x666   :  { %v5019_v40 = vmul.f32 1.050701, %v5016_v28  ;;  %v5017_v56 = vsel %vm4999_vm8, %v4982_v30, %v5014_v18  ;;  %v5167_v58 = vpop.f32.mrf.mxu0 }
 0x667   :  { %v5020_v60 = vmul.f32 1.050701, %v5017_v56 }
 0x668   :  { %v5022_v61 = vpack.c.bf16 %v5019_v40, %v5019_v40 }
 0x669   :  { %v5023_v62 = vpack.c.bf16 %v5020_v60, %v5020_v60 }
 0x66a   :  { %5116 = vmatmul.bf16.vlgmr.msra.gmra.mxu1 %v5022_v61 }
 0x66b   :  { %5129 = vmatmul.bf16.vlgmr.msrb.gmra.mxu2 %v5023_v62 }
 0x6e7   :  { %v5117_v54 = vpop.f32.mrf.mxu1 }
 0x6e8   :  { %v5143_v4 = vpop.f32.mrf.mxu3  ;;  %v5118_v33 = vadd.f32 %v5117_v54, %v5043_v9 }
 0x6ee   :  { %v5130_v43 = vpop.f32.mrf.mxu2 }
 0x6ef   :  { %v5131_v5 = vadd.f32 %v5130_v43, %v5118_v33  ;;  %v5119_v15 = vpop.f32.mrf.mxu1 }
 0x6f0   :  { %v5145_v17 = vpop.f32.mrf.mxu3 }
 0x6f1   :  { %v5144_v10 = vadd.f32 %v5143_v4, %v5131_v5 }
 0x6f3   :  { %v5169_v59 = vmul.f32 %v5165_v20, %v5144_v10 }
 0x6f5   :  { %v5170_v2 = vpack.c.bf16 %v5169_v59, %v5169_v59 }
 0x6f6   :  { %v5132_v12 = vpop.f32.mrf.mxu2 }
 0x6f7   :  { %8851 = vmatmul.msk.bf16.vlgmr.msrb.gmra.mxu1 %vm4573_vm1, %v5170_v2 }
 0x774   :  { %v5187_v14 = vpop.f32.mrf.mxu1 }
 0x77c   :  { %v5189_v19 = vpop.f32.mrf.mxu1 }
 0x77d   :  { %9869 = dma.done.wait [#allocation3], 19712 }
 0x77e   :  { %9870 = vsyncadd [#allocation3], 4294947584  ;;  %v5196_v13 = vrot.slane %v13593_v29, 6  ;;  %v5200_v16 = vld [vmem:[#allocation2] sm:$0xf]  ;;  %s9873_s3 = smov 100  }
 0x77f   :  { %v5205_v35 = vsel %vm1353_vm3, %v5200_v16, 0  ;;  %v5232_v22 = vld [vmem:[#allocation2 + $0x8] sm:$0xf]  ;;  %v5233_v23 = vld [vmem:[#allocation2 + $0x10] sm:$0xf]  ;;  %s9874_s7 = smov [#allocation4]  }
 0x780   :  { %v13865_v3 = vsel %vm390_vm0, %v5187_v14, %v5196_v13  ;;  %5214 = vmatpush.bf16.msra.mxu0 %v5205_v35  ;;  %v5234_v6 = vld [vmem:[#allocation2 + $0x18] sm:$0xf]  ;;  %v5235_v51 = vld [vmem:[#allocation2 + $0x20] sm:$0xf]  ;;  %v5244_v24 = vld [vmem:[#allocation2 + $0x28] sm:$0xf]  ;;  %v5236_v0 = vunpack.c.l.bf16 %v5232_v22  ;;  %v5237_v27 = vunpack.c.l.bf16 %v5233_v23 }
 0x781   :  { %v5199_v21 = vpack.c.bf16 %v13865_v3, %v13865_v3  ;;  %v5246_v25 = vld [vmem:[#allocation2 + $0x38] sm:$0xf]  ;;  %v5247_v29 = vld [vmem:[#allocation2 + $0x40] sm:$0xf]  ;;  %v5245_v26 = vld [vmem:[#allocation2 + $0x30] sm:$0xf]  ;;  %v5238_v1 = vunpack.c.l.bf16 %v5234_v6  ;;  %v5239_v52 = vunpack.c.l.bf16 %v5235_v51  ;;  %v5248_v63 = vunpack.c.l.bf16 %v5244_v24  ;;  %6689 = vrot.lane.b32.xlu0 %v13865_v3, %s9873_s3 }
 0x782   :  { %v5250_v34 = vunpack.c.l.bf16 %v5246_v25  ;;  %v5251_v37 = vunpack.c.l.bf16 %v5247_v29  ;;  %v5249_v38 = vunpack.c.l.bf16 %v5245_v26  ;;  %v5288_v62 = vld [vmem:[#allocation2 + $0x4c8] sm:$0x3]  ;;  %v9001_v3 = vld [vmem:[#allocation2 + $0x250] sm:$0xf0]  ;;  %s6701_s8 = sshll.u32 %s9874_s7, 4  ;;  %s6703_s11 = sshll.u32 %s14222_s5, 4  ;;  %s6702_s8 = int_to_ptr.vmem [resolvable:$true] %s6701_s8  ;;  %s6704_s11 = int_to_ptr.hbm [resolvable:$true] %s6703_s11 }
 0x783   :  { %8852 = vmatmul.msk.bf16.vlgmr.msra.gmra.mxu0 %vm5149_vm5, %v5199_v21  ;;  %v13871_v43 = vunpack.c.l.bf16 %v5288_v62 }
 0x785   :  { %v5296_v59 = vperm.slane %v13871_v43, 0  ;;  %v13875_v51 = vsub.f32 1.0, %v13871_v43 }
 0x787   :  { %v5291_v29 = vperm.slane %v13875_v51, 0 }
 0x800   :  { %v5216_v7 = vpop.f32.mrf.mxu0 }
 0x801   :  { %v5221_v8 = vrot.slane %v5216_v7, 1  ;;  %v5222_v30 = vrot.slane %v5216_v7, 2  ;;  %v5223_v11 = vrot.slane %v5216_v7, 3  ;;  %v5224_v32 = vperm.slane %v5216_v7, 0 }
 0x803   :  { %v5225_v44 = vperm.slane %v5221_v8, 0  ;;  %v5226_v39 = vperm.slane %v5222_v30, 0  ;;  %v5227_v57 = vperm.slane %v5223_v11, 0  ;;  %v5240_v47 = vmul.f32 %v5236_v0, %v5224_v32  ;;  %v8859_v8 = vld [vmem:[#allocation2 + $0x48] sm:$0xf] }
 0x804   :  { %v9613_v30 = vld [vmem:[#allocation2 + $0x4c] sm:$0xf0] }
 0x805   :  { %v5241_v49 = vmul.f32 %v5237_v27, %v5225_v44  ;;  %v5242_v20 = vmul.f32 %v5238_v1, %v5226_v39  ;;  %v5243_v36 = vmul.f32 %v5239_v52, %v5227_v57  ;;  %v5252_v41 = vadd.f32 %v5248_v63, %v5240_v47  ;;  %v8867_v44 = vld [vmem:[#allocation2 + $0x68] sm:$0xf]  ;;  %v9615_v39 = vld [vmem:[#allocation2 + $0x6c] sm:$0xf0]  ;;  %v8871_v47 = vld [vmem:[#allocation2 + $0x78] sm:$0xf] }
 0x806   :  { %v8860_v32 = vor.u32 %v9613_v30, %v8859_v8  ;;  %v8868_v57 = vor.u32 %v9615_v39, %v8867_v44 }
 0x807   :  { %v5254_v42 = vadd.f32 %v5250_v34, %v5242_v20  ;;  %v5255_v45 = vadd.f32 %v5251_v37, %v5243_v36  ;;  %v5253_v31 = vadd.f32 %v5249_v38, %v5241_v49  ;;  %v5260_v48 = vmin.f32 %v5252_v41, 0.0  ;;  %v8863_v34 = vld [vmem:[#allocation2 + $0x58] sm:$0xf]  ;;  %v9614_v37 = vld [vmem:[#allocation2 + $0x5c] sm:$0xf0] }
 0x808   :  { %v5218_v46 = vpop.f32.mrf.mxu0  ;;  %vm5256_vm9 = vcmp.gt.f32.partialorder %v5252_v41, 0.0  ;;  %v8864_v38 = vor.u32 %v9614_v37, %v8863_v34  ;;  %v9616_v49 = vld [vmem:[#allocation2 + $0x7c] sm:$0xf0]  ;;  %v5313_v36 = vld [vmem:[#allocation2 + $0x88] sm:$0xf] }
 0x809   :  { %v5262_v50 = vmin.f32 %v5254_v42, 0.0  ;;  %v5263_v18 = vmin.f32 %v5255_v45, 0.0  ;;  %v5261_v28 = vmin.f32 %v5253_v31, 0.0  ;;  %v5264_v40 = vmul.f32 1.442695, %v5260_v48 }
 0x80a   :  { %vm5258_vm0 = vcmp.gt.f32.partialorder %v5254_v42, 0.0  ;;  %vm5259_vm3 = vcmp.gt.f32.partialorder %v5255_v45, 0.0  ;;  %vm5257_vm10 = vcmp.gt.f32.partialorder %v5253_v31, 0.0  ;;  %v8872_v20 = vor.u32 %v9616_v49, %v8871_v47  ;;  %v5320_v37 = vld [vmem:[#allocation2 + $0xc0] sm:$0xf] }
 0x80b   :  { %v5268_v56 = vmul.f32 1.442695, %v5262_v50  ;;  %v5270_v58 = vmul.f32 1.442695, %v5263_v18  ;;  %9725 = vpow2.f32 %v5264_v40  ;;  %v5266_v60 = vmul.f32 1.442695, %v5261_v28 }
 0x80c   :  { %v5328_v49 = vunpack.c.l.bf16 %v5320_v37 }
 0x80d   :  { %9727 = vpow2.f32 %v5268_v56 }
 0x80e   :  { %9729 = vpow2.f32 %v5270_v58 }
 0x80f   :  { %9731 = vpow2.f32 %v5266_v60 }
 0x811   :  { %v9726_v61 = vpop.eup %9725 }
 0x812   :  { %v8853_v55 = vadd.f32 -1.0, %v9726_v61 }
 0x813   :  { %v9728_v53 = vpop.eup %9727 }
 0x814   :  { %v9730_v54 = vpop.eup %9729  ;;  %v8855_v4 = vadd.f32 -1.0, %v9728_v53  ;;  %v5276_v5 = vmul.f32 1.6732632, %v8853_v55  ;;  %v13883_v53 = vperm.slane %v13871_v43, 1  ;;  %v13886_v55 = vperm.slane %v13875_v51, 1 }
 0x815   :  { %v9732_v9 = vpop.eup %9731  ;;  %v8856_v33 = vadd.f32 -1.0, %v9730_v54 }
 0x816   :  { %v5278_v15 = vmul.f32 1.6732632, %v8855_v4  ;;  %v8854_v17 = vadd.f32 -1.0, %v9732_v9  ;;  %v5280_v13 = vsel %vm5256_vm9, %v5252_v41, %v5276_v5  ;;  %v5321_v41 = vunpack.c.l.bf16 %v5313_v36 }
 0x817   :  { %v5279_v10 = vmul.f32 1.6732632, %v8856_v33  ;;  %v5284_v6 = vmul.f32 1.050701, %v5280_v13 }
 0x818   :  { %v5282_v2 = vsel %vm5258_vm0, %v5254_v42, %v5278_v15  ;;  %v5277_v12 = vmul.f32 1.6732632, %v8854_v17 }
 0x819   :  { %v5283_v14 = vsel %vm5259_vm3, %v5255_v45, %v5279_v10  ;;  %v5286_v19 = vmul.f32 1.050701, %v5282_v2  ;;  %v5297_v25 = vmul.f32 %v5296_v59, %v5284_v6  ;;  %v5292_v63 = vmul.f32 %v5291_v29, %v5284_v6 }
 0x81a   :  { %v5287_v16 = vmul.f32 1.050701, %v5283_v14  ;;  %v5281_v35 = vsel %vm5257_vm10, %v5253_v31, %v5277_v12  ;;  %v5314_v31 = vld [vmem:[#allocation2 + $0x90] sm:$0xf] }
 0x81b   :  { %v5299_v21 = vmul.f32 %v5296_v59, %v5286_v19  ;;  %v5285_v22 = vmul.f32 1.050701, %v5281_v35  ;;  %v5294_v7 = vmul.f32 %v5291_v29, %v5286_v19  ;;  %v5322_v50 = vunpack.c.l.bf16 %v5314_v31  ;;  %v5318_v35 = vld [vmem:[#allocation2 + $0xb0] sm:$0xf] }
 0x81c   :  { %v5300_v23 = vmul.f32 %v5296_v59, %v5287_v16  ;;  %v5295_v27 = vmul.f32 %v5291_v29, %v5287_v16 }
 0x81d   :  { %v5298_v0 = vmul.f32 %v5296_v59, %v5285_v22  ;;  %v5293_v52 = vmul.f32 %v5291_v29, %v5285_v22  ;;  %v5326_v22 = vunpack.c.l.bf16 %v5318_v35  ;;  %v5319_v29 = vld [vmem:[#allocation2 + $0xb8] sm:$0xf] }
 0x81e   :  { %v5304_v24 = vpack.c.bf16 %v5300_v23, %v5299_v21  ;;  %v5302_v1 = vpack.c.bf16 %v5295_v27, %v5294_v7  ;;  %v5317_v21 = vld [vmem:[#allocation2 + $0xa8] sm:$0xf]  ;;  %v5316_v23 = vld [vmem:[#allocation2 + $0xa0] sm:$0xf] }
 0x81f   :  { %v5303_v26 = vpack.c.bf16 %v5298_v0, %v5297_v25  ;;  %v5301_v11 = vpack.c.bf16 %v5293_v52, %v5292_v63  ;;  %v5315_v0 = vld [vmem:[#allocation2 + $0x98] sm:$0xf] }
 0x820   :  { %5365 = vmatpush.bf16.msra.mxu1 %v5304_v24  ;;  %v5325_v24 = vunpack.c.l.bf16 %v5317_v21  ;;  %v5323_v7 = vunpack.c.l.bf16 %v5315_v0 }
 0x824   :  { %5366 = vmatpush.bf16.msra.mxu1 %v5303_v26  ;;  %v5324_v26 = vunpack.c.l.bf16 %v5316_v23 }
 0x828   :  { %5367 = vmatpush.bf16.msra.mxu1 %v5302_v1  ;;  %v5327_v1 = vunpack.c.l.bf16 %v5319_v29 }
 0x82c   :  { %5368 = vmatpush.bf16.msra.mxu1 %v5301_v11 }
 0x82f   :  { %8873 = vmatmul.msk.bf16.vlgmr.msra.gmra.mxu1 %vm4573_vm1, %v8860_v32 }
 0x83f   :  { %8874 = vmatmul.msk.bf16.gmra.mxu1 %vm4573_vm1, %v8864_v38 }
 0x84f   :  { %8875 = vmatmul.msk.bf16.gmra.mxu1 %vm4573_vm1, %v8868_v57 }
 0x85f   :  { %8876 = vmatmul.msk.bf16.gmra.mxu1 %vm4573_vm1, %v8872_v20 }
 0x8ac   :  { %v5370_v42 = vpop.f32.mrf.mxu1 }
 0x8ad   :  { %v5371_v45 = vadd.f32 %v5370_v42, %v5321_v41 }
 0x8af   :  { %v5398_v46 = vmin.f32 %v5371_v45, 0.0  ;;  %vm5390_vm11 = vcmp.gt.f32.partialorder %v5371_v45, 0.0 }
 0x8b1   :  { %v5406_v48 = vmul.f32 1.442695, %v5398_v46 }
 0x8b3   :  { %9733 = vpow2.f32 %v5406_v48 }
 0x8b4   :  { %v5372_v18 = vpop.f32.mrf.mxu1 }
 0x8b5   :  { %v5373_v28 = vadd.f32 %v5372_v18, %v5322_v50 }
 0x8b7   :  { %v5399_v40 = vmin.f32 %v5373_v28, 0.0  ;;  %vm5391_vm1 = vcmp.gt.f32.partialorder %v5373_v28, 0.0 }
 0x8b9   :  { %v9734_v56 = vpop.eup %9733  ;;  %v5408_v58 = vmul.f32 1.442695, %v5399_v40 }
 0x8ba   :  { %v8877_v60 = vadd.f32 -1.0, %v9734_v56 }
 0x8bb   :  { %9735 = vpow2.f32 %v5408_v58 }
 0x8bc   :  { %v5430_v61 = vmul.f32 1.6732632, %v8877_v60  ;;  %v5375_v62 = vpop.f32.mrf.mxu1 }
 0x8bd   :  { %v5376_v30 = vadd.f32 %v5375_v62, %v5323_v7 }
 0x8be   :  { %v5438_v54 = vsel %vm5390_vm11, %v5371_v45, %v5430_v61 }
 0x8bf   :  { %v5446_v4 = vmul.f32 1.050701, %v5438_v54  ;;  %v5400_v39 = vmin.f32 %v5376_v30, 0.0  ;;  %vm5392_vm5 = vcmp.gt.f32.partialorder %v5376_v30, 0.0 }
 0x8c1   :  { %v9736_v9 = vpop.eup %9735  ;;  %v13889_v33 = vmul.f32 %v13883_v53, %v5446_v4  ;;  %v13892_v5 = vmul.f32 %v13886_v55, %v5446_v4  ;;  %v5410_v41 = vmul.f32 1.442695, %v5400_v39 }
 0x8c2   :  { %v8878_v15 = vadd.f32 -1.0, %v9736_v9 }
 0x8c4   :  { %v5431_v17 = vmul.f32 1.6732632, %v8878_v15  ;;  %v5377_v10 = vpop.f32.mrf.mxu1 }
 0x8c5   :  { %v5378_v63 = vadd.f32 %v5377_v10, %v5324_v26 }
 0x8c6   :  { %v5439_v59 = vsel %vm5391_vm1, %v5373_v28, %v5431_v17 }
 0x8c7   :  { %v5447_v2 = vmul.f32 1.050701, %v5439_v59  ;;  %v5401_v38 = vmin.f32 %v5378_v63, 0.0  ;;  %vm5393_vm4 = vcmp.gt.f32.partialorder %v5378_v63, 0.0 }
 0x8c9   :  { %v13895_v12 = vmul.f32 %v13883_v53, %v5447_v2  ;;  %v13898_v14 = vmul.f32 %v13886_v55, %v5447_v2  ;;  %v5412_v20 = vmul.f32 1.442695, %v5401_v38 }
 0x8cb   :  { %v5476_v19 = vpack.c.bf16 %v13895_v12, %v13889_v33  ;;  %v5472_v13 = vpack.c.bf16 %v13898_v14, %v13892_v5  ;;  %v8891_v12 = vld [vmem:[#allocation2 + $0xd8] sm:$0xf]  ;;  %v9622_v5 = vld [vmem:[#allocation2 + $0x11c] sm:$0xf0] }
 0x8cc   :  { %v5380_v16 = vpop.f32.mrf.mxu1 }
 0x8cd   :  { %v5381_v27 = vadd.f32 %v5380_v16, %v5325_v24 }
 0x8cf   :  { %v5402_v11 = vmin.f32 %v5381_v27, 0.0  ;;  %vm5394_vm14 = vcmp.gt.f32.partialorder %v5381_v27, 0.0 }
 0x8d1   :  { %v5414_v57 = vmul.f32 1.442695, %v5402_v11 }
 0x8d4   :  { %v5382_v6 = vpop.f32.mrf.mxu1 }
 0x8d5   :  { %v5383_v25 = vadd.f32 %v5382_v6, %v5326_v22 }
 0x8d7   :  { %v5403_v52 = vmin.f32 %v5383_v25, 0.0  ;;  %vm5395_vm13 = vcmp.gt.f32.partialorder %v5383_v25, 0.0 }
 0x8d9   :  { %v5416_v34 = vmul.f32 1.442695, %v5403_v52 }
 0x8db   :  { %9737 = vpow2.f32 %v5416_v34 }
 0x8dc   :  { %v5385_v8 = vpop.f32.mrf.mxu1 }
 0x8dd   :  { %v5386_v32 = vadd.f32 %v5385_v8, %v5327_v1 }
 0x8df   :  { %v5404_v44 = vmin.f32 %v5386_v32, 0.0  ;;  %vm5396_vm12 = vcmp.gt.f32.partialorder %v5386_v32, 0.0 }
 0x8e1   :  { %v5418_v47 = vmul.f32 1.442695, %v5404_v44  ;;  %v9738_v31 = vpop.eup %9737 }
 0x8e2   :  { %v8882_v28 = vadd.f32 -1.0, %v9738_v31 }
 0x8e3   :  { %9739 = vpow2.f32 %v5418_v47 }
 0x8e4   :  { %v5387_v36 = vpop.f32.mrf.mxu1  ;;  %9741 = vpow2.f32 %v5414_v57  ;;  %v5435_v62 = vmul.f32 1.6732632, %v8882_v28 }
 0x8e5   :  { %v5388_v42 = vadd.f32 %v5387_v36, %v5328_v49  ;;  %9743 = vpow2.f32 %v5412_v20  ;;  %v8887_v20 = vld [vmem:[#allocation2 + $0xc8] sm:$0xf]  ;;  %v9617_v36 = vld [vmem:[#allocation2 + $0xcc] sm:$0xf0] }
 0x8e6   :  { %9745 = vpow2.f32 %v5410_v41  ;;  %v5443_v59 = vsel %vm5395_vm13, %v5383_v25, %v5435_v62  ;;  %v8888_v33 = vor.u32 %v9617_v36, %v8887_v20 }
 0x8e7   :  { %v5405_v45 = vmin.f32 %v5388_v42, 0.0  ;;  %vm5397_vm15 = vcmp.gt.f32.partialorder %v5388_v42, 0.0  ;;  %v5451_v23 = vmul.f32 1.050701, %v5443_v59 }
 0x8e9   :  { %v9740_v46 = vpop.eup %9739  ;;  %v5420_v48 = vmul.f32 1.442695, %v5405_v45  ;;  %v5469_v25 = vmul.f32 %v13883_v53, %v5451_v23  ;;  %v5460_v44 = vmul.f32 %v13886_v55, %v5451_v23  ;;  %v9619_v45 = vld [vmem:[#allocation2 + $0xec] sm:$0xf0] }
 0x8ea   :  { %v8883_v50 = vadd.f32 -1.0, %v9740_v46  ;;  %v9742_v18 = vpop.eup %9741  ;;  %v8899_v46 = vld [vmem:[#allocation2 + $0xf8] sm:$0xf] }
 0x8eb   :  { %9747 = vpow2.f32 %v5420_v48  ;;  %v9744_v40 = vpop.eup %9743  ;;  %v8881_v56 = vadd.f32 -1.0, %v9742_v18  ;;  %v9621_v18 = vld [vmem:[#allocation2 + $0x10c] sm:$0xf0] }
 0x8ec   :  { %v5436_v58 = vmul.f32 1.6732632, %v8883_v50  ;;  %v9746_v60 = vpop.eup %9745  ;;  %v8880_v61 = vadd.f32 -1.0, %v9744_v40  ;;  %v8903_v50 = vld [vmem:[#allocation2 + $0x108] sm:$0xf] }
 0x8ed   :  { %v8879_v4 = vadd.f32 -1.0, %v9746_v60  ;;  %v5434_v9 = vmul.f32 1.6732632, %v8881_v56  ;;  %v8904_v28 = vor.u32 %v9621_v18, %v8903_v50  ;;  %v8907_v40 = vld [vmem:[#allocation2 + $0x118] sm:$0xf] }
 0x8ee   :  { %v5444_v17 = vsel %vm5396_vm12, %v5386_v32, %v5436_v58  ;;  %v5433_v10 = vmul.f32 1.6732632, %v8880_v61  ;;  %v8908_v14 = vor.u32 %v9622_v5, %v8907_v40  ;;  %v9623_v56 = vld [vmem:[#allocation2 + $0x12c] sm:$0xf0]  ;;  %v8915_v60 = vld [vmem:[#allocation2 + $0x138] sm:$0xf] }
 0x8ef   :  { %v5452_v16 = vmul.f32 1.050701, %v5444_v17  ;;  %v5432_v35 = vmul.f32 1.6732632, %v8879_v4  ;;  %v5442_v21 = vsel %vm5394_vm14, %v5381_v27, %v5434_v9  ;;  %v9624_v61 = vld [vmem:[#allocation2 + $0x13c] sm:$0xf0] }
 0x8f0   :  { %v5441_v24 = vsel %vm5393_vm4, %v5378_v63, %v5433_v10  ;;  %v5450_v0 = vmul.f32 1.050701, %v5442_v21  ;;  %v8916_v62 = vor.u32 %v9624_v61, %v8915_v60  ;;  %v5497_v17 = vld [vmem:[#allocation2 + $0x150] sm:$0xf]  ;;  %v5498_v21 = vld [vmem:[#allocation2 + $0x158] sm:$0xf] }
 0x8f1   :  { %v9748_v54 = vpop.eup %9747  ;;  %v5470_v29 = vmul.f32 %v13883_v53, %v5452_v16  ;;  %v5440_v7 = vsel %vm5392_vm5, %v5376_v30, %v5432_v35  ;;  %v5449_v52 = vmul.f32 1.050701, %v5441_v24  ;;  %v5461_v30 = vmul.f32 %v13886_v55, %v5452_v16 }
 0x8f2   :  { %v8884_v15 = vadd.f32 -1.0, %v9748_v54  ;;  %v5448_v8 = vmul.f32 1.050701, %v5440_v7  ;;  %v5468_v27 = vmul.f32 %v13883_v53, %v5450_v0  ;;  %v5459_v39 = vmul.f32 %v13886_v55, %v5450_v0  ;;  %v5496_v54 = vld [vmem:[#allocation2 + $0x148] sm:$0xf] }
 0x8f3   :  { %v5467_v32 = vmul.f32 %v13883_v53, %v5449_v52  ;;  %v5458_v47 = vmul.f32 %v13886_v55, %v5449_v52  ;;  %v5512_v4 = vunpack.c.l.bf16 %v5496_v54  ;;  %v5514_v24 = vunpack.c.l.bf16 %v5498_v21  ;;  %v5502_v54 = vld [vmem:[#allocation2 + $0x178] sm:$0xf] }
 0x8f4   :  { %v5437_v2 = vmul.f32 1.6732632, %v8884_v15  ;;  %v5478_v11 = vpack.c.bf16 %v5469_v25, %v5468_v27  ;;  %v5466_v63 = vmul.f32 %v13883_v53, %v5448_v8  ;;  %v5474_v57 = vpack.c.bf16 %v5460_v44, %v5459_v39 }
 0x8f5   :  { %v13923_v7 = vperm.slane %v13871_v43, 2 }
 0x8f6   :  { %v5445_v22 = vsel %vm5397_vm15, %v5388_v42, %v5437_v2  ;;  %v5477_v34 = vpack.c.bf16 %v5467_v32, %v5466_v63  ;;  %v8895_v42 = vld [vmem:[#allocation2 + $0xe8] sm:$0xf]  ;;  %v5513_v2 = vunpack.c.l.bf16 %v5497_v17 }
 0x8f7   :  { %v5453_v6 = vmul.f32 1.050701, %v5445_v22  ;;  %v8896_v31 = vor.u32 %v9619_v45, %v8895_v42 }
 0x8f9   :  { %v5471_v26 = vmul.f32 %v13883_v53, %v5453_v6  ;;  %v5462_v37 = vmul.f32 %v13886_v55, %v5453_v6  ;;  %v5457_v53 = vmul.f32 %v13886_v55, %v5448_v8  ;;  %v9620_v55 = vld [vmem:[#allocation2 + $0xfc] sm:$0xf0] }
 0x8fa   :  { %v8900_v48 = vor.u32 %v9620_v55, %v8899_v46  ;;  %v5499_v8 = vld [vmem:[#allocation2 + $0x160] sm:$0xf] }
 0x8fb   :  { %v5479_v1 = vpack.c.bf16 %v5471_v26, %v5470_v29  ;;  %v5475_v38 = vpack.c.bf16 %v5462_v37, %v5461_v30  ;;  %v5473_v49 = vpack.c.bf16 %v5458_v47, %v5457_v53 }
 0x8fd   :  { %5576 = vmatpush.bf16.msra.mxu2 %v5479_v1  ;;  %v13926_v1 = vperm.slane %v13875_v51, 2 }
 0x901   :  { %5577 = vmatpush.bf16.msra.mxu2 %v5478_v11 }
 0x905   :  { %5578 = vmatpush.bf16.msra.mxu2 %v5477_v34  ;;  %v5515_v34 = vunpack.c.l.bf16 %v5499_v8 }
 0x909   :  { %5579 = vmatpush.bf16.msra.mxu2 %v5476_v19  ;;  %v9618_v19 = vld [vmem:[#allocation2 + $0xdc] sm:$0xf0] }
 0x90a   :  { %v8892_v41 = vor.u32 %v9618_v19, %v8891_v12 }
 0x90d   :  { %5580 = vmatpush.bf16.msra.mxu2 %v5475_v38 }
 0x911   :  { %5581 = vmatpush.bf16.msra.mxu2 %v5474_v57  ;;  %v5500_v57 = vld [vmem:[#allocation2 + $0x168] sm:$0xf] }
 0x912   :  { %v5516_v36 = vunpack.c.l.bf16 %v5500_v57 }
 0x915   :  { %5582 = vmatpush.bf16.msra.mxu2 %v5473_v49 }
 0x919   :  { %5583 = vmatpush.bf16.msra.mxu2 %v5472_v13  ;;  %v8911_v13 = vld [vmem:[#allocation2 + $0x128] sm:$0xf] }
 0x91a   :  { %v8912_v58 = vor.u32 %v9623_v56, %v8911_v13 }
 0x91c   :  { %5584 = vmatmul.bf16.vlgmr.msra.gmra.mxu2 %v8888_v33 }
 0x92c   :  { %5589 = vmatmul.bf16.gmra.mxu2 %v8892_v41 }
 0x93c   :  { %5594 = vmatmul.bf16.gmra.mxu2 %v8896_v31 }
 0x94c   :  { %5599 = vmatmul.bf16.gmra.mxu2 %v8900_v48  ;;  %v5501_v48 = vld [vmem:[#allocation2 + $0x170] sm:$0xf] }
 0x94d   :  { %v5517_v5 = vunpack.c.l.bf16 %v5501_v48 }
 0x95c   :  { %5604 = vmatmul.bf16.gmra.mxu2 %v8904_v28 }
 0x96c   :  { %5609 = vmatmul.bf16.gmra.mxu2 %v8908_v14 }
 0x97c   :  { %5614 = vmatmul.bf16.gmra.mxu2 %v8912_v58 }
 0x98c   :  { %5619 = vmatmul.bf16.gmra.mxu2 %v8916_v62 }
 0x99f   :  { %v5585_v9 = vpop.f32.mrf.mxu2 }
 0x9a0   :  { %v5586_v15 = vadd.f32 %v5585_v9, %v5512_v4 }
 0x9a2   :  { %v5641_v10 = vmin.f32 %v5586_v15, 0.0  ;;  %vm5625_vm6 = vcmp.gt.f32.partialorder %v5586_v15, 0.0 }
 0x9a4   :  { %v5657_v59 = vmul.f32 1.442695, %v5641_v10  ;;  %v5518_v10 = vunpack.c.l.bf16 %v5502_v54 }
 0x9a6   :  { %9749 = vpow2.f32 %v5657_v59 }
 0x9a7   :  { %v5587_v16 = vpop.f32.mrf.mxu2 }
 0x9a8   :  { %v5588_v35 = vadd.f32 %v5587_v16, %v5513_v2 }
 0x9aa   :  { %v5642_v22 = vmin.f32 %v5588_v35, 0.0  ;;  %vm5626_vm7 = vcmp.gt.f32.partialorder %v5588_v35, 0.0 }
 0x9ac   :  { %v9750_v23 = vpop.eup %9749  ;;  %v5659_v6 = vmul.f32 1.442695, %v5642_v22 }
 0x9ad   :  { %v8917_v0 = vadd.f32 -1.0, %v9750_v23 }
 0x9ae   :  { %9751 = vpow2.f32 %v5659_v6 }
 0x9af   :  { %v5705_v29 = vmul.f32 1.6732632, %v8917_v0  ;;  %v5590_v26 = vpop.f32.mrf.mxu2  ;;  %v5503_v0 = vld [vmem:[#allocation2 + $0x180] sm:$0xf] }
 0x9b0   :  { %v5591_v25 = vadd.f32 %v5590_v26, %v5514_v24  ;;  %v5519_v8 = vunpack.c.l.bf16 %v5503_v0 }
 0x9b1   :  { %v5721_v52 = vsel %vm5625_vm6, %v5586_v15, %v5705_v29 }
 0x9b2   :  { %v5737_v27 = vmul.f32 1.050701, %v5721_v52  ;;  %v5643_v11 = vmin.f32 %v5591_v25, 0.0  ;;  %vm5627_vm8 = vcmp.gt.f32.partialorder %v5591_v25, 0.0 }
 0x9b4   :  { %v9752_v32 = vpop.eup %9751  ;;  %v5661_v63 = vmul.f32 1.442695, %v5643_v11  ;;  %v5754_v37 = vmul.f32 %v13926_v1, %v5737_v27  ;;  %v5771_v30 = vmul.f32 %v13923_v7, %v5737_v27 }
 0x9b5   :  { %v8918_v38 = vadd.f32 -1.0, %v9752_v32 }
 0x9b6   :  { %9753 = vpow2.f32 %v5661_v63 }
 0x9b7   :  { %v5706_v43 = vmul.f32 1.6732632, %v8918_v38  ;;  %v5592_v44 = vpop.f32.mrf.mxu2  ;;  %v5504_v38 = vld [vmem:[#allocation2 + $0x188] sm:$0xf] }
 0x9b8   :  { %v5593_v51 = vadd.f32 %v5592_v44, %v5515_v34  ;;  %v5520_v57 = vunpack.c.l.bf16 %v5504_v38  ;;  %v5507_v38 = vld [vmem:[#allocation2 + $0x1a0] sm:$0xf] }
 0x9b9   :  { %v5722_v39 = vsel %vm5626_vm7, %v5588_v35, %v5706_v43 }
 0x9ba   :  { %v5738_v47 = vmul.f32 1.050701, %v5722_v39  ;;  %v5644_v53 = vmin.f32 %v5593_v51, 0.0  ;;  %vm5628_vm0 = vcmp.gt.f32.partialorder %v5593_v51, 0.0 }
 0x9bc   :  { %v9754_v49 = vpop.eup %9753  ;;  %v5663_v20 = vmul.f32 1.442695, %v5644_v53  ;;  %v5755_v33 = vmul.f32 %v13926_v1, %v5738_v47  ;;  %v5772_v12 = vmul.f32 %v13923_v7, %v5738_v47 }
 0x9bd   :  { %v8919_v19 = vadd.f32 -1.0, %v9754_v49 }
 0x9be   :  { %9755 = vpow2.f32 %v5663_v20  ;;  %v13932_v41 = vpack.c.bf16 %v5755_v33, %v5754_v37  ;;  %v13934_v42 = vpack.c.bf16 %v5772_v12, %v5771_v30 }
 0x9bf   :  { %v5707_v45 = vmul.f32 1.6732632, %v8919_v19  ;;  %v5595_v31 = vpop.f32.mrf.mxu2 }
 0x9c0   :  { %v5596_v46 = vadd.f32 %v5595_v31, %v5516_v36  ;;  %v5505_v31 = vld [vmem:[#allocation2 + $0x190] sm:$0xf] }
 0x9c1   :  { %v5723_v55 = vsel %vm5627_vm8, %v5591_v25, %v5707_v45 }
 0x9c2   :  { %v5739_v50 = vmul.f32 1.050701, %v5723_v55  ;;  %v5645_v18 = vmin.f32 %v5596_v46, 0.0  ;;  %vm5629_vm3 = vcmp.gt.f32.partialorder %v5596_v46, 0.0 }
 0x9c4   :  { %v9756_v28 = vpop.eup %9755  ;;  %v5665_v40 = vmul.f32 1.442695, %v5645_v18  ;;  %v5756_v14 = vmul.f32 %v13926_v1, %v5739_v50  ;;  %v5773_v13 = vmul.f32 %v13923_v7, %v5739_v50  ;;  %v5521_v18 = vunpack.c.l.bf16 %v5505_v31 }
 0x9c5   :  { %v8920_v56 = vadd.f32 -1.0, %v9756_v28 }
 0x9c6   :  { %9757 = vpow2.f32 %v5665_v40 }
 0x9c7   :  { %v5708_v58 = vmul.f32 1.6732632, %v8920_v56  ;;  %v5597_v60 = vpop.f32.mrf.mxu2 }
 0x9c8   :  { %v5598_v61 = vadd.f32 %v5597_v60, %v5517_v5 }
 0x9c9   :  { %v5724_v62 = vsel %vm5628_vm0, %v5593_v51, %v5708_v58 }
 0x9ca   :  { %v5740_v4 = vmul.f32 1.050701, %v5724_v62  ;;  %v5646_v9 = vmin.f32 %v5598_v61, 0.0  ;;  %vm5630_vm9 = vcmp.gt.f32.partialorder %v5598_v61, 0.0 }
 0x9cc   :  { %v9758_v15 = vpop.eup %9757  ;;  %v5667_v17 = vmul.f32 1.442695, %v5646_v9  ;;  %v5757_v59 = vmul.f32 %v13926_v1, %v5740_v4  ;;  %v5774_v2 = vmul.f32 %v13923_v7, %v5740_v4 }
 0x9cd   :  { %v8921_v16 = vadd.f32 -1.0, %v9758_v15 }
 0x9ce   :  { %9759 = vpow2.f32 %v5667_v17  ;;  %v13940_v35 = vpack.c.bf16 %v5757_v59, %v5756_v14  ;;  %v13942_v21 = vpack.c.bf16 %v5774_v2, %v5773_v13 }
 0x9cf   :  { %v5709_v22 = vmul.f32 1.6732632, %v8921_v16  ;;  %v5600_v23 = vpop.f32.mrf.mxu2 }
 0x9d0   :  { %v5601_v6 = vadd.f32 %v5600_v23, %v5518_v10 }
 0x9d1   :  { %v5725_v24 = vsel %vm5629_vm3, %v5596_v46, %v5709_v22 }
 0x9d2   :  { %v5741_v29 = vmul.f32 1.050701, %v5725_v24  ;;  %v5647_v26 = vmin.f32 %v5601_v6, 0.0  ;;  %vm5631_vm10 = vcmp.gt.f32.partialorder %v5601_v6, 0.0 }
 0x9d4   :  { %v9760_v25 = vpop.eup %9759  ;;  %v5669_v52 = vmul.f32 1.442695, %v5647_v26  ;;  %v5758_v27 = vmul.f32 %v13926_v1, %v5741_v29  ;;  %v5775_v11 = vmul.f32 %v13923_v7, %v5741_v29 }
 0x9d5   :  { %v8922_v32 = vadd.f32 -1.0, %v9760_v25 }
 0x9d6   :  { %9761 = vpow2.f32 %v5669_v52 }
 0x9d7   :  { %v5710_v63 = vmul.f32 1.6732632, %v8922_v32  ;;  %v5602_v34 = vpop.f32.mrf.mxu2 }
 0x9d8   :  { %v5603_v37 = vadd.f32 %v5602_v34, %v5519_v8  ;;  %v5509_v34 = vld [vmem:[#allocation2 + $0x1b0] sm:$0xf] }
 0x9d9   :  { %v5726_v30 = vsel %vm5630_vm9, %v5598_v61, %v5710_v63 }
 0x9da   :  { %v5742_v43 = vmul.f32 1.050701, %v5726_v30  ;;  %v5648_v44 = vmin.f32 %v5603_v37, 0.0  ;;  %vm5632_vm11 = vcmp.gt.f32.partialorder %v5603_v37, 0.0  ;;  %v5525_v30 = vunpack.c.l.bf16 %v5509_v34 }
 0x9dc   :  { %v9762_v51 = vpop.eup %9761  ;;  %v5671_v39 = vmul.f32 1.442695, %v5648_v44  ;;  %v5759_v47 = vmul.f32 %v13926_v1, %v5742_v43  ;;  %v5776_v53 = vmul.f32 %v13923_v7, %v5742_v43 }
 0x9dd   :  { %v8923_v49 = vadd.f32 -1.0, %v9762_v51  ;;  %v5506_v51 = vld [vmem:[#allocation2 + $0x198] sm:$0xf] }
 0x9de   :  { %9763 = vpow2.f32 %v5671_v39  ;;  %v13948_v20 = vpack.c.bf16 %v5759_v47, %v5758_v27  ;;  %v13950_v36 = vpack.c.bf16 %v5776_v53, %v5775_v11  ;;  %v5523_v47 = vunpack.c.l.bf16 %v5507_v38 }
 0x9df   :  { %v5711_v33 = vmul.f32 1.6732632, %v8923_v49  ;;  %v5605_v12 = vpop.f32.mrf.mxu2  ;;  %v5522_v49 = vunpack.c.l.bf16 %v5506_v51 }
 0x9e0   :  { %v5606_v19 = vadd.f32 %v5605_v12, %v5520_v57  ;;  %v5510_v57 = vld [vmem:[#allocation2 + $0x1b8] sm:$0xf] }
 0x9e1   :  { %v5727_v45 = vsel %vm5631_vm10, %v5601_v6, %v5711_v33  ;;  %v5526_v33 = vunpack.c.l.bf16 %v5510_v57 }
 0x9e2   :  { %v5743_v46 = vmul.f32 1.050701, %v5727_v45  ;;  %v5649_v55 = vmin.f32 %v5606_v19, 0.0  ;;  %vm5633_vm1 = vcmp.gt.f32.partialorder %v5606_v19, 0.0 }
 0x9e4   :  { %v9764_v48 = vpop.eup %9763  ;;  %v5673_v50 = vmul.f32 1.442695, %v5649_v55  ;;  %v5760_v28 = vmul.f32 %v13926_v1, %v5743_v46  ;;  %v5777_v40 = vmul.f32 %v13923_v7, %v5743_v46 }
 0x9e5   :  { %v8924_v5 = vadd.f32 -1.0, %v9764_v48 }
 0x9e6   :  { %9765 = vpow2.f32 %v5673_v50  ;;  %v5511_v50 = vld [vmem:[#allocation2 + $0x1c0] sm:$0xf] }
 0x9e7   :  { %v5712_v14 = vmul.f32 1.6732632, %v8924_v5  ;;  %v5607_v13 = vpop.f32.mrf.mxu2 }
 0x9e8   :  { %v5608_v56 = vadd.f32 %v5607_v13, %v5521_v18  ;;  %v5527_v13 = vunpack.c.l.bf16 %v5511_v50 }
 0x9e9   :  { %v5728_v58 = vsel %vm5632_vm11, %v5603_v37, %v5712_v14  ;;  %v5508_v37 = vld [vmem:[#allocation2 + $0x1a8] sm:$0xf] }
 0x9ea   :  { %v5744_v60 = vmul.f32 1.050701, %v5728_v58  ;;  %v5650_v61 = vmin.f32 %v5608_v56, 0.0  ;;  %vm5634_vm12 = vcmp.gt.f32.partialorder %v5608_v56, 0.0  ;;  %v5524_v43 = vunpack.c.l.bf16 %v5508_v37 }
 0x9ec   :  { %v9766_v62 = vpop.eup %9765  ;;  %v5675_v54 = vmul.f32 1.442695, %v5650_v61  ;;  %v5761_v4 = vmul.f32 %v13926_v1, %v5744_v60  ;;  %v5778_v9 = vmul.f32 %v13923_v7, %v5744_v60 }
 0x9ed   :  { %v8925_v15 = vadd.f32 -1.0, %v9766_v62 }
 0x9ee   :  { %9767 = vpow2.f32 %v5675_v54  ;;  %v13956_v17 = vpack.c.bf16 %v5761_v4, %v5760_v28  ;;  %v13958_v10 = vpack.c.bf16 %v5778_v9, %v5777_v40 }
 0x9ef   :  { %v5713_v59 = vmul.f32 1.6732632, %v8925_v15  ;;  %v5610_v2 = vpop.f32.mrf.mxu2 }
 0x9f0   :  { %v5611_v46 = vadd.f32 %v5610_v2, %v5522_v49 }
 0x9f1   :  { %v5729_v16 = vsel %vm5633_vm1, %v5606_v19, %v5713_v59 }
 0x9f2   :  { %v5745_v22 = vmul.f32 1.050701, %v5729_v16  ;;  %v5651_v5 = vmin.f32 %v5611_v46, 0.0  ;;  %vm5635_vm6 = vcmp.gt.f32.partialorder %v5611_v46, 0.0 }
 0x9f4   :  { %v9768_v23 = vpop.eup %9767  ;;  %v5762_v6 = vmul.f32 %v13926_v1, %v5745_v22  ;;  %v5779_v24 = vmul.f32 %v13923_v7, %v5745_v22  ;;  %v5677_v60 = vmul.f32 1.442695, %v5651_v5 }
 0x9f5   :  { %v8926_v0 = vadd.f32 -1.0, %v9768_v23 }
 0x9f7   :  { %v5714_v29 = vmul.f32 1.6732632, %v8926_v0  ;;  %v5612_v26 = vpop.f32.mrf.mxu2 }
 0x9f8   :  { %v5613_v19 = vadd.f32 %v5612_v26, %v5523_v47 }
 0x9f9   :  { %v5730_v25 = vsel %vm5634_vm12, %v5608_v56, %v5714_v29 }
 0x9fa   :  { %v5746_v52 = vmul.f32 1.050701, %v5730_v25  ;;  %v5652_v18 = vmin.f32 %v5613_v19, 0.0  ;;  %vm5636_vm5 = vcmp.gt.f32.partialorder %v5613_v19, 0.0 }
 0x9fc   :  { %v5763_v8 = vmul.f32 %v13926_v1, %v5746_v52  ;;  %v5780_v27 = vmul.f32 %v13923_v7, %v5746_v52  ;;  %v5679_v56 = vmul.f32 1.442695, %v5652_v18 }
 0x9fe   :  { %v13964_v11 = vpack.c.bf16 %v5763_v8, %v5762_v6  ;;  %v13966_v32 = vpack.c.bf16 %v5780_v27, %v5779_v24 }
 0x9ff   :  { %v5615_v63 = vpop.f32.mrf.mxu2 }
 0xa00   :  { %v5616_v53 = vadd.f32 %v5615_v63, %v5524_v43 }
 0xa02   :  { %v5653_v45 = vmin.f32 %v5616_v53, 0.0  ;;  %vm5637_vm15 = vcmp.gt.f32.partialorder %v5616_v53, 0.0 }
 0xa04   :  { %v5681_v40 = vmul.f32 1.442695, %v5653_v45 }
 0xa07   :  { %v5617_v44 = vpop.f32.mrf.mxu2 }
 0xa08   :  { %v5618_v39 = vadd.f32 %v5617_v44, %v5525_v30 }
 0xa0a   :  { %v5654_v12 = vmin.f32 %v5618_v39, 0.0  ;;  %vm5638_vm14 = vcmp.gt.f32.partialorder %v5618_v39, 0.0 }
 0xa0c   :  { %v5683_v48 = vmul.f32 1.442695, %v5654_v12 }
 0xa0e   :  { %9769 = vpow2.f32 %v5683_v48 }
 0xa0f   :  { %v5620_v31 = vpop.f32.mrf.mxu2 }
 0xa10   :  { %v5621_v55 = vadd.f32 %v5620_v31, %v5526_v33 }
 0xa12   :  { %v5655_v28 = vmin.f32 %v5621_v55, 0.0  ;;  %vm5639_vm13 = vcmp.gt.f32.partialorder %v5621_v55, 0.0 }
 0xa14   :  { %v5685_v14 = vmul.f32 1.442695, %v5655_v28  ;;  %v9770_v54 = vpop.eup %9769 }
 0xa15   :  { %v8930_v2 = vadd.f32 -1.0, %v9770_v54 }
 0xa16   :  { %9771 = vpow2.f32 %v5685_v14 }
 0xa17   :  { %9773 = vpow2.f32 %v5681_v40  ;;  %v5622_v58 = vpop.f32.mrf.mxu2  ;;  %v5718_v0 = vmul.f32 1.6732632, %v8930_v2  ;;  %v9627_v2 = vld [vmem:[#allocation2 + $0x1dc] sm:$0xf] }
 0xa18   :  { %v5623_v61 = vadd.f32 %v5622_v58, %v5527_v13  ;;  %9775 = vpow2.f32 %v5679_v56 }
 0xa19   :  { %9777 = vpow2.f32 %v5677_v60  ;;  %v5734_v63 = vsel %vm5638_vm14, %v5618_v39, %v5718_v0  ;;  %v8991_v0 = vld [vmem:[#allocation2 + $0x238] sm:$0xf] }
 0xa1a   :  { %v5656_v62 = vmin.f32 %v5623_v61, 0.0  ;;  %vm5640_vm4 = vcmp.gt.f32.partialorder %v5623_v61, 0.0  ;;  %v5750_v44 = vmul.f32 1.050701, %v5734_v63  ;;  %v8999_v63 = vld [vmem:[#allocation2 + $0x248] sm:$0xf] }
 0xa1c   :  { %v9772_v4 = vpop.eup %9771  ;;  %v5687_v9 = vmul.f32 1.442695, %v5656_v62  ;;  %v5767_v48 = vmul.f32 %v13926_v1, %v5750_v44  ;;  %v5784_v50 = vmul.f32 %v13923_v7, %v5750_v44  ;;  %v9625_v62 = vld [vmem:[#allocation2 + $0x1cc] sm:$0xf]  ;;  %v9007_v44 = vld [vmem:[#allocation2 + $0x258] sm:$0xf] }
 0xa1d   :  { %v9774_v15 = vpop.eup %9773  ;;  %v8931_v59 = vadd.f32 -1.0, %v9772_v4 }
 0xa1e   :  { %9779 = vpow2.f32 %v5687_v9  ;;  %v9776_v16 = vpop.eup %9775  ;;  %v8929_v22 = vadd.f32 -1.0, %v9774_v15  ;;  %v9628_v9 = vld [vmem:[#allocation2 + $0x1dc] sm:$0xf0]  ;;  %v8983_v15 = vld [vmem:[#allocation2 + $0x228] sm:$0xf] }
 0xa1f   :  { %v5719_v23 = vmul.f32 1.6732632, %v8931_v59  ;;  %v9778_v6 = vpop.eup %9777  ;;  %v8928_v24 = vadd.f32 -1.0, %v9776_v16  ;;  %v9638_v59 = vld [vmem:[#allocation2 + $0x22c] sm:$0xf0] }
 0xa20   :  { %v5717_v26 = vmul.f32 1.6732632, %v8929_v22  ;;  %v8927_v25 = vadd.f32 -1.0, %v9778_v6  ;;  %v8945_v16 = vld [vmem:[#allocation2 + $0x1e0] sm:$0xf0] }
 0xa21   :  { %v5735_v52 = vsel %vm5639_vm13, %v5621_v55, %v5719_v23  ;;  %v5716_v27 = vmul.f32 1.6732632, %v8928_v24  ;;  %v8984_v23 = vor.u32 %v9638_v59, %v8983_v15  ;;  %v8951_v6 = vld [vmem:[#allocation2 + $0x1e8] sm:$0xf]  ;;  %v9630_v24 = vld [vmem:[#allocation2 + $0x1ec] sm:$0xf0] }
 0xa22   :  { %v5733_v37 = vsel %vm5637_vm15, %v5616_v53, %v5717_v26  ;;  %v5751_v30 = vmul.f32 1.050701, %v5735_v52  ;;  %v5715_v38 = vmul.f32 1.6732632, %v8927_v25  ;;  %v8953_v26 = vld [vmem:[#allocation2 + $0x1f0] sm:$0xf0]  ;;  %v8952_v25 = vor.u32 %v9630_v24, %v8951_v6 }
 0xa23   :  { %v5732_v57 = vsel %vm5636_vm5, %v5613_v19, %v5716_v27  ;;  %v5749_v47 = vmul.f32 1.050701, %v5733_v37  ;;  %v9632_v27 = vld [vmem:[#allocation2 + $0x1fc] sm:$0xf0]  ;;  %v9653_v59 = vld [vmem:[#allocation2 + $0x2ac] sm:$0xf] }
 0xa24   :  { %v9780_v29 = vpop.eup %9779  ;;  %v5768_v49 = vmul.f32 %v13926_v1, %v5751_v30  ;;  %v5785_v12 = vmul.f32 %v13923_v7, %v5751_v30  ;;  %v5731_v45 = vsel %vm5635_vm6, %v5611_v46, %v5715_v38  ;;  %v5748_v53 = vmul.f32 1.050701, %v5732_v57  ;;  %v9633_v57 = vld [vmem:[#allocation2 + $0x20c] sm:$0xf]  ;;  %v9652_v15 = vld [vmem:[#allocation2 + $0x29c] sm:$0xf0] }
 0xa25   :  { %v8932_v8 = vadd.f32 -1.0, %v9780_v29  ;;  %v5747_v18 = vmul.f32 1.050701, %v5731_v45  ;;  %v5766_v19 = vmul.f32 %v13926_v1, %v5749_v47  ;;  %v5783_v28 = vmul.f32 %v13923_v7, %v5749_v47  ;;  %v9640_v29 = vld [vmem:[#allocation2 + $0x23c] sm:$0xf0] }
 0xa26   :  { %v5765_v5 = vmul.f32 %v13926_v1, %v5748_v53  ;;  %v5782_v46 = vmul.f32 %v13923_v7, %v5748_v53  ;;  %v8992_v52 = vor.u32 %v9640_v29, %v8991_v0  ;;  %v8969_v47 = vld [vmem:[#allocation2 + $0x210] sm:$0xf0]  ;;  %v9646_v45 = vld [vmem:[#allocation2 + $0x26c] sm:$0xf0]  ;;  %v9647_v53 = vld [vmem:[#allocation2 + $0x27c] sm:$0xf] }
 0xa27   :  { %v5720_v34 = vmul.f32 1.6732632, %v8932_v8  ;;  %v5793_v40 = vpack.c.bf16 %v5767_v48, %v5766_v19  ;;  %v5801_v14 = vpack.c.bf16 %v5784_v50, %v5783_v28  ;;  %v5764_v13 = vmul.f32 %v13926_v1, %v5747_v18  ;;  %v8977_v48 = vld [vmem:[#allocation2 + $0x220] sm:$0xf0]  ;;  %v9023_v28 = vld [vmem:[#allocation2 + $0x278] sm:$0xf] }
 0xa28   :  { %v5781_v56 = vmul.f32 %v13923_v7, %v5747_v18 }
 0xa29   :  { %v5736_v43 = vsel %vm5640_vm4, %v5623_v61, %v5720_v34  ;;  %v5792_v58 = vpack.c.bf16 %v5765_v5, %v5764_v13  ;;  %v9636_v61 = vld [vmem:[#allocation2 + $0x21c] sm:$0xf0]  ;;  %v9631_v34 = vld [vmem:[#allocation2 + $0x1fc] sm:$0xf]  ;;  %v9649_v5 = vld [vmem:[#allocation2 + $0x28c] sm:$0xf] }
 0xa2a   :  { %v5752_v51 = vmul.f32 1.050701, %v5736_v43  ;;  %v5800_v60 = vpack.c.bf16 %v5782_v46, %v5781_v56  ;;  %v9634_v43 = vld [vmem:[#allocation2 + $0x20c] sm:$0xf0]  ;;  %v9637_v46 = vld [vmem:[#allocation2 + $0x22c] sm:$0xf] }
 0xa2b   :  { %v8985_v13 = vld [vmem:[#allocation2 + $0x230] sm:$0xf0] }
 0xa2c   :  { %v5769_v33 = vmul.f32 %v13926_v1, %v5752_v51  ;;  %v5786_v39 = vmul.f32 %v13923_v7, %v5752_v51  ;;  %v8935_v7 = vld [vmem:[#allocation2 + $0x1c8] sm:$0xf]  ;;  %v9626_v1 = vld [vmem:[#allocation2 + $0x1cc] sm:$0xf0]  ;;  %v9644_v51 = vld [vmem:[#allocation2 + $0x25c] sm:$0xf0] }
 0xa2d   :  { %v8936_v54 = vor.u32 %v9626_v1, %v8935_v7  ;;  %v9031_v7 = vld [vmem:[#allocation2 + $0x288] sm:$0xf]  ;;  %v9650_v1 = vld [vmem:[#allocation2 + $0x28c] sm:$0xf0] }
 0xa2e   :  { %v5794_v31 = vpack.c.bf16 %v5769_v33, %v5768_v49  ;;  %v5802_v55 = vpack.c.bf16 %v5786_v39, %v5785_v12  ;;  %v9008_v33 = vor.u32 %v9644_v51, %v9007_v44  ;;  %v8972_v12 = vor.u32 %v9633_v57, %v8969_v47  ;;  %v9015_v39 = vld [vmem:[#allocation2 + $0x268] sm:$0xf]  ;;  %v9643_v51 = vld [vmem:[#allocation2 + $0x25c] sm:$0xf]  ;;  %v9009_v57 = vld [vmem:[#allocation2 + $0x260] sm:$0xf0] }
 0xa2f   :  { %v9016_v50 = vor.u32 %v9646_v45, %v9015_v39 }
 0xa30   :  { %6059 = vmatpush.bf16.msrb.mxu1 %v5794_v31  ;;  %9657 = vmatpush.bf16.msrb.mxu3 %v5794_v31  ;;  %v9025_v31 = vld [vmem:[#allocation2 + $0x280] sm:$0xf0] }
 0xa31   :  { %6148 = vmatpush.bf16.msrb.mxu0 %v5802_v55  ;;  %v9028_v18 = vor.u32 %v9647_v53, %v9025_v31  ;;  %v9012_v31 = vor.u32 %v9643_v51, %v9009_v57 }
 0xa34   :  { %6060 = vmatpush.bf16.msrb.mxu1 %v5793_v40  ;;  %9658 = vmatpush.bf16.msrb.mxu3 %v5793_v40  ;;  %v9648_v40 = vld [vmem:[#allocation2 + $0x27c] sm:$0xf0] }
 0xa35   :  { %6149 = vmatpush.bf16.msrb.mxu0 %v5801_v14  ;;  %v9024_v56 = vor.u32 %v9648_v40, %v9023_v28 }
 0xa38   :  { %6061 = vmatpush.bf16.msrb.mxu1 %v5792_v58  ;;  %9659 = vmatpush.bf16.msrb.mxu3 %v5792_v58 }
 0xa39   :  { %6150 = vmatpush.bf16.msrb.mxu0 %v5800_v60 }
 0xa3c   :  { %6062 = vmatpush.bf16.msrb.mxu1 %v13964_v11  ;;  %9660 = vmatpush.bf16.msrb.mxu3 %v13964_v11  ;;  %v8975_v11 = vld [vmem:[#allocation2 + $0x218] sm:$0xf] }
 0xa3d   :  { %6151 = vmatpush.bf16.msrb.mxu0 %v13966_v32  ;;  %v8976_v4 = vor.u32 %v9636_v61, %v8975_v11  ;;  %v9651_v11 = vld [vmem:[#allocation2 + $0x29c] sm:$0xf]  ;;  %v9041_v61 = vld [vmem:[#allocation2 + $0x2a0] sm:$0xf0] }
 0xa40   :  { %6063 = vmatpush.bf16.msrb.mxu1 %v13956_v17  ;;  %9661 = vmatpush.bf16.msrb.mxu3 %v13956_v17  ;;  %v8937_v17 = vld [vmem:[#allocation2 + $0x1d0] sm:$0xf0] }
 0xa41   :  { %6152 = vmatpush.bf16.msrb.mxu0 %v13958_v10 }
 0xa44   :  { %6064 = vmatpush.bf16.msrb.mxu1 %v13948_v20  ;;  %9662 = vmatpush.bf16.msrb.mxu3 %v13948_v20  ;;  %v8940_v20 = vor.u32 %v9625_v62, %v8937_v17  ;;  %v9639_v62 = vld [vmem:[#allocation2 + $0x23c] sm:$0xf]  ;;  %v8993_v17 = vld [vmem:[#allocation2 + $0x240] sm:$0xf0] }
 0xa45   :  { %6153 = vmatpush.bf16.msrb.mxu0 %v13950_v36 }
 0xa48   :  { %6065 = vmatpush.bf16.msrb.mxu1 %v13940_v35  ;;  %9663 = vmatpush.bf16.msrb.mxu3 %v13940_v35  ;;  %v8943_v35 = vld [vmem:[#allocation2 + $0x1d8] sm:$0xf] }
 0xa49   :  { %6154 = vmatpush.bf16.msrb.mxu0 %v13942_v21  ;;  %v8944_v22 = vor.u32 %v9628_v9, %v8943_v35  ;;  %v5835_v35 = vld [vmem:[#allocation2 + $0x2c8] sm:$0xf]  ;;  %v9039_v9 = vld [vmem:[#allocation2 + $0x298] sm:$0xf] }
 0xa4c   :  { %6066 = vmatpush.bf16.msrb.mxu1 %v13932_v41  ;;  %9664 = vmatpush.bf16.msrb.mxu3 %v13932_v41  ;;  %v8948_v41 = vor.u32 %v9627_v2, %v8945_v16  ;;  %v9049_v2 = vld [vmem:[#allocation2 + $0x2b0] sm:$0xf0]  ;;  %v5867_v16 = vunpack.c.l.bf16 %v5835_v35 }
 0xa4d   :  { %6155 = vmatpush.bf16.msrb.mxu0 %v13934_v42 }
 0xa4f   :  { %6067 = vmatmul.bf16.vlgmr.msrb.gmra.mxu1 %v8936_v54  ;;  %6092 = vmatmul.bf16.vlgmr.msrb.gmra.mxu3 %v8976_v4  ;;  %v9032_v54 = vor.u32 %v9650_v1, %v9031_v7  ;;  %v9044_v4 = vor.u32 %v9651_v11, %v9041_v61 }
 0xa50   :  { %9665 = vmatpush.bf16.msra.mxu1 %v5802_v55  ;;  %6156 = vmatmul.bf16.vlgmr.msrb.gmra.mxu0 %v8940_v20  ;;  %v9635_v55 = vld [vmem:[#allocation2 + $0x21c] sm:$0xf]  ;;  %v8996_v20 = vor.u32 %v9639_v62, %v8993_v17 }
 0xa51   :  { %v8980_v19 = vor.u32 %v9635_v55, %v8977_v48 }
 0xa54   :  { %9666 = vmatpush.bf16.msra.mxu1 %v5801_v14  ;;  %v9033_v14 = vld [vmem:[#allocation2 + $0x290] sm:$0xf0] }
 0xa55   :  { %v9036_v58 = vor.u32 %v9649_v5, %v9033_v14  ;;  %v6493_v14 = vld [vmem:[#allocation2 + $0x3c8] sm:$0xf] }
 0xa56   :  { %v6525_v11 = vunpack.c.l.bf16 %v6493_v14 }
 0xa58   :  { %9667 = vmatpush.bf16.msra.mxu1 %v5800_v60  ;;  %v8988_v60 = vor.u32 %v9637_v46, %v8985_v13 }
 0xa5c   :  { %9668 = vmatpush.bf16.msra.mxu1 %v13966_v32  ;;  %v9629_v32 = vld [vmem:[#allocation2 + $0x1ec] sm:$0xf] }
 0xa5d   :  { %v8956_v8 = vor.u32 %v9629_v32, %v8953_v26  ;;  %v5836_v32 = vld [vmem:[#allocation2 + $0x2d0] sm:$0xf] }
 0xa5f   :  { %6072 = vmatmul.bf16.gmra.mxu1 %v8944_v22  ;;  %6097 = vmatmul.bf16.gmra.mxu3 %v8984_v23  ;;  %v9641_v22 = vld [vmem:[#allocation2 + $0x24c] sm:$0xf]  ;;  %v9040_v23 = vor.u32 %v9652_v15, %v9039_v9  ;;  %v9055_v9 = vld [vmem:[#allocation2 + $0x2b8] sm:$0xf]  ;;  %v9656_v15 = vld [vmem:[#allocation2 + $0x2bc] sm:$0xf0] }
 0xa60   :  { %9669 = vmatpush.bf16.msra.mxu1 %v13958_v10  ;;  %6161 = vmatmul.bf16.gmra.mxu0 %v8948_v41  ;;  %v8959_v10 = vld [vmem:[#allocation2 + $0x1f8] sm:$0xf]  ;;  %v9052_v41 = vor.u32 %v9653_v59, %v9049_v2  ;;  %v9004_v24 = vor.u32 %v9641_v22, %v9001_v3  ;;  %v9645_v59 = vld [vmem:[#allocation2 + $0x26c] sm:$0xf] }
 0xa61   :  { %v8960_v37 = vor.u32 %v9632_v27, %v8959_v10 }
 0xa64   :  { %9670 = vmatpush.bf16.msra.mxu1 %v13950_v36  ;;  %v9642_v36 = vld [vmem:[#allocation2 + $0x24c] sm:$0xf0] }
 0xa65   :  { %v9000_v30 = vor.u32 %v9642_v36, %v8999_v63 }
 0xa68   :  { %9671 = vmatpush.bf16.msra.mxu1 %v13942_v21  ;;  %v8961_v21 = vld [vmem:[#allocation2 + $0x200] sm:$0xf0] }
 0xa69   :  { %v8964_v38 = vor.u32 %v9631_v34, %v8961_v21  ;;  %v5837_v34 = vld [vmem:[#allocation2 + $0x2d8] sm:$0xf] }
 0xa6a   :  { %v5869_v44 = vunpack.c.l.bf16 %v5837_v34 }
 0xa6c   :  { %9672 = vmatpush.bf16.msra.mxu1 %v13934_v42  ;;  %v8967_v42 = vld [vmem:[#allocation2 + $0x208] sm:$0xf] }
 0xa6d   :  { %v8968_v49 = vor.u32 %v9634_v43, %v8967_v42  ;;  %v9057_v42 = vld [vmem:[#allocation2 + $0x2c0] sm:$0xf0] }
 0xa6f   :  { %6077 = vmatmul.bf16.gmra.mxu1 %v8952_v25  ;;  %6102 = vmatmul.bf16.gmra.mxu3 %v8992_v52  ;;  %v5868_v52 = vunpack.c.l.bf16 %v5836_v32 }
 0xa70   :  { %6166 = vmatmul.bf16.gmra.mxu0 %v8956_v8 }
 0xa7f   :  { %6082 = vmatmul.bf16.gmra.mxu1 %v8960_v37  ;;  %6107 = vmatmul.bf16.gmra.mxu3 %v9000_v30  ;;  %v9047_v37 = vld [vmem:[#allocation2 + $0x2a8] sm:$0xf]  ;;  %v9654_v30 = vld [vmem:[#allocation2 + $0x2ac] sm:$0xf0] }
 0xa80   :  { %6171 = vmatmul.bf16.gmra.mxu0 %v8964_v38  ;;  %v9655_v38 = vld [vmem:[#allocation2 + $0x2bc] sm:$0xf] }
 0xa81   :  { %v9060_v39 = vor.u32 %v9655_v38, %v9057_v42 }
 0xa8f   :  { %6087 = vmatmul.bf16.gmra.mxu1 %v8968_v49  ;;  %6112 = vmatmul.bf16.gmra.mxu3 %v9008_v33 }
 0xa90   :  { %6176 = vmatmul.bf16.gmra.mxu0 %v8972_v12  ;;  %v9048_v12 = vor.u32 %v9654_v30, %v9047_v37  ;;  %v5840_v37 = vld [vmem:[#allocation2 + $0x2f0] sm:$0xf] }
 0xa91   :  { %v5872_v51 = vunpack.c.l.bf16 %v5840_v37 }
 0xa9f   :  { %6117 = vmatmul.bf16.gmra.mxu3 %v9016_v50  ;;  %6211 = vmatmul.bf16.vlgmr.msra.gmra.mxu1 %v9028_v18  ;;  %v5838_v18 = vld [vmem:[#allocation2 + $0x2e0] sm:$0xf] }
 0xaa0   :  { %6181 = vmatmul.bf16.gmra.mxu0 %v8980_v19  ;;  %v5870_v40 = vunpack.c.l.bf16 %v5838_v18 }
 0xaaf   :  { %6122 = vmatmul.bf16.gmra.mxu3 %v9024_v56  ;;  %6216 = vmatmul.bf16.gmra.mxu1 %v9036_v58 }
 0xab0   :  { %6186 = vmatmul.bf16.gmra.mxu0 %v8988_v60  ;;  %v6494_v60 = vld [vmem:[#allocation2 + $0x3d0] sm:$0xf] }
 0xabf   :  { %6127 = vmatmul.bf16.gmra.mxu3 %v9032_v54  ;;  %6221 = vmatmul.bf16.gmra.mxu1 %v9044_v4  ;;  %v5839_v54 = vld [vmem:[#allocation2 + $0x2e8] sm:$0xf]  ;;  %v6526_v4 = vunpack.c.l.bf16 %v6494_v60 }
 0xac0   :  { %6191 = vmatmul.bf16.gmra.mxu0 %v8996_v20  ;;  %v5871_v3 = vunpack.c.l.bf16 %v5839_v54 }
 0xacc   :  { %v6068_v6 = vpop.f32.mrf.mxu1 }
 0xacd   :  { %v6069_v0 = vadd.f32 %v6068_v6, %v5867_v16  ;;  %v6157_v29 = vpop.f32.mrf.mxu0 }
 0xacf   :  { %v6158_v26 = vadd.f32 %v6157_v29, %v6069_v0  ;;  %6132 = vmatmul.bf16.gmra.mxu3 %v9040_v23  ;;  %6226 = vmatmul.bf16.gmra.mxu1 %v9052_v41  ;;  %v9017_v23 = vld [vmem:[#allocation2 + $0x270] sm:$0xf0]  ;;  %v9056_v29 = vor.u32 %v9656_v15, %v9055_v9  ;;  %v5842_v15 = vld [vmem:[#allocation2 + $0x300] sm:$0xf] }
 0xad0   :  { %6196 = vmatmul.bf16.gmra.mxu0 %v9004_v24 }
 0xad1   :  { %v6269_v25 = vmin.f32 %v6158_v26, 0.0  ;;  %vm6237_vm7 = vcmp.gt.f32.partialorder %v6158_v26, 0.0 }
 0xad2   :  { %v14001_v8 = vpop.f32.mrf.mxu3 }
 0xad3   :  { %v6301_v10 = vmul.f32 1.442695, %v6269_v25 }
 0xad4   :  { %v6070_v27 = vpop.f32.mrf.mxu1 }
 0xad5   :  { %9781 = vpow2.f32 %v6301_v10  ;;  %v6071_v63 = vadd.f32 %v6070_v27, %v5868_v52  ;;  %v6159_v36 = vpop.f32.mrf.mxu0  ;;  %v9020_v52 = vor.u32 %v9645_v59, %v9017_v23 }
 0xad7   :  { %v6160_v21 = vadd.f32 %v6159_v36, %v6071_v63 }
 0xad9   :  { %v6270_v43 = vmin.f32 %v6160_v21, 0.0  ;;  %vm6238_vm8 = vcmp.gt.f32.partialorder %v6160_v21, 0.0 }
 0xada   :  { %v14003_v47 = vpop.f32.mrf.mxu3 }
 0xadb   :  { %v9782_v49 = vpop.eup %9781  ;;  %v6303_v33 = vmul.f32 1.442695, %v6270_v43 }
 0xadc   :  { %v9061_v45 = vadd.f32 -1.0, %v9782_v49  ;;  %v6073_v53 = vpop.f32.mrf.mxu1 }
 0xadd   :  { %9783 = vpow2.f32 %v6303_v33  ;;  %v6074_v55 = vadd.f32 %v6073_v53, %v5869_v44  ;;  %v6162_v48 = vpop.f32.mrf.mxu0 }
 0xade   :  { %v6397_v50 = vmul.f32 1.6732632, %v9061_v45  ;;  %v6496_v45 = vld [vmem:[#allocation2 + $0x3e0] sm:$0xf] }
 0xadf   :  { %v6163_v19 = vadd.f32 %v6162_v48, %v6074_v55  ;;  %6137 = vmatmul.bf16.gmra.mxu3 %v9048_v12  ;;  %6231 = vmatmul.bf16.gmra.mxu1 %v9060_v39 }
 0xae0   :  { %6201 = vmatmul.bf16.gmra.mxu0 %v9012_v31  ;;  %v6429_v5 = vsel %vm6237_vm7, %v6158_v26, %v6397_v50  ;;  %v6495_v26 = vld [vmem:[#allocation2 + $0x3d8] sm:$0xf] }
 0xae1   :  { %v6271_v28 = vmin.f32 %v6163_v19, 0.0  ;;  %v6461_v1 = vmul.f32 1.050701, %v6429_v5  ;;  %vm6239_vm0 = vcmp.gt.f32.partialorder %v6163_v19, 0.0  ;;  %v6527_v30 = vunpack.c.l.bf16 %v6495_v26 }
 0xae2   :  { %v14005_v46 = vpop.f32.mrf.mxu3 }
 0xae3   :  { %v9784_v13 = vpop.eup %9783  ;;  %v6305_v56 = vmul.f32 1.442695, %v6271_v28  ;;  %v6557_v2 = vmul.f32 %v6525_v11, %v6461_v1  ;;  %v6528_v28 = vunpack.c.l.bf16 %v6496_v45 }
 0xae4   :  { %v9062_v58 = vadd.f32 -1.0, %v9784_v13  ;;  %v6075_v7 = vpop.f32.mrf.mxu1 }
 0xae5   :  { %9785 = vpow2.f32 %v6305_v56  ;;  %v6076_v61 = vadd.f32 %v6075_v7, %v5870_v40  ;;  %v6164_v62 = vpop.f32.mrf.mxu0  ;;  %v6589_v10 = vsel %vm585_vm2, %v6557_v2, 0.0 }
 0xae6   :  { %v6398_v17 = vmul.f32 1.6732632, %v9062_v58 }
 0xae7   :  { %v6165_v20 = vadd.f32 %v6164_v62, %v6076_v61  ;;  %v6497_v61 = vld [vmem:[#allocation2 + $0x3e8] sm:$0xf] }
 0xae8   :  { %v6430_v35 = vsel %vm6238_vm8, %v6160_v21, %v6398_v17 }
 0xae9   :  { %v6462_v16 = vmul.f32 1.050701, %v6430_v35  ;;  %v6272_v22 = vmin.f32 %v6165_v20, 0.0  ;;  %vm6240_vm3 = vcmp.gt.f32.partialorder %v6165_v20, 0.0 }
 0xaea   :  { %v14007_v41 = vpop.f32.mrf.mxu3 }
 0xaeb   :  { %v9786_v6 = vpop.eup %9785  ;;  %v6558_v24 = vmul.f32 %v6526_v4, %v6462_v16  ;;  %v6307_v0 = vmul.f32 1.442695, %v6272_v22 }
 0xaec   :  { %v9063_v32 = vadd.f32 -1.0, %v9786_v6  ;;  %v6078_v25 = vpop.f32.mrf.mxu1 }
 0xaed   :  { %v6590_v27 = vsel %vm585_vm2, %v6558_v24, 0.0  ;;  %9787 = vpow2.f32 %v6307_v0  ;;  %v6079_v63 = vadd.f32 %v6078_v25, %v5871_v3  ;;  %v6167_v36 = vpop.f32.mrf.mxu0  ;;  %v5874_v3 = vunpack.c.l.bf16 %v5842_v15 }
 0xaee   :  { %v6591_v34 = vadd.f32 %v6590_v27, %v6589_v10  ;;  %v6399_v21 = vmul.f32 1.6732632, %v9063_v32  ;;  %v6498_v32 = vld [vmem:[#allocation2 + $0x3f0] sm:$0xf] }
 0xaef   :  { %v6168_v38 = vadd.f32 %v6167_v36, %v6079_v63  ;;  %6142 = vmatmul.bf16.gmra.mxu3 %v9056_v29  ;;  %v5843_v36 = vld [vmem:[#allocation2 + $0x308] sm:$0xf] }
 0xaf0   :  { %v6431_v42 = vsel %vm6239_vm0, %v6163_v19, %v6399_v21  ;;  %6206 = vmatmul.bf16.gmra.mxu0 %v9020_v52  ;;  %v5841_v19 = vld [vmem:[#allocation2 + $0x2f8] sm:$0xf] }
 0xaf1   :  { %v6463_v43 = vmul.f32 1.050701, %v6431_v42  ;;  %v6273_v44 = vmin.f32 %v6168_v38, 0.0  ;;  %v5873_v56 = vunpack.c.l.bf16 %v5841_v19  ;;  %vm6241_vm9 = vcmp.gt.f32.partialorder %v6168_v38, 0.0 }
 0xaf2   :  { %v14011_v57 = vpop.f32.mrf.mxu3  ;;  %v5875_v42 = vunpack.c.l.bf16 %v5843_v36 }
 0xaf3   :  { %v9788_v49 = vpop.eup %9787  ;;  %v6559_v33 = vmul.f32 %v6527_v30, %v6463_v43  ;;  %v6309_v12 = vmul.f32 1.442695, %v6273_v44 }
 0xaf4   :  { %v9064_v39 = vadd.f32 -1.0, %v9788_v49  ;;  %v6080_v53 = vpop.f32.mrf.mxu1 }
 0xaf5   :  { %v6592_v31 = vsel %vm585_vm2, %v6559_v33, 0.0  ;;  %9789 = vpow2.f32 %v6309_v12  ;;  %v6081_v55 = vadd.f32 %v6080_v53, %v5872_v51  ;;  %v6169_v48 = vpop.f32.mrf.mxu0  ;;  %v6499_v12 = vld [vmem:[#allocation2 + $0x3f8] sm:$0xf] }
 0xaf6   :  { %v6593_v50 = vadd.f32 %v6592_v31, %v6591_v34  ;;  %v6400_v18 = vmul.f32 1.6732632, %v9064_v39  ;;  %v6530_v34 = vunpack.c.l.bf16 %v6498_v32 }
 0xaf7   :  { %v6170_v40 = vadd.f32 %v6169_v48, %v6081_v55 }
 0xaf8   :  { %v6432_v5 = vsel %vm6240_vm3, %v6165_v20, %v6400_v18  ;;  %v6529_v20 = vunpack.c.l.bf16 %v6497_v61  ;;  %v6531_v18 = vunpack.c.l.bf16 %v6499_v12 }
 0xaf9   :  { %v6464_v14 = vmul.f32 1.050701, %v6432_v5  ;;  %v6274_v13 = vmin.f32 %v6170_v40, 0.0  ;;  %vm6242_vm10 = vcmp.gt.f32.partialorder %v6170_v40, 0.0 }
 0xafa   :  { %v14014_v58 = vpop.f32.mrf.mxu3 }
 0xafb   :  { %v9790_v60 = vpop.eup %9789  ;;  %v6560_v7 = vmul.f32 %v6528_v28, %v6464_v14  ;;  %v6311_v1 = vmul.f32 1.442695, %v6274_v13 }
 0xafc   :  { %v9065_v11 = vadd.f32 -1.0, %v9790_v60  ;;  %v6083_v62 = vpop.f32.mrf.mxu1 }
 0xafd   :  { %v6594_v17 = vsel %vm585_vm2, %v6560_v7, 0.0  ;;  %9791 = vpow2.f32 %v6311_v1  ;;  %v6084_v54 = vadd.f32 %v6083_v62, %v5873_v56  ;;  %v6172_v4 = vpop.f32.mrf.mxu0  ;;  %v5845_v62 = vld [vmem:[#allocation2 + $0x318] sm:$0xf] }
 0xafe   :  { %v6595_v35 = vadd.f32 %v6594_v17, %v6593_v50  ;;  %v6401_v9 = vmul.f32 1.6732632, %v9065_v11  ;;  %v5844_v50 = vld [vmem:[#allocation2 + $0x310] sm:$0xf]  ;;  %v6500_v11 = vld [vmem:[#allocation2 + $0x400] sm:$0xf] }
 0xaff   :  { %v6173_v59 = vadd.f32 %v6172_v4, %v6084_v54  ;;  %v5876_v14 = vunpack.c.l.bf16 %v5844_v50  ;;  %v6532_v15 = vunpack.c.l.bf16 %v6500_v11 }
 0xb00   :  { %v6433_v2 = vsel %vm6241_vm9, %v6168_v38, %v6401_v9 }
 0xb01   :  { %v6465_v16 = vmul.f32 1.050701, %v6433_v2  ;;  %v6275_v22 = vmin.f32 %v6173_v59, 0.0  ;;  %vm6243_vm11 = vcmp.gt.f32.partialorder %v6173_v59, 0.0 }
 0xb02   :  { %v14017_v23 = vpop.f32.mrf.mxu3 }
 0xb03   :  { %v9792_v6 = vpop.eup %9791  ;;  %v6561_v24 = vmul.f32 %v6529_v20, %v6465_v16  ;;  %v6313_v0 = vmul.f32 1.442695, %v6275_v22 }
 0xb04   :  { %v9066_v29 = vadd.f32 -1.0, %v9792_v6  ;;  %v6085_v26 = vpop.f32.mrf.mxu1 }
 0xb05   :  { %v6596_v25 = vsel %vm585_vm2, %v6561_v24, 0.0  ;;  %9793 = vpow2.f32 %v6313_v0  ;;  %v6086_v52 = vadd.f32 %v6085_v26, %v5874_v3  ;;  %v6174_v10 = vpop.f32.mrf.mxu0  ;;  %v5846_v26 = vld [vmem:[#allocation2 + $0x320] sm:$0xf] }
 0xb06   :  { %v6597_v27 = vadd.f32 %v6596_v25, %v6595_v35  ;;  %v6402_v63 = vmul.f32 1.6732632, %v9066_v29  ;;  %v5878_v36 = vunpack.c.l.bf16 %v5846_v26 }
 0xb07   :  { %v6175_v21 = vadd.f32 %v6174_v10, %v6086_v52 }
 0xb08   :  { %v6434_v37 = vsel %vm6242_vm10, %v6170_v40, %v6402_v63  ;;  %vm6681_vm10 = vcmask 1041409  }
 0xb09   :  { %v6466_v30 = vmul.f32 1.050701, %v6434_v37  ;;  %v6276_v38 = vmin.f32 %v6175_v21, 0.0  ;;  %vm6244_vm1 = vcmp.gt.f32.partialorder %v6175_v21, 0.0  ;;  %v6501_v37 = vld [vmem:[#allocation2 + $0x408] sm:$0xf] }
 0xb0a   :  { %v14020_v43 = vpop.f32.mrf.mxu3 }
 0xb0b   :  { %v9794_v44 = vpop.eup %9793  ;;  %v6562_v51 = vmul.f32 %v6530_v34, %v6466_v30  ;;  %v6315_v49 = vmul.f32 1.442695, %v6276_v38 }
 0xb0c   :  { %v9067_v33 = vadd.f32 -1.0, %v9794_v44  ;;  %v6088_v39 = vpop.f32.mrf.mxu1  ;;  %v6096_v44 = vadd.f32 %v14003_v47, %v5878_v36 }
 0xb0d   :  { %v6598_v45 = vsel %vm585_vm2, %v6562_v51, 0.0  ;;  %9795 = vpow2.f32 %v6315_v49  ;;  %v6089_v53 = vadd.f32 %v6088_v39, %v5875_v42  ;;  %v6177_v31 = vpop.f32.mrf.mxu0  ;;  %v6502_v49 = vld [vmem:[#allocation2 + $0x410] sm:$0xf]  ;;  %v6533_v39 = vunpack.c.l.bf16 %v6501_v37 }
 0xb0e   :  { %v6599_v55 = vadd.f32 %v6598_v45, %v6597_v27  ;;  %v6403_v48 = vmul.f32 1.6732632, %v9067_v33  ;;  %v5847_v33 = vld [vmem:[#allocation2 + $0x328] sm:$0xf] }
 0xb0f   :  { %v6178_v19 = vadd.f32 %v6177_v31, %v6089_v53 }
 0xb10   :  { %v6435_v28 = vsel %vm6243_vm11, %v6173_v59, %v6403_v48  ;;  %v5877_v59 = vunpack.c.l.bf16 %v5845_v62  ;;  %v5879_v48 = vunpack.c.l.bf16 %v5847_v33 }
 0xb11   :  { %v6467_v40 = vmul.f32 1.050701, %v6435_v28  ;;  %v6277_v5 = vmin.f32 %v6178_v19, 0.0  ;;  %vm6245_vm12 = vcmp.gt.f32.partialorder %v6178_v19, 0.0 }
 0xb12   :  { %v14023_v13 = vpop.f32.mrf.mxu3  ;;  %v6094_v29 = vadd.f32 %v14001_v8, %v5877_v59 }
 0xb13   :  { %v9796_v56 = vpop.eup %9795  ;;  %v6563_v60 = vmul.f32 %v6531_v18, %v6467_v40  ;;  %v6317_v7 = vmul.f32 1.442695, %v6277_v5 }
 0xb14   :  { %v9068_v1 = vadd.f32 -1.0, %v9796_v56  ;;  %v6090_v61 = vpop.f32.mrf.mxu1 }
 0xb15   :  { %v6600_v17 = vsel %vm585_vm2, %v6563_v60, 0.0  ;;  %9797 = vpow2.f32 %v6317_v7  ;;  %v6091_v54 = vadd.f32 %v6090_v61, %v5876_v14  ;;  %v6179_v4 = vpop.f32.mrf.mxu0  ;;  %v6503_v60 = vld [vmem:[#allocation2 + $0x418] sm:$0xf]  ;;  %v6099_v7 = vadd.f32 %v14005_v46, %v5879_v48  ;;  %v5848_v61 = vld [vmem:[#allocation2 + $0x330] sm:$0xf] }
 0xb16   :  { %v6601_v35 = vadd.f32 %v6600_v17, %v6599_v55  ;;  %v6404_v9 = vmul.f32 1.6732632, %v9068_v1  ;;  %v6534_v55 = vunpack.c.l.bf16 %v6502_v49  ;;  %v5857_v1 = vld [vmem:[#allocation2 + $0x378] sm:$0xf] }
 0xb17   :  { %v6180_v20 = vadd.f32 %v6179_v4, %v6091_v54  ;;  %v5889_v59 = vunpack.c.l.bf16 %v5857_v1 }
 0xb18   :  { %v6436_v2 = vsel %vm6244_vm1, %v6175_v21, %v6404_v9  ;;  %v6535_v9 = vunpack.c.l.bf16 %v6503_v60 }
 0xb19   :  { %v6468_v16 = vmul.f32 1.050701, %v6436_v2  ;;  %v6278_v22 = vmin.f32 %v6180_v20, 0.0  ;;  %vm6246_vm13 = vcmp.gt.f32.partialorder %v6180_v20, 0.0  ;;  %v5880_v2 = vunpack.c.l.bf16 %v5848_v61 }
 0xb1a   :  { %v14026_v3 = vpop.f32.mrf.mxu3 }
 0xb1b   :  { %v9798_v6 = vpop.eup %9797  ;;  %v6564_v24 = vmul.f32 %v6532_v15, %v6468_v16  ;;  %v6319_v0 = vmul.f32 1.442695, %v6278_v22 }
 0xb1c   :  { %v9069_v32 = vadd.f32 -1.0, %v9798_v6  ;;  %v6212_v42 = vpop.f32.mrf.mxu1 }
 0xb1d   :  { %v6602_v25 = vsel %vm585_vm2, %v6564_v24, 0.0  ;;  %9799 = vpow2.f32 %v6319_v0  ;;  %v6182_v52 = vpop.f32.mrf.mxu0 }
 0xb1e   :  { %v14030_v10 = vadd.f32 %v6602_v25, %v6601_v35  ;;  %v6405_v27 = vmul.f32 1.6732632, %v9069_v32  ;;  %v6183_v63 = vadd.f32 %v6182_v52, %v6094_v29  ;;  %v6504_v32 = vld [vmem:[#allocation2 + $0x420] sm:$0xf]  ;;  %v6101_v25 = vadd.f32 %v14007_v41, %v5880_v2 }
 0xb1f   :  { %v6536_v37 = vunpack.c.l.bf16 %v6504_v32  ;;  %v5859_v32 = vld [vmem:[#allocation2 + $0x388] sm:$0xf] }
 0xb20   :  { %v6279_v34 = vmin.f32 %v6183_v63, 0.0  ;;  %v6437_v21 = vsel %vm6245_vm12, %v6178_v19, %v6405_v27  ;;  %vm6247_vm14 = vcmp.gt.f32.partialorder %v6183_v63, 0.0  ;;  %v5849_v27 = vld [vmem:[#allocation2 + $0x338] sm:$0xf] }
 0xb21   :  { %v6469_v12 = vmul.f32 1.050701, %v6437_v21 }
 0xb22   :  { %v6321_v30 = vmul.f32 1.442695, %v6279_v34  ;;  %v14032_v38 = vpop.f32.mrf.mxu3 }
 0xb23   :  { %v9800_v8 = vpop.eup %9799  ;;  %v6565_v19 = vmul.f32 %v6533_v39, %v6469_v12 }
 0xb24   :  { %v9070_v51 = vadd.f32 -1.0, %v9800_v8  ;;  %9801 = vpow2.f32 %v6321_v30  ;;  %v14038_v11 = vpop.f32.mrf.mxu1 }
 0xb25   :  { %v6184_v45 = vpop.f32.mrf.mxu0  ;;  %v6610_v62 = vsel %vm585_vm2, %v6565_v19, 0.0 }
 0xb26   :  { %v6406_v53 = vmul.f32 1.6732632, %v9070_v51  ;;  %v6185_v31 = vadd.f32 %v6184_v45, %v6096_v44  ;;  %v5881_v51 = vunpack.c.l.bf16 %v5849_v27 }
 0xb28   :  { %v6438_v50 = vsel %vm6246_vm13, %v6180_v20, %v6406_v53  ;;  %v6280_v18 = vmin.f32 %v6185_v31, 0.0  ;;  %vm6248_vm15 = vcmp.gt.f32.partialorder %v6185_v31, 0.0  ;;  %v6104_v48 = vadd.f32 %v14011_v57, %v5881_v51 }
 0xb29   :  { %v6470_v28 = vmul.f32 1.050701, %v6438_v50  ;;  %v5850_v50 = vld [vmem:[#allocation2 + $0x340] sm:$0xf] }
 0xb2a   :  { %v9802_v40 = vpop.eup %9801  ;;  %v6323_v5 = vmul.f32 1.442695, %v6280_v18  ;;  %v14035_v14 = vpop.f32.mrf.mxu3 }
 0xb2b   :  { %v6566_v47 = vmul.f32 %v6534_v55, %v6470_v28  ;;  %v9071_v56 = vadd.f32 -1.0, %v9802_v40  ;;  %v6505_v55 = vld [vmem:[#allocation2 + $0x428] sm:$0xf] }
 0xb2c   :  { %9803 = vpow2.f32 %v6323_v5  ;;  %v14046_v8 = vpop.f32.mrf.mxu1 }
 0xb2d   :  { %v6611_v17 = vsel %vm585_vm2, %v6566_v47, 0.0  ;;  %v6407_v54 = vmul.f32 1.6732632, %v9071_v56  ;;  %v6187_v4 = vpop.f32.mrf.mxu0  ;;  %v5882_v47 = vunpack.c.l.bf16 %v5850_v50 }
 0xb2e   :  { %v6612_v35 = vadd.f32 %v6611_v17, %v6610_v62  ;;  %v6188_v15 = vadd.f32 %v6187_v4, %v6099_v7 }
 0xb2f   :  { %v6439_v20 = vsel %vm6247_vm14, %v6183_v63, %v6407_v54  ;;  %v6506_v54 = vld [vmem:[#allocation2 + $0x430] sm:$0xf]  ;;  %v6106_v4 = vadd.f32 %v14014_v58, %v5882_v47 }
 0xb30   :  { %v6471_v16 = vmul.f32 1.050701, %v6439_v20  ;;  %v6281_v46 = vmin.f32 %v6188_v15, 0.0  ;;  %vm6249_vm4 = vcmp.gt.f32.partialorder %v6188_v15, 0.0  ;;  %v5851_v20 = vld [vmem:[#allocation2 + $0x348] sm:$0xf] }
 0xb32   :  { %v9804_v22 = vpop.eup %9803  ;;  %v6567_v6 = vmul.f32 %v6535_v9, %v6471_v16  ;;  %v6325_v24 = vmul.f32 1.442695, %v6281_v46  ;;  %v6123_v0 = vpop.f32.mrf.mxu3  ;;  %v5858_v9 = vld [vmem:[#allocation2 + $0x380] sm:$0xf]  ;;  %v6538_v16 = vunpack.c.l.bf16 %v6506_v54 }
 0xb33   :  { %v9072_v29 = vadd.f32 -1.0, %v9804_v22  ;;  %v6124_v26 = vadd.f32 %v6123_v0, %v5889_v59  ;;  %v6604_v0 = vrot.slane %v14030_v10, 4  ;;  %v6508_v54 = vld [vmem:[#allocation2 + $0x440] sm:$0xf] }
 0xb34   :  { %v6613_v52 = vsel %vm585_vm2, %v6567_v6, 0.0  ;;  %9805 = vpow2.f32 %v6325_v24  ;;  %v14050_v7 = vpop.f32.mrf.mxu1  ;;  %v5890_v6 = vunpack.c.l.bf16 %v5858_v9  ;;  %v5883_v24 = vunpack.c.l.bf16 %v5851_v20  ;;  %v5862_v20 = vld [vmem:[#allocation2 + $0x3a0] sm:$0xf] }
 0xb35   :  { %v6614_v36 = vadd.f32 %v6613_v52, %v6612_v35  ;;  %v6408_v34 = vmul.f32 1.6732632, %v9072_v29  ;;  %v6189_v63 = vpop.f32.mrf.mxu0  ;;  %v14044_v21 = vadd.f32 %v6212_v42, %v6124_v26  ;;  %v6605_v51 = vadd.f32 %v6604_v0, %v14030_v10  ;;  %v5856_v0 = vld [vmem:[#allocation2 + $0x370] sm:$0xf] }
 0xb36   :  { %v6190_v30 = vadd.f32 %v6189_v63, %v6101_v25 }
 0xb37   :  { %v6440_v44 = vsel %vm6248_vm15, %v6185_v31, %v6408_v34  ;;  %v6537_v31 = vunpack.c.l.bf16 %v6505_v55  ;;  %v6606_v10 = vrot.slane %v6605_v51, 2  ;;  %vm6259_vm0 = vcmp.gt.f32.partialorder %v14044_v21, 0.0 }
 0xb38   :  { %v6472_v49 = vmul.f32 1.050701, %v6440_v44  ;;  %v6282_v33 = vmin.f32 %v6190_v30, 0.0  ;;  %vm6250_vm5 = vcmp.gt.f32.partialorder %v6190_v30, 0.0  ;;  %v5891_v44 = vunpack.c.l.bf16 %v5859_v32 }
 0xb3a   :  { %v9806_v12 = vpop.eup %9805  ;;  %v6568_v41 = vmul.f32 %v6536_v37, %v6472_v49  ;;  %v6327_v39 = vmul.f32 1.442695, %v6282_v33  ;;  %v6125_v45 = vpop.f32.mrf.mxu3  ;;  %v6507_v37 = vld [vmem:[#allocation2 + $0x438] sm:$0xf]  ;;  %v5852_v33 = vld [vmem:[#allocation2 + $0x350] sm:$0xf] }
 0xb3b   :  { %v9073_v53 = vadd.f32 -1.0, %v9806_v12  ;;  %v6126_v34 = vadd.f32 %v6125_v45, %v5890_v6  ;;  %v6539_v55 = vunpack.c.l.bf16 %v6507_v37 }
 0xb3c   :  { %v6615_v42 = vsel %vm585_vm2, %v6568_v41, 0.0  ;;  %9807 = vpow2.f32 %v6327_v39  ;;  %v6291_v41 = vmin.f32 %v14044_v21, 0.0 }
 0xb3d   :  { %v6616_v18 = vadd.f32 %v6615_v42, %v6614_v36  ;;  %v6409_v19 = vmul.f32 1.6732632, %v9073_v53  ;;  %v6192_v28 = vpop.f32.mrf.mxu0  ;;  %v14058_v36 = vpop.f32.mrf.mxu1  ;;  %v14067_v50 = vadd.f32 %v14038_v11, %v6126_v34 }
 0xb3e   :  { %v6193_v40 = vadd.f32 %v6192_v28, %v6104_v48  ;;  %v5860_v48 = vld [vmem:[#allocation2 + $0x390] sm:$0xf] }
 0xb3f   :  { %v6441_v5 = vsel %vm6249_vm4, %v6188_v15, %v6409_v19  ;;  %v5853_v19 = vld [vmem:[#allocation2 + $0x358] sm:$0xf]  ;;  %v5892_v47 = vunpack.c.l.bf16 %v5860_v48  ;;  %vm6260_vm9 = vcmp.gt.f32.partialorder %v14067_v50, 0.0 }
 0xb40   :  { %v6473_v56 = vmul.f32 1.050701, %v6441_v5  ;;  %v6283_v60 = vmin.f32 %v6193_v40, 0.0  ;;  %vm6251_vm6 = vcmp.gt.f32.partialorder %v6193_v40, 0.0  ;;  %v6345_v5 = vmul.f32 1.442695, %v6291_v41 }
 0xb42   :  { %v9808_v1 = vpop.eup %9807  ;;  %v6569_v61 = vmul.f32 %v6537_v31, %v6473_v56  ;;  %v6329_v62 = vmul.f32 1.442695, %v6283_v60  ;;  %v6128_v57 = vpop.f32.mrf.mxu3 }
 0xb43   :  { %v9074_v17 = vadd.f32 -1.0, %v9808_v1 }
 0xb44   :  { %v6617_v35 = vsel %vm585_vm2, %v6569_v61, 0.0  ;;  %9809 = vpow2.f32 %v6329_v62  ;;  %v5885_v62 = vunpack.c.l.bf16 %v5853_v19 }
 0xb45   :  { %v6618_v59 = vadd.f32 %v6617_v35, %v6616_v18  ;;  %v6410_v15 = vmul.f32 1.6732632, %v9074_v17  ;;  %v6194_v2 = vpop.f32.mrf.mxu0  ;;  %v5884_v18 = vunpack.c.l.bf16 %v5852_v33  ;;  %v6292_v17 = vmin.f32 %v14067_v50, 0.0 }
 0xb46   :  { %v14054_v46 = vadd.f32 %v6194_v2, %v6106_v4  ;;  %v6607_v4 = vadd.f32 %v6606_v10, %v6605_v51 }
 0xb47   :  { %v6442_v22 = vsel %vm6250_vm5, %v6190_v30, %v6410_v15  ;;  %v6109_v30 = vadd.f32 %v14017_v23, %v5883_v24  ;;  %v6129_v23 = vadd.f32 %v6128_v57, %v5891_v44  ;;  %v5861_v57 = vld [vmem:[#allocation2 + $0x398] sm:$0xf]  ;;  %v6111_v35 = vadd.f32 %v14020_v43, %v5884_v18  ;;  %v5854_v15 = vld [vmem:[#allocation2 + $0x360] sm:$0xf]  ;;  %v5855_v24 = vld [vmem:[#allocation2 + $0x368] sm:$0xf] }
 0xb48   :  { %v6474_v29 = vmul.f32 1.050701, %v6442_v22  ;;  %v6284_v58 = vmin.f32 %v14054_v46, 0.0  ;;  %vm6252_vm7 = vcmp.gt.f32.partialorder %v14054_v46, 0.0  ;;  %v6347_v43 = vmul.f32 1.442695, %v6292_v17 }
 0xb49   :  { %v14072_v11 = vadd.f32 %v14046_v8, %v6129_v23  ;;  %v6540_v8 = vunpack.c.l.bf16 %v6508_v54  ;;  %v5887_v37 = vunpack.c.l.bf16 %v5855_v24  ;;  %v5888_v44 = vunpack.c.l.bf16 %v5856_v0  ;;  %v6510_v0 = vld [vmem:[#allocation2 + $0x450] sm:$0xf] }
 0xb4a   :  { %v9810_v26 = vpop.eup %9809  ;;  %v6570_v25 = vmul.f32 %v6538_v16, %v6474_v29  ;;  %v6331_v52 = vmul.f32 1.442695, %v6284_v58  ;;  %v6130_v27 = vpop.f32.mrf.mxu3  ;;  %v5893_v29 = vunpack.c.l.bf16 %v5861_v57 }
 0xb4b   :  { %v9075_v63 = vadd.f32 -1.0, %v9810_v26  ;;  %v6131_v22 = vadd.f32 %v6130_v27, %v5892_v47  ;;  %v6293_v26 = vmin.f32 %v14072_v11, 0.0  ;;  %v6608_v27 = vrot.slane %v6607_v4, 1 }
 0xb4c   :  { %v6619_v49 = vsel %vm585_vm2, %v6570_v25, 0.0  ;;  %9811 = vpow2.f32 %v6331_v52  ;;  %v5894_v25 = vunpack.c.l.bf16 %v5862_v20  ;;  %v5886_v52 = vunpack.c.l.bf16 %v5854_v15 }
 0xb4d   :  { %v6620_v12 = vadd.f32 %v6619_v49, %v6618_v59  ;;  %v6411_v39 = vmul.f32 1.6732632, %v9075_v63  ;;  %v6197_v53 = vpop.f32.mrf.mxu0  ;;  %v6224_v59 = vpop.f32.mrf.mxu1  ;;  %v6114_v49 = vadd.f32 %v14023_v13, %v5885_v62  ;;  %v6609_v18 = vadd.f32 %v6608_v27, %v6607_v4  ;;  %v14100_v62 = vld [vmem:[#allocation2 + $0x488] sm:$0xf] }
 0xb4e   :  { %v14064_v45 = vadd.f32 %v6197_v53, %v6109_v30  ;;  %v14083_v30 = vadd.f32 %v14050_v7, %v6131_v22  ;;  %v14086_v53 = vld [vmem:[#allocation2 + $0x478] sm:$0xf]  ;;  %v6116_v23 = vadd.f32 %v14026_v3, %v5886_v52  ;;  %v5863_v7 = vld [vmem:[#allocation2 + $0x3a8] sm:$0xf]  ;;  %v14091_v13 = vadd.f32 %v14032_v38, %v5887_v37 }
 0xb4f   :  { %v6443_v42 = vsel %vm6251_vm6, %v6193_v40, %v6411_v39  ;;  %v5895_v17 = vunpack.c.l.bf16 %v5863_v7  ;;  %v14109_v57 = vadd.f32 -0.06689453, %v6609_v18  ;;  %v6542_v37 = vunpack.c.l.bf16 %v6510_v0 }
 0xb50   :  { %v6475_v28 = vmul.f32 1.050701, %v6443_v42  ;;  %v6285_v31 = vmin.f32 %v14064_v45, 0.0  ;;  %vm6253_vm8 = vcmp.gt.f32.partialorder %v14064_v45, 0.0  ;;  %vm6261_vm1 = vcmp.gt.f32.partialorder %v14072_v11, 0.0 }
 0xb51   :  { %vm6262_vm12 = vcmp.gt.f32.partialorder %v14083_v30, 0.0 }
 0xb52   :  { %v9812_v56 = vpop.eup %9811  ;;  %v6571_v60 = vmul.f32 %v6539_v55, %v6475_v28  ;;  %v6333_v1 = vmul.f32 1.442695, %v6285_v31  ;;  %v6133_v61 = vpop.f32.mrf.mxu3  ;;  %v6349_v55 = vmul.f32 1.442695, %v6293_v26  ;;  %v6294_v31 = vmin.f32 %v14083_v30, 0.0 }
 0xb53   :  { %v9076_v40 = vadd.f32 -1.0, %v9812_v56  ;;  %v6547_v56 = vunpack.c.l.bf16 %v14086_v53 }
 0xb54   :  { %v6621_v9 = vsel %vm585_vm2, %v6571_v60, 0.0  ;;  %9813 = vpow2.f32 %v6333_v1  ;;  %v6351_v20 = vmul.f32 1.442695, %v6294_v31 }
 0xb55   :  { %9815 = vpow2.f32 %v6345_v5  ;;  %v6622_v2 = vadd.f32 %v6621_v9, %v6620_v12  ;;  %v6412_v16 = vmul.f32 1.6732632, %v9076_v40  ;;  %v6199_v6 = vpop.f32.mrf.mxu0  ;;  %v6134_v12 = vadd.f32 %v6133_v61, %v5893_v29  ;;  %v6227_v1 = vpop.f32.mrf.mxu1  ;;  %v6509_v9 = vld [vmem:[#allocation2 + $0x448] sm:$0xf] }
 0xb56   :  { %v14077_v32 = vadd.f32 %v6199_v6, %v6111_v35  ;;  %9817 = vpow2.f32 %v6347_v43  ;;  %v14105_v40 = vadd.f32 %v14035_v14, %v5888_v44  ;;  %v6541_v26 = vunpack.c.l.bf16 %v6509_v9 }
 0xb57   :  { %v6444_v58 = vsel %vm6252_vm7, %v14054_v46, %v6412_v16  ;;  %v14096_v60 = vadd.f32 %v14058_v36, %v6134_v12 }
 0xb58   :  { %v6476_v34 = vmul.f32 1.050701, %v6444_v58  ;;  %v6286_v63 = vmin.f32 %v14077_v32, 0.0  ;;  %vm6254_vm3 = vcmp.gt.f32.partialorder %v14077_v32, 0.0 }
 0xb59   :  { %v6295_v14 = vmin.f32 %v14096_v60, 0.0  ;;  %vm6263_vm14 = vcmp.gt.f32.partialorder %v14096_v60, 0.0 }
 0xb5a   :  { %v9814_v51 = vpop.eup %9813  ;;  %v6572_v33 = vmul.f32 %v6540_v8, %v6476_v34  ;;  %v6335_v41 = vmul.f32 1.442695, %v6286_v63  ;;  %v6135_v46 = vpop.f32.mrf.mxu3 }
 0xb5b   :  { %v9816_v39 = vpop.eup %9815  ;;  %v9077_v48 = vadd.f32 -1.0, %v9814_v51  ;;  %v6136_v42 = vadd.f32 %v6135_v46, %v5894_v25  ;;  %v6353_v44 = vmul.f32 1.442695, %v6295_v14  ;;  %v6511_v51 = vld [vmem:[#allocation2 + $0x458] sm:$0xf] }
 0xb5c   :  { %v6623_v10 = vsel %vm585_vm2, %v6572_v33, 0.0  ;;  %9819 = vpow2.f32 %v6335_v41  ;;  %v9083_v47 = vadd.f32 -1.0, %v9816_v39  ;;  %v9818_v36 = vpop.eup %9817  ;;  %v6543_v18 = vunpack.c.l.bf16 %v6511_v51 }
 0xb5d   :  { %v6624_v19 = vadd.f32 %v6623_v10, %v6622_v2  ;;  %v6413_v28 = vmul.f32 1.6732632, %v9077_v48  ;;  %v6202_v5 = vpop.f32.mrf.mxu0  ;;  %9821 = vpow2.f32 %v6349_v55  ;;  %v14102_v38 = vadd.f32 %v6224_v59, %v6136_v42  ;;  %v6229_v10 = vpop.f32.mrf.mxu1 }
 0xb5e   :  { %v14098_v3 = vadd.f32 %v6202_v5, %v6114_v49  ;;  %v6419_v15 = vmul.f32 1.6732632, %v9083_v47  ;;  %v6549_v2 = vunpack.c.l.bf16 %v14100_v62  ;;  %v9084_v43 = vadd.f32 -1.0, %v9818_v36 }
 0xb5f   :  { %v6625_v61 = vrot.slane %v6624_v19, 4  ;;  %v6445_v35 = vsel %vm6253_vm8, %v14064_v45, %v6413_v28  ;;  %v6296_v8 = vmin.f32 %v14102_v38, 0.0  ;;  %v5864_v45 = vld [vmem:[#allocation2 + $0x3b0] sm:$0xf]  ;;  %vm6264_vm15 = vcmp.gt.f32.partialorder %v14102_v38, 0.0 }
 0xb60   :  { %v6287_v54 = vmin.f32 %v14098_v3, 0.0  ;;  %v6477_v58 = vmul.f32 1.050701, %v6445_v35  ;;  %v5896_v46 = vunpack.c.l.bf16 %v5864_v45  ;;  %v6451_v7 = vsel %vm6259_vm0, %v14044_v21, %v6419_v15  ;;  %v14130_v35 = vld [vmem:[#allocation2 + $0x490] sm:$0xf] }
 0xb61   :  { %v6626_v4 = vadd.f32 %v6625_v61, %v6624_v19  ;;  %v6355_v12 = vmul.f32 1.442695, %v6296_v8  ;;  %vm6255_vm11 = vcmp.gt.f32.partialorder %v14098_v3, 0.0 }
 0xb62   :  { %v9820_v59 = vpop.eup %9819  ;;  %v6337_v16 = vmul.f32 1.442695, %v6287_v54  ;;  %v6138_v22 = vpop.f32.mrf.mxu3  ;;  %v6573_v55 = vmul.f32 %v6541_v26, %v6477_v58  ;;  %v5865_v54 = vld [vmem:[#allocation2 + $0x3b8] sm:$0xf]  ;;  %v6550_v58 = vunpack.c.l.bf16 %v14130_v35 }
 0xb63   :  { %v6627_v6 = vrot.slane %v6626_v4, 2  ;;  %v9078_v24 = vadd.f32 -1.0, %v9820_v59  ;;  %v6139_v29 = vadd.f32 %v6138_v22, %v5895_v17  ;;  %v9822_v25 = vpop.eup %9821 }
 0xb64   :  { %9823 = vpow2.f32 %v6337_v16  ;;  %v9085_v39 = vadd.f32 -1.0, %v9822_v25  ;;  %v6631_v21 = vsel %vm585_vm2, %v6573_v55, 0.0 }
 0xb65   :  { %v6628_v52 = vadd.f32 %v6627_v6, %v6626_v4  ;;  %9825 = vpow2.f32 %v6351_v20  ;;  %v6414_v34 = vmul.f32 1.6732632, %v9078_v24  ;;  %v6204_v63 = vpop.f32.mrf.mxu0  ;;  %v14116_v27 = vadd.f32 %v6227_v1, %v6139_v29  ;;  %v14138_v24 = vld [vmem:[#allocation2 + $0x498] sm:$0xf] }
 0xb66   :  { %v14119_v49 = vadd.f32 %v6204_v63, %v6116_v23  ;;  %v6420_v23 = vmul.f32 1.6732632, %v9084_v43  ;;  %9827 = vpow2.f32 %v6353_v44  ;;  %v6421_v36 = vmul.f32 1.6732632, %v9085_v39 }
 0xb67   :  { %v6446_v33 = vsel %vm6254_vm3, %v14077_v32, %v6414_v34  ;;  %v6297_v41 = vmin.f32 %v14116_v27, 0.0  ;;  %v6629_v19 = vrot.slane %v6628_v52, 1  ;;  %9829 = vpow2.f32 %v6355_v12 }
 0xb68   :  { %v6478_v48 = vmul.f32 1.050701, %v6446_v33  ;;  %v6288_v42 = vmin.f32 %v14119_v49, 0.0  ;;  %v5897_v6 = vunpack.c.l.bf16 %v5865_v54  ;;  %v6551_v44 = vunpack.c.l.bf16 %v14138_v24 }
 0xb69   :  { %v6357_v61 = vmul.f32 1.442695, %v6297_v41  ;;  %v6630_v14 = vadd.f32 %v6629_v19, %v6628_v52  ;;  %v6453_v52 = vsel %vm6261_vm1, %v14072_v11, %v6421_v36  ;;  %v6232_v41 = vpop.f32.mrf.mxu1  ;;  %v6512_v11 = vld [vmem:[#allocation2 + $0x460] sm:$0xf]  ;;  %vm6256_vm13 = vcmp.gt.f32.partialorder %v14119_v49, 0.0 }
 0xb6a   :  { %v9824_v32 = vpop.eup %9823  ;;  %v6574_v28 = vmul.f32 %v6542_v37, %v6478_v48  ;;  %v6339_v31 = vmul.f32 1.442695, %v6288_v42  ;;  %v6140_v5 = vpop.f32.mrf.mxu3  ;;  %v14155_v37 = vsel %vm6260_vm9, %v14067_v50, %v6420_v23  ;;  %v6485_v48 = vmul.f32 1.050701, %v6453_v52 }
 0xb6b   :  { %v9826_v47 = vpop.eup %9825  ;;  %v9079_v1 = vadd.f32 -1.0, %v9824_v32  ;;  %v6141_v17 = vadd.f32 %v6140_v5, %v5896_v46  ;;  %v6674_v29 = vadd.f32 -0.06689453, %v6630_v14  ;;  %vm6265_vm5 = vcmp.gt.f32.partialorder %v14116_v27, 0.0 }
 0xb6c   :  { %v6632_v4 = vsel %vm585_vm2, %v6574_v28, 0.0  ;;  %9831 = vpow2.f32 %v6339_v31  ;;  %v9086_v16 = vadd.f32 -1.0, %v9826_v47  ;;  %v9828_v43 = vpop.eup %9827  ;;  %v6544_v28 = vunpack.c.l.bf16 %v6512_v11 }
 0xb6d   :  { %v6633_v9 = vadd.f32 %v6632_v4, %v6631_v21  ;;  %v6415_v20 = vmul.f32 1.6732632, %v9079_v1  ;;  %v6207_v59 = vpop.f32.mrf.mxu0  ;;  %v14132_v15 = vadd.f32 %v6229_v10, %v6141_v17  ;;  %9833 = vpow2.f32 %v6357_v61  ;;  %v9830_v25 = vpop.eup %9829  ;;  %v5866_v10 = vld [vmem:[#allocation2 + $0x3c0] sm:$0xf] }
 0xb6e   :  { %v14136_v22 = vadd.f32 %v6207_v59, %v14091_v13  ;;  %v14145_v13 = vmul.f32 1.050701, %v6451_v7  ;;  %v6422_v46 = vmul.f32 1.6732632, %v9086_v16  ;;  %v9088_v23 = vadd.f32 -1.0, %v9830_v25 }
 0xb6f   :  { %v6447_v0 = vsel %vm6255_vm11, %v14098_v3, %v6415_v20  ;;  %v6298_v8 = vmin.f32 %v14132_v15, 0.0  ;;  %v14150_v3 = vsel %vm6681_vm10, %v6674_v29, %v14109_v57  ;;  %v9087_v57 = vadd.f32 -1.0, %v9828_v43  ;;  %v6520_v25 = vld [vmem:[#allocation2 + $0x4a0] sm:$0xf] }
 0xb70   :  { %v6479_v26 = vmul.f32 1.050701, %v6447_v0  ;;  %v6289_v45 = vmin.f32 %v14136_v22, 0.0  ;;  %v6454_v5 = vsel %vm6262_vm12, %v14083_v30, %v6422_v46  ;;  %v5898_v61 = vunpack.c.l.bf16 %v5866_v10 }
 0xb71   :  { %v6359_v34 = vmul.f32 1.442695, %v6298_v8  ;;  %v6423_v17 = vmul.f32 1.6732632, %v9087_v57  ;;  %v6486_v30 = vmul.f32 1.050701, %v6454_v5  ;;  %v6552_v11 = vunpack.c.l.bf16 %v6520_v25 }
 0xb72   :  { %v9832_v63 = vpop.eup %9831  ;;  %v6575_v51 = vmul.f32 %v6543_v18, %v6479_v26  ;;  %v6341_v33 = vmul.f32 1.442695, %v6289_v45  ;;  %v6143_v12 = vpop.f32.mrf.mxu3  ;;  %v6513_v8 = vld [vmem:[#allocation2 + $0x468] sm:$0xf]  ;;  %vm6257_vm4 = vcmp.gt.f32.partialorder %v14136_v22, 0.0  ;;  %vm6266_vm6 = vcmp.gt.f32.partialorder %v14132_v15, 0.0 }
 0xb73   :  { %v9080_v39 = vadd.f32 -1.0, %v9832_v63  ;;  %9835 = vpow2.f32 %v6359_v34  ;;  %v6144_v55 = vadd.f32 %v6143_v12, %v5897_v6  ;;  %v9834_v7 = vpop.eup %9833  ;;  %v6455_v43 = vsel %vm6263_vm14, %v14096_v60, %v6423_v17  ;;  %v6234_v26 = vpop.f32.mrf.mxu1 }
 0xb74   :  { %v6634_v42 = vsel %vm585_vm2, %v6575_v51, 0.0  ;;  %9837 = vpow2.f32 %v6341_v33  ;;  %v9089_v36 = vadd.f32 -1.0, %v9834_v7  ;;  %v6582_v51 = vmul.f32 %v6550_v58, %v6486_v30  ;;  %v6521_v33 = vld [vmem:[#allocation2 + $0x4a8] sm:$0xf] }
 0xb75   :  { %v6635_v50 = vadd.f32 %v6634_v42, %v6633_v9  ;;  %v6416_v19 = vmul.f32 1.6732632, %v9080_v39  ;;  %v6209_v32 = vpop.f32.mrf.mxu0  ;;  %v14159_v18 = vadd.f32 %v6232_v41, %v6144_v55  ;;  %v6581_v9 = vmul.f32 %v6549_v2, %v6485_v48  ;;  %v6522_v42 = vld [vmem:[#allocation2 + $0x4b0] sm:$0xf] }
 0xb76   :  { %v14164_v31 = vadd.f32 %v6209_v32, %v14105_v40  ;;  %v6424_v40 = vmul.f32 1.6732632, %v9088_v23  ;;  %v6425_v2 = vmul.f32 1.6732632, %v9089_v36  ;;  %v6545_v12 = vunpack.c.l.bf16 %v6513_v8 }
 0xb77   :  { %v6448_v47 = vsel %vm6256_vm13, %v14119_v49, %v6416_v19  ;;  %v6299_v1 = vmin.f32 %v14159_v18, 0.0  ;;  %v6487_v41 = vmul.f32 1.050701, %v6455_v43  ;;  %v6652_v35 = vsel %vm585_vm2, %v6581_v9, 0.0  ;;  %v6514_v19 = vld [vmem:[#allocation2 + $0x470] sm:$0xf] }
 0xb78   :  { %v6480_v54 = vmul.f32 1.050701, %v6448_v47  ;;  %v6290_v21 = vmin.f32 %v14164_v31, 0.0  ;;  %v6456_v45 = vsel %vm6264_vm15, %v14102_v38, %v6424_v40  ;;  %v6457_v55 = vsel %vm6265_vm5, %v14116_v27, %v6425_v2  ;;  %v6523_v47 = vld [vmem:[#allocation2 + $0x4b8] sm:$0xf] }
 0xb79   :  { %v9836_v4 = vpop.eup %9835  ;;  %v6361_v20 = vmul.f32 1.442695, %v6299_v1  ;;  %v6488_v39 = vmul.f32 1.050701, %v6456_v45  ;;  %v6553_v58 = vunpack.c.l.bf16 %v6521_v33  ;;  %v6583_v27 = vmul.f32 %v6551_v44, %v6487_v41  ;;  %v6516_v1 = vld [vmem:[#allocation2 + $0x480] sm:$0xf] }
 0xb7a   :  { %v9838_v59 = vpop.eup %9837  ;;  %v6576_v14 = vmul.f32 %v6544_v28, %v6480_v54  ;;  %v9090_v49 = vadd.f32 -1.0, %v9836_v4  ;;  %v6343_v16 = vmul.f32 1.442695, %v6290_v21  ;;  %v6145_v6 = vpop.f32.mrf.mxu3  ;;  %v6489_v28 = vmul.f32 1.050701, %v6457_v55 }
 0xb7b   :  { %v9081_v0 = vadd.f32 -1.0, %v9838_v59  ;;  %9839 = vpow2.f32 %v6361_v20  ;;  %v6146_v29 = vadd.f32 %v6145_v6, %v5898_v61  ;;  %v6584_v61 = vmul.f32 %v6552_v11, %v6488_v39 }
 0xb7c   :  { %v6636_v62 = vsel %vm585_vm2, %v6576_v14, 0.0  ;;  %9841 = vpow2.f32 %v6343_v16  ;;  %v6426_v60 = vmul.f32 1.6732632, %v9090_v49  ;;  %v6554_v54 = vunpack.c.l.bf16 %v6522_v42 }
 0xb7d   :  { %v6637_v52 = vadd.f32 %v6636_v62, %v6635_v50  ;;  %v6417_v34 = vmul.f32 1.6732632, %v9081_v0  ;;  %v14177_v63 = vadd.f32 %v6234_v26, %v6146_v29  ;;  %v6653_v50 = vsel %vm585_vm2, %v6582_v51, 0.0  ;;  %v6524_v26 = vld [vmem:[#allocation2 + $0x4c0] sm:$0xf] }
 0xb7e   :  { %vm6267_vm7 = vcmp.gt.f32.partialorder %v14159_v18, 0.0  ;;  %vm6258_vm8 = vcmp.gt.f32.partialorder %v14164_v31, 0.0  ;;  %v6555_v44 = vunpack.c.l.bf16 %v6523_v47  ;;  %v6655_v40 = vsel %vm585_vm2, %v6583_v27, 0.0 }
 0xb7f   :  { %v6449_v46 = vsel %vm6257_vm4, %v14136_v22, %v6417_v34  ;;  %v6300_v38 = vmin.f32 %v14177_v63, 0.0  ;;  %v6458_v22 = vsel %vm6266_vm6, %v14132_v15, %v6426_v60  ;;  %v6546_v15 = vunpack.c.l.bf16 %v6514_v19 }
 0xb80   :  { %v6481_v48 = vmul.f32 1.050701, %v6449_v46  ;;  %v6490_v4 = vmul.f32 1.050701, %v6458_v22  ;;  %v6585_v20 = vmul.f32 %v6553_v58, %v6489_v28  ;;  %v6484_v14 = vmul.f32 1.050701, %v14155_v37 }
 0xb81   :  { %v9840_v57 = vpop.eup %9839  ;;  %v6363_v10 = vmul.f32 1.442695, %v6300_v38  ;;  %v6548_v49 = vunpack.c.l.bf16 %v6516_v1  ;;  %v6654_v16 = vadd.f32 %v6653_v50, %v6652_v35  ;;  %v6657_v8 = vsel %vm585_vm2, %v6584_v61, 0.0  ;;  %v6690_v61 = vpop.permute.xlu0 %6689 }
 0xb82   :  { %v9842_v7 = vpop.eup %9841  ;;  %v6577_v23 = vmul.f32 %v6545_v12, %v6481_v48  ;;  %v9091_v32 = vadd.f32 -1.0, %v9840_v57  ;;  %v6586_v29 = vmul.f32 %v6554_v54, %v6490_v4  ;;  %vm6268_vm0 = vcmp.gt.f32.partialorder %v14177_v63, 0.0 }
 0xb83   :  { %v9082_v5 = vadd.f32 -1.0, %v9842_v7  ;;  %9843 = vpow2.f32 %v6363_v10  ;;  %v6656_v43 = vadd.f32 %v6655_v40, %v6654_v16  ;;  %v6580_v25 = vmul.f32 %v6548_v49, %v6484_v14 }
 0xb84   :  { %v6638_v17 = vsel %vm585_vm2, %v6577_v23, 0.0  ;;  %v6427_v36 = vmul.f32 1.6732632, %v9091_v32  ;;  %v6661_v51 = vsel %vm585_vm2, %v6586_v29, 0.0  ;;  %v6556_v12 = vunpack.c.l.bf16 %v6524_v26 }
 0xb85   :  { %v6639_v21 = vadd.f32 %v6638_v17, %v6637_v52  ;;  %v6418_v9 = vmul.f32 1.6732632, %v9082_v5  ;;  %v6658_v37 = vadd.f32 %v6657_v8, %v6656_v43  ;;  %v6644_v38 = vsel %vm585_vm2, %v6580_v25, 0.0 }
 0xb86   :  { %v6459_v24 = vsel %vm6267_vm7, %v14159_v18, %v6427_v36  ;;  %v6579_v18 = vmul.f32 %v6547_v56, %v14145_v13  ;;  %vm6683_vm3 = vcmask 1042434   ;;  %vm6685_vm9 = vcmask 1043459  }
 0xb87   :  { %v6450_v59 = vsel %vm6258_vm8, %v14164_v31, %v6418_v9  ;;  %v6491_v30 = vmul.f32 1.050701, %v6459_v24  ;;  %v6659_v31 = vsel %vm585_vm2, %v6585_v20, 0.0  ;;  %vm6693_vm10 = vcmask 883712  }
 0xb88   :  { %v6482_v6 = vmul.f32 1.050701, %v6450_v59  ;;  %v6642_v53 = vsel %vm585_vm2, %v6579_v18, 0.0  ;;  %v6660_v56 = vadd.f32 %v6659_v31, %v6658_v37 }
 0xb89   :  { %v9844_v0 = vpop.eup %9843  ;;  %v6587_v45 = vmul.f32 %v6555_v44, %v6491_v30 }
 0xb8a   :  { %v6578_v62 = vmul.f32 %v6546_v15, %v6482_v6  ;;  %v9092_v2 = vadd.f32 -1.0, %v9844_v0  ;;  %v6662_v39 = vadd.f32 %v6661_v51, %v6660_v56 }
 0xb8b   :  { %v6663_v41 = vsel %vm585_vm2, %v6587_v45, 0.0 }
 0xb8c   :  { %v6640_v52 = vsel %vm585_vm2, %v6578_v62, 0.0  ;;  %v6428_v34 = vmul.f32 1.6732632, %v9092_v2  ;;  %v6664_v48 = vadd.f32 %v6663_v41, %v6662_v39 }
 0xb8d   :  { %v6641_v33 = vadd.f32 %v6640_v52, %v6639_v21 }
 0xb8e   :  { %v6460_v13 = vsel %vm6268_vm0, %v14177_v63, %v6428_v34 }
 0xb8f   :  { %v6643_v60 = vadd.f32 %v6642_v53, %v6641_v33  ;;  %v6492_v46 = vmul.f32 1.050701, %v6460_v13 }
 0xb91   :  { %v6645_v11 = vadd.f32 %v6644_v38, %v6643_v60  ;;  %v6588_v55 = vmul.f32 %v6556_v12, %v6492_v46 }
 0xb93   :  { %v6665_v57 = vsel %vm585_vm2, %v6588_v55, 0.0  ;;  %v6646_v35 = vrot.slane %v6645_v11, 4 }
 0xb94   :  { %v6666_v58 = vadd.f32 %v6665_v57, %v6664_v48 }
 0xb95   :  { %v6647_v42 = vadd.f32 %v6646_v35, %v6645_v11 }
 0xb96   :  { %v6667_v10 = vrot.slane %v6666_v58, 4 }
 0xb97   :  { %v6648_v7 = vrot.slane %v6647_v42, 2 }
 0xb98   :  { %v6668_v50 = vadd.f32 %v6667_v10, %v6666_v58 }
 0xb99   :  { %v6649_v23 = vadd.f32 %v6648_v7, %v6647_v42 }
 0xb9a   :  { %v6669_v63 = vrot.slane %v6668_v50, 2 }
 0xb9b   :  { %v6650_v22 = vrot.slane %v6649_v23, 1 }
 0xb9c   :  { %v6670_v19 = vadd.f32 %v6669_v63, %v6668_v50 }
 0xb9d   :  { %v6651_v32 = vadd.f32 %v6650_v22, %v6649_v23 }
 0xb9e   :  { %v6671_v27 = vrot.slane %v6670_v19, 1 }
 0xb9f   :  { %v6675_v28 = vadd.f32 -0.06689453, %v6651_v32 }
 0xba0   :  { %v6672_v5 = vadd.f32 %v6671_v27, %v6670_v19 }
 0xba1   :  { %v6684_v47 = vsel %vm6683_vm3, %v6675_v28, %v14150_v3 }
 0xba2   :  { %v6676_v1 = vadd.f32 -0.06689453, %v6672_v5 }
 0xba4   :  { %v6686_v17 = vsel %vm6685_vm9, %v6676_v1, %v6684_v47 }
 0xba5   :  { %v6692_v54 = vsel %vm585_vm2, %v6686_v17, %v6690_v61 }
 0xba6   :  { %v6694_v36 = vsel %vm6693_vm10, %v6692_v54, 0.0 }
 0xba7   :  { %6695 = vst [vmem:[#allocation4] sm:$0xf] %v6694_v36 }
 0xba8   :  { %6706 = dma.vmem_to_hbm [thread:$0]  %s6702_s8, 64, %s6704_s11, [#allocation5]  }
 0xba9   :  { %9871 = dma.done.wait [#allocation5], 64  }
 0xbaa   :  { %9872 = vsyncadd [#allocation5], 4294967232 }
 0xbab   :  { %6711 = vsyncpa [#allocation5], 1 }
 0xbac   :  { %6712 = vsyncmov [#allocation3] }
 0xbaf   :  { %s6713_s0 = vpop.sfrf %6712 }
 0xbb0   :  { %p9093_p0 = scmp.ne.s32.totalorder %s6713_s0, 0 }
 0xbb2   :  { %6717 = shalt.err (%p9093_p0)  }

</bundles_post_ra>
